<compile_context>
chip_gen: v7x
topology: tpu7x:2x2x1
jax: 0.10.0
libtpu: 0.0.40
codegen_flags: <defaults>
</compile_context>

<pallas_src>
import functools

import jax
import jax.numpy as jnp
from jax.experimental import pallas as pl
from jax.experimental.pallas import tpu as pltpu


def _round_up(x, m):
    return (x + m - 1) // m * m


# ----------------------------------------------------------------------------
# Kernel 1: fused conv1 + ReLU + conv2 + ReLU + 2x2 maxpool  (one sample/step)
# ----------------------------------------------------------------------------
def _conv_stack_kernel(x_ref, w1_ref, b1_ref, w2_ref, b2_ref, o_ref,
                       act1_ref, act2_ref, *, H, W, WW, Cin):
    f32 = jnp.float32
    H1, H2 = H - 2, H - 4
    Hp, WWq = H2 // 2, WW // 2
    Wp = (W - 4) // 2                 # number of *valid* pooled columns
    M1 = H1 * WW                      # conv1 "wide" rows
    M2 = H2 * WW                      # conv2 "wide" rows
    C1 = w1_ref.shape[1]              # 32
    C2 = w2_ref.shape[1]              # 128 (zero-padded -> lane-dense)

    # ---- conv1 + bias + ReLU: 9*Cin VPU broadcast-MACs (K=Cin is too small
    # for the MXU to be useful; this keeps it on the VPU).
    acc1 = jnp.zeros((M1, C1), f32)
    for k in range(9):
        dy, dx = divmod(k, 3)
        off = dy * WW + dx
        for c in range(Cin):
            col = x_ref[pl.ds(off, M1), c:c + 1]                      # (M1, 1)
            acc1 = acc1 + col * w1_ref[k * Cin + c:k * Cin + c + 1, :]
    act1_ref[0:M1, :] = jnp.maximum(acc1 + b1_ref[...], 0.0)
    # conv2's shifted slices read a couple of rows past M1 -> keep them zero.
    act1_ref[M1:, :] = jnp.zeros((act1_ref.shape[0] - M1, C1), f32)

    # ---- conv2 + bias + ReLU: 9 MXU dots (M2, C1) @ (C1, C2) accumulated in f32
    acc2 = jnp.zeros((M2, C2), f32)
    for k in range(9):
        dy, dx = divmod(k, 3)
        off = dy * WW + dx
        a = act1_ref[pl.ds(off, M2), :]                               # (M2, C1)
        acc2 = acc2 + jnp.dot(a, w2_ref[k * C1:(k + 1) * C1, :],
                              preferred_element_type=f32)
    act2_ref[...] = jnp.maximum(acc2 + b2_ref[...], 0.0)

    # ---- 2x2 maxpool on the wide layout: pure VPU maxes, no XLU reduction.
    # x-direction: pair adjacent rows (same y, x even/odd) via strided loads.
    xe = act2_ref[pl.ds(0, M2 // 2, stride=2), :]                     # even x
    xo = act2_ref[pl.ds(1, M2 // 2, stride=2), :]                     # odd  x
    xm = jnp.maximum(xe, xo)                                          # (H2*WWq, C2)
    # y-direction: layout-preserving reshape (split factor 2*WWq % 8 == 0),
    # then max of the two tile-aligned halves.
    v = xm.reshape(Hp, 2 * WWq, C2)
    pooled = jnp.maximum(v[:, :WWq, :], v[:, WWq:, :])                # (Hp, WWq, C2)

    # zero the padded-width garbage columns so the HBM output is clean
    xi = jax.lax.broadcasted_iota(jnp.int32, (Hp, WWq, C2), 1)
    o_ref[...] = jnp.where(xi < Wp, pooled, 0.0)


def _conv_stack(x_flat, w1m, b1m, w2m, b2m, *, N, H, W, WW, Cin):
    H2 = H - 4
    Hp, WWq = H2 // 2, WW // 2
    RPAD = x_flat.shape[1]
    C1 = w1m.shape[1]
    C2 = w2m.shape[1]
    a1_rows = _round_up((H - 2) * WW + 2, 8)

    flops = 2 * N * ((H - 2) * WW * 9 * Cin * C1 + H2 * WW * 9 * C1 * C2)
    bytes_accessed = 4 * (x_flat.size + w1m.size + b1m.size + w2m.size
                          + b2m.size + N * Hp * WWq * C2)

    kernel = functools.partial(_conv_stack_kernel, H=H, W=W, WW=WW, Cin=Cin)
    return pl.pallas_call(
        kernel,
        out_shape=jax.ShapeDtypeStruct((N, Hp, WWq, C2), jnp.float32),
        grid=(N,),
        in_specs=[
            pl.BlockSpec((None, RPAD, Cin), lambda b: (b, 0, 0)),     # x (per sample)
            pl.BlockSpec((9 * Cin, C1), lambda b: (0, 0)),            # conv1 weight
            pl.BlockSpec((1, C1), lambda b: (0, 0)),                  # conv1 bias
            pl.BlockSpec((9 * C1, C2), lambda b: (0, 0)),             # conv2 weight (padded)
            pl.BlockSpec((1, C2), lambda b: (0, 0)),                  # conv2 bias (padded)
        ],
        out_specs=pl.BlockSpec((None, Hp, WWq, C2), lambda b: (b, 0, 0, 0)),
        scratch_shapes=[
            pltpu.VMEM((a1_rows, C1), jnp.float32),                   # conv1 activation
            pltpu.VMEM((H2 * WW, C2), jnp.float32),                   # conv2 activation
        ],
        compiler_params=pltpu.CompilerParams(
            dimension_semantics=("parallel",)),
        cost_estimate=pl.CostEstimate(flops=flops, transcendentals=0,
                                      bytes_accessed=bytes_accessed),
    )(x_flat, w1m, b1m, w2m, b2m)


# ----------------------------------------------------------------------------
# Kernel 2: fused linear1 + ReLU + linear2 + square (whole batch)
# ----------------------------------------------------------------------------
# NOTE: kept as a second (batched) pallas_call rather than fused into kernel 1
# because folding the spatial axes into the GEMM K-dimension inside one kernel
# would require a cross-lane relayout of the pooled tile; the only HBM traffic
# between the two calls is the tiny pooled tensor.
def _head_kernel(x_ref, w1_ref, b1_ref, w2_ref, b2_ref, o_ref):
    h = jnp.dot(x_ref[...], w1_ref[...], preferred_element_type=jnp.float32)
    h = jnp.maximum(h + b1_ref[...], 0.0)
    y = jnp.dot(h, w2_ref[...], preferred_element_type=jnp.float32) + b2_ref[...]
    o_ref[...] = y * y


_VMEM = pl.BlockSpec(memory_space=pltpu.MemorySpace.VMEM)


def _head(flat, wl1h, b1h, wl2h, b2h):
    n, f = flat.shape
    d1, d2 = wl1h.shape[1], wl2h.shape[1]
    flops = 2 * n * (f * d1 + d1 * d2)
    bytes_accessed = 4 * (flat.size + wl1h.size + b1h.size + wl2h.size
                          + b2h.size + n * d2)
    return pl.pallas_call(
        _head_kernel,
        out_shape=jax.ShapeDtypeStruct((n, d2), jnp.float32),
        in_specs=[_VMEM] * 5,
        out_specs=_VMEM,
        cost_estimate=pl.CostEstimate(flops=flops, transcendentals=0,
                                      bytes_accessed=bytes_accessed),
    )(flat, wl1h, b1h, wl2h, b2h)


# ----------------------------------------------------------------------------
# Forward pass (glue is pure layout / trace-time weight preprocessing)
# ----------------------------------------------------------------------------
def simple_dcnn_forward(x_nchw, params):
    """Forward matching torch simpleDCNN (weights supplied in torch layout)."""
    w1, b1, w2, b2, wl1, bl1, wl2, bl2 = params
    N, Cin, H, W = x_nchw.shape
    assert H % 2 == 0 and W % 2 == 0 and H >= 6 and W >= 6, (
        "fused kernel expects even spatial dims >= 6")

    C1 = w1.shape[0]                  # 32
    C2 = w2.shape[0]                  # 64
    C2P = 128                         # lane-dense padded conv2/pool channels
    OUTP = 128                        # lane-dense padded class dim
    n_cls = wl2.shape[0]              # 10
    Hp, Wp = (H - 4) // 2, (W - 4) // 2
    WW = _round_up(W, 16)             # wide width: even and WW//2 % 8 == 0
    WWq = WW // 2
    RPAD = _round_up(H * WW + 2, 8)   # flat rows incl. shifted-slice overrun

    # ---- weight preprocessing (folded into constants at trace time) --------
    w1m = jnp.transpose(w1, (2, 3, 1, 0)).reshape(9 * Cin, C1)
    w2m = jnp.transpose(w2, (2, 3, 1, 0)).reshape(9 * C1, C2)
    w2m = jnp.pad(w2m, ((0, 0), (0, C2P - C2)))
    b1m = b1.reshape(1, C1)
    b2m = jnp.pad(b2.reshape(1, C2), ((0, 0), (0, C2P - C2)))

    # linear1: fold torch NCHW flatten(1) order + width/channel padding in.
    wl1r = wl1.T.reshape(C2, Hp, Wp, wl1.shape[0])       # [c, yp, xp, out]
    wl1r = jnp.transpose(wl1r, (1, 2, 0, 3))             # [yp, xp, c, out]
    wl1r = jnp.pad(wl1r, ((0, 0), (0, WWq - Wp), (0, C2P - C2), (0, 0)))
    wl1h = wl1r.reshape(Hp * WWq * C2P, wl1.shape[0])
    b1h = bl1.reshape(1, -1)
    wl2h = jnp.pad(wl2.T, ((0, 0), (0, OUTP - n_cls)))
    b2h = jnp.pad(bl2.reshape(1, -1), ((0, 0), (0, OUTP - n_cls)))

    # ---- activations: NCHW -> flat "wide" rows (pure layout, no compute) ---
    x = jnp.transpose(x_nchw, (0, 2, 3, 1)).astype(jnp.float32)     # NHWC
    x = jnp.pad(x, ((0, 0), (0, 0), (0, WW - W), (0, 0)))           # width pad
    x = x.reshape(N, H * WW, Cin)
    x = jnp.pad(x, ((0, 0), (0, RPAD - H * WW), (0, 0)))            # row pad

    pooled = _conv_stack(x, w1m, b1m, w2m, b2m, N=N, H=H, W=W, WW=WW, Cin=Cin)
    flat = pooled.reshape(N, Hp * WWq * C2P)                        # free reshape
    out = _head(flat, wl1h, b1h, wl2h, b2h)
    return out[:, :n_cls]


# ----------------------------------------------------------------------------
# Pure-JAX reference (sanity check)
# ----------------------------------------------------------------------------
def reference_forward(x_nchw, params):
    w1, b1, w2, b2, wl1, bl1, wl2, bl2 = params
    dn = ('NCHW', 'OIHW', 'NCHW')
    y = jax.lax.conv_general_dilated(x_nchw, w1, (1, 1), 'VALID', dimension_numbers=dn)
    y = jax.nn.relu(y + b1[None, :, None, None])
    y = jax.lax.conv_general_dilated(y, w2, (1, 1), 'VALID', dimension_numbers=dn)
    y = jax.nn.relu(y + b2[None, :, None, None])
    y = jax.lax.reduce_window(y, -jnp.inf, jax.lax.max, (1, 1, 2, 2), (1, 1, 2, 2), 'VALID')
    y = y.reshape(y.shape[0], -1)
    y = jax.nn.relu(y @ wl1.T + bl1)
    y = y @ wl2.T + bl2
    return y * y


# ----------------------------------------------------------------------------
# Deterministic parameter init + run
# ----------------------------------------------------------------------------
def init_params(key, im_channels, im_size):
    d = (im_size - 4) // 2
    feat = 64 * d * d
    ks = jax.random.split(key, 8)
    scale = 0.1
    w1 = scale * jax.random.normal(ks[0], (32, im_channels, 3, 3), jnp.float32)
    b1 = scale * jax.random.normal(ks[1], (32,), jnp.float32)
    w2 = scale * jax.random.normal(ks[2], (64, 32, 3, 3), jnp.float32)
    b2 = scale * jax.random.normal(ks[3], (64,), jnp.float32)
    wl1 = scale * jax.random.normal(ks[4], (128, feat), jnp.float32)
    bl1 = scale * jax.random.normal(ks[5], (128,), jnp.float32)
    wl2 = scale * jax.random.normal(ks[6], (10, 128), jnp.float32)
    bl2 = scale * jax.random.normal(ks[7], (10,), jnp.float32)
    return (w1, b1, w2, b2, wl1, bl1, wl2, bl2)


if __name__ == "__main__":
    batch, im_channels, im_size = 2, 1, 16

    root = jax.random.PRNGKey(0)
    k_x, k_p = jax.random.split(root)
    x = jax.random.normal(k_x, (batch, im_channels, im_size, im_size), jnp.float32)
    params = init_params(k_p, im_channels, im_size)

    fwd = jax.jit(simple_dcnn_forward)
    out = jax.block_until_ready(fwd(x, params))
    assert out.shape == (batch, 10), out.shape

    ref = jax.block_until_ready(reference_forward(x, params))
    err = jnp.max(jnp.abs(out - ref))
    assert jnp.allclose(out, ref, rtol=2e-3, atol=2e-3), f"max abs err {err}"

    print("KERNEL_OK")
</pallas_src>

<mosaic_0001>
module attributes {stable_mosaic.version = 11 : i64} {
  func.func @_conv_stack_kernel(%arg0: i32, %arg1: memref<1x264x1xf32, #tpu.memory_space<vmem>>, %arg2: memref<9x32xf32, #tpu.memory_space<vmem>>, %arg3: memref<1x32xf32, #tpu.memory_space<vmem>>, %arg4: memref<288x128xf32, #tpu.memory_space<vmem>>, %arg5: memref<1x128xf32, #tpu.memory_space<vmem>>, %arg6: memref<1x6x8x128xf32, #tpu.memory_space<vmem>>, %arg7: memref<232x32xf32, #tpu.memory_space<vmem>>, %arg8: memref<192x128xf32, #tpu.memory_space<vmem>>) attributes {dimension_semantics = [#tpu.dimension_semantics<parallel>], iteration_bounds = array<i64: 2>, scalar_prefetch = 0 : i64, scratch_operands = 2 : i64, tpu.core_type = #tpu.core_type<tc>, window_params = [{transform_indices = @transform_0, window_bounds = array<i64: 1, 264, 1>}, {pipeline_mode = #tpu.pipeline_mode<synchronous>, transform_indices = @transform_1, window_bounds = array<i64: 9, 32>}, {pipeline_mode = #tpu.pipeline_mode<synchronous>, transform_indices = @transform_2, window_bounds = array<i64: 1, 32>}, {pipeline_mode = #tpu.pipeline_mode<synchronous>, transform_indices = @transform_3, window_bounds = array<i64: 288, 128>}, {pipeline_mode = #tpu.pipeline_mode<synchronous>, transform_indices = @transform_4, window_bounds = array<i64: 1, 128>}, {transform_indices = @transform_5, window_bounds = array<i64: 1, 6, 8, 128>}]} {
    %cst = arith.constant 0.000000e+00 : f32
    %0 = vector.broadcast %cst : f32 to vector<224x32xf32>
    %c0 = arith.constant 0 : index
    %c0_0 = arith.constant 0 : index
    %c0_1 = arith.constant 0 : index
    %1 = vector.load %arg1[%c0, %c0_0, %c0_1] : memref<1x264x1xf32, #tpu.memory_space<vmem>>, vector<1x224x1xf32>
    %2 = vector.shape_cast %1 : vector<1x224x1xf32> to vector<224x1xf32>
    %c0_2 = arith.constant 0 : index
    %c0_3 = arith.constant 0 : index
    %3 = vector.load %arg2[%c0_2, %c0_3] : memref<9x32xf32, #tpu.memory_space<vmem>>, vector<1x32xf32>
    %4 = vector.broadcast %2 : vector<224x1xf32> to vector<224x32xf32>
    %5 = vector.broadcast %3 : vector<1x32xf32> to vector<224x32xf32>
    %6 = arith.mulf %4, %5 : vector<224x32xf32>
    %7 = arith.addf %0, %6 : vector<224x32xf32>
    %c0_4 = arith.constant 0 : index
    %c1 = arith.constant 1 : index
    %c0_5 = arith.constant 0 : index
    %8 = vector.load %arg1[%c0_4, %c1, %c0_5] : memref<1x264x1xf32, #tpu.memory_space<vmem>>, vector<1x224x1xf32>
    %9 = vector.shape_cast %8 : vector<1x224x1xf32> to vector<224x1xf32>
    %c1_6 = arith.constant 1 : index
    %c0_7 = arith.constant 0 : index
    %10 = vector.load %arg2[%c1_6, %c0_7] : memref<9x32xf32, #tpu.memory_space<vmem>>, vector<1x32xf32>
    %11 = vector.broadcast %9 : vector<224x1xf32> to vector<224x32xf32>
    %12 = vector.broadcast %10 : vector<1x32xf32> to vector<224x32xf32>
    %13 = arith.mulf %11, %12 : vector<224x32xf32>
    %14 = arith.addf %7, %13 : vector<224x32xf32>
    %c0_8 = arith.constant 0 : index
    %c2 = arith.constant 2 : index
    %c0_9 = arith.constant 0 : index
    %15 = vector.load %arg1[%c0_8, %c2, %c0_9] : memref<1x264x1xf32, #tpu.memory_space<vmem>>, vector<1x224x1xf32>
    %16 = vector.shape_cast %15 : vector<1x224x1xf32> to vector<224x1xf32>
    %c2_10 = arith.constant 2 : index
    %c0_11 = arith.constant 0 : index
    %17 = vector.load %arg2[%c2_10, %c0_11] : memref<9x32xf32, #tpu.memory_space<vmem>>, vector<1x32xf32>
    %18 = vector.broadcast %16 : vector<224x1xf32> to vector<224x32xf32>
    %19 = vector.broadcast %17 : vector<1x32xf32> to vector<224x32xf32>
    %20 = arith.mulf %18, %19 : vector<224x32xf32>
    %21 = arith.addf %14, %20 : vector<224x32xf32>
    %c0_12 = arith.constant 0 : index
    %c16 = arith.constant 16 : index
    %c0_13 = arith.constant 0 : index
    %22 = vector.load %arg1[%c0_12, %c16, %c0_13] : memref<1x264x1xf32, #tpu.memory_space<vmem>>, vector<1x224x1xf32>
    %23 = vector.shape_cast %22 : vector<1x224x1xf32> to vector<224x1xf32>
    %c3 = arith.constant 3 : index
    %c0_14 = arith.constant 0 : index
    %24 = vector.load %arg2[%c3, %c0_14] : memref<9x32xf32, #tpu.memory_space<vmem>>, vector<1x32xf32>
    %25 = vector.broadcast %23 : vector<224x1xf32> to vector<224x32xf32>
    %26 = vector.broadcast %24 : vector<1x32xf32> to vector<224x32xf32>
    %27 = arith.mulf %25, %26 : vector<224x32xf32>
    %28 = arith.addf %21, %27 : vector<224x32xf32>
    %c0_15 = arith.constant 0 : index
    %c17 = arith.constant 17 : index
    %c0_16 = arith.constant 0 : index
    %29 = vector.load %arg1[%c0_15, %c17, %c0_16] : memref<1x264x1xf32, #tpu.memory_space<vmem>>, vector<1x224x1xf32>
    %30 = vector.shape_cast %29 : vector<1x224x1xf32> to vector<224x1xf32>
    %c4 = arith.constant 4 : index
    %c0_17 = arith.constant 0 : index
    %31 = vector.load %arg2[%c4, %c0_17] : memref<9x32xf32, #tpu.memory_space<vmem>>, vector<1x32xf32>
    %32 = vector.broadcast %30 : vector<224x1xf32> to vector<224x32xf32>
    %33 = vector.broadcast %31 : vector<1x32xf32> to vector<224x32xf32>
    %34 = arith.mulf %32, %33 : vector<224x32xf32>
    %35 = arith.addf %28, %34 : vector<224x32xf32>
    %c0_18 = arith.constant 0 : index
    %c18 = arith.constant 18 : index
    %c0_19 = arith.constant 0 : index
    %36 = vector.load %arg1[%c0_18, %c18, %c0_19] : memref<1x264x1xf32, #tpu.memory_space<vmem>>, vector<1x224x1xf32>
    %37 = vector.shape_cast %36 : vector<1x224x1xf32> to vector<224x1xf32>
    %c5 = arith.constant 5 : index
    %c0_20 = arith.constant 0 : index
    %38 = vector.load %arg2[%c5, %c0_20] : memref<9x32xf32, #tpu.memory_space<vmem>>, vector<1x32xf32>
    %39 = vector.broadcast %37 : vector<224x1xf32> to vector<224x32xf32>
    %40 = vector.broadcast %38 : vector<1x32xf32> to vector<224x32xf32>
    %41 = arith.mulf %39, %40 : vector<224x32xf32>
    %42 = arith.addf %35, %41 : vector<224x32xf32>
    %c0_21 = arith.constant 0 : index
    %c32 = arith.constant 32 : index
    %c0_22 = arith.constant 0 : index
    %43 = vector.load %arg1[%c0_21, %c32, %c0_22] : memref<1x264x1xf32, #tpu.memory_space<vmem>>, vector<1x224x1xf32>
    %44 = vector.shape_cast %43 : vector<1x224x1xf32> to vector<224x1xf32>
    %c6 = arith.constant 6 : index
    %c0_23 = arith.constant 0 : index
    %45 = vector.load %arg2[%c6, %c0_23] : memref<9x32xf32, #tpu.memory_space<vmem>>, vector<1x32xf32>
    %46 = vector.broadcast %44 : vector<224x1xf32> to vector<224x32xf32>
    %47 = vector.broadcast %45 : vector<1x32xf32> to vector<224x32xf32>
    %48 = arith.mulf %46, %47 : vector<224x32xf32>
    %49 = arith.addf %42, %48 : vector<224x32xf32>
    %c0_24 = arith.constant 0 : index
    %c33 = arith.constant 33 : index
    %c0_25 = arith.constant 0 : index
    %50 = vector.load %arg1[%c0_24, %c33, %c0_25] : memref<1x264x1xf32, #tpu.memory_space<vmem>>, vector<1x224x1xf32>
    %51 = vector.shape_cast %50 : vector<1x224x1xf32> to vector<224x1xf32>
    %c7 = arith.constant 7 : index
    %c0_26 = arith.constant 0 : index
    %52 = vector.load %arg2[%c7, %c0_26] : memref<9x32xf32, #tpu.memory_space<vmem>>, vector<1x32xf32>
    %53 = vector.broadcast %51 : vector<224x1xf32> to vector<224x32xf32>
    %54 = vector.broadcast %52 : vector<1x32xf32> to vector<224x32xf32>
    %55 = arith.mulf %53, %54 : vector<224x32xf32>
    %56 = arith.addf %49, %55 : vector<224x32xf32>
    %c0_27 = arith.constant 0 : index
    %c34 = arith.constant 34 : index
    %c0_28 = arith.constant 0 : index
    %57 = vector.load %arg1[%c0_27, %c34, %c0_28] : memref<1x264x1xf32, #tpu.memory_space<vmem>>, vector<1x224x1xf32>
    %58 = vector.shape_cast %57 : vector<1x224x1xf32> to vector<224x1xf32>
    %c8 = arith.constant 8 : index
    %c0_29 = arith.constant 0 : index
    %59 = vector.load %arg2[%c8, %c0_29] : memref<9x32xf32, #tpu.memory_space<vmem>>, vector<1x32xf32>
    %60 = vector.broadcast %58 : vector<224x1xf32> to vector<224x32xf32>
    %61 = vector.broadcast %59 : vector<1x32xf32> to vector<224x32xf32>
    %62 = arith.mulf %60, %61 : vector<224x32xf32>
    %63 = arith.addf %56, %62 : vector<224x32xf32>
    %c0_30 = arith.constant 0 : index
    %c0_31 = arith.constant 0 : index
    %64 = vector.load %arg3[%c0_30, %c0_31] : memref<1x32xf32, #tpu.memory_space<vmem>>, vector<1x32xf32>
    %65 = vector.broadcast %64 : vector<1x32xf32> to vector<224x32xf32>
    %66 = arith.addf %63, %65 : vector<224x32xf32>
    %cst_32 = arith.constant 0.000000e+00 : f32
    %67 = vector.broadcast %cst_32 : f32 to vector<224x32xf32>
    %68 = arith.maximumf %66, %67 : vector<224x32xf32>
    %c0_33 = arith.constant 0 : index
    %c0_34 = arith.constant 0 : index
    %69 = vector.load %arg7[%c0_33, %c0_34] : memref<232x32xf32, #tpu.memory_space<vmem>>, vector<224x32xf32>
    tpu.vector_store %arg7[%c0_33, %c0_34], %68 {strides = array<i32>} : memref<232x32xf32, #tpu.memory_space<vmem>>, vector<224x32xf32>,
    %cst_35 = arith.constant 0.000000e+00 : f32
    %70 = vector.broadcast %cst_35 : f32 to vector<8x32xf32>
    %c224 = arith.constant 224 : index
    %c0_36 = arith.constant 0 : index
    %71 = vector.load %arg7[%c224, %c0_36] : memref<232x32xf32, #tpu.memory_space<vmem>>, vector<8x32xf32>
    tpu.vector_store %arg7[%c224, %c0_36], %70 {strides = array<i32>} : memref<232x32xf32, #tpu.memory_space<vmem>>, vector<8x32xf32>,
    %cst_37 = arith.constant 0.000000e+00 : f32
    %72 = vector.broadcast %cst_37 : f32 to vector<192x128xf32>
    %c0_38 = arith.constant 0 : index
    %c0_39 = arith.constant 0 : index
    %73 = vector.load %arg7[%c0_38, %c0_39] : memref<232x32xf32, #tpu.memory_space<vmem>>, vector<192x32xf32>
    %c0_40 = arith.constant 0 : index
    %c0_41 = arith.constant 0 : index
    %74 = vector.load %arg4[%c0_40, %c0_41] : memref<288x128xf32, #tpu.memory_space<vmem>>, vector<32x128xf32>
    %cst_42 = arith.constant dense<0.000000e+00> : vector<192x128xf32>
    %75 = tpu.matmul %73, %74, %cst_42 {dimension_numbers = #tpu.dot_dimension_numbers<[1], [0], [0], [1], [0, 0, 1, 1], [], []>} : vector<192x32xf32>, vector<32x128xf32>, vector<192x128xf32> -> vector<192x128xf32>
    %76 = arith.addf %72, %75 : vector<192x128xf32>
    %c1_43 = arith.constant 1 : index
    %c0_44 = arith.constant 0 : index
    %77 = vector.load %arg7[%c1_43, %c0_44] : memref<232x32xf32, #tpu.memory_space<vmem>>, vector<192x32xf32>
    %c32_45 = arith.constant 32 : index
    %c0_46 = arith.constant 0 : index
    %78 = vector.load %arg4[%c32_45, %c0_46] : memref<288x128xf32, #tpu.memory_space<vmem>>, vector<32x128xf32>
    %cst_47 = arith.constant dense<0.000000e+00> : vector<192x128xf32>
    %79 = tpu.matmul %77, %78, %cst_47 {dimension_numbers = #tpu.dot_dimension_numbers<[1], [0], [0], [1], [0, 0, 1, 1], [], []>} : vector<192x32xf32>, vector<32x128xf32>, vector<192x128xf32> -> vector<192x128xf32>
    %80 = arith.addf %76, %79 : vector<192x128xf32>
    %c2_48 = arith.constant 2 : index
    %c0_49 = arith.constant 0 : index
    %81 = vector.load %arg7[%c2_48, %c0_49] : memref<232x32xf32, #tpu.memory_space<vmem>>, vector<192x32xf32>
    %c64 = arith.constant 64 : index
    %c0_50 = arith.constant 0 : index
    %82 = vector.load %arg4[%c64, %c0_50] : memref<288x128xf32, #tpu.memory_space<vmem>>, vector<32x128xf32>
    %cst_51 = arith.constant dense<0.000000e+00> : vector<192x128xf32>
    %83 = tpu.matmul %81, %82, %cst_51 {dimension_numbers = #tpu.dot_dimension_numbers<[1], [0], [0], [1], [0, 0, 1, 1], [], []>} : vector<192x32xf32>, vector<32x128xf32>, vector<192x128xf32> -> vector<192x128xf32>
    %84 = arith.addf %80, %83 : vector<192x128xf32>
    %c16_52 = arith.constant 16 : index
    %c0_53 = arith.constant 0 : index
    %85 = vector.load %arg7[%c16_52, %c0_53] : memref<232x32xf32, #tpu.memory_space<vmem>>, vector<192x32xf32>
    %c96 = arith.constant 96 : index
    %c0_54 = arith.constant 0 : index
    %86 = vector.load %arg4[%c96, %c0_54] : memref<288x128xf32, #tpu.memory_space<vmem>>, vector<32x128xf32>
    %cst_55 = arith.constant dense<0.000000e+00> : vector<192x128xf32>
    %87 = tpu.matmul %85, %86, %cst_55 {dimension_numbers = #tpu.dot_dimension_numbers<[1], [0], [0], [1], [0, 0, 1, 1], [], []>} : vector<192x32xf32>, vector<32x128xf32>, vector<192x128xf32> -> vector<192x128xf32>
    %88 = arith.addf %84, %87 : vector<192x128xf32>
    %c17_56 = arith.constant 17 : index
    %c0_57 = arith.constant 0 : index
    %89 = vector.load %arg7[%c17_56, %c0_57] : memref<232x32xf32, #tpu.memory_space<vmem>>, vector<192x32xf32>
    %c128 = arith.constant 128 : index
    %c0_58 = arith.constant 0 : index
    %90 = vector.load %arg4[%c128, %c0_58] : memref<288x128xf32, #tpu.memory_space<vmem>>, vector<32x128xf32>
    %cst_59 = arith.constant dense<0.000000e+00> : vector<192x128xf32>
    %91 = tpu.matmul %89, %90, %cst_59 {dimension_numbers = #tpu.dot_dimension_numbers<[1], [0], [0], [1], [0, 0, 1, 1], [], []>} : vector<192x32xf32>, vector<32x128xf32>, vector<192x128xf32> -> vector<192x128xf32>
    %92 = arith.addf %88, %91 : vector<192x128xf32>
    %c18_60 = arith.constant 18 : index
    %c0_61 = arith.constant 0 : index
    %93 = vector.load %arg7[%c18_60, %c0_61] : memref<232x32xf32, #tpu.memory_space<vmem>>, vector<192x32xf32>
    %c160 = arith.constant 160 : index
    %c0_62 = arith.constant 0 : index
    %94 = vector.load %arg4[%c160, %c0_62] : memref<288x128xf32, #tpu.memory_space<vmem>>, vector<32x128xf32>
    %cst_63 = arith.constant dense<0.000000e+00> : vector<192x128xf32>
    %95 = tpu.matmul %93, %94, %cst_63 {dimension_numbers = #tpu.dot_dimension_numbers<[1], [0], [0], [1], [0, 0, 1, 1], [], []>} : vector<192x32xf32>, vector<32x128xf32>, vector<192x128xf32> -> vector<192x128xf32>
    %96 = arith.addf %92, %95 : vector<192x128xf32>
    %c32_64 = arith.constant 32 : index
    %c0_65 = arith.constant 0 : index
    %97 = vector.load %arg7[%c32_64, %c0_65] : memref<232x32xf32, #tpu.memory_space<vmem>>, vector<192x32xf32>
    %c192 = arith.constant 192 : index
    %c0_66 = arith.constant 0 : index
    %98 = vector.load %arg4[%c192, %c0_66] : memref<288x128xf32, #tpu.memory_space<vmem>>, vector<32x128xf32>
    %cst_67 = arith.constant dense<0.000000e+00> : vector<192x128xf32>
    %99 = tpu.matmul %97, %98, %cst_67 {dimension_numbers = #tpu.dot_dimension_numbers<[1], [0], [0], [1], [0, 0, 1, 1], [], []>} : vector<192x32xf32>, vector<32x128xf32>, vector<192x128xf32> -> vector<192x128xf32>
    %100 = arith.addf %96, %99 : vector<192x128xf32>
    %c33_68 = arith.constant 33 : index
    %c0_69 = arith.constant 0 : index
    %101 = vector.load %arg7[%c33_68, %c0_69] : memref<232x32xf32, #tpu.memory_space<vmem>>, vector<192x32xf32>
    %c224_70 = arith.constant 224 : index
    %c0_71 = arith.constant 0 : index
    %102 = vector.load %arg4[%c224_70, %c0_71] : memref<288x128xf32, #tpu.memory_space<vmem>>, vector<32x128xf32>
    %cst_72 = arith.constant dense<0.000000e+00> : vector<192x128xf32>
    %103 = tpu.matmul %101, %102, %cst_72 {dimension_numbers = #tpu.dot_dimension_numbers<[1], [0], [0], [1], [0, 0, 1, 1], [], []>} : vector<192x32xf32>, vector<32x128xf32>, vector<192x128xf32> -> vector<192x128xf32>
    %104 = arith.addf %100, %103 : vector<192x128xf32>
    %c34_73 = arith.constant 34 : index
    %c0_74 = arith.constant 0 : index
    %105 = vector.load %arg7[%c34_73, %c0_74] : memref<232x32xf32, #tpu.memory_space<vmem>>, vector<192x32xf32>
    %c256 = arith.constant 256 : index
    %c0_75 = arith.constant 0 : index
    %106 = vector.load %arg4[%c256, %c0_75] : memref<288x128xf32, #tpu.memory_space<vmem>>, vector<32x128xf32>
    %cst_76 = arith.constant dense<0.000000e+00> : vector<192x128xf32>
    %107 = tpu.matmul %105, %106, %cst_76 {dimension_numbers = #tpu.dot_dimension_numbers<[1], [0], [0], [1], [0, 0, 1, 1], [], []>} : vector<192x32xf32>, vector<32x128xf32>, vector<192x128xf32> -> vector<192x128xf32>
    %108 = arith.addf %104, %107 : vector<192x128xf32>
    %c0_77 = arith.constant 0 : index
    %c0_78 = arith.constant 0 : index
    %109 = vector.load %arg5[%c0_77, %c0_78] : memref<1x128xf32, #tpu.memory_space<vmem>>, vector<1x128xf32>
    %110 = vector.broadcast %109 : vector<1x128xf32> to vector<192x128xf32>
    %111 = arith.addf %108, %110 : vector<192x128xf32>
    %cst_79 = arith.constant 0.000000e+00 : f32
    %112 = vector.broadcast %cst_79 : f32 to vector<192x128xf32>
    %113 = arith.maximumf %111, %112 : vector<192x128xf32>
    %c0_80 = arith.constant 0 : index
    %c0_81 = arith.constant 0 : index
    %114 = vector.load %arg8[%c0_80, %c0_81] : memref<192x128xf32, #tpu.memory_space<vmem>>, vector<192x128xf32>
    tpu.vector_store %arg8[%c0_80, %c0_81], %113 {strides = array<i32>} : memref<192x128xf32, #tpu.memory_space<vmem>>, vector<192x128xf32>,
    %c0_82 = arith.constant 0 : index
    %c0_83 = arith.constant 0 : index
    %115 = tpu.strided_load %arg8[%c0_82, %c0_83] {strides = array<i32: 2, 1>} : memref<192x128xf32, #tpu.memory_space<vmem>>, vector<96x128xf32>
    %c1_84 = arith.constant 1 : index
    %c0_85 = arith.constant 0 : index
    %116 = tpu.strided_load %arg8[%c1_84, %c0_85] {strides = array<i32: 2, 1>} : memref<192x128xf32, #tpu.memory_space<vmem>>, vector<96x128xf32>
    %117 = arith.maximumf %115, %116 : vector<96x128xf32>
    %118 = vector.shape_cast %117 : vector<96x128xf32> to vector<6x16x128xf32>
    %119 = vector.extract_strided_slice %118 {offsets = [0, 0, 0], sizes = [6, 8, 128], strides = [1, 1, 1]} : vector<6x16x128xf32> to vector<6x8x128xf32>
    %120 = vector.extract_strided_slice %118 {offsets = [0, 8, 0], sizes = [6, 8, 128], strides = [1, 1, 1]} : vector<6x16x128xf32> to vector<6x8x128xf32>
    %121 = arith.maximumf %119, %120 : vector<6x8x128xf32>
    %122 = tpu.iota {dimensions = array<i32: 1>} : vector<6x8x128xi32>
    %c6_i32 = arith.constant 6 : i32
    %123 = vector.broadcast %c6_i32 : i32 to vector<6x8x128xi32>
    %124 = arith.cmpi slt, %122, %123 : vector<6x8x128xi32>
    %cst_86 = arith.constant 0.000000e+00 : f32
    %125 = vector.broadcast %cst_86 : f32 to vector<6x8x128xf32>
    %126 = arith.select %124, %121, %125 : vector<6x8x128xi1>, vector<6x8x128xf32>
    %c0_87 = arith.constant 0 : index
    %c0_88 = arith.constant 0 : index
    %c0_89 = arith.constant 0 : index
    %c0_90 = arith.constant 0 : index
    %127 = vector.load %arg6[%c0_87, %c0_88, %c0_89, %c0_90] : memref<1x6x8x128xf32, #tpu.memory_space<vmem>>, vector<1x6x8x128xf32>
    %128 = vector.shape_cast %127 : vector<1x6x8x128xf32> to vector<6x8x128xf32>
    %129 = vector.shape_cast %126 : vector<6x8x128xf32> to vector<1x6x8x128xf32>
    tpu.vector_store %arg6[%c0_87, %c0_88, %c0_89, %c0_90], %129 {strides = array<i32>} : memref<1x6x8x128xf32, #tpu.memory_space<vmem>>, vector<1x6x8x128xf32>,
    return
  }
  func.func @transform_0(%arg0: i32) -> (i32, i32, i32) {
    %c0_i32 = arith.constant 0 : i32
    %c0_i32_0 = arith.constant 0 : i32
    %c0_i32_1 = arith.constant 0 : i32
    return %arg0, %c0_i32, %c0_i32_0 : i32, i32, i32
  }
  func.func @transform_1(%arg0: i32) -> (i32, i32) {
    %c0_i32 = arith.constant 0 : i32
    %c0_i32_0 = arith.constant 0 : i32
    %c0_i32_1 = arith.constant 0 : i32
    return %c0_i32, %c0_i32_0 : i32, i32
  }
  func.func @transform_2(%arg0: i32) -> (i32, i32) {
    %c0_i32 = arith.constant 0 : i32
    %c0_i32_0 = arith.constant 0 : i32
    %c0_i32_1 = arith.constant 0 : i32
    return %c0_i32, %c0_i32_0 : i32, i32
  }
  func.func @transform_3(%arg0: i32) -> (i32, i32) {
    %c0_i32 = arith.constant 0 : i32
    %c0_i32_0 = arith.constant 0 : i32
    %c0_i32_1 = arith.constant 0 : i32
    return %c0_i32, %c0_i32_0 : i32, i32
  }
  func.func @transform_4(%arg0: i32) -> (i32, i32) {
    %c0_i32 = arith.constant 0 : i32
    %c0_i32_0 = arith.constant 0 : i32
    %c0_i32_1 = arith.constant 0 : i32
    return %c0_i32, %c0_i32_0 : i32, i32
  }
  func.func @transform_5(%arg0: i32) -> (i32, i32, i32, i32) {
    %c0_i32 = arith.constant 0 : i32
    %c0_i32_0 = arith.constant 0 : i32
    %c0_i32_1 = arith.constant 0 : i32
    %c0_i32_2 = arith.constant 0 : i32
    return %arg0, %c0_i32, %c0_i32_0, %c0_i32_1 : i32, i32, i32, i32
  }
}

module attributes {stable_mosaic.version = 11 : i64} {
  func.func @_head_kernel(%arg0: memref<2x6144xf32, #tpu.memory_space<vmem>>, %arg1: memref<6144x128xf32, #tpu.memory_space<vmem>>, %arg2: memref<1x128xf32, #tpu.memory_space<vmem>>, %arg3: memref<128x128xf32, #tpu.memory_space<vmem>>, %arg4: memref<1x128xf32, #tpu.memory_space<vmem>>, %arg5: memref<2x128xf32, #tpu.memory_space<vmem>>) attributes {dimension_semantics = [], scalar_prefetch = 0 : i64, scratch_operands = 0 : i64, tpu.core_type = #tpu.core_type<tc>} {
    %c0 = arith.constant 0 : index
    %c0_0 = arith.constant 0 : index
    %0 = vector.load %arg0[%c0, %c0_0] : memref<2x6144xf32, #tpu.memory_space<vmem>>, vector<2x6144xf32>
    %c0_1 = arith.constant 0 : index
    %c0_2 = arith.constant 0 : index
    %1 = vector.load %arg1[%c0_1, %c0_2] : memref<6144x128xf32, #tpu.memory_space<vmem>>, vector<6144x128xf32>
    %cst = arith.constant dense<0.000000e+00> : vector<2x128xf32>
    %2 = tpu.matmul %0, %1, %cst {dimension_numbers = #tpu.dot_dimension_numbers<[1], [0], [0], [1], [0, 0, 1, 1], [], []>} : vector<2x6144xf32>, vector<6144x128xf32>, vector<2x128xf32> -> vector<2x128xf32>
    %c0_3 = arith.constant 0 : index
    %c0_4 = arith.constant 0 : index
    %3 = vector.load %arg2[%c0_3, %c0_4] : memref<1x128xf32, #tpu.memory_space<vmem>>, vector<1x128xf32>
    %4 = vector.broadcast %3 : vector<1x128xf32> to vector<2x128xf32>
    %5 = arith.addf %2, %4 : vector<2x128xf32>
    %cst_5 = arith.constant 0.000000e+00 : f32
    %6 = vector.broadcast %cst_5 : f32 to vector<2x128xf32>
    %7 = arith.maximumf %5, %6 : vector<2x128xf32>
    %c0_6 = arith.constant 0 : index
    %c0_7 = arith.constant 0 : index
    %8 = vector.load %arg3[%c0_6, %c0_7] : memref<128x128xf32, #tpu.memory_space<vmem>>, vector<128x128xf32>
    %cst_8 = arith.constant dense<0.000000e+00> : vector<2x128xf32>
    %9 = tpu.matmul %7, %8, %cst_8 {dimension_numbers = #tpu.dot_dimension_numbers<[1], [0], [0], [1], [0, 0, 1, 1], [], []>} : vector<2x128xf32>, vector<128x128xf32>, vector<2x128xf32> -> vector<2x128xf32>
    %c0_9 = arith.constant 0 : index
    %c0_10 = arith.constant 0 : index
    %10 = vector.load %arg4[%c0_9, %c0_10] : memref<1x128xf32, #tpu.memory_space<vmem>>, vector<1x128xf32>
    %11 = vector.broadcast %10 : vector<1x128xf32> to vector<2x128xf32>
    %12 = arith.addf %9, %11 : vector<2x128xf32>
    %13 = arith.mulf %12, %12 : vector<2x128xf32>
    %c0_11 = arith.constant 0 : index
    %c0_12 = arith.constant 0 : index
    %14 = vector.load %arg5[%c0_11, %c0_12] : memref<2x128xf32, #tpu.memory_space<vmem>>, vector<2x128xf32>
    tpu.vector_store %arg5[%c0_11, %c0_12], %13 {strides = array<i32>} : memref<2x128xf32, #tpu.memory_space<vmem>>, vector<2x128xf32>,
    return
  }
}

</mosaic_0001>

<bundles_post_ra>
// kernel: simple_dcnn_forward.3
= control target key start
LH: loop header
LB: loop body
LE: loop exit
PB: predicated region body
PF: predicated region fallthrough
CT: control target
= control target key end

     0   :  { %v4589_v47 = vmov 1983009808   ;;  %v824_v49 = vlaneseq  ;;  %s7178_s0 = inlined_call_operand.vmem [shape: f32[2,6144], index: 0, kind: input, shape index: {}]   ;;  %s7179_s1 = inlined_call_operand.vmem [shape: f32[6144,128], index: 1, kind: input, shape index: {}]   ;;  %s7180_s2 = inlined_call_operand.vmem [shape: f32[1,128], index: 2, kind: input, shape index: {}]   ;;  %s7181_s3 = inlined_call_operand.vmem [shape: f32[128,128], index: 3, kind: input, shape index: {}]   ;;  %s7182_s4 = inlined_call_operand.vmem [shape: f32[1,128], index: 4, kind: input, shape index: {}]   ;;  %s7183_s5 = inlined_call_operand.hbm [shape: f32[2,128], index: 5, kind: output, shape index: {}]  }
   0x1   :  { %v49_v0 = vld [vmem:[%s7179_s1 + $0x80] sm:$0xff]  ;;  %v50_v1 = vld [vmem:[%s7179_s1 + $0x88] sm:$0xff]  ;;  %v51_v11 = vld [vmem:[%s7179_s1 + $0x90] sm:$0xff]  ;;  %v822_v48 = vunpack.c.l.s4 %v4589_v47 }
   0x2   :  { %v33_v2 = vld [vmem:[%s7179_s1] sm:$0xff]  ;;  %v3756_v3 = vpack.c.bf16 %v50_v1, %v49_v0  ;;  %v34_v4 = vld [vmem:[%s7179_s1 + $0x8] sm:$0xff]  ;;  %v52_v13 = vld [vmem:[%s7179_s1 + $0x98] sm:$0xff]  ;;  %v825_v0 = vshrl.u32 %v824_v49, 7 }
   0x3   :  { %v81_v5 = vld [vmem:[%s7179_s1 + $0x180] sm:$0xff]  ;;  %v82_v6 = vld [vmem:[%s7179_s1 + $0x188] sm:$0xff]  ;;  %v3758_v7 = vpack.c.bf16 %v34_v4, %v33_v2  ;;  %v35_v14 = vld [vmem:[%s7179_s1 + $0x10] sm:$0xff]  ;;  %v3760_v16 = vpack.c.bf16 %v52_v13, %v51_v11  ;;  %v823_v63 = vunpack.c.0.s8 %v822_v48 }
   0x4   :  { %v3788_v8 = vpack.c.bf16 %v82_v6, %v81_v5  ;;  %v65_v9 = vld [vmem:[%s7179_s1 + $0x100] sm:$0xff]  ;;  %v66_v10 = vld [vmem:[%s7179_s1 + $0x108] sm:$0xff]  ;;  %3757 = vmatprep.subr.bf16.mxu0 %v3756_v3  ;;  %v36_v15 = vld [vmem:[%s7179_s1 + $0x18] sm:$0xff] }
   0x5   :  { %v3790_v12 = vpack.c.bf16 %v66_v10, %v65_v9  ;;  %3759 = vmatpush3.bf16.msra.mxu0 %v3758_v7  ;;  %v3762_v17 = vpack.c.bf16 %v36_v15, %v35_v14  ;;  %v83_v18 = vld [vmem:[%s7179_s1 + $0x190] sm:$0xff]  ;;  %v84_v19 = vld [vmem:[%s7179_s1 + $0x198] sm:$0xff]  ;;  %v53_v23 = vld [vmem:[%s7179_s1 + $0xa0] sm:$0xff]  ;;  %v4774_v13 = vsub.s32 %v823_v63, %v825_v0 }
   0x6   :  { %3789 = vmatprep.subr.bf16.mxu1 %v3788_v8  ;;  %v67_v20 = vld [vmem:[%s7179_s1 + $0x110] sm:$0xff]  ;;  %v3792_v21 = vpack.c.bf16 %v84_v19, %v83_v18  ;;  %v68_v22 = vld [vmem:[%s7179_s1 + $0x118] sm:$0xff]  ;;  %v54_v24 = vld [vmem:[%s7179_s1 + $0xa8] sm:$0xff]  ;;  %3761 = vmatprep.subr.bf16.mxu0 %v3760_v16 }
   0x7   :  { %3791 = vmatpush3.bf16.msra.mxu1 %v3790_v12  ;;  %v3794_v25 = vpack.c.bf16 %v68_v22, %v67_v20  ;;  %v3764_v26 = vpack.c.bf16 %v54_v24, %v53_v23  ;;  %v37_v27 = vld [vmem:[%s7179_s1 + $0x20] sm:$0xff]  ;;  %v38_v28 = vld [vmem:[%s7179_s1 + $0x28] sm:$0xff]  ;;  %v55_v35 = vld [vmem:[%s7179_s1 + $0xb0] sm:$0xff] }
   0x8   :  { %v85_v29 = vld [vmem:[%s7179_s1 + $0x1a0] sm:$0xff]  ;;  %3793 = vmatprep.subr.bf16.mxu1 %v3792_v21  ;;  %v86_v30 = vld [vmem:[%s7179_s1 + $0x1a8] sm:$0xff]  ;;  %v3766_v33 = vpack.c.bf16 %v38_v28, %v37_v27  ;;  %v56_v36 = vld [vmem:[%s7179_s1 + $0xb8] sm:$0xff] }
   0x9   :  { %v69_v31 = vld [vmem:[%s7179_s1 + $0x120] sm:$0xff]  ;;  %v70_v32 = vld [vmem:[%s7179_s1 + $0x128] sm:$0xff]  ;;  %3763 = vmatpush3.bf16.msra.mxu0 %v3762_v17  ;;  %v3796_v34 = vpack.c.bf16 %v86_v30, %v85_v29  ;;  %v39_v37 = vld [vmem:[%s7179_s1 + $0x30] sm:$0xff]  ;;  %v3768_v39 = vpack.c.bf16 %v56_v36, %v55_v35 }
   0xa   :  { %3765 = vmatprep.subr.bf16.mxu0 %v3764_v26  ;;  %v3798_v38 = vpack.c.bf16 %v70_v32, %v69_v31  ;;  %v40_v40 = vld [vmem:[%s7179_s1 + $0x38] sm:$0xff]  ;;  %v87_v41 = vld [vmem:[%s7179_s1 + $0x1b0] sm:$0xff]  ;;  %v57_v46 = vld [vmem:[%s7179_s1 + $0xc0] sm:$0xff] }
   0xb   :  { %3795 = vmatpush3.bf16.msra.mxu1 %v3794_v25  ;;  %v88_v42 = vld [vmem:[%s7179_s1 + $0x1b8] sm:$0xff]  ;;  %v71_v44 = vld [vmem:[%s7179_s1 + $0x130] sm:$0xff]  ;;  %v58_v50 = vld [vmem:[%s7179_s1 + $0xc8] sm:$0xff]  ;;  %v3770_v51 = vpack.c.bf16 %v40_v40, %v39_v37 }
   0xc   :  { %3797 = vmatprep.subr.bf16.mxu1 %v3796_v34  ;;  %v3800_v43 = vpack.c.bf16 %v88_v42, %v87_v41  ;;  %v72_v45 = vld [vmem:[%s7179_s1 + $0x138] sm:$0xff]  ;;  %v89_v52 = vld [vmem:[%s7179_s1 + $0x1c0] sm:$0xff]  ;;  %v90_v53 = vld [vmem:[%s7179_s1 + $0x1c8] sm:$0xff]  ;;  %v3772_v55 = vpack.c.bf16 %v58_v50, %v57_v46 }
   0xd   :  { %3767 = vmatpush3.bf16.msra.mxu0 %v3766_v33  ;;  %v3802_v54 = vpack.c.bf16 %v72_v45, %v71_v44  ;;  %v41_v56 = vld [vmem:[%s7179_s1 + $0x40] sm:$0xff]  ;;  %v42_v57 = vld [vmem:[%s7179_s1 + $0x48] sm:$0xff]  ;;  %v3804_v59 = vpack.c.bf16 %v90_v53, %v89_v52  ;;  %v59_v61 = vld [vmem:[%s7179_s1 + $0xd0] sm:$0xff] }
   0xe   :  { %3769 = vmatprep.subr.bf16.mxu0 %v3768_v39  ;;  %v73_v58 = vld [vmem:[%s7179_s1 + $0x140] sm:$0xff]  ;;  %v74_v60 = vld [vmem:[%s7179_s1 + $0x148] sm:$0xff]  ;;  %v60_v62 = vld [vmem:[%s7179_s1 + $0xd8] sm:$0xff]  ;;  %v3774_v3 = vpack.c.bf16 %v42_v57, %v41_v56 }
   0xf   :  { %3799 = vmatpush3.bf16.msra.mxu1 %v3798_v38  ;;  %v91_v1 = vld [vmem:[%s7179_s1 + $0x1d0] sm:$0xff]  ;;  %v92_v2 = vld [vmem:[%s7179_s1 + $0x1d8] sm:$0xff]  ;;  %v3806_v4 = vpack.c.bf16 %v74_v60, %v73_v58  ;;  %v3776_v5 = vpack.c.bf16 %v60_v62, %v59_v61  ;;  %v61_v11 = vld [vmem:[%s7179_s1 + $0xe0] sm:$0xff] }
  0x10   :  { %3801 = vmatprep.subr.bf16.mxu1 %v3800_v43  ;;  %v43_v6 = vld [vmem:[%s7179_s1 + $0x50] sm:$0xff]  ;;  %v44_v7 = vld [vmem:[%s7179_s1 + $0x58] sm:$0xff]  ;;  %v3808_v9 = vpack.c.bf16 %v92_v2, %v91_v1  ;;  %v62_v12 = vld [vmem:[%s7179_s1 + $0xe8] sm:$0xff] }
  0x11   :  { %3771 = vmatpush3.bf16.msra.mxu0 %v3770_v51  ;;  %v75_v8 = vld [vmem:[%s7179_s1 + $0x150] sm:$0xff]  ;;  %v76_v10 = vld [vmem:[%s7179_s1 + $0x158] sm:$0xff]  ;;  %v93_v14 = vld [vmem:[%s7179_s1 + $0x1e0] sm:$0xff]  ;;  %v3778_v16 = vpack.c.bf16 %v44_v7, %v43_v6  ;;  %v3780_v19 = vpack.c.bf16 %v62_v12, %v61_v11 }
  0x12   :  { %3773 = vmatprep.subr.bf16.mxu0 %v3772_v55  ;;  %v94_v15 = vld [vmem:[%s7179_s1 + $0x1e8] sm:$0xff]  ;;  %v45_v17 = vld [vmem:[%s7179_s1 + $0x60] sm:$0xff]  ;;  %v3810_v18 = vpack.c.bf16 %v76_v10, %v75_v8  ;;  %v63_v25 = vld [vmem:[%s7179_s1 + $0xf0] sm:$0xff] }
  0x13   :  { %3803 = vmatpush3.bf16.msra.mxu1 %v3802_v54  ;;  %v46_v20 = vld [vmem:[%s7179_s1 + $0x68] sm:$0xff]  ;;  %v77_v21 = vld [vmem:[%s7179_s1 + $0x160] sm:$0xff]  ;;  %v3812_v23 = vpack.c.bf16 %v94_v15, %v93_v14  ;;  %v64_v26 = vld [vmem:[%s7179_s1 + $0xf8] sm:$0xff] }
  0x14   :  { %3805 = vmatprep.subr.bf16.mxu1 %v3804_v59  ;;  %v21_v22 = vld [vmem:[%s7178_s0] sm:$0xff]  ;;  %v78_v24 = vld [vmem:[%s7179_s1 + $0x168] sm:$0xff]  ;;  %v95_v29 = vld [vmem:[%s7179_s1 + $0x1f0] sm:$0xff]  ;;  %v3782_v31 = vpack.c.bf16 %v46_v20, %v45_v17  ;;  %v3784_v35 = vpack.c.bf16 %v64_v26, %v63_v25 }
  0x15   :  { %3775 = vmatpush3.bf16.msra.mxu0 %v3774_v3  ;;  %v827_v27 = vrot.slane %v21_v22, %v4774_v13  ;;  %v820_v28 = vcombine.high %v21_v22, %v21_v22  ;;  %v96_v30 = vld [vmem:[%s7179_s1 + $0x1f8] sm:$0xff]  ;;  %v3814_v34 = vpack.c.bf16 %v78_v24, %v77_v21  ;;  %v47_v36 = vld [vmem:[%s7179_s1 + $0x70] sm:$0xff]  ;;  %v113_v41 = vld [vmem:[%s7179_s1 + $0x280] sm:$0xff] }
  0x16   :  { %3777 = vmatprep.subr.bf16.mxu0 %v3776_v5  ;;  %v48_v37 = vld [vmem:[%s7179_s1 + $0x78] sm:$0xff]  ;;  %v79_v38 = vld [vmem:[%s7179_s1 + $0x170] sm:$0xff]  ;;  %v3816_v39 = vpack.c.bf16 %v96_v30, %v95_v29  ;;  %v114_v42 = vld [vmem:[%s7179_s1 + $0x288] sm:$0xff] }
  0x17   :  { %3807 = vmatpush3.bf16.msra.mxu1 %v3806_v4  ;;  %v835_v32 = vcombine.high %v827_v27, %v827_v27  ;;  %v834_v33 = vrot.slane %v820_v28, %v4774_v13  ;;  %v80_v40 = vld [vmem:[%s7179_s1 + $0x178] sm:$0xff]  ;;  %v145_v44 = vld [vmem:[%s7179_s1 + $0x380] sm:$0xff]  ;;  %v146_v45 = vld [vmem:[%s7179_s1 + $0x388] sm:$0xff]  ;;  %v3786_v46 = vpack.c.bf16 %v48_v37, %v47_v36  ;;  %v3820_v48 = vpack.c.bf16 %v114_v42, %v113_v41 }
  0x18   :  { %3809 = vmatprep.subr.bf16.mxu1 %v3808_v9  ;;  %v3818_v47 = vpack.c.bf16 %v80_v40, %v79_v38  ;;  %v97_v49 = vld [vmem:[%s7179_s1 + $0x200] sm:$0xff]  ;;  %v98_v50 = vld [vmem:[%s7179_s1 + $0x208] sm:$0xff]  ;;  %v3852_v52 = vpack.c.bf16 %v146_v45, %v145_v44  ;;  %v115_v54 = vld [vmem:[%s7179_s1 + $0x290] sm:$0xff] }
  0x19   :  { %3779 = vmatpush3.bf16.msra.mxu0 %v3778_v16  ;;  %1136 = vmatprep.mubr.f32.mxu0 %v835_v32  ;;  %v836_v43 = vcombine.high %v834_v33, %v834_v33  ;;  %v129_v51 = vld [vmem:[%s7179_s1 + $0x300] sm:$0xff]  ;;  %v130_v53 = vld [vmem:[%s7179_s1 + $0x308] sm:$0xff]  ;;  %v116_v55 = vld [vmem:[%s7179_s1 + $0x298] sm:$0xff]  ;;  %v3822_v58 = vpack.c.bf16 %v98_v50, %v97_v49 }
  0x1a   :  { %3781 = vmatprep.subr.bf16.mxu0 %v3780_v19  ;;  %v147_v56 = vld [vmem:[%s7179_s1 + $0x390] sm:$0xff]  ;;  %v148_v57 = vld [vmem:[%s7179_s1 + $0x398] sm:$0xff]  ;;  %v3854_v59 = vpack.c.bf16 %v130_v53, %v129_v51  ;;  %v3824_v60 = vpack.c.bf16 %v116_v55, %v115_v54  ;;  %v117_v2 = vld [vmem:[%s7179_s1 + $0x2a0] sm:$0xff] }
  0x1b   :  { %3811 = vmatpush3.bf16.msra.mxu1 %v3810_v18  ;;  %1206 = vmatprep.mubr.f32.mxu1 %v836_v43  ;;  %v99_v61 = vld [vmem:[%s7179_s1 + $0x210] sm:$0xff]  ;;  %v100_v62 = vld [vmem:[%s7179_s1 + $0x218] sm:$0xff]  ;;  %v3856_v0 = vpack.c.bf16 %v148_v57, %v147_v56  ;;  %v118_v3 = vld [vmem:[%s7179_s1 + $0x2a8] sm:$0xff] }
  0x1c   :  { %3813 = vmatprep.subr.bf16.mxu1 %v3812_v23  ;;  %v131_v63 = vld [vmem:[%s7179_s1 + $0x310] sm:$0xff]  ;;  %v132_v1 = vld [vmem:[%s7179_s1 + $0x318] sm:$0xff]  ;;  %v149_v4 = vld [vmem:[%s7179_s1 + $0x3a0] sm:$0xff]  ;;  %v3826_v6 = vpack.c.bf16 %v100_v62, %v99_v61  ;;  %v3828_v8 = vpack.c.bf16 %v118_v3, %v117_v2 }
  0x1d   :  { %3783 = vmatpush3.bf16.msra.mxu0 %v3782_v31  ;;  %v150_v5 = vld [vmem:[%s7179_s1 + $0x3a8] sm:$0xff]  ;;  %v3858_v7 = vpack.c.bf16 %v132_v1, %v131_v63  ;;  %v101_v9 = vld [vmem:[%s7179_s1 + $0x220] sm:$0xff]  ;;  %v119_v15 = vld [vmem:[%s7179_s1 + $0x2b0] sm:$0xff] }
  0x1e   :  { %3785 = vmatprep.subr.bf16.mxu0 %v3784_v35  ;;  %v102_v10 = vld [vmem:[%s7179_s1 + $0x228] sm:$0xff]  ;;  %v133_v11 = vld [vmem:[%s7179_s1 + $0x320] sm:$0xff]  ;;  %v3860_v12 = vpack.c.bf16 %v150_v5, %v149_v4  ;;  %v120_v16 = vld [vmem:[%s7179_s1 + $0x2b8] sm:$0xff] }
  0x1f   :  { %3815 = vmatpush3.bf16.msra.mxu1 %v3814_v34  ;;  %v134_v14 = vld [vmem:[%s7179_s1 + $0x328] sm:$0xff]  ;;  %v151_v17 = vld [vmem:[%s7179_s1 + $0x3b0] sm:$0xff]  ;;  %v152_v18 = vld [vmem:[%s7179_s1 + $0x3b8] sm:$0xff]  ;;  %v3830_v19 = vpack.c.bf16 %v102_v10, %v101_v9  ;;  %v3832_v21 = vpack.c.bf16 %v120_v16, %v119_v15 }
  0x20   :  { %3817 = vmatprep.subr.bf16.mxu1 %v3816_v39  ;;  %v3862_v20 = vpack.c.bf16 %v134_v14, %v133_v11  ;;  %v103_v22 = vld [vmem:[%s7179_s1 + $0x230] sm:$0xff]  ;;  %v104_v23 = vld [vmem:[%s7179_s1 + $0x238] sm:$0xff]  ;;  %v3864_v25 = vpack.c.bf16 %v152_v18, %v151_v17  ;;  %v122_v28 = vld [vmem:[%s7179_s1 + $0x2c8] sm:$0xff] }
  0x21   :  { %3787 = vmatpush3.bf16.msra.mxu0 %v3786_v46  ;;  %v135_v24 = vld [vmem:[%s7179_s1 + $0x330] sm:$0xff]  ;;  %v136_v26 = vld [vmem:[%s7179_s1 + $0x338] sm:$0xff]  ;;  %v153_v29 = vld [vmem:[%s7179_s1 + $0x3c0] sm:$0xff]  ;;  %v3834_v32 = vpack.c.bf16 %v104_v23, %v103_v22 }
  0x22   :  { %3821 = vmatprep.subr.bf16.mxu0 %v3820_v48  ;;  %v154_v30 = vld [vmem:[%s7179_s1 + $0x3c8] sm:$0xff]  ;;  %v3866_v35 = vpack.c.bf16 %v136_v26, %v135_v24  ;;  %v105_v37 = vld [vmem:[%s7179_s1 + $0x240] sm:$0xff]  ;;  %v123_v42 = vld [vmem:[%s7179_s1 + $0x2d0] sm:$0xff] }
  0x23   :  { %3819 = vmatpush3.bf16.msra.mxu1 %v3818_v47  ;;  %v22_v31 = vld [vmem:[%s7178_s0 + $0x8] sm:$0xff]  ;;  %v137_v39 = vld [vmem:[%s7179_s1 + $0x340] sm:$0xff]  ;;  %v3868_v40 = vpack.c.bf16 %v154_v30, %v153_v29  ;;  %v124_v43 = vld [vmem:[%s7179_s1 + $0x2d8] sm:$0xff] }
  0x24   :  { %3853 = vmatprep.subr.bf16.mxu1 %v3852_v52  ;;  %1137 = vmatmul.mubr.f32.vlgmr.msra.gmra.mrb[0].mxu0 %v827_v27  ;;  %v121_v27 = vld [vmem:[%s7179_s1 + $0x2c0] sm:$0xff]  ;;  %v837_v34 = vcombine.high %v22_v31, %v22_v31  ;;  %v106_v38 = vld [vmem:[%s7179_s1 + $0x248] sm:$0xff]  ;;  %v155_v46 = vld [vmem:[%s7179_s1 + $0x3d0] sm:$0xff]  ;;  %v3840_v51 = vpack.c.bf16 %v124_v43, %v123_v42 }
  0x25   :  { %3823 = vmatpush3.bf16.msra.mxu0 %v3822_v58  ;;  %v3836_v36 = vpack.c.bf16 %v122_v28, %v121_v27  ;;  %v138_v41 = vld [vmem:[%s7179_s1 + $0x348] sm:$0xff]  ;;  %v156_v47 = vld [vmem:[%s7179_s1 + $0x3d8] sm:$0xff]  ;;  %v3838_v48 = vpack.c.bf16 %v106_v38, %v105_v37  ;;  %v107_v52 = vld [vmem:[%s7179_s1 + $0x250] sm:$0xff] }
  0x26   :  { %1207 = vmatmul.mubr.f32.vlgmr.msra.gmra.mrb[0].mxu1 %v834_v33  ;;  %3825 = vmatprep.subr.bf16.mxu0 %v3824_v60  ;;  %v4935_v33 = vrot.slane %v22_v31, %v4774_v13  ;;  %v4958_v45 = vrot.slane %v837_v34, %v4774_v13  ;;  %v3870_v50 = vpack.c.bf16 %v138_v41, %v137_v39  ;;  %v108_v53 = vld [vmem:[%s7179_s1 + $0x258] sm:$0xff]  ;;  %v139_v54 = vld [vmem:[%s7179_s1 + $0x350] sm:$0xff]  ;;  %v125_v57 = vld [vmem:[%s7179_s1 + $0x2e0] sm:$0xff] }
  0x27   :  { %3855 = vmatpush3.bf16.msra.mxu1 %v3854_v59  ;;  %v3872_v55 = vpack.c.bf16 %v156_v47, %v155_v46  ;;  %v140_v56 = vld [vmem:[%s7179_s1 + $0x358] sm:$0xff]  ;;  %v126_v58 = vld [vmem:[%s7179_s1 + $0x2e8] sm:$0xff]  ;;  %v157_v59 = vld [vmem:[%s7179_s1 + $0x3e0] sm:$0xff]  ;;  %v3842_v61 = vpack.c.bf16 %v108_v53, %v107_v52 }
  0x28   :  { %3857 = vmatprep.subr.bf16.mxu1 %v3856_v0  ;;  %v852_v44 = vcombine.high %v4935_v33, %v4935_v33  ;;  %v853_v49 = vcombine.high %v4958_v45, %v4958_v45  ;;  %v158_v60 = vld [vmem:[%s7179_s1 + $0x3e8] sm:$0xff]  ;;  %v3874_v62 = vpack.c.bf16 %v140_v56, %v139_v54  ;;  %v3844_v63 = vpack.c.bf16 %v126_v58, %v125_v57  ;;  %v109_v0 = vld [vmem:[%s7179_s1 + $0x260] sm:$0xff]  ;;  %v127_v5 = vld [vmem:[%s7179_s1 + $0x2f0] sm:$0xff] }
  0x29   :  { %3827 = vmatpush3.bf16.msra.mxu0 %v3826_v6  ;;  %v110_v1 = vld [vmem:[%s7179_s1 + $0x268] sm:$0xff]  ;;  %v141_v2 = vld [vmem:[%s7179_s1 + $0x360] sm:$0xff]  ;;  %v3876_v3 = vpack.c.bf16 %v158_v60, %v157_v59  ;;  %v128_v6 = vld [vmem:[%s7179_s1 + $0x2f8] sm:$0xff] }
  0x2a   :  { %3829 = vmatprep.subr.bf16.mxu0 %v3828_v8  ;;  %1276 = vmatprep.mubr.f32.mxu0 %v852_v44  ;;  %v142_v4 = vld [vmem:[%s7179_s1 + $0x368] sm:$0xff]  ;;  %v160_v8 = vld [vmem:[%s7179_s1 + $0x3f8] sm:$0xff]  ;;  %v3846_v9 = vpack.c.bf16 %v110_v1, %v109_v0  ;;  %v3848_v11 = vpack.c.bf16 %v128_v6, %v127_v5  ;;  %v143_v15 = vld [vmem:[%s7179_s1 + $0x370] sm:$0xff] }
  0x2b   :  { %3859 = vmatpush3.bf16.msra.mxu1 %v3858_v7  ;;  %1346 = vmatprep.mubr.f32.mxu1 %v853_v49  ;;  %v159_v7 = vld [vmem:[%s7179_s1 + $0x3f0] sm:$0xff]  ;;  %v3878_v10 = vpack.c.bf16 %v142_v4, %v141_v2  ;;  %v112_v14 = vld [vmem:[%s7179_s1 + $0x278] sm:$0xff]  ;;  %v177_v18 = vld [vmem:[%s7179_s1 + $0x480] sm:$0xff] }
  0x2c   :  { %3861 = vmatprep.subr.bf16.mxu1 %v3860_v12  ;;  %v111_v12 = vld [vmem:[%s7179_s1 + $0x270] sm:$0xff]  ;;  %v3880_v16 = vpack.c.bf16 %v160_v8, %v159_v7  ;;  %v144_v17 = vld [vmem:[%s7179_s1 + $0x378] sm:$0xff]  ;;  %v161_v23 = vld [vmem:[%s7179_s1 + $0x400] sm:$0xff] }
  0x2d   :  { %3831 = vmatpush3.bf16.msra.mxu0 %v3830_v19  ;;  %v178_v19 = vld [vmem:[%s7179_s1 + $0x488] sm:$0xff]  ;;  %v3850_v22 = vpack.c.bf16 %v112_v14, %v111_v12  ;;  %v3882_v24 = vpack.c.bf16 %v144_v17, %v143_v15  ;;  %v193_v27 = vld [vmem:[%s7179_s1 + $0x500] sm:$0xff]  ;;  %v179_v30 = vld [vmem:[%s7179_s1 + $0x490] sm:$0xff] }
  0x2e   :  { %3833 = vmatprep.subr.bf16.mxu0 %v3832_v21  ;;  %v210_v21 = vld [vmem:[%s7179_s1 + $0x588] sm:$0xff]  ;;  %v180_v31 = vld [vmem:[%s7179_s1 + $0x498] sm:$0xff]  ;;  %v23_v37 = vld [vmem:[%s7178_s0 + $0x10] sm:$0xff] }
  0x2f   :  { %3863 = vmatpush3.bf16.msra.mxu1 %v3862_v20  ;;  %v209_v20 = vld [vmem:[%s7179_s1 + $0x580] sm:$0xff]  ;;  %v162_v26 = vld [vmem:[%s7179_s1 + $0x408] sm:$0xff]  ;;  %v212_v34 = vld [vmem:[%s7179_s1 + $0x598] sm:$0xff]  ;;  %v3888_v38 = vpack.c.bf16 %v180_v31, %v179_v30  ;;  %v5077_v42 = vrot.slane %v23_v37, %v4774_v13  ;;  %v854_v43 = vcombine.high %v23_v37, %v23_v37 }
  0x30   :  { %3865 = vmatprep.subr.bf16.mxu1 %v3864_v25  ;;  %v3884_v25 = vpack.c.bf16 %v178_v19, %v177_v18  ;;  %v194_v28 = vld [vmem:[%s7179_s1 + $0x508] sm:$0xff]  ;;  %v3916_v29 = vpack.c.bf16 %v210_v21, %v209_v20  ;;  %v163_v39 = vld [vmem:[%s7179_s1 + $0x410] sm:$0xff]  ;;  %v196_v46 = vld [vmem:[%s7179_s1 + $0x518] sm:$0xff] }
  0x31   :  { %3835 = vmatpush3.bf16.msra.mxu0 %v3834_v32  ;;  %v211_v32 = vld [vmem:[%s7179_s1 + $0x590] sm:$0xff]  ;;  %v181_v47 = vld [vmem:[%s7179_s1 + $0x4a0] sm:$0xff]  ;;  %v5098_v52 = vrot.slane %v854_v43, %v4774_v13  ;;  %v166_v56 = vld [vmem:[%s7179_s1 + $0x428] sm:$0xff] }
  0x32   :  { %3837 = vmatprep.subr.bf16.mxu0 %v3836_v36  ;;  %v3918_v36 = vpack.c.bf16 %v194_v28, %v193_v27  ;;  %v195_v41 = vld [vmem:[%s7179_s1 + $0x510] sm:$0xff]  ;;  %v3920_v44 = vpack.c.bf16 %v212_v34, %v211_v32  ;;  %v213_v49 = vld [vmem:[%s7179_s1 + $0x5a0] sm:$0xff]  ;;  %v198_v59 = vld [vmem:[%s7179_s1 + $0x528] sm:$0xff] }
  0x33   :  { %3867 = vmatpush3.bf16.msra.mxu1 %v3866_v35  ;;  %v3886_v35 = vpack.c.bf16 %v162_v26, %v161_v23  ;;  %v197_v57 = vld [vmem:[%s7179_s1 + $0x520] sm:$0xff]  ;;  %v183_v60 = vld [vmem:[%s7179_s1 + $0x4b0] sm:$0xff]  ;;  %v168_v4 = vld [vmem:[%s7179_s1 + $0x438] sm:$0xff] }
  0x34   :  { %3869 = vmatprep.subr.bf16.mxu1 %v3868_v40  ;;  %v164_v40 = vld [vmem:[%s7179_s1 + $0x418] sm:$0xff]  ;;  %v3926_v1 = vpack.c.bf16 %v198_v59, %v197_v57  ;;  %v199_v5 = vld [vmem:[%s7179_s1 + $0x530] sm:$0xff]  ;;  %v185_v8 = vld [vmem:[%s7179_s1 + $0x4c0] sm:$0xff] }
  0x35   :  { %3839 = vmatpush3.bf16.msra.mxu0 %v3838_v48  ;;  %v182_v48 = vld [vmem:[%s7179_s1 + $0x4a8] sm:$0xff]  ;;  %v3890_v53 = vpack.c.bf16 %v164_v40, %v163_v39  ;;  %v200_v7 = vld [vmem:[%s7179_s1 + $0x538] sm:$0xff]  ;;  %v201_v18 = vld [vmem:[%s7179_s1 + $0x540] sm:$0xff] }
  0x36   :  { %3841 = vmatprep.subr.bf16.mxu0 %v3840_v51  ;;  %v869_v51 = vcombine.high %v5077_v42, %v5077_v42  ;;  %v3892_v54 = vpack.c.bf16 %v182_v48, %v181_v47  ;;  %v3930_v14 = vpack.c.bf16 %v200_v7, %v199_v5  ;;  %v170_v17 = vld [vmem:[%s7179_s1 + $0x448] sm:$0xff]  ;;  %v187_v21 = vld [vmem:[%s7179_s1 + $0x4d0] sm:$0xff]  ;;  %v204_v32 = vld [vmem:[%s7179_s1 + $0x558] sm:$0xff] }
  0x37   :  { %3871 = vmatpush3.bf16.msra.mxu1 %v3870_v50  ;;  %v214_v50 = vld [vmem:[%s7179_s1 + $0x5a8] sm:$0xff]  ;;  %v219_v23 = vld [vmem:[%s7179_s1 + $0x5d0] sm:$0xff]  ;;  %v189_v34 = vld [vmem:[%s7179_s1 + $0x4e0] sm:$0xff] }
  0x38   :  { %3873 = vmatprep.subr.bf16.mxu1 %v3872_v55  ;;  %v165_v55 = vld [vmem:[%s7179_s1 + $0x420] sm:$0xff]  ;;  %v3924_v58 = vpack.c.bf16 %v214_v50, %v213_v49  ;;  %v202_v20 = vld [vmem:[%s7179_s1 + $0x548] sm:$0xff]  ;;  %v171_v28 = vld [vmem:[%s7179_s1 + $0x450] sm:$0xff] }
  0x39   :  { %3843 = vmatpush3.bf16.msra.mxu0 %v3842_v61  ;;  %v184_v61 = vld [vmem:[%s7179_s1 + $0x4b8] sm:$0xff]  ;;  %v3894_v0 = vpack.c.bf16 %v166_v56, %v165_v55  ;;  %v3934_v26 = vpack.c.bf16 %v202_v20, %v201_v18  ;;  %v203_v30 = vld [vmem:[%s7179_s1 + $0x550] sm:$0xff]  ;;  %v222_v37 = vld [vmem:[%s7179_s1 + $0x5e8] sm:$0xff] }
  0x3a   :  { %3845 = vmatprep.subr.bf16.mxu0 %v3844_v63  ;;  %v216_v63 = vld [vmem:[%s7179_s1 + $0x5b8] sm:$0xff]  ;;  %v3896_v2 = vpack.c.bf16 %v184_v61, %v183_v60  ;;  %v3938_v39 = vpack.c.bf16 %v204_v32, %v203_v30  ;;  %v174_v43 = vld [vmem:[%s7179_s1 + $0x468] sm:$0xff]  ;;  %v191_v48 = vld [vmem:[%s7179_s1 + $0x4f0] sm:$0xff] }
  0x3b   :  { %3875 = vmatpush3.bf16.msra.mxu1 %v3874_v62  ;;  %v215_v62 = vld [vmem:[%s7179_s1 + $0x5b0] sm:$0xff]  ;;  %v206_v47 = vld [vmem:[%s7179_s1 + $0x568] sm:$0xff]  ;;  %v192_v49 = vld [vmem:[%s7179_s1 + $0x4f8] sm:$0xff] }
  0x3c   :  { %3877 = vmatprep.subr.bf16.mxu1 %v3876_v3  ;;  %v167_v3 = vld [vmem:[%s7179_s1 + $0x430] sm:$0xff]  ;;  %v3928_v6 = vpack.c.bf16 %v216_v63, %v215_v62  ;;  %v3912_v55 = vpack.c.bf16 %v192_v49, %v191_v48  ;;  %v176_v57 = vld [vmem:[%s7179_s1 + $0x478] sm:$0xff]  ;;  %v241_v60 = vld [vmem:[%s7179_s1 + $0x680] sm:$0xff] }
  0x3d   :  { %3847 = vmatpush3.bf16.msra.mxu0 %v3846_v9  ;;  %v186_v9 = vld [vmem:[%s7179_s1 + $0x4c8] sm:$0xff]  ;;  %v3898_v12 = vpack.c.bf16 %v168_v4, %v167_v3  ;;  %v223_v50 = vld [vmem:[%s7179_s1 + $0x5f0] sm:$0xff]  ;;  %v208_v59 = vld [vmem:[%s7179_s1 + $0x578] sm:$0xff] }
  0x3e   :  { %3849 = vmatprep.subr.bf16.mxu0 %v3848_v11  ;;  %v218_v11 = vld [vmem:[%s7179_s1 + $0x5c8] sm:$0xff]  ;;  %v3900_v15 = vpack.c.bf16 %v186_v9, %v185_v8  ;;  %v175_v56 = vld [vmem:[%s7179_s1 + $0x470] sm:$0xff]  ;;  %v273_v62 = vld [vmem:[%s7179_s1 + $0x780] sm:$0xff] }
  0x3f   :  { %3879 = vmatpush3.bf16.msra.mxu1 %v3878_v10  ;;  %v217_v10 = vld [vmem:[%s7179_s1 + $0x5c0] sm:$0xff]  ;;  %v242_v61 = vld [vmem:[%s7179_s1 + $0x688] sm:$0xff]  ;;  %v243_v9 = vld [vmem:[%s7179_s1 + $0x690] sm:$0xff] }
  0x40   :  { %3881 = vmatprep.subr.bf16.mxu1 %v3880_v16  ;;  %v169_v16 = vld [vmem:[%s7179_s1 + $0x440] sm:$0xff]  ;;  %v3932_v19 = vpack.c.bf16 %v218_v11, %v217_v10  ;;  %v274_v63 = vld [vmem:[%s7179_s1 + $0x788] sm:$0xff]  ;;  %v3948_v3 = vpack.c.bf16 %v242_v61, %v241_v60  ;;  %v244_v10 = vld [vmem:[%s7179_s1 + $0x698] sm:$0xff] }
  0x41   :  { %3851 = vmatpush3.bf16.msra.mxu0 %v3850_v22  ;;  %v188_v22 = vld [vmem:[%s7179_s1 + $0x4d8] sm:$0xff]  ;;  %v225_v4 = vld [vmem:[%s7179_s1 + $0x600] sm:$0xff]  ;;  %v226_v5 = vld [vmem:[%s7179_s1 + $0x608] sm:$0xff]  ;;  %v3980_v7 = vpack.c.bf16 %v274_v63, %v273_v62  ;;  %v3952_v18 = vpack.c.bf16 %v244_v10, %v243_v9 }
  0x42   :  { %3885 = vmatprep.subr.bf16.mxu0 %v3884_v25  ;;  %v3902_v25 = vpack.c.bf16 %v170_v17, %v169_v16  ;;  %v3904_v27 = vpack.c.bf16 %v188_v22, %v187_v21  ;;  %v258_v8 = vld [vmem:[%s7179_s1 + $0x708] sm:$0xff]  ;;  %v3950_v16 = vpack.c.bf16 %v226_v5, %v225_v4  ;;  %v228_v20 = vld [vmem:[%s7179_s1 + $0x618] sm:$0xff]  ;;  %v259_v21 = vld [vmem:[%s7179_s1 + $0x710] sm:$0xff] }
  0x43   :  { %3883 = vmatpush3.bf16.msra.mxu1 %v3882_v24  ;;  %v220_v24 = vld [vmem:[%s7179_s1 + $0x5d8] sm:$0xff]  ;;  %v263_v48 = vld [vmem:[%s7179_s1 + $0x730] sm:$0xff]  ;;  %v266_v61 = vld [vmem:[%s7179_s1 + $0x748] sm:$0xff] }
  0x44   :  { %3917 = vmatprep.subr.bf16.mxu1 %v3916_v29  ;;  %1277 = vmatmul.mubr.f32.vlgmr.msra.gmra.mrb[2].mxu0 %v4935_v33  ;;  %v3922_v33 = vpack.c.bf16 %v196_v46, %v195_v41  ;;  %v172_v29 = vld [vmem:[%s7179_s1 + $0x458] sm:$0xff]  ;;  %v3936_v31 = vpack.c.bf16 %v220_v24, %v219_v23  ;;  %v173_v41 = vld [vmem:[%s7179_s1 + $0x460] sm:$0xff]  ;;  %v251_v62 = vld [vmem:[%s7179_s1 + $0x6d0] sm:$0xff] }
  0x45   :  { %3887 = vmatpush3.bf16.msra.mxu0 %v3886_v35  ;;  %1416 = vmatprep.mubr.f32.mxu0 %v869_v51  ;;  %v190_v35 = vld [vmem:[%s7179_s1 + $0x4e8] sm:$0xff]  ;;  %v224_v51 = vld [vmem:[%s7179_s1 + $0x5f8] sm:$0xff]  ;;  %v245_v24 = vld [vmem:[%s7179_s1 + $0x6a0] sm:$0xff] }
  0x46   :  { %1347 = vmatmul.mubr.f32.vlgmr.msra.gmra.mrb[2].mxu1 %v4958_v45  ;;  %3889 = vmatprep.subr.bf16.mxu0 %v3888_v38  ;;  %v870_v45 = vcombine.high %v5098_v52, %v5098_v52  ;;  %v3906_v38 = vpack.c.bf16 %v172_v29, %v171_v28  ;;  %v3908_v40 = vpack.c.bf16 %v190_v35, %v189_v34  ;;  %v260_v23 = vld [vmem:[%s7179_s1 + $0x718] sm:$0xff]  ;;  %v278_v28 = vld [vmem:[%s7179_s1 + $0x7a8] sm:$0xff]  ;;  %v261_v35 = vld [vmem:[%s7179_s1 + $0x720] sm:$0xff] }
  0x47   :  { %3919 = vmatpush3.bf16.msra.mxu1 %v3918_v36  ;;  %v221_v36 = vld [vmem:[%s7179_s1 + $0x5e0] sm:$0xff]  ;;  %v230_v34 = vld [vmem:[%s7179_s1 + $0x628] sm:$0xff]  ;;  %v252_v63 = vld [vmem:[%s7179_s1 + $0x6d8] sm:$0xff] }
  0x48   :  { %3921 = vmatprep.subr.bf16.mxu1 %v3920_v44  ;;  %1486 = vmatprep.mubr.f32.mxu1 %v870_v45  ;;  %v205_v44 = vld [vmem:[%s7179_s1 + $0x560] sm:$0xff]  ;;  %v3940_v46 = vpack.c.bf16 %v222_v37, %v221_v36  ;;  %v207_v45 = vld [vmem:[%s7179_s1 + $0x570] sm:$0xff]  ;;  %v3968_v4 = vpack.c.bf16 %v252_v63, %v251_v62  ;;  %v268_v9 = vld [vmem:[%s7179_s1 + $0x758] sm:$0xff] }
  0x49   :  { %3891 = vmatpush3.bf16.msra.mxu0 %v3890_v53  ;;  %v3910_v53 = vpack.c.bf16 %v174_v43, %v173_v41  ;;  %v247_v37 = vld [vmem:[%s7179_s1 + $0x6b0] sm:$0xff]  ;;  %v253_v10 = vld [vmem:[%s7179_s1 + $0x6e0] sm:$0xff] }
  0x4a   :  { %3893 = vmatprep.subr.bf16.mxu0 %v3892_v54  ;;  %v3942_v54 = vpack.c.bf16 %v206_v47, %v205_v44  ;;  %v232_v47 = vld [vmem:[%s7179_s1 + $0x638] sm:$0xff]  ;;  %v235_v5 = vld [vmem:[%s7179_s1 + $0x650] sm:$0xff] }
  0x4b   :  { %3923 = vmatpush3.bf16.msra.mxu1 %v3922_v33  ;;  %v24_v33 = vld [vmem:[%s7178_s0 + $0x18] sm:$0xff]  ;;  %v323_v62 = vld [vmem:[%s7179_s1 + $0x910] sm:$0xff] }
  0x4c   :  { %3925 = vmatprep.subr.bf16.mxu1 %v3924_v58  ;;  %v3944_v58 = vpack.c.bf16 %v224_v51, %v223_v50  ;;  %v5269_v11 = vrot.slane %v24_v33, %v4774_v13  ;;  %v264_v50 = vld [vmem:[%s7179_s1 + $0x738] sm:$0xff]  ;;  %v249_v51 = vld [vmem:[%s7179_s1 + $0x6c0] sm:$0xff] }
  0x4d   :  { %3895 = vmatpush3.bf16.msra.mxu0 %v3894_v0  ;;  %v871_v0 = vcombine.high %v24_v33, %v24_v33  ;;  %v281_v33 = vld [vmem:[%s7179_s1 + $0x7c0] sm:$0xff] }
  0x4e   :  { %3897 = vmatprep.subr.bf16.mxu0 %v3896_v2  ;;  %v3946_v2 = vpack.c.bf16 %v208_v59, %v207_v45  ;;  %v233_v45 = vld [vmem:[%s7179_s1 + $0x640] sm:$0xff] }
  0x4f   :  { %3927 = vmatpush3.bf16.msra.mxu1 %v3926_v1  ;;  %v3914_v1 = vpack.c.bf16 %v176_v57, %v175_v56  ;;  %v3994_v56 = vpack.c.bf16 %v264_v50, %v263_v48  ;;  %v265_v59 = vld [vmem:[%s7179_s1 + $0x740] sm:$0xff]  ;;  %v290_v48 = vld [vmem:[%s7179_s1 + $0x808] sm:$0xff] }
  0x50   :  { %3929 = vmatprep.subr.bf16.mxu1 %v3928_v6  ;;  %v257_v6 = vld [vmem:[%s7179_s1 + $0x700] sm:$0xff] }
  0x51   :  { %3899 = vmatpush3.bf16.msra.mxu0 %v3898_v12  ;;  %v275_v12 = vld [vmem:[%s7179_s1 + $0x790] sm:$0xff]  ;;  %v3982_v17 = vpack.c.bf16 %v258_v8, %v257_v6  ;;  %v236_v6 = vld [vmem:[%s7179_s1 + $0x658] sm:$0xff] }
  0x52   :  { %3901 = vmatprep.subr.bf16.mxu0 %v3900_v15  ;;  %v5278_v15 = vrot.slane %v871_v0, %v4774_v13  ;;  %v283_v0 = vld [vmem:[%s7179_s1 + $0x7d0] sm:$0xff] }
  0x53   :  { %3931 = vmatpush3.bf16.msra.mxu1 %v3930_v14  ;;  %v276_v14 = vld [vmem:[%s7179_s1 + $0x798] sm:$0xff] }
  0x54   :  { %3933 = vmatprep.subr.bf16.mxu1 %v3932_v19  ;;  %v227_v19 = vld [vmem:[%s7179_s1 + $0x610] sm:$0xff]  ;;  %v3984_v22 = vpack.c.bf16 %v276_v14, %v275_v12  ;;  %v887_v29 = vcombine.high %v5278_v15, %v5278_v15  ;;  %v254_v12 = vld [vmem:[%s7179_s1 + $0x6e8] sm:$0xff]  ;;  %v285_v14 = vld [vmem:[%s7179_s1 + $0x7e0] sm:$0xff] }
  0x55   :  { %3903 = vmatpush3.bf16.msra.mxu0 %v3902_v25  ;;  %v246_v25 = vld [vmem:[%s7179_s1 + $0x6a8] sm:$0xff]  ;;  %v3954_v30 = vpack.c.bf16 %v228_v20, %v227_v19  ;;  %v3972_v19 = vpack.c.bf16 %v254_v12, %v253_v10  ;;  %v237_v20 = vld [vmem:[%s7179_s1 + $0x660] sm:$0xff] }
  0x56   :  { %3905 = vmatprep.subr.bf16.mxu0 %v3904_v27  ;;  %v277_v27 = vld [vmem:[%s7179_s1 + $0x7a0] sm:$0xff]  ;;  %v3956_v32 = vpack.c.bf16 %v246_v25, %v245_v24  ;;  %v270_v24 = vld [vmem:[%s7179_s1 + $0x768] sm:$0xff]  ;;  %v255_v25 = vld [vmem:[%s7179_s1 + $0x6f0] sm:$0xff] }
  0x57   :  { %3935 = vmatpush3.bf16.msra.mxu1 %v3934_v26  ;;  %v886_v26 = vcombine.high %v5269_v11, %v5269_v11  ;;  %v3988_v36 = vpack.c.bf16 %v278_v28, %v277_v27  ;;  %v287_v27 = vld [vmem:[%s7179_s1 + $0x7f0] sm:$0xff]  ;;  %v288_v28 = vld [vmem:[%s7179_s1 + $0x7f8] sm:$0xff]  ;;  %v294_v10 = vld [vmem:[%s7179_s1 + $0x828] sm:$0xff] }
  0x58   :  { %3937 = vmatprep.subr.bf16.mxu1 %v3936_v31  ;;  %v3986_v31 = vpack.c.bf16 %v260_v23, %v259_v21  ;;  %v238_v21 = vld [vmem:[%s7179_s1 + $0x668] sm:$0xff]  ;;  %v325_v12 = vld [vmem:[%s7179_s1 + $0x920] sm:$0xff] }
  0x59   :  { %3907 = vmatpush3.bf16.msra.mxu0 %v3906_v38  ;;  %v248_v38 = vld [vmem:[%s7179_s1 + $0x6b8] sm:$0xff] }
  0x5a   :  { %3909 = vmatprep.subr.bf16.mxu0 %v3908_v40  ;;  %v280_v40 = vld [vmem:[%s7179_s1 + $0x7b8] sm:$0xff]  ;;  %v3960_v44 = vpack.c.bf16 %v248_v38, %v247_v37  ;;  %v305_v37 = vld [vmem:[%s7179_s1 + $0x880] sm:$0xff]  ;;  %v306_v38 = vld [vmem:[%s7179_s1 + $0x888] sm:$0xff] }
  0x5b   :  { %3939 = vmatpush3.bf16.msra.mxu1 %v3938_v39  ;;  %v279_v39 = vld [vmem:[%s7179_s1 + $0x7b0] sm:$0xff] }
  0x5c   :  { %3941 = vmatprep.subr.bf16.mxu1 %v3940_v46  ;;  %v231_v46 = vld [vmem:[%s7179_s1 + $0x630] sm:$0xff]  ;;  %v3992_v49 = vpack.c.bf16 %v280_v40, %v279_v39  ;;  %v337_v39 = vld [vmem:[%s7179_s1 + $0x980] sm:$0xff]  ;;  %v338_v40 = vld [vmem:[%s7179_s1 + $0x988] sm:$0xff] }
  0x5d   :  { %3911 = vmatpush3.bf16.msra.mxu0 %v3910_v53  ;;  %v250_v53 = vld [vmem:[%s7179_s1 + $0x6c8] sm:$0xff]  ;;  %v4044_v50 = vpack.c.bf16 %v338_v40, %v337_v39  ;;  %v315_v39 = vld [vmem:[%s7179_s1 + $0x8d0] sm:$0xff]  ;;  %v316_v40 = vld [vmem:[%s7179_s1 + $0x8d8] sm:$0xff] }
  0x5e   :  { %3913 = vmatprep.subr.bf16.mxu0 %v3912_v55  ;;  %v3962_v55 = vpack.c.bf16 %v232_v47, %v231_v46  ;;  %v3964_v57 = vpack.c.bf16 %v250_v53, %v249_v51  ;;  %v4012_v46 = vpack.c.bf16 %v306_v38, %v305_v37  ;;  %v289_v47 = vld [vmem:[%s7179_s1 + $0x800] sm:$0xff]  ;;  %v322_v51 = vld [vmem:[%s7179_s1 + $0x908] sm:$0xff]  ;;  %v307_v53 = vld [vmem:[%s7179_s1 + $0x890] sm:$0xff] }
  0x5f   :  { %3943 = vmatpush3.bf16.msra.mxu1 %v3942_v54  ;;  %v282_v54 = vld [vmem:[%s7179_s1 + $0x7c8] sm:$0xff] }
  0x60   :  { %3945 = vmatprep.subr.bf16.mxu1 %v3944_v58  ;;  %v234_v58 = vld [vmem:[%s7179_s1 + $0x648] sm:$0xff]  ;;  %v3996_v60 = vpack.c.bf16 %v282_v54, %v281_v33  ;;  %v308_v33 = vld [vmem:[%s7179_s1 + $0x898] sm:$0xff] }
  0x61   :  { %3915 = vmatpush3.bf16.msra.mxu0 %v3914_v1  ;;  %v284_v1 = vld [vmem:[%s7179_s1 + $0x7d8] sm:$0xff]  ;;  %v330_v38 = vld [vmem:[%s7179_s1 + $0x948] sm:$0xff] }
  0x62   :  { %3949 = vmatprep.subr.bf16.mxu0 %v3948_v3  ;;  %v3998_v3 = vpack.c.bf16 %v266_v61, %v265_v59  ;;  %v4000_v8 = vpack.c.bf16 %v284_v1, %v283_v0  ;;  %v4016_v59 = vpack.c.bf16 %v308_v33, %v307_v53  ;;  %v292_v61 = vld [vmem:[%s7179_s1 + $0x818] sm:$0xff]  ;;  %v309_v1 = vld [vmem:[%s7179_s1 + $0x8a0] sm:$0xff] }
  0x63   :  { %3947 = vmatpush3.bf16.msra.mxu1 %v3946_v2  ;;  %v3966_v2 = vpack.c.bf16 %v234_v58, %v233_v45  ;;  %v4014_v45 = vpack.c.bf16 %v290_v48, %v289_v47  ;;  %v324_v0 = vld [vmem:[%s7179_s1 + $0x918] sm:$0xff]  ;;  %v4032_v47 = vpack.c.bf16 %v316_v40, %v315_v39  ;;  %v299_v48 = vld [vmem:[%s7179_s1 + $0x850] sm:$0xff]  ;;  %v317_v33 = vld [vmem:[%s7179_s1 + $0x8e0] sm:$0xff] }
  0x64   :  { %3981 = vmatprep.subr.bf16.mxu1 %v3980_v7  ;;  %1417 = vmatmul.mubr.f32.vlgmr.msra.gmra.mrb[4].mxu0 %v5077_v42  ;;  %v229_v42 = vld [vmem:[%s7179_s1 + $0x620] sm:$0xff]  ;;  %v267_v7 = vld [vmem:[%s7179_s1 + $0x750] sm:$0xff]  ;;  %v332_v53 = vld [vmem:[%s7179_s1 + $0x958] sm:$0xff] }
  0x65   :  { %3951 = vmatpush3.bf16.msra.mxu0 %v3950_v16  ;;  %1556 = vmatprep.mubr.f32.mxu0 %v886_v26  ;;  %v3958_v41 = vpack.c.bf16 %v230_v34, %v229_v42  ;;  %v286_v16 = vld [vmem:[%s7179_s1 + $0x7e8] sm:$0xff]  ;;  %v256_v26 = vld [vmem:[%s7179_s1 + $0x6f8] sm:$0xff]  ;;  %v239_v42 = vld [vmem:[%s7179_s1 + $0x670] sm:$0xff] }
  0x66   :  { %1487 = vmatmul.mubr.f32.vlgmr.msra.gmra.mrb[4].mxu1 %v5098_v52  ;;  %3953 = vmatprep.subr.bf16.mxu0 %v3952_v18  ;;  %v262_v52 = vld [vmem:[%s7179_s1 + $0x728] sm:$0xff]  ;;  %v4002_v18 = vpack.c.bf16 %v268_v9, %v267_v7  ;;  %v4004_v23 = vpack.c.bf16 %v286_v16, %v285_v14  ;;  %v240_v34 = vld [vmem:[%s7179_s1 + $0x678] sm:$0xff]  ;;  %v311_v16 = vld [vmem:[%s7179_s1 + $0x8b0] sm:$0xff] }
  0x67   :  { %3983 = vmatpush3.bf16.msra.mxu1 %v3982_v17  ;;  %1626 = vmatprep.mubr.f32.mxu1 %v887_v29  ;;  %v3990_v43 = vpack.c.bf16 %v262_v52, %v261_v35  ;;  %v3970_v17 = vpack.c.bf16 %v236_v6, %v235_v5  ;;  %v3974_v29 = vpack.c.bf16 %v238_v21, %v237_v20  ;;  %v271_v35 = vld [vmem:[%s7179_s1 + $0x770] sm:$0xff]  ;;  %v272_v52 = vld [vmem:[%s7179_s1 + $0x778] sm:$0xff]  ;;  %v342_v5 = vld [vmem:[%s7179_s1 + $0x9a8] sm:$0xff] }
  0x68   :  { %3985 = vmatprep.subr.bf16.mxu1 %v3984_v22  ;;  %v269_v22 = vld [vmem:[%s7179_s1 + $0x760] sm:$0xff]  ;;  %v387_v39 = vld [vmem:[%s7179_s1 + $0xb10] sm:$0xff] }
  0x69   :  { %3955 = vmatpush3.bf16.msra.mxu0 %v3954_v30  ;;  %v25_v30 = vld [vmem:[%s7178_s0 + $0x20] sm:$0xff] }
  0x6a   :  { %3957 = vmatprep.subr.bf16.mxu0 %v3956_v32  ;;  %v3976_v32 = vpack.c.bf16 %v256_v26, %v255_v25  ;;  %v5476_v54 = vrot.slane %v25_v30, %v4774_v13  ;;  %v327_v25 = vld [vmem:[%s7179_s1 + $0x930] sm:$0xff] }
  0x6b   :  { %3987 = vmatpush3.bf16.msra.mxu1 %v3986_v31  ;;  %v4006_v31 = vpack.c.bf16 %v270_v24, %v269_v22  ;;  %v296_v24 = vld [vmem:[%s7179_s1 + $0x838] sm:$0xff] }
  0x6c   :  { %3989 = vmatprep.subr.bf16.mxu1 %v3988_v36  ;;  %v4008_v36 = vpack.c.bf16 %v288_v28, %v287_v27  ;;  %v328_v27 = vld [vmem:[%s7179_s1 + $0x938] sm:$0xff]  ;;  %v313_v28 = vld [vmem:[%s7179_s1 + $0x8c0] sm:$0xff] }
  0x6d   :  { %3959 = vmatpush3.bf16.msra.mxu0 %v3958_v41  ;;  %v888_v41 = vcombine.high %v25_v30, %v25_v30  ;;  %v345_v30 = vld [vmem:[%s7179_s1 + $0x9c0] sm:$0xff] }
  0x6e   :  { %3961 = vmatprep.subr.bf16.mxu0 %v3960_v44  ;;  %v4010_v44 = vpack.c.bf16 %v272_v52, %v271_v35  ;;  %v297_v35 = vld [vmem:[%s7179_s1 + $0x840] sm:$0xff] }
  0x6f   :  { %3991 = vmatpush3.bf16.msra.mxu1 %v3990_v43  ;;  %v3978_v43 = vpack.c.bf16 %v240_v34, %v239_v42  ;;  %v4058_v42 = vpack.c.bf16 %v328_v27, %v327_v25  ;;  %v329_v52 = vld [vmem:[%s7179_s1 + $0x940] sm:$0xff]  ;;  %v354_v25 = vld [vmem:[%s7179_s1 + $0xa08] sm:$0xff] }
  0x70   :  { %3993 = vmatprep.subr.bf16.mxu1 %v3992_v49  ;;  %v321_v49 = vld [vmem:[%s7179_s1 + $0x900] sm:$0xff] }
  0x71   :  { %3963 = vmatpush3.bf16.msra.mxu0 %v3962_v55  ;;  %v339_v55 = vld [vmem:[%s7179_s1 + $0x990] sm:$0xff]  ;;  %v4046_v58 = vpack.c.bf16 %v322_v51, %v321_v49  ;;  %v300_v49 = vld [vmem:[%s7179_s1 + $0x858] sm:$0xff] }
  0x72   :  { %3965 = vmatprep.subr.bf16.mxu0 %v3964_v57  ;;  %v5485_v57 = vrot.slane %v888_v41, %v4774_v13  ;;  %v347_v41 = vld [vmem:[%s7179_s1 + $0x9d0] sm:$0xff] }
  0x73   :  { %3995 = vmatpush3.bf16.msra.mxu1 %v3994_v56  ;;  %v340_v56 = vld [vmem:[%s7179_s1 + $0x998] sm:$0xff] }
  0x74   :  { %3997 = vmatprep.subr.bf16.mxu1 %v3996_v60  ;;  %v291_v60 = vld [vmem:[%s7179_s1 + $0x810] sm:$0xff]  ;;  %v4048_v63 = vpack.c.bf16 %v340_v56, %v339_v55  ;;  %v904_v6 = vcombine.high %v5485_v57, %v5485_v57  ;;  %v318_v55 = vld [vmem:[%s7179_s1 + $0x8e8] sm:$0xff]  ;;  %v349_v56 = vld [vmem:[%s7179_s1 + $0x9e0] sm:$0xff] }
  0x75   :  { %3967 = vmatpush3.bf16.msra.mxu0 %v3966_v2  ;;  %v310_v2 = vld [vmem:[%s7179_s1 + $0x8a8] sm:$0xff]  ;;  %v4018_v7 = vpack.c.bf16 %v292_v61, %v291_v60  ;;  %v4036_v60 = vpack.c.bf16 %v318_v55, %v317_v33  ;;  %v301_v61 = vld [vmem:[%s7179_s1 + $0x860] sm:$0xff] }
  0x76   :  { %3969 = vmatprep.subr.bf16.mxu0 %v3968_v4  ;;  %v341_v4 = vld [vmem:[%s7179_s1 + $0x9a0] sm:$0xff]  ;;  %v4020_v9 = vpack.c.bf16 %v310_v2, %v309_v1  ;;  %v334_v1 = vld [vmem:[%s7179_s1 + $0x968] sm:$0xff]  ;;  %v319_v2 = vld [vmem:[%s7179_s1 + $0x8f0] sm:$0xff] }
  0x77   :  { %3999 = vmatpush3.bf16.msra.mxu1 %v3998_v3  ;;  %v903_v3 = vcombine.high %v5476_v54, %v5476_v54  ;;  %v4052_v14 = vpack.c.bf16 %v342_v5, %v341_v4  ;;  %v351_v4 = vld [vmem:[%s7179_s1 + $0x9f0] sm:$0xff]  ;;  %v352_v5 = vld [vmem:[%s7179_s1 + $0x9f8] sm:$0xff]  ;;  %v358_v33 = vld [vmem:[%s7179_s1 + $0xa28] sm:$0xff] }
  0x78   :  { %4001 = vmatprep.subr.bf16.mxu1 %v4000_v8  ;;  %v4050_v8 = vpack.c.bf16 %v324_v0, %v323_v62  ;;  %v302_v62 = vld [vmem:[%s7179_s1 + $0x868] sm:$0xff]  ;;  %v389_v55 = vld [vmem:[%s7179_s1 + $0xb20] sm:$0xff] }
  0x79   :  { %3971 = vmatpush3.bf16.msra.mxu0 %v3970_v17  ;;  %v312_v17 = vld [vmem:[%s7179_s1 + $0x8b8] sm:$0xff] }
  0x7a   :  { %3973 = vmatprep.subr.bf16.mxu0 %v3972_v19  ;;  %v344_v19 = vld [vmem:[%s7179_s1 + $0x9b8] sm:$0xff]  ;;  %v4024_v22 = vpack.c.bf16 %v312_v17, %v311_v16  ;;  %v369_v16 = vld [vmem:[%s7179_s1 + $0xa80] sm:$0xff]  ;;  %v370_v17 = vld [vmem:[%s7179_s1 + $0xa88] sm:$0xff] }
  0x7b   :  { %4003 = vmatpush3.bf16.msra.mxu1 %v4002_v18  ;;  %v343_v18 = vld [vmem:[%s7179_s1 + $0x9b0] sm:$0xff] }
  0x7c   :  { %4005 = vmatprep.subr.bf16.mxu1 %v4004_v23  ;;  %v295_v23 = vld [vmem:[%s7179_s1 + $0x830] sm:$0xff]  ;;  %v4056_v26 = vpack.c.bf16 %v344_v19, %v343_v18  ;;  %v401_v18 = vld [vmem:[%s7179_s1 + $0xb80] sm:$0xff]  ;;  %v402_v19 = vld [vmem:[%s7179_s1 + $0xb88] sm:$0xff] }
  0x7d   :  { %3975 = vmatpush3.bf16.msra.mxu0 %v3974_v29  ;;  %v314_v29 = vld [vmem:[%s7179_s1 + $0x8c8] sm:$0xff]  ;;  %v4108_v27 = vpack.c.bf16 %v402_v19, %v401_v18  ;;  %v379_v18 = vld [vmem:[%s7179_s1 + $0xad0] sm:$0xff]  ;;  %v380_v19 = vld [vmem:[%s7179_s1 + $0xad8] sm:$0xff] }
  0x7e   :  { %3977 = vmatprep.subr.bf16.mxu0 %v3976_v32  ;;  %v4026_v32 = vpack.c.bf16 %v296_v24, %v295_v23  ;;  %v4028_v34 = vpack.c.bf16 %v314_v29, %v313_v28  ;;  %v4076_v23 = vpack.c.bf16 %v370_v17, %v369_v16  ;;  %v353_v24 = vld [vmem:[%s7179_s1 + $0xa00] sm:$0xff]  ;;  %v386_v28 = vld [vmem:[%s7179_s1 + $0xb08] sm:$0xff]  ;;  %v371_v29 = vld [vmem:[%s7179_s1 + $0xa90] sm:$0xff] }
  0x7f   :  { %4007 = vmatpush3.bf16.msra.mxu1 %v4006_v31  ;;  %v346_v31 = vld [vmem:[%s7179_s1 + $0x9c8] sm:$0xff] }
  0x80   :  { %4009 = vmatprep.subr.bf16.mxu1 %v4008_v36  ;;  %v298_v36 = vld [vmem:[%s7179_s1 + $0x848] sm:$0xff]  ;;  %v4060_v37 = vpack.c.bf16 %v346_v31, %v345_v30  ;;  %v372_v30 = vld [vmem:[%s7179_s1 + $0xa98] sm:$0xff] }
  0x81   :  { %3979 = vmatpush3.bf16.msra.mxu0 %v3978_v43  ;;  %v348_v43 = vld [vmem:[%s7179_s1 + $0x9d8] sm:$0xff]  ;;  %v394_v17 = vld [vmem:[%s7179_s1 + $0xb48] sm:$0xff] }
  0x82   :  { %4013 = vmatprep.subr.bf16.mxu0 %v4012_v46  ;;  %v4062_v46 = vpack.c.bf16 %v330_v38, %v329_v52  ;;  %v4064_v51 = vpack.c.bf16 %v348_v43, %v347_v41  ;;  %v4080_v52 = vpack.c.bf16 %v372_v30, %v371_v29  ;;  %v356_v38 = vld [vmem:[%s7179_s1 + $0xa18] sm:$0xff]  ;;  %v373_v43 = vld [vmem:[%s7179_s1 + $0xaa0] sm:$0xff] }
  0x83   :  { %4011 = vmatpush3.bf16.msra.mxu1 %v4010_v44  ;;  %v4030_v44 = vpack.c.bf16 %v298_v36, %v297_v35  ;;  %v4078_v35 = vpack.c.bf16 %v354_v25, %v353_v24  ;;  %v388_v41 = vld [vmem:[%s7179_s1 + $0xb18] sm:$0xff]  ;;  %v4096_v24 = vpack.c.bf16 %v380_v19, %v379_v18  ;;  %v363_v25 = vld [vmem:[%s7179_s1 + $0xa50] sm:$0xff]  ;;  %v381_v30 = vld [vmem:[%s7179_s1 + $0xae0] sm:$0xff] }
  0x84   :  { %4045 = vmatprep.subr.bf16.mxu1 %v4044_v50  ;;  %1557 = vmatmul.mubr.f32.vlgmr.msra.gmra.mrb[6].mxu0 %v5269_v11  ;;  %v293_v11 = vld [vmem:[%s7179_s1 + $0x820] sm:$0xff]  ;;  %v331_v50 = vld [vmem:[%s7179_s1 + $0x950] sm:$0xff]  ;;  %v396_v29 = vld [vmem:[%s7179_s1 + $0xb58] sm:$0xff] }
  0x85   :  { %4015 = vmatpush3.bf16.msra.mxu0 %v4014_v45  ;;  %1696 = vmatprep.mubr.f32.mxu0 %v903_v3  ;;  %v4022_v20 = vpack.c.bf16 %v294_v10, %v293_v11  ;;  %v350_v45 = vld [vmem:[%s7179_s1 + $0x9e8] sm:$0xff]  ;;  %v320_v3 = vld [vmem:[%s7179_s1 + $0x8f8] sm:$0xff]  ;;  %v303_v11 = vld [vmem:[%s7179_s1 + $0x870] sm:$0xff] }
  0x86   :  { %1627 = vmatmul.mubr.f32.vlgmr.msra.gmra.mrb[6].mxu1 %v5278_v15  ;;  %4017 = vmatprep.subr.bf16.mxu0 %v4016_v59  ;;  %v326_v15 = vld [vmem:[%s7179_s1 + $0x928] sm:$0xff]  ;;  %v4066_v59 = vpack.c.bf16 %v332_v53, %v331_v50  ;;  %v4068_v0 = vpack.c.bf16 %v350_v45, %v349_v56  ;;  %v304_v10 = vld [vmem:[%s7179_s1 + $0x878] sm:$0xff]  ;;  %v375_v45 = vld [vmem:[%s7179_s1 + $0xab0] sm:$0xff] }
  0x87   :  { %4047 = vmatpush3.bf16.msra.mxu1 %v4046_v58  ;;  %1766 = vmatprep.mubr.f32.mxu1 %v904_v6  ;;  %v4054_v21 = vpack.c.bf16 %v326_v15, %v325_v12  ;;  %v4034_v58 = vpack.c.bf16 %v300_v49, %v299_v48  ;;  %v4038_v6 = vpack.c.bf16 %v302_v62, %v301_v61  ;;  %v335_v12 = vld [vmem:[%s7179_s1 + $0x970] sm:$0xff]  ;;  %v336_v15 = vld [vmem:[%s7179_s1 + $0x978] sm:$0xff]  ;;  %v406_v48 = vld [vmem:[%s7179_s1 + $0xba8] sm:$0xff] }
  0x88   :  { %4049 = vmatprep.subr.bf16.mxu1 %v4048_v63  ;;  %v333_v63 = vld [vmem:[%s7179_s1 + $0x960] sm:$0xff]  ;;  %v451_v18 = vld [vmem:[%s7179_s1 + $0xd10] sm:$0xff] }
  0x89   :  { %4019 = vmatpush3.bf16.msra.mxu0 %v4018_v7  ;;  %v26_v7 = vld [vmem:[%s7178_s0 + $0x28] sm:$0xff] }
  0x8a   :  { %4021 = vmatprep.subr.bf16.mxu0 %v4020_v9  ;;  %v4040_v9 = vpack.c.bf16 %v320_v3, %v319_v2  ;;  %v5683_v31 = vrot.slane %v26_v7, %v4774_v13  ;;  %v391_v2 = vld [vmem:[%s7179_s1 + $0xb30] sm:$0xff] }
  0x8b   :  { %4051 = vmatpush3.bf16.msra.mxu1 %v4050_v8  ;;  %v4070_v8 = vpack.c.bf16 %v334_v1, %v333_v63  ;;  %v360_v1 = vld [vmem:[%s7179_s1 + $0xa38] sm:$0xff] }
  0x8c   :  { %4053 = vmatprep.subr.bf16.mxu1 %v4052_v14  ;;  %v4072_v14 = vpack.c.bf16 %v352_v5, %v351_v4  ;;  %v392_v4 = vld [vmem:[%s7179_s1 + $0xb38] sm:$0xff]  ;;  %v377_v5 = vld [vmem:[%s7179_s1 + $0xac0] sm:$0xff] }
  0x8d   :  { %4023 = vmatpush3.bf16.msra.mxu0 %v4022_v20  ;;  %v905_v20 = vcombine.high %v26_v7, %v26_v7  ;;  %v409_v7 = vld [vmem:[%s7179_s1 + $0xbc0] sm:$0xff] }
  0x8e   :  { %4025 = vmatprep.subr.bf16.mxu0 %v4024_v22  ;;  %v4074_v22 = vpack.c.bf16 %v336_v15, %v335_v12  ;;  %v361_v12 = vld [vmem:[%s7179_s1 + $0xa40] sm:$0xff] }
  0x8f   :  { %4055 = vmatpush3.bf16.msra.mxu1 %v4054_v21  ;;  %v4042_v21 = vpack.c.bf16 %v304_v10, %v303_v11  ;;  %v4122_v11 = vpack.c.bf16 %v392_v4, %v391_v2  ;;  %v393_v15 = vld [vmem:[%s7179_s1 + $0xb40] sm:$0xff]  ;;  %v418_v2 = vld [vmem:[%s7179_s1 + $0xc08] sm:$0xff] }
  0x90   :  { %4057 = vmatprep.subr.bf16.mxu1 %v4056_v26  ;;  %v385_v26 = vld [vmem:[%s7179_s1 + $0xb00] sm:$0xff] }
  0x91   :  { %4027 = vmatpush3.bf16.msra.mxu0 %v4026_v32  ;;  %v403_v32 = vld [vmem:[%s7179_s1 + $0xb90] sm:$0xff]  ;;  %v4110_v36 = vpack.c.bf16 %v386_v28, %v385_v26  ;;  %v364_v26 = vld [vmem:[%s7179_s1 + $0xa58] sm:$0xff] }
  0x92   :  { %4029 = vmatprep.subr.bf16.mxu0 %v4028_v34  ;;  %v5692_v34 = vrot.slane %v905_v20, %v4774_v13  ;;  %v411_v20 = vld [vmem:[%s7179_s1 + $0xbd0] sm:$0xff] }
  0x93   :  { %4059 = vmatpush3.bf16.msra.mxu1 %v4058_v42  ;;  %v404_v42 = vld [vmem:[%s7179_s1 + $0xb98] sm:$0xff] }
  0x94   :  { %4061 = vmatprep.subr.bf16.mxu1 %v4060_v37  ;;  %v355_v37 = vld [vmem:[%s7179_s1 + $0xa10] sm:$0xff]  ;;  %v4112_v40 = vpack.c.bf16 %v404_v42, %v403_v32  ;;  %v921_v49 = vcombine.high %v5692_v34, %v5692_v34  ;;  %v382_v32 = vld [vmem:[%s7179_s1 + $0xae8] sm:$0xff]  ;;  %v413_v42 = vld [vmem:[%s7179_s1 + $0xbe0] sm:$0xff] }
  0x95   :  { %4031 = vmatpush3.bf16.msra.mxu0 %v4030_v44  ;;  %v374_v44 = vld [vmem:[%s7179_s1 + $0xaa8] sm:$0xff]  ;;  %v4082_v50 = vpack.c.bf16 %v356_v38, %v355_v37  ;;  %v4100_v37 = vpack.c.bf16 %v382_v32, %v381_v30  ;;  %v365_v38 = vld [vmem:[%s7179_s1 + $0xa60] sm:$0xff] }
  0x96   :  { %4033 = vmatprep.subr.bf16.mxu0 %v4032_v47  ;;  %v405_v47 = vld [vmem:[%s7179_s1 + $0xba0] sm:$0xff]  ;;  %v4084_v53 = vpack.c.bf16 %v374_v44, %v373_v43  ;;  %v398_v43 = vld [vmem:[%s7179_s1 + $0xb68] sm:$0xff]  ;;  %v383_v44 = vld [vmem:[%s7179_s1 + $0xaf0] sm:$0xff] }
  0x97   :  { %4063 = vmatpush3.bf16.msra.mxu1 %v4062_v46  ;;  %v920_v46 = vcombine.high %v5683_v31, %v5683_v31  ;;  %v4116_v56 = vpack.c.bf16 %v406_v48, %v405_v47  ;;  %v415_v47 = vld [vmem:[%s7179_s1 + $0xbf0] sm:$0xff]  ;;  %v416_v48 = vld [vmem:[%s7179_s1 + $0xbf8] sm:$0xff]  ;;  %v422_v30 = vld [vmem:[%s7179_s1 + $0xc28] sm:$0xff] }
  0x98   :  { %4065 = vmatprep.subr.bf16.mxu1 %v4064_v51  ;;  %v4114_v51 = vpack.c.bf16 %v388_v41, %v387_v39  ;;  %v366_v39 = vld [vmem:[%s7179_s1 + $0xa68] sm:$0xff]  ;;  %v453_v32 = vld [vmem:[%s7179_s1 + $0xd20] sm:$0xff] }
  0x99   :  { %4035 = vmatpush3.bf16.msra.mxu0 %v4034_v58  ;;  %v376_v58 = vld [vmem:[%s7179_s1 + $0xab8] sm:$0xff] }
  0x9a   :  { %4037 = vmatprep.subr.bf16.mxu0 %v4036_v60  ;;  %v408_v60 = vld [vmem:[%s7179_s1 + $0xbb8] sm:$0xff]  ;;  %v4088_v63 = vpack.c.bf16 %v376_v58, %v375_v45  ;;  %v433_v45 = vld [vmem:[%s7179_s1 + $0xc80] sm:$0xff]  ;;  %v434_v58 = vld [vmem:[%s7179_s1 + $0xc88] sm:$0xff] }
  0x9b   :  { %4067 = vmatpush3.bf16.msra.mxu1 %v4066_v59  ;;  %v407_v59 = vld [vmem:[%s7179_s1 + $0xbb0] sm:$0xff] }
  0x9c   :  { %4069 = vmatprep.subr.bf16.mxu1 %v4068_v0  ;;  %v359_v0 = vld [vmem:[%s7179_s1 + $0xa30] sm:$0xff]  ;;  %v4120_v3 = vpack.c.bf16 %v408_v60, %v407_v59  ;;  %v465_v59 = vld [vmem:[%s7179_s1 + $0xd80] sm:$0xff]  ;;  %v466_v60 = vld [vmem:[%s7179_s1 + $0xd88] sm:$0xff] }
  0x9d   :  { %4039 = vmatpush3.bf16.msra.mxu0 %v4038_v6  ;;  %v378_v6 = vld [vmem:[%s7179_s1 + $0xac8] sm:$0xff]  ;;  %v4172_v4 = vpack.c.bf16 %v466_v60, %v465_v59  ;;  %v443_v59 = vld [vmem:[%s7179_s1 + $0xcd0] sm:$0xff]  ;;  %v444_v60 = vld [vmem:[%s7179_s1 + $0xcd8] sm:$0xff] }
  0x9e   :  { %4041 = vmatprep.subr.bf16.mxu0 %v4040_v9  ;;  %v4090_v9 = vpack.c.bf16 %v360_v1, %v359_v0  ;;  %v4092_v10 = vpack.c.bf16 %v378_v6, %v377_v5  ;;  %v4140_v0 = vpack.c.bf16 %v434_v58, %v433_v45  ;;  %v417_v1 = vld [vmem:[%s7179_s1 + $0xc00] sm:$0xff]  ;;  %v450_v5 = vld [vmem:[%s7179_s1 + $0xd08] sm:$0xff]  ;;  %v435_v6 = vld [vmem:[%s7179_s1 + $0xc90] sm:$0xff] }
  0x9f   :  { %4071 = vmatpush3.bf16.msra.mxu1 %v4070_v8  ;;  %v410_v8 = vld [vmem:[%s7179_s1 + $0xbc8] sm:$0xff] }
  0xa0   :  { %4073 = vmatprep.subr.bf16.mxu1 %v4072_v14  ;;  %v362_v14 = vld [vmem:[%s7179_s1 + $0xa48] sm:$0xff]  ;;  %v4124_v16 = vpack.c.bf16 %v410_v8, %v409_v7  ;;  %v436_v7 = vld [vmem:[%s7179_s1 + $0xc98] sm:$0xff] }
  0xa1   :  { %4043 = vmatpush3.bf16.msra.mxu0 %v4042_v21  ;;  %v412_v21 = vld [vmem:[%s7179_s1 + $0xbd8] sm:$0xff]  ;;  %v458_v58 = vld [vmem:[%s7179_s1 + $0xd48] sm:$0xff] }
  0xa2   :  { %4077 = vmatprep.subr.bf16.mxu0 %v4076_v23  ;;  %v4126_v23 = vpack.c.bf16 %v394_v17, %v393_v15  ;;  %v4128_v28 = vpack.c.bf16 %v412_v21, %v411_v20  ;;  %v4144_v15 = vpack.c.bf16 %v436_v7, %v435_v6  ;;  %v420_v17 = vld [vmem:[%s7179_s1 + $0xc18] sm:$0xff]  ;;  %v437_v21 = vld [vmem:[%s7179_s1 + $0xca0] sm:$0xff] }
  0xa3   :  { %4075 = vmatpush3.bf16.msra.mxu1 %v4074_v22  ;;  %v4094_v22 = vpack.c.bf16 %v362_v14, %v361_v12  ;;  %v4142_v12 = vpack.c.bf16 %v418_v2, %v417_v1  ;;  %v452_v20 = vld [vmem:[%s7179_s1 + $0xd18] sm:$0xff]  ;;  %v4160_v1 = vpack.c.bf16 %v444_v60, %v443_v59  ;;  %v427_v2 = vld [vmem:[%s7179_s1 + $0xc50] sm:$0xff]  ;;  %v445_v7 = vld [vmem:[%s7179_s1 + $0xce0] sm:$0xff] }
  0xa4   :  { %4109 = vmatprep.subr.bf16.mxu1 %v4108_v27  ;;  %1697 = vmatmul.mubr.f32.vlgmr.msra.gmra.mrb[8].mxu0 %v5476_v54  ;;  %v357_v54 = vld [vmem:[%s7179_s1 + $0xa20] sm:$0xff]  ;;  %v395_v27 = vld [vmem:[%s7179_s1 + $0xb50] sm:$0xff]  ;;  %v460_v6 = vld [vmem:[%s7179_s1 + $0xd58] sm:$0xff] }
  0xa5   :  { %4079 = vmatpush3.bf16.msra.mxu0 %v4078_v35  ;;  %1836 = vmatprep.mubr.f32.mxu0 %v920_v46  ;;  %v4086_v61 = vpack.c.bf16 %v358_v33, %v357_v54  ;;  %v414_v35 = vld [vmem:[%s7179_s1 + $0xbe8] sm:$0xff]  ;;  %v384_v46 = vld [vmem:[%s7179_s1 + $0xaf8] sm:$0xff]  ;;  %v367_v54 = vld [vmem:[%s7179_s1 + $0xa70] sm:$0xff] }
  0xa6   :  { %1767 = vmatmul.mubr.f32.vlgmr.msra.gmra.mrb[8].mxu1 %v5485_v57  ;;  %4081 = vmatprep.subr.bf16.mxu0 %v4080_v52  ;;  %v390_v57 = vld [vmem:[%s7179_s1 + $0xb28] sm:$0xff]  ;;  %v4130_v52 = vpack.c.bf16 %v396_v29, %v395_v27  ;;  %v4132_v41 = vpack.c.bf16 %v414_v35, %v413_v42  ;;  %v368_v33 = vld [vmem:[%s7179_s1 + $0xa78] sm:$0xff]  ;;  %v439_v35 = vld [vmem:[%s7179_s1 + $0xcb0] sm:$0xff] }
  0xa7   :  { %4111 = vmatpush3.bf16.msra.mxu1 %v4110_v36  ;;  %1906 = vmatprep.mubr.f32.mxu1 %v921_v49  ;;  %v4118_v62 = vpack.c.bf16 %v390_v57, %v389_v55  ;;  %v4098_v36 = vpack.c.bf16 %v364_v26, %v363_v25  ;;  %v4102_v49 = vpack.c.bf16 %v366_v39, %v365_v38  ;;  %v399_v55 = vld [vmem:[%s7179_s1 + $0xb70] sm:$0xff]  ;;  %v400_v57 = vld [vmem:[%s7179_s1 + $0xb78] sm:$0xff]  ;;  %v470_v25 = vld [vmem:[%s7179_s1 + $0xda8] sm:$0xff] }
  0xa8   :  { %4113 = vmatprep.subr.bf16.mxu1 %v4112_v40  ;;  %v397_v40 = vld [vmem:[%s7179_s1 + $0xb60] sm:$0xff]  ;;  %v515_v59 = vld [vmem:[%s7179_s1 + $0xf10] sm:$0xff] }
  0xa9   :  { %4083 = vmatpush3.bf16.msra.mxu0 %v4082_v50  ;;  %v27_v50 = vld [vmem:[%s7178_s0 + $0x30] sm:$0xff] }
  0xaa   :  { %4085 = vmatprep.subr.bf16.mxu0 %v4084_v53  ;;  %v4104_v53 = vpack.c.bf16 %v384_v46, %v383_v44  ;;  %v5890_v8 = vrot.slane %v27_v50, %v4774_v13  ;;  %v455_v44 = vld [vmem:[%s7179_s1 + $0xd30] sm:$0xff] }
  0xab   :  { %4115 = vmatpush3.bf16.msra.mxu1 %v4114_v51  ;;  %v4134_v51 = vpack.c.bf16 %v398_v43, %v397_v40  ;;  %v424_v43 = vld [vmem:[%s7179_s1 + $0xc38] sm:$0xff] }
  0xac   :  { %4117 = vmatprep.subr.bf16.mxu1 %v4116_v56  ;;  %v4136_v56 = vpack.c.bf16 %v416_v48, %v415_v47  ;;  %v456_v47 = vld [vmem:[%s7179_s1 + $0xd38] sm:$0xff]  ;;  %v441_v48 = vld [vmem:[%s7179_s1 + $0xcc0] sm:$0xff] }
  0xad   :  { %4087 = vmatpush3.bf16.msra.mxu0 %v4086_v61  ;;  %v922_v61 = vcombine.high %v27_v50, %v27_v50  ;;  %v473_v50 = vld [vmem:[%s7179_s1 + $0xdc0] sm:$0xff] }
  0xae   :  { %4089 = vmatprep.subr.bf16.mxu0 %v4088_v63  ;;  %v4138_v63 = vpack.c.bf16 %v400_v57, %v399_v55  ;;  %v425_v55 = vld [vmem:[%s7179_s1 + $0xc40] sm:$0xff] }
  0xaf   :  { %4119 = vmatpush3.bf16.msra.mxu1 %v4118_v62  ;;  %v4106_v62 = vpack.c.bf16 %v368_v33, %v367_v54  ;;  %v4186_v54 = vpack.c.bf16 %v456_v47, %v455_v44  ;;  %v457_v57 = vld [vmem:[%s7179_s1 + $0xd40] sm:$0xff]  ;;  %v482_v44 = vld [vmem:[%s7179_s1 + $0xe08] sm:$0xff] }
  0xb0   :  { %4121 = vmatprep.subr.bf16.mxu1 %v4120_v3  ;;  %v449_v3 = vld [vmem:[%s7179_s1 + $0xd00] sm:$0xff] }
  0xb1   :  { %4091 = vmatpush3.bf16.msra.mxu0 %v4090_v9  ;;  %v467_v9 = vld [vmem:[%s7179_s1 + $0xd90] sm:$0xff]  ;;  %v4174_v14 = vpack.c.bf16 %v450_v5, %v449_v3  ;;  %v428_v3 = vld [vmem:[%s7179_s1 + $0xc58] sm:$0xff] }
  0xb2   :  { %4093 = vmatprep.subr.bf16.mxu0 %v4092_v10  ;;  %v5899_v10 = vrot.slane %v922_v61, %v4774_v13  ;;  %v475_v61 = vld [vmem:[%s7179_s1 + $0xdd0] sm:$0xff] }
  0xb3   :  { %4123 = vmatpush3.bf16.msra.mxu1 %v4122_v11  ;;  %v468_v11 = vld [vmem:[%s7179_s1 + $0xd98] sm:$0xff] }
  0xb4   :  { %4125 = vmatprep.subr.bf16.mxu1 %v4124_v16  ;;  %v419_v16 = vld [vmem:[%s7179_s1 + $0xc10] sm:$0xff]  ;;  %v4176_v19 = vpack.c.bf16 %v468_v11, %v467_v9  ;;  %v938_v26 = vcombine.high %v5899_v10, %v5899_v10  ;;  %v446_v9 = vld [vmem:[%s7179_s1 + $0xce8] sm:$0xff]  ;;  %v477_v11 = vld [vmem:[%s7179_s1 + $0xde0] sm:$0xff] }
  0xb5   :  { %4095 = vmatpush3.bf16.msra.mxu0 %v4094_v22  ;;  %v438_v22 = vld [vmem:[%s7179_s1 + $0xca8] sm:$0xff]  ;;  %v4146_v27 = vpack.c.bf16 %v420_v17, %v419_v16  ;;  %v4164_v16 = vpack.c.bf16 %v446_v9, %v445_v7  ;;  %v429_v17 = vld [vmem:[%s7179_s1 + $0xc60] sm:$0xff] }
  0xb6   :  { %4097 = vmatprep.subr.bf16.mxu0 %v4096_v24  ;;  %v469_v24 = vld [vmem:[%s7179_s1 + $0xda0] sm:$0xff]  ;;  %v4148_v29 = vpack.c.bf16 %v438_v22, %v437_v21  ;;  %v462_v21 = vld [vmem:[%s7179_s1 + $0xd68] sm:$0xff]  ;;  %v447_v22 = vld [vmem:[%s7179_s1 + $0xcf0] sm:$0xff] }
  0xb7   :  { %4127 = vmatpush3.bf16.msra.mxu1 %v4126_v23  ;;  %v937_v23 = vcombine.high %v5890_v8, %v5890_v8  ;;  %v4180_v42 = vpack.c.bf16 %v470_v25, %v469_v24  ;;  %v479_v24 = vld [vmem:[%s7179_s1 + $0xdf0] sm:$0xff]  ;;  %v480_v25 = vld [vmem:[%s7179_s1 + $0xdf8] sm:$0xff]  ;;  %v486_v7 = vld [vmem:[%s7179_s1 + $0xe28] sm:$0xff] }
  0xb8   :  { %4129 = vmatprep.subr.bf16.mxu1 %v4128_v28  ;;  %v4178_v28 = vpack.c.bf16 %v452_v20, %v451_v18  ;;  %v430_v18 = vld [vmem:[%s7179_s1 + $0xc68] sm:$0xff]  ;;  %v517_v9 = vld [vmem:[%s7179_s1 + $0xf20] sm:$0xff] }
  0xb9   :  { %4099 = vmatpush3.bf16.msra.mxu0 %v4098_v36  ;;  %v440_v36 = vld [vmem:[%s7179_s1 + $0xcb8] sm:$0xff] }
  0xba   :  { %4101 = vmatprep.subr.bf16.mxu0 %v4100_v37  ;;  %v472_v37 = vld [vmem:[%s7179_s1 + $0xdb8] sm:$0xff]  ;;  %v4152_v40 = vpack.c.bf16 %v440_v36, %v439_v35  ;;  %v497_v35 = vld [vmem:[%s7179_s1 + $0xe80] sm:$0xff]  ;;  %v498_v36 = vld [vmem:[%s7179_s1 + $0xe88] sm:$0xff] }
  0xbb   :  { %4131 = vmatpush3.bf16.msra.mxu1 %v4130_v52  ;;  %v471_v52 = vld [vmem:[%s7179_s1 + $0xdb0] sm:$0xff] }
  0xbc   :  { %4133 = vmatprep.subr.bf16.mxu1 %v4132_v41  ;;  %v423_v41 = vld [vmem:[%s7179_s1 + $0xc30] sm:$0xff]  ;;  %v4184_v46 = vpack.c.bf16 %v472_v37, %v471_v52  ;;  %v529_v52 = vld [vmem:[%s7179_s1 + $0xf80] sm:$0xff]  ;;  %v530_v37 = vld [vmem:[%s7179_s1 + $0xf88] sm:$0xff] }
  0xbd   :  { %4103 = vmatpush3.bf16.msra.mxu0 %v4102_v49  ;;  %v442_v49 = vld [vmem:[%s7179_s1 + $0xcc8] sm:$0xff]  ;;  %v4236_v47 = vpack.c.bf16 %v530_v37, %v529_v52  ;;  %v507_v52 = vld [vmem:[%s7179_s1 + $0xed0] sm:$0xff]  ;;  %v508_v37 = vld [vmem:[%s7179_s1 + $0xed8] sm:$0xff] }
  0xbe   :  { %4105 = vmatprep.subr.bf16.mxu0 %v4104_v53  ;;  %v4154_v53 = vpack.c.bf16 %v424_v43, %v423_v41  ;;  %v4156_v33 = vpack.c.bf16 %v442_v49, %v441_v48  ;;  %v4204_v41 = vpack.c.bf16 %v498_v36, %v497_v35  ;;  %v481_v43 = vld [vmem:[%s7179_s1 + $0xe00] sm:$0xff]  ;;  %v514_v48 = vld [vmem:[%s7179_s1 + $0xf08] sm:$0xff]  ;;  %v499_v49 = vld [vmem:[%s7179_s1 + $0xe90] sm:$0xff] }
  0xbf   :  { %4135 = vmatpush3.bf16.msra.mxu1 %v4134_v51  ;;  %v474_v51 = vld [vmem:[%s7179_s1 + $0xdc8] sm:$0xff] }
  0xc0   :  { %4137 = vmatprep.subr.bf16.mxu1 %v4136_v56  ;;  %v426_v56 = vld [vmem:[%s7179_s1 + $0xc48] sm:$0xff]  ;;  %v4188_v45 = vpack.c.bf16 %v474_v51, %v473_v50  ;;  %v500_v50 = vld [vmem:[%s7179_s1 + $0xe98] sm:$0xff] }
  0xc1   :  { %4107 = vmatpush3.bf16.msra.mxu0 %v4106_v62  ;;  %v476_v62 = vld [vmem:[%s7179_s1 + $0xdd8] sm:$0xff]  ;;  %v522_v36 = vld [vmem:[%s7179_s1 + $0xf48] sm:$0xff] }
  0xc2   :  { %4141 = vmatprep.subr.bf16.mxu0 %v4140_v0  ;;  %v4190_v0 = vpack.c.bf16 %v458_v58, %v457_v57  ;;  %v4192_v5 = vpack.c.bf16 %v476_v62, %v475_v61  ;;  %v4208_v57 = vpack.c.bf16 %v500_v50, %v499_v49  ;;  %v484_v58 = vld [vmem:[%s7179_s1 + $0xe18] sm:$0xff]  ;;  %v501_v62 = vld [vmem:[%s7179_s1 + $0xea0] sm:$0xff] }
  0xc3   :  { %4139 = vmatpush3.bf16.msra.mxu1 %v4138_v63  ;;  %v4158_v63 = vpack.c.bf16 %v426_v56, %v425_v55  ;;  %v4206_v55 = vpack.c.bf16 %v482_v44, %v481_v43  ;;  %v516_v61 = vld [vmem:[%s7179_s1 + $0xf18] sm:$0xff]  ;;  %v4224_v43 = vpack.c.bf16 %v508_v37, %v507_v52  ;;  %v491_v44 = vld [vmem:[%s7179_s1 + $0xe50] sm:$0xff]  ;;  %v509_v50 = vld [vmem:[%s7179_s1 + $0xee0] sm:$0xff] }
  0xc4   :  { %4173 = vmatprep.subr.bf16.mxu1 %v4172_v4  ;;  %1837 = vmatmul.mubr.f32.vlgmr.msra.gmra.mrb[10].mxu0 %v5683_v31  ;;  %v421_v31 = vld [vmem:[%s7179_s1 + $0xc20] sm:$0xff]  ;;  %v459_v4 = vld [vmem:[%s7179_s1 + $0xd50] sm:$0xff]  ;;  %v524_v49 = vld [vmem:[%s7179_s1 + $0xf58] sm:$0xff] }
  0xc5   :  { %4143 = vmatpush3.bf16.msra.mxu0 %v4142_v12  ;;  %1976 = vmatprep.mubr.f32.mxu0 %v937_v23  ;;  %v4150_v38 = vpack.c.bf16 %v422_v30, %v421_v31  ;;  %v478_v12 = vld [vmem:[%s7179_s1 + $0xde8] sm:$0xff]  ;;  %v448_v23 = vld [vmem:[%s7179_s1 + $0xcf8] sm:$0xff]  ;;  %v431_v31 = vld [vmem:[%s7179_s1 + $0xc70] sm:$0xff] }
  0xc6   :  { %1907 = vmatmul.mubr.f32.vlgmr.msra.gmra.mrb[10].mxu1 %v5692_v34  ;;  %4145 = vmatprep.subr.bf16.mxu0 %v4144_v15  ;;  %v454_v34 = vld [vmem:[%s7179_s1 + $0xd28] sm:$0xff]  ;;  %v4194_v15 = vpack.c.bf16 %v460_v6, %v459_v4  ;;  %v4196_v20 = vpack.c.bf16 %v478_v12, %v477_v11  ;;  %v432_v30 = vld [vmem:[%s7179_s1 + $0xc78] sm:$0xff]  ;;  %v503_v12 = vld [vmem:[%s7179_s1 + $0xeb0] sm:$0xff] }
  0xc7   :  { %4175 = vmatpush3.bf16.msra.mxu1 %v4174_v14  ;;  %2046 = vmatprep.mubr.f32.mxu1 %v938_v26  ;;  %v4182_v39 = vpack.c.bf16 %v454_v34, %v453_v32  ;;  %v4162_v14 = vpack.c.bf16 %v428_v3, %v427_v2  ;;  %v4166_v26 = vpack.c.bf16 %v430_v18, %v429_v17  ;;  %v463_v32 = vld [vmem:[%s7179_s1 + $0xd70] sm:$0xff]  ;;  %v464_v34 = vld [vmem:[%s7179_s1 + $0xd78] sm:$0xff]  ;;  %v534_v2 = vld [vmem:[%s7179_s1 + $0xfa8] sm:$0xff] }
  0xc8   :  { %4177 = vmatprep.subr.bf16.mxu1 %v4176_v19  ;;  %v461_v19 = vld [vmem:[%s7179_s1 + $0xd60] sm:$0xff]  ;;  %v595_v37 = vld [vmem:[%s7179_s1 + $0x1190] sm:$0xff] }
  0xc9   :  { %4147 = vmatpush3.bf16.msra.mxu0 %v4146_v27  ;;  %v28_v27 = vld [vmem:[%s7178_s0 + $0x38] sm:$0xff] }
  0xca   :  { %4149 = vmatprep.subr.bf16.mxu0 %v4148_v29  ;;  %v4168_v29 = vpack.c.bf16 %v448_v23, %v447_v22  ;;  %v6097_v51 = vrot.slane %v28_v27, %v4774_v13  ;;  %v519_v22 = vld [vmem:[%s7179_s1 + $0xf30] sm:$0xff] }
  0xcb   :  { %4179 = vmatpush3.bf16.msra.mxu1 %v4178_v28  ;;  %v4198_v28 = vpack.c.bf16 %v462_v21, %v461_v19  ;;  %v488_v21 = vld [vmem:[%s7179_s1 + $0xe38] sm:$0xff] }
  0xcc   :  { %4181 = vmatprep.subr.bf16.mxu1 %v4180_v42  ;;  %v4200_v42 = vpack.c.bf16 %v480_v25, %v479_v24  ;;  %v520_v24 = vld [vmem:[%s7179_s1 + $0xf38] sm:$0xff]  ;;  %v505_v25 = vld [vmem:[%s7179_s1 + $0xec0] sm:$0xff] }
  0xcd   :  { %4151 = vmatpush3.bf16.msra.mxu0 %v4150_v38  ;;  %v939_v38 = vcombine.high %v28_v27, %v28_v27  ;;  %v537_v27 = vld [vmem:[%s7179_s1 + $0xfc0] sm:$0xff] }
  0xce   :  { %4153 = vmatprep.subr.bf16.mxu0 %v4152_v40  ;;  %v4202_v40 = vpack.c.bf16 %v464_v34, %v463_v32  ;;  %v489_v32 = vld [vmem:[%s7179_s1 + $0xe40] sm:$0xff] }
  0xcf   :  { %4183 = vmatpush3.bf16.msra.mxu1 %v4182_v39  ;;  %v4170_v39 = vpack.c.bf16 %v432_v30, %v431_v31  ;;  %v4250_v31 = vpack.c.bf16 %v520_v24, %v519_v22  ;;  %v521_v34 = vld [vmem:[%s7179_s1 + $0xf40] sm:$0xff]  ;;  %v562_v22 = vld [vmem:[%s7179_s1 + $0x1088] sm:$0xff] }
  0xd0   :  { %4185 = vmatprep.subr.bf16.mxu1 %v4184_v46  ;;  %v513_v46 = vld [vmem:[%s7179_s1 + $0xf00] sm:$0xff]  ;;  %v594_v24 = vld [vmem:[%s7179_s1 + $0x1188] sm:$0xff] }
  0xd1   :  { %4155 = vmatpush3.bf16.msra.mxu0 %v4154_v53  ;;  %v531_v53 = vld [vmem:[%s7179_s1 + $0xf90] sm:$0xff]  ;;  %v4238_v56 = vpack.c.bf16 %v514_v48, %v513_v46  ;;  %v492_v46 = vld [vmem:[%s7179_s1 + $0xe58] sm:$0xff] }
  0xd2   :  { %4157 = vmatprep.subr.bf16.mxu0 %v4156_v33  ;;  %v6106_v33 = vrot.slane %v939_v38, %v4774_v13  ;;  %v539_v38 = vld [vmem:[%s7179_s1 + $0xfd0] sm:$0xff] }
  0xd3   :  { %4187 = vmatpush3.bf16.msra.mxu1 %v4186_v54  ;;  %v532_v54 = vld [vmem:[%s7179_s1 + $0xf98] sm:$0xff] }
  0xd4   :  { %4189 = vmatprep.subr.bf16.mxu1 %v4188_v45  ;;  %v483_v45 = vld [vmem:[%s7179_s1 + $0xe10] sm:$0xff]  ;;  %v4240_v60 = vpack.c.bf16 %v532_v54, %v531_v53  ;;  %v955_v3 = vcombine.high %v6106_v33, %v6106_v33  ;;  %v510_v53 = vld [vmem:[%s7179_s1 + $0xee8] sm:$0xff]  ;;  %v541_v54 = vld [vmem:[%s7179_s1 + $0xfe0] sm:$0xff] }
  0xd5   :  { %4159 = vmatpush3.bf16.msra.mxu0 %v4158_v63  ;;  %v502_v63 = vld [vmem:[%s7179_s1 + $0xea8] sm:$0xff]  ;;  %v4210_v4 = vpack.c.bf16 %v484_v58, %v483_v45  ;;  %v4228_v45 = vpack.c.bf16 %v510_v53, %v509_v50  ;;  %v493_v58 = vld [vmem:[%s7179_s1 + $0xe60] sm:$0xff] }
  0xd6   :  { %4161 = vmatprep.subr.bf16.mxu0 %v4160_v1  ;;  %v533_v1 = vld [vmem:[%s7179_s1 + $0xfa0] sm:$0xff]  ;;  %v4212_v6 = vpack.c.bf16 %v502_v63, %v501_v62  ;;  %v526_v63 = vld [vmem:[%s7179_s1 + $0xf68] sm:$0xff] }
  0xd7   :  { %4191 = vmatpush3.bf16.msra.mxu1 %v4190_v0  ;;  %v954_v0 = vcombine.high %v6097_v51, %v6097_v51  ;;  %v4244_v11 = vpack.c.bf16 %v534_v2, %v533_v1  ;;  %v512_v1 = vld [vmem:[%s7179_s1 + $0xef8] sm:$0xff]  ;;  %v2862_v2 = vld [vmem:[%s7180_s2] ss:$0 sm:$0xff]  ;;  %v566_v53 = vld [vmem:[%s7179_s1 + $0x10a8] sm:$0xff] }
  0xd8   :  { %4193 = vmatprep.subr.bf16.mxu1 %v4192_v5  ;;  %v4242_v5 = vpack.c.bf16 %v516_v61, %v515_v59  ;;  %v494_v59 = vld [vmem:[%s7179_s1 + $0xe68] sm:$0xff]  ;;  %v565_v50 = vld [vmem:[%s7179_s1 + $0x10a0] sm:$0xff] }
  0xd9   :  { %4163 = vmatpush3.bf16.msra.mxu0 %v4162_v14  ;;  %v504_v14 = vld [vmem:[%s7179_s1 + $0xeb8] sm:$0xff] }
  0xda   :  { %4165 = vmatprep.subr.bf16.mxu0 %v4164_v16  ;;  %v536_v16 = vld [vmem:[%s7179_s1 + $0xfb8] sm:$0xff]  ;;  %v4216_v19 = vpack.c.bf16 %v504_v14, %v503_v12 }
  0xdb   :  { %4195 = vmatpush3.bf16.msra.mxu1 %v4194_v15  ;;  %v535_v15 = vld [vmem:[%s7179_s1 + $0xfb0] sm:$0xff] }
  0xdc   :  { %4197 = vmatprep.subr.bf16.mxu1 %v4196_v20  ;;  %v487_v20 = vld [vmem:[%s7179_s1 + $0xe30] sm:$0xff]  ;;  %v4248_v23 = vpack.c.bf16 %v536_v16, %v535_v15  ;;  %v496_v16 = vld [vmem:[%s7179_s1 + $0xe78] sm:$0xff] }
  0xdd   :  { %4167 = vmatpush3.bf16.msra.mxu0 %v4166_v26  ;;  %v506_v26 = vld [vmem:[%s7179_s1 + $0xec8] sm:$0xff]  ;;  %v495_v15 = vld [vmem:[%s7179_s1 + $0xe70] sm:$0xff] }
  0xde   :  { %4169 = vmatprep.subr.bf16.mxu0 %v4168_v29  ;;  %v4218_v29 = vpack.c.bf16 %v488_v21, %v487_v20  ;;  %v4220_v30 = vpack.c.bf16 %v506_v26, %v505_v25  ;;  %v528_v20 = vld [vmem:[%s7179_s1 + $0xf78] sm:$0xff]  ;;  %v561_v21 = vld [vmem:[%s7179_s1 + $0x1080] sm:$0xff] }
  0xdf   :  { %4199 = vmatpush3.bf16.msra.mxu1 %v4198_v28  ;;  %v538_v28 = vld [vmem:[%s7179_s1 + $0xfc8] sm:$0xff] }
  0xe0   :  { %4201 = vmatprep.subr.bf16.mxu1 %v4200_v42  ;;  %v490_v42 = vld [vmem:[%s7179_s1 + $0xe48] sm:$0xff]  ;;  %v4252_v35 = vpack.c.bf16 %v538_v28, %v537_v27  ;;  %v4234_v27 = vpack.c.bf16 %v496_v16, %v495_v15 }
  0xe1   :  { %4171 = vmatpush3.bf16.msra.mxu0 %v4170_v39  ;;  %v540_v39 = vld [vmem:[%s7179_s1 + $0xfd8] sm:$0xff] }
  0xe2   :  { %4205 = vmatprep.subr.bf16.mxu0 %v4204_v41  ;;  %v4254_v41 = vpack.c.bf16 %v522_v36, %v521_v34  ;;  %v4256_v48 = vpack.c.bf16 %v540_v39, %v539_v38  ;;  %v578_v34 = vld [vmem:[%s7179_s1 + $0x1108] sm:$0xff]  ;;  %v564_v36 = vld [vmem:[%s7179_s1 + $0x1098] sm:$0xff] }
  0xe3   :  { %4203 = vmatpush3.bf16.msra.mxu1 %v4202_v40  ;;  %v4222_v40 = vpack.c.bf16 %v490_v42, %v489_v32  ;;  %v577_v32 = vld [vmem:[%s7179_s1 + $0x1100] sm:$0xff]  ;;  %v596_v38 = vld [vmem:[%s7179_s1 + $0x1198] sm:$0xff] }
  0xe4   :  { %4237 = vmatprep.subr.bf16.mxu1 %v4236_v47  ;;  %1977 = vmatmul.mubr.f32.vlgmr.msra.gmra.mrb[12].mxu0 %v5890_v8  ;;  %v485_v8 = vld [vmem:[%s7179_s1 + $0xe20] sm:$0xff]  ;;  %v523_v47 = vld [vmem:[%s7179_s1 + $0xf50] sm:$0xff] }
  0xe5   :  { %4207 = vmatpush3.bf16.msra.mxu0 %v4206_v55  ;;  %2116 = vmatprep.mubr.f32.mxu0 %v954_v0  ;;  %v4214_v17 = vpack.c.bf16 %v486_v7, %v485_v8  ;;  %v542_v55 = vld [vmem:[%s7179_s1 + $0xfe8] sm:$0xff]  ;;  %v511_v0 = vld [vmem:[%s7179_s1 + $0xef0] sm:$0xff] }
  0xe6   :  { %2047 = vmatmul.mubr.f32.vlgmr.msra.gmra.mrb[12].mxu1 %v5899_v10  ;;  %4209 = vmatprep.subr.bf16.mxu0 %v4208_v57  ;;  %v518_v10 = vld [vmem:[%s7179_s1 + $0xf28] sm:$0xff]  ;;  %v4258_v57 = vpack.c.bf16 %v524_v49, %v523_v47  ;;  %v4260_v62 = vpack.c.bf16 %v542_v55, %v541_v54  ;;  %v4232_v14 = vpack.c.bf16 %v512_v1, %v511_v0  ;;  %v579_v47 = vld [vmem:[%s7179_s1 + $0x1110] sm:$0xff]  ;;  %v580_v49 = vld [vmem:[%s7179_s1 + $0x1118] sm:$0xff] }
  0xe7   :  { %4239 = vmatpush3.bf16.msra.mxu1 %v4238_v56  ;;  %2186 = vmatprep.mubr.f32.mxu1 %v955_v3  ;;  %v4246_v18 = vpack.c.bf16 %v518_v10, %v517_v9  ;;  %v4226_v56 = vpack.c.bf16 %v492_v46, %v491_v44  ;;  %v4230_v9 = vpack.c.bf16 %v494_v59, %v493_v58  ;;  %v547_v44 = vld [vmem:[%s7179_s1 + $0x1010] sm:$0xff]  ;;  %v548_v46 = vld [vmem:[%s7179_s1 + $0x1018] sm:$0xff]  ;;  %v597_v55 = vld [vmem:[%s7179_s1 + $0x11a0] sm:$0xff] }
  0xe8   :  { %4241 = vmatprep.subr.bf16.mxu1 %v4240_v60  ;;  %v525_v60 = vld [vmem:[%s7179_s1 + $0xf60] sm:$0xff] }
  0xe9   :  { %4211 = vmatpush3.bf16.msra.mxu0 %v4210_v4  ;;  %v4262_v12 = vpack.c.bf16 %v526_v63, %v525_v60 }
  0xea   :  { %4213 = vmatprep.subr.bf16.mxu0 %v4212_v6  ;;  %v544_v6 = vld [vmem:[%s7179_s1 + $0xff8] sm:$0xff] }
  0xeb   :  { %4243 = vmatpush3.bf16.msra.mxu1 %v4242_v5  ;;  %v543_v5 = vld [vmem:[%s7179_s1 + $0xff0] sm:$0xff] }
  0xec   :  { %4245 = vmatprep.subr.bf16.mxu1 %v4244_v11  ;;  %v29_v11 = vld [vmem:[%s7178_s0 + $0x40] sm:$0xff] }
  0xed   :  { %4215 = vmatpush3.bf16.msra.mxu0 %v4214_v17  ;;  %v527_v17 = vld [vmem:[%s7179_s1 + $0xf70] sm:$0xff]  ;;  %v956_v25 = vcombine.high %v29_v11, %v29_v11  ;;  %v6309_v52 = vrot.slane %v29_v11, %v4774_v13 }
  0xee   :  { %4217 = vmatprep.subr.bf16.mxu0 %v4216_v19  ;;  %v4264_v19 = vpack.c.bf16 %v544_v6, %v543_v5  ;;  %v4266_v28 = vpack.c.bf16 %v528_v20, %v527_v17 }
  0xef   :  { %4247 = vmatpush3.bf16.msra.mxu1 %v4246_v18  ;;  %v6318_v39 = vrot.slane %v956_v25, %v4774_v13  ;;  %v971_v54 = vcombine.high %v6309_v52, %v6309_v52 }
  0xf0   :  { %4249 = vmatprep.subr.bf16.mxu1 %v4248_v23  ;;  %v593_v23 = vld [vmem:[%s7179_s1 + $0x1180] sm:$0xff] }
  0xf1   :  { %4219 = vmatpush3.bf16.msra.mxu0 %v4218_v29  ;;  %v4268_v29 = vpack.c.bf16 %v562_v22, %v561_v21  ;;  %v4300_v42 = vpack.c.bf16 %v594_v24, %v593_v23 }
  0xf2   :  { %4221 = vmatprep.subr.bf16.mxu0 %v4220_v30  ;;  %v546_v30 = vld [vmem:[%s7179_s1 + $0x1008] sm:$0xff] }
  0xf3   :  { %4251 = vmatpush3.bf16.msra.mxu1 %v4250_v31  ;;  %v545_v31 = vld [vmem:[%s7179_s1 + $0x1000] sm:$0xff] }
  0xf4   :  { %4253 = vmatprep.subr.bf16.mxu1 %v4252_v35  ;;  %v563_v35 = vld [vmem:[%s7179_s1 + $0x1090] sm:$0xff] }
  0xf5   :  { %4223 = vmatpush3.bf16.msra.mxu0 %v4222_v40  ;;  %v4270_v40 = vpack.c.bf16 %v546_v30, %v545_v31 }
  0xf6   :  { %4225 = vmatprep.subr.bf16.mxu0 %v4224_v43  ;;  %v4272_v43 = vpack.c.bf16 %v564_v36, %v563_v35 }
  0xf7   :  { %4255 = vmatpush3.bf16.msra.mxu1 %v4254_v41  ;;  %v2896_v61 = vpop.f32.mrb[0].mxu0  ;;  %v4302_v41 = vpack.c.bf16 %v578_v34, %v577_v32 }
  0xf8   :  { %4257 = vmatprep.subr.bf16.mxu1 %v4256_v48  ;;  %v2897_v3 = vpop.f32.mrb[1].mxu0  ;;  %v4304_v48 = vpack.c.bf16 %v596_v38, %v595_v37 }
  0xf9   :  { %v2931_v4 = vpop.f32.mrb[0].mxu1  ;;  %v2898_v8 = vadd.f32 %v2897_v3, %v2896_v61  ;;  %4227 = vmatpush3.bf16.msra.mxu0 %v4226_v56  ;;  %v598_v56 = vld [vmem:[%s7179_s1 + $0x11a8] sm:$0xff] }
  0xfa   :  { %v2932_v7 = vpop.f32.mrb[1].mxu1  ;;  %4229 = vmatprep.subr.bf16.mxu0 %v4228_v45  ;;  %v4274_v45 = vpack.c.bf16 %v548_v46, %v547_v44 }
  0xfb   :  { %v2933_v10 = vadd.f32 %v2932_v7, %v2931_v4  ;;  %4259 = vmatpush3.bf16.msra.mxu1 %v4258_v57  ;;  %v1139_v18 = vadd.f32 %v2898_v8, %v2862_v2  ;;  %v972_v57 = vcombine.high %v6318_v39, %v6318_v39 }
  0xfc   :  { %4261 = vmatprep.subr.bf16.mxu1 %v4260_v62 }
  0xfd   :  { %v6288_v26 = vadd.f32 %v2933_v10, %v1139_v18  ;;  %4231 = vmatpush3.bf16.msra.mxu0 %v4230_v9 }
  0xfe   :  { %4233 = vmatprep.subr.bf16.mxu0 %v4232_v14 }
  0xff   :  { %4263 = vmatpush3.bf16.msra.mxu1 %v4262_v12 }
 0x100   :  { %4265 = vmatprep.subr.bf16.mxu1 %v4264_v19 }
 0x101   :  { %4235 = vmatpush3.bf16.msra.mxu0 %v4234_v27 }
 0x102   :  { %4269 = vmatprep.subr.bf16.mxu0 %v4268_v29 }
 0x103   :  { %4267 = vmatpush3.bf16.msra.mxu1 %v4266_v28 }
 0x104   :  { %4301 = vmatprep.subr.bf16.mxu1 %v4300_v42  ;;  %2117 = vmatmul.mubr.f32.vlgmr.msra.gmra.mrb[14].mxu0 %v6097_v51 }
 0x105   :  { %4271 = vmatpush3.bf16.msra.mxu0 %v4270_v40 }
 0x106   :  { %2187 = vmatmul.mubr.f32.vlgmr.msra.gmra.mrb[14].mxu1 %v6106_v33 }
 0x107   :  { %10 = vsyncpa [#allocation3], 0  ;;  %4303 = vmatpush3.bf16.msra.mxu1 %v4302_v41  ;;  %4273 = vmatprep.subr.bf16.mxu0 %v4272_v43  ;;  %v4306_v58 = vpack.c.bf16 %v580_v49, %v579_v47  ;;  %v4276_v51 = vpack.c.bf16 %v566_v53, %v565_v50  ;;  %v549_v59 = vld [vmem:[%s7179_s1 + $0x1020] sm:$0xff]  ;;  %v550_v60 = vld [vmem:[%s7179_s1 + $0x1028] sm:$0xff]  ;;  %v4308_v33 = vpack.c.bf16 %v598_v56, %v597_v55  ;;  %vm4591_vm0 = vmmov 0   ;;  %s4593_s8 = smov [#allocation2]  }
 0x108   :  { %v581_v61 = vld [vmem:[%s7179_s1 + $0x1120] sm:$0xff]  ;;  %4305 = vmatprep.subr.bf16.mxu1 %v4304_v48  ;;  %v582_v62 = vld [vmem:[%s7179_s1 + $0x1128] sm:$0xff]  ;;  %v567_v63 = vld [vmem:[%s7179_s1 + $0x10b0] sm:$0xff]  ;;  %2256 = vmatprep.mubr.f32.mxu0 %v971_v54  ;;  %v4278_v3 = vpack.c.bf16 %v550_v60, %v549_v59 }
 0x109   :  { %v568_v0 = vld [vmem:[%s7179_s1 + $0x10b8] sm:$0xff]  ;;  %v599_v1 = vld [vmem:[%s7179_s1 + $0x11b0] sm:$0xff]  ;;  %2326 = vmatprep.mubr.f32.mxu1 %v972_v57  ;;  %4275 = vmatpush3.bf16.msra.mxu0 %v4274_v45  ;;  %v4310_v4 = vpack.c.bf16 %v582_v62, %v581_v61  ;;  %v569_v10 = vld [vmem:[%s7179_s1 + $0x10c0] sm:$0xff] }
 0x10a   :  { %v600_v2 = vld [vmem:[%s7179_s1 + $0x11b8] sm:$0xff]  ;;  %4277 = vmatprep.subr.bf16.mxu0 %v4276_v51  ;;  %v4280_v5 = vpack.c.bf16 %v568_v0, %v567_v63  ;;  %v551_v6 = vld [vmem:[%s7179_s1 + $0x1030] sm:$0xff]  ;;  %v570_v12 = vld [vmem:[%s7179_s1 + $0x10c8] sm:$0xff] }
 0x10b   :  { %4307 = vmatpush3.bf16.msra.mxu1 %v4306_v58  ;;  %v552_v8 = vld [vmem:[%s7179_s1 + $0x1038] sm:$0xff]  ;;  %v583_v7 = vld [vmem:[%s7179_s1 + $0x1130] sm:$0xff]  ;;  %v4312_v9 = vpack.c.bf16 %v600_v2, %v599_v1  ;;  %v601_v14 = vld [vmem:[%s7179_s1 + $0x11c0] sm:$0xff]  ;;  %v4284_v18 = vpack.c.bf16 %v570_v12, %v569_v10 }
 0x10c   :  { %4309 = vmatprep.subr.bf16.mxu1 %v4308_v33  ;;  %v584_v11 = vld [vmem:[%s7179_s1 + $0x1138] sm:$0xff]  ;;  %v602_v15 = vld [vmem:[%s7179_s1 + $0x11c8] sm:$0xff]  ;;  %v4282_v16 = vpack.c.bf16 %v552_v8, %v551_v6  ;;  %v553_v19 = vld [vmem:[%s7179_s1 + $0x1040] sm:$0xff] }
 0x10d   :  { %4279 = vmatpush3.bf16.msra.mxu0 %v4278_v3  ;;  %v4314_v17 = vpack.c.bf16 %v584_v11, %v583_v7  ;;  %v554_v20 = vld [vmem:[%s7179_s1 + $0x1048] sm:$0xff]  ;;  %v585_v21 = vld [vmem:[%s7179_s1 + $0x1140] sm:$0xff]  ;;  %v4316_v22 = vpack.c.bf16 %v602_v15, %v601_v14  ;;  %v571_v24 = vld [vmem:[%s7179_s1 + $0x10d0] sm:$0xff] }
 0x10e   :  { %4281 = vmatprep.subr.bf16.mxu0 %v4280_v5  ;;  %v586_v23 = vld [vmem:[%s7179_s1 + $0x1148] sm:$0xff]  ;;  %v572_v25 = vld [vmem:[%s7179_s1 + $0x10d8] sm:$0xff]  ;;  %v603_v27 = vld [vmem:[%s7179_s1 + $0x11d0] sm:$0xff]  ;;  %v4286_v29 = vpack.c.bf16 %v554_v20, %v553_v19 }
 0x10f   :  { %4311 = vmatpush3.bf16.msra.mxu1 %v4310_v4  ;;  %v604_v28 = vld [vmem:[%s7179_s1 + $0x11d8] sm:$0xff]  ;;  %v4318_v31 = vpack.c.bf16 %v586_v23, %v585_v21  ;;  %v4288_v30 = vpack.c.bf16 %v572_v25, %v571_v24  ;;  %v555_v32 = vld [vmem:[%s7179_s1 + $0x1050] sm:$0xff]  ;;  %v573_v37 = vld [vmem:[%s7179_s1 + $0x10e0] sm:$0xff] }
 0x110   :  { %4313 = vmatprep.subr.bf16.mxu1 %v4312_v9  ;;  %v556_v42 = vld [vmem:[%s7179_s1 + $0x1058] sm:$0xff]  ;;  %v587_v34 = vld [vmem:[%s7179_s1 + $0x1150] sm:$0xff]  ;;  %v4320_v35 = vpack.c.bf16 %v604_v28, %v603_v27  ;;  %v574_v38 = vld [vmem:[%s7179_s1 + $0x10e8] sm:$0xff] }
 0x111   :  { %4283 = vmatpush3.bf16.msra.mxu0 %v4282_v16  ;;  %v588_v36 = vld [vmem:[%s7179_s1 + $0x1158] sm:$0xff]  ;;  %v605_v40 = vld [vmem:[%s7179_s1 + $0x11e0] sm:$0xff]  ;;  %v606_v41 = vld [vmem:[%s7179_s1 + $0x11e8] sm:$0xff]  ;;  %v4290_v43 = vpack.c.bf16 %v556_v42, %v555_v32  ;;  %v4292_v46 = vpack.c.bf16 %v574_v38, %v573_v37 }
 0x112   :  { %4285 = vmatprep.subr.bf16.mxu0 %v4284_v18  ;;  %v4322_v44 = vpack.c.bf16 %v588_v36, %v587_v34  ;;  %v557_v47 = vld [vmem:[%s7179_s1 + $0x1060] sm:$0xff]  ;;  %v558_v48 = vld [vmem:[%s7179_s1 + $0x1068] sm:$0xff]  ;;  %v4324_v53 = vpack.c.bf16 %v606_v41, %v605_v40  ;;  %v575_v55 = vld [vmem:[%s7179_s1 + $0x10f0] sm:$0xff] }
 0x113   :  { %4315 = vmatpush3.bf16.msra.mxu1 %v4314_v17  ;;  %v589_v49 = vld [vmem:[%s7179_s1 + $0x1160] sm:$0xff]  ;;  %v590_v54 = vld [vmem:[%s7179_s1 + $0x1168] sm:$0xff]  ;;  %v576_v56 = vld [vmem:[%s7179_s1 + $0x10f8] sm:$0xff]  ;;  %v4294_v61 = vpack.c.bf16 %v558_v48, %v557_v47 }
 0x114   :  { %4317 = vmatprep.subr.bf16.mxu1 %v4316_v22  ;;  %v607_v58 = vld [vmem:[%s7179_s1 + $0x11f0] sm:$0xff]  ;;  %v608_v51 = vld [vmem:[%s7179_s1 + $0x11f8] sm:$0xff]  ;;  %v30_v33 = vld [vmem:[%s7178_s0 + $0x48] sm:$0xff]  ;;  %v4326_v63 = vpack.c.bf16 %v590_v54, %v589_v49  ;;  %v4296_v0 = vpack.c.bf16 %v576_v56, %v575_v55 }
 0x115   :  { %4287 = vmatpush3.bf16.msra.mxu0 %v4286_v29  ;;  %v559_v1 = vld [vmem:[%s7179_s1 + $0x1070] sm:$0xff]  ;;  %v560_v2 = vld [vmem:[%s7179_s1 + $0x1078] sm:$0xff]  ;;  %v4328_v5 = vpack.c.bf16 %v608_v51, %v607_v58  ;;  %v625_v8 = vld [vmem:[%s7179_s1 + $0x1280] sm:$0xff]  ;;  %v973_v11 = vcombine.high %v30_v33, %v30_v33  ;;  %v6519_v23 = vrot.slane %v30_v33, %v4774_v13 }
 0x116   :  { %4289 = vmatprep.subr.bf16.mxu0 %v4288_v30  ;;  %v591_v3 = vld [vmem:[%s7179_s1 + $0x1170] sm:$0xff]  ;;  %v592_v6 = vld [vmem:[%s7179_s1 + $0x1178] sm:$0xff]  ;;  %v626_v7 = vld [vmem:[%s7179_s1 + $0x1288] sm:$0xff]  ;;  %v4298_v12 = vpack.c.bf16 %v560_v2, %v559_v1 }
 0x117   :  { %4319 = vmatpush3.bf16.msra.mxu1 %v4318_v31  ;;  %v2966_v50 = vpop.f32.mrb[2].mxu0  ;;  %v657_v9 = vld [vmem:[%s7179_s1 + $0x1380] sm:$0xff]  ;;  %v4330_v14 = vpack.c.bf16 %v592_v6, %v591_v3  ;;  %v4332_v15 = vpack.c.bf16 %v626_v7, %v625_v8  ;;  %v610_v17 = vld [vmem:[%s7179_s1 + $0x1208] sm:$0xff]  ;;  %v627_v21 = vld [vmem:[%s7179_s1 + $0x1290] sm:$0xff]  ;;  %v6528_v27 = vrot.slane %v973_v11, %v4774_v13  ;;  %v988_v38 = vcombine.high %v6519_v23, %v6519_v23 }
 0x118   :  { %4321 = vmatprep.subr.bf16.mxu1 %v4320_v35  ;;  %v2967_v57 = vpop.f32.mrb[3].mxu0  ;;  %v609_v16 = vld [vmem:[%s7179_s1 + $0x1200] sm:$0xff]  ;;  %v642_v20 = vld [vmem:[%s7179_s1 + $0x1308] sm:$0xff]  ;;  %v628_v22 = vld [vmem:[%s7179_s1 + $0x1298] sm:$0xff] }
 0x119   :  { %v3001_v45 = vpop.f32.mrb[2].mxu1  ;;  %v2968_v59 = vadd.f32 %v2967_v57, %v2966_v50  ;;  %4291 = vmatpush3.bf16.msra.mxu0 %v4290_v43  ;;  %v641_v18 = vld [vmem:[%s7179_s1 + $0x1300] sm:$0xff]  ;;  %v659_v24 = vld [vmem:[%s7179_s1 + $0x1390] sm:$0xff]  ;;  %v660_v25 = vld [vmem:[%s7179_s1 + $0x1398] sm:$0xff]  ;;  %v4334_v28 = vpack.c.bf16 %v610_v17, %v609_v16  ;;  %v4336_v31 = vpack.c.bf16 %v628_v22, %v627_v21  ;;  %v989_v43 = vcombine.high %v6528_v27, %v6528_v27 }
 0x11a   :  { %v3002_v60 = vpop.f32.mrb[3].mxu1  ;;  %4293 = vmatprep.subr.bf16.mxu0 %v4292_v46  ;;  %v4366_v29 = vpack.c.bf16 %v642_v20, %v641_v18  ;;  %v611_v30 = vld [vmem:[%s7179_s1 + $0x1210] sm:$0xff]  ;;  %v612_v32 = vld [vmem:[%s7179_s1 + $0x1218] sm:$0xff]  ;;  %v4368_v34 = vpack.c.bf16 %v660_v25, %v659_v24  ;;  %v629_v36 = vld [vmem:[%s7179_s1 + $0x12a0] sm:$0xff] }
 0x11b   :  { %v3003_v62 = vadd.f32 %v3002_v60, %v3001_v45  ;;  %4323 = vmatpush3.bf16.msra.mxu1 %v4322_v44  ;;  %v1279_v4 = vadd.f32 %v2968_v59, %v6288_v26  ;;  %v658_v26 = vld [vmem:[%s7179_s1 + $0x1388] sm:$0xff]  ;;  %v643_v42 = vld [vmem:[%s7179_s1 + $0x1310] sm:$0xff]  ;;  %v644_v35 = vld [vmem:[%s7179_s1 + $0x1318] sm:$0xff]  ;;  %v4338_v44 = vpack.c.bf16 %v612_v32, %v611_v30 }
 0x11c   :  { %4325 = vmatprep.subr.bf16.mxu1 %v4324_v53  ;;  %v4364_v19 = vpack.c.bf16 %v658_v26, %v657_v9  ;;  %v630_v37 = vld [vmem:[%s7179_s1 + $0x12a8] sm:$0xff]  ;;  %v661_v40 = vld [vmem:[%s7179_s1 + $0x13a0] sm:$0xff]  ;;  %v4370_v46 = vpack.c.bf16 %v644_v35, %v643_v42  ;;  %v631_v53 = vld [vmem:[%s7179_s1 + $0x12b0] sm:$0xff] }
 0x11d   :  { %v6498_v10 = vadd.f32 %v3003_v62, %v1279_v4  ;;  %4295 = vmatpush3.bf16.msra.mxu0 %v4294_v61  ;;  %v662_v41 = vld [vmem:[%s7179_s1 + $0x13a8] sm:$0xff]  ;;  %v4340_v47 = vpack.c.bf16 %v630_v37, %v629_v36  ;;  %v645_v49 = vld [vmem:[%s7179_s1 + $0x1320] sm:$0xff]  ;;  %v632_v54 = vld [vmem:[%s7179_s1 + $0x12b8] sm:$0xff] }
 0x11e   :  { %4297 = vmatprep.subr.bf16.mxu0 %v4296_v0  ;;  %v614_v48 = vld [vmem:[%s7179_s1 + $0x1228] sm:$0xff]  ;;  %v4372_v50 = vpack.c.bf16 %v662_v41, %v661_v40  ;;  %v663_v55 = vld [vmem:[%s7179_s1 + $0x13b0] sm:$0xff]  ;;  %v664_v56 = vld [vmem:[%s7179_s1 + $0x13b8] sm:$0xff]  ;;  %v4344_v58 = vpack.c.bf16 %v632_v54, %v631_v53 }
 0x11f   :  { %4327 = vmatpush3.bf16.msra.mxu1 %v4326_v63  ;;  %v615_v51 = vld [vmem:[%s7179_s1 + $0x1230] sm:$0xff]  ;;  %v616_v59 = vld [vmem:[%s7179_s1 + $0x1238] sm:$0xff]  ;;  %v4376_v61 = vpack.c.bf16 %v664_v56, %v663_v55  ;;  %v633_v62 = vld [vmem:[%s7179_s1 + $0x12c0] sm:$0xff] }
 0x120   :  { %4329 = vmatprep.subr.bf16.mxu1 %v4328_v5  ;;  %v647_v60 = vld [vmem:[%s7179_s1 + $0x1330] sm:$0xff]  ;;  %v648_v33 = vld [vmem:[%s7179_s1 + $0x1338] sm:$0xff]  ;;  %v634_v63 = vld [vmem:[%s7179_s1 + $0x12c8] sm:$0xff]  ;;  %v4346_v2 = vpack.c.bf16 %v616_v59, %v615_v51 }
 0x121   :  { %4299 = vmatpush3.bf16.msra.mxu0 %v4298_v12  ;;  %v665_v0 = vld [vmem:[%s7179_s1 + $0x13c0] sm:$0xff]  ;;  %v666_v1 = vld [vmem:[%s7179_s1 + $0x13c8] sm:$0xff]  ;;  %v4378_v3 = vpack.c.bf16 %v648_v33, %v647_v60  ;;  %v4348_v4 = vpack.c.bf16 %v634_v63, %v633_v62  ;;  %v635_v26 = vld [vmem:[%s7179_s1 + $0x12d0] sm:$0xff] }
 0x122   :  { %4333 = vmatprep.subr.bf16.mxu0 %v4332_v15  ;;  %v617_v5 = vld [vmem:[%s7179_s1 + $0x1240] sm:$0xff]  ;;  %v618_v6 = vld [vmem:[%s7179_s1 + $0x1248] sm:$0xff]  ;;  %v4380_v7 = vpack.c.bf16 %v666_v1, %v665_v0  ;;  %v636_v11 = vld [vmem:[%s7179_s1 + $0x12d8] sm:$0xff] }
 0x123   :  { %4331 = vmatpush3.bf16.msra.mxu1 %v4330_v14  ;;  %v649_v8 = vld [vmem:[%s7179_s1 + $0x1340] sm:$0xff]  ;;  %v650_v9 = vld [vmem:[%s7179_s1 + $0x1348] sm:$0xff]  ;;  %v667_v12 = vld [vmem:[%s7179_s1 + $0x13d0] sm:$0xff]  ;;  %v4350_v15 = vpack.c.bf16 %v618_v6, %v617_v5  ;;  %v4352_v17 = vpack.c.bf16 %v636_v11, %v635_v26 }
 0x124   :  { %4365 = vmatprep.subr.bf16.mxu1 %v4364_v19  ;;  %2257 = vmatmul.mubr.f32.vlgmr.msra.gmra.mrb[16].mxu0 %v6309_v52  ;;  %v613_v52 = vld [vmem:[%s7179_s1 + $0x1220] sm:$0xff]  ;;  %v668_v14 = vld [vmem:[%s7179_s1 + $0x13d8] sm:$0xff]  ;;  %v4382_v16 = vpack.c.bf16 %v650_v9, %v649_v8  ;;  %v619_v18 = vld [vmem:[%s7179_s1 + $0x1250] sm:$0xff] }
 0x125   :  { %4335 = vmatpush3.bf16.msra.mxu0 %v4334_v28  ;;  %2396 = vmatprep.mubr.f32.mxu0 %v988_v38  ;;  %v4342_v57 = vpack.c.bf16 %v614_v48, %v613_v52  ;;  %v620_v19 = vld [vmem:[%s7179_s1 + $0x1258] sm:$0xff]  ;;  %v651_v20 = vld [vmem:[%s7179_s1 + $0x1350] sm:$0xff]  ;;  %v4384_v21 = vpack.c.bf16 %v668_v14, %v667_v12  ;;  %v637_v24 = vld [vmem:[%s7179_s1 + $0x12e0] sm:$0xff] }
 0x126   :  { %2327 = vmatmul.mubr.f32.vlgmr.msra.gmra.mrb[16].mxu1 %v6318_v39  ;;  %4337 = vmatprep.subr.bf16.mxu0 %v4336_v31  ;;  %v646_v39 = vld [vmem:[%s7179_s1 + $0x1328] sm:$0xff]  ;;  %v652_v22 = vld [vmem:[%s7179_s1 + $0x1358] sm:$0xff]  ;;  %v669_v28 = vld [vmem:[%s7179_s1 + $0x13e0] sm:$0xff]  ;;  %v4354_v31 = vpack.c.bf16 %v620_v19, %v619_v18 }
 0x127   :  { %4367 = vmatpush3.bf16.msra.mxu1 %v4366_v29  ;;  %2466 = vmatprep.mubr.f32.mxu1 %v989_v43  ;;  %v4374_v45 = vpack.c.bf16 %v646_v39, %v645_v49  ;;  %v638_v25 = vld [vmem:[%s7179_s1 + $0x12e8] sm:$0xff]  ;;  %v4386_v30 = vpack.c.bf16 %v652_v22, %v651_v20  ;;  %v621_v42 = vld [vmem:[%s7179_s1 + $0x1260] sm:$0xff]  ;;  %v639_v40 = vld [vmem:[%s7179_s1 + $0x12f0] sm:$0xff] }
 0x128   :  { %4369 = vmatprep.subr.bf16.mxu1 %v4368_v34  ;;  %v670_v29 = vld [vmem:[%s7179_s1 + $0x13e8] sm:$0xff]  ;;  %v4356_v32 = vpack.c.bf16 %v638_v25, %v637_v24  ;;  %v653_v35 = vld [vmem:[%s7179_s1 + $0x1360] sm:$0xff]  ;;  %v640_v41 = vld [vmem:[%s7179_s1 + $0x12f8] sm:$0xff] }
 0x129   :  { %4339 = vmatpush3.bf16.msra.mxu0 %v4338_v44  ;;  %v622_v34 = vld [vmem:[%s7179_s1 + $0x1268] sm:$0xff]  ;;  %v4388_v37 = vpack.c.bf16 %v670_v29, %v669_v28  ;;  %v4360_v54 = vpack.c.bf16 %v640_v41, %v639_v40  ;;  %v623_v55 = vld [vmem:[%s7179_s1 + $0x1270] sm:$0xff]  ;;  %v624_v56 = vld [vmem:[%s7179_s1 + $0x1278] sm:$0xff] }
 0x12a   :  { %4341 = vmatprep.subr.bf16.mxu0 %v4340_v47  ;;  %v654_v38 = vld [vmem:[%s7179_s1 + $0x1368] sm:$0xff]  ;;  %v672_v47 = vld [vmem:[%s7179_s1 + $0x13f8] sm:$0xff]  ;;  %v4358_v49 = vpack.c.bf16 %v622_v34, %v621_v42  ;;  %v689_v59 = vld [vmem:[%s7179_s1 + $0x1480] sm:$0xff]  ;;  %v4362_v63 = vpack.c.bf16 %v624_v56, %v623_v55 }
 0x12b   :  { %4371 = vmatpush3.bf16.msra.mxu1 %v4370_v46  ;;  %v671_v46 = vld [vmem:[%s7179_s1 + $0x13f0] sm:$0xff]  ;;  %v4390_v53 = vpack.c.bf16 %v654_v38, %v653_v35  ;;  %v656_v51 = vld [vmem:[%s7179_s1 + $0x1378] sm:$0xff]  ;;  %v690_v60 = vld [vmem:[%s7179_s1 + $0x1488] sm:$0xff] }
 0x12c   :  { %4373 = vmatprep.subr.bf16.mxu1 %v4372_v50  ;;  %v31_v50 = vld [vmem:[%s7178_s0 + $0x50] sm:$0xff]  ;;  %v4396_v1 = vpack.c.bf16 %v690_v60, %v689_v59  ;;  %v706_v6 = vld [vmem:[%s7179_s1 + $0x1508] sm:$0xff]  ;;  %v724_v11 = vld [vmem:[%s7179_s1 + $0x1598] sm:$0xff] }
 0x12d   :  { %4343 = vmatpush3.bf16.msra.mxu0 %v4342_v57  ;;  %v655_v57 = vld [vmem:[%s7179_s1 + $0x1370] sm:$0xff]  ;;  %v990_v33 = vcombine.high %v31_v50, %v31_v50  ;;  %v6729_v9 = vrot.slane %v31_v50, %v4774_v13  ;;  %v676_v18 = vld [vmem:[%s7179_s1 + $0x1418] sm:$0xff]  ;;  %v693_v22 = vld [vmem:[%s7179_s1 + $0x14a0] sm:$0xff] }
 0x12e   :  { %4345 = vmatprep.subr.bf16.mxu0 %v4344_v58  ;;  %v4392_v58 = vpack.c.bf16 %v672_v47, %v671_v46  ;;  %v4394_v0 = vpack.c.bf16 %v656_v51, %v655_v57  ;;  %v691_v8 = vld [vmem:[%s7179_s1 + $0x1490] sm:$0xff]  ;;  %v694_v24 = vld [vmem:[%s7179_s1 + $0x14a8] sm:$0xff]  ;;  %v725_v28 = vld [vmem:[%s7179_s1 + $0x15a0] sm:$0xff] }
 0x12f   :  { %4375 = vmatpush3.bf16.msra.mxu1 %v4374_v45  ;;  %v723_v26 = vld [vmem:[%s7179_s1 + $0x1590] sm:$0xff]  ;;  %v6738_v12 = vrot.slane %v990_v33, %v4774_v13  ;;  %v1005_v25 = vcombine.high %v6729_v9, %v6729_v9  ;;  %v726_v29 = vld [vmem:[%s7179_s1 + $0x15a8] sm:$0xff]  ;;  %v4404_v42 = vpack.c.bf16 %v694_v24, %v693_v22  ;;  %v709_v35 = vld [vmem:[%s7179_s1 + $0x1520] sm:$0xff] }
 0x130   :  { %4377 = vmatprep.subr.bf16.mxu1 %v4376_v61  ;;  %v721_v61 = vld [vmem:[%s7179_s1 + $0x1580] sm:$0xff]  ;;  %v707_v19 = vld [vmem:[%s7179_s1 + $0x1510] sm:$0xff]  ;;  %v4432_v20 = vpack.c.bf16 %v724_v11, %v723_v26  ;;  %v678_v34 = vld [vmem:[%s7179_s1 + $0x1428] sm:$0xff] }
 0x131   :  { %4347 = vmatpush3.bf16.msra.mxu0 %v4346_v2  ;;  %v673_v2 = vld [vmem:[%s7179_s1 + $0x1400] sm:$0xff]  ;;  %v696_v38 = vld [vmem:[%s7179_s1 + $0x14b8] sm:$0xff]  ;;  %v727_v40 = vld [vmem:[%s7179_s1 + $0x15b0] sm:$0xff] }
 0x132   :  { %4349 = vmatprep.subr.bf16.mxu0 %v4348_v4  ;;  %v705_v4 = vld [vmem:[%s7179_s1 + $0x1500] sm:$0xff]  ;;  %v728_v41 = vld [vmem:[%s7179_s1 + $0x15b8] sm:$0xff]  ;;  %v679_v47 = vld [vmem:[%s7179_s1 + $0x1430] sm:$0xff] }
 0x133   :  { %4379 = vmatpush3.bf16.msra.mxu1 %v4378_v3  ;;  %v674_v3 = vld [vmem:[%s7179_s1 + $0x1408] sm:$0xff]  ;;  %v712_v50 = vld [vmem:[%s7179_s1 + $0x1538] sm:$0xff]  ;;  %v713_v59 = vld [vmem:[%s7179_s1 + $0x1540] sm:$0xff] }
 0x134   :  { %4381 = vmatprep.subr.bf16.mxu1 %v4380_v7  ;;  %v692_v7 = vld [vmem:[%s7179_s1 + $0x1498] sm:$0xff]  ;;  %v4398_v14 = vpack.c.bf16 %v674_v3, %v673_v2  ;;  %v730_v55 = vld [vmem:[%s7179_s1 + $0x15c8] sm:$0xff]  ;;  %v701_v26 = vld [vmem:[%s7179_s1 + $0x14e0] sm:$0xff] }
 0x135   :  { %4351 = vmatpush3.bf16.msra.mxu0 %v4350_v15  ;;  %v4430_v15 = vpack.c.bf16 %v706_v6, %v705_v4  ;;  %v682_v51 = vld [vmem:[%s7179_s1 + $0x1448] sm:$0xff]  ;;  %v700_v33 = vld [vmem:[%s7179_s1 + $0x14d8] sm:$0xff]  ;;  %v683_v4 = vld [vmem:[%s7179_s1 + $0x1450] sm:$0xff] }
 0x136   :  { %4353 = vmatprep.subr.bf16.mxu0 %v4352_v17  ;;  %v675_v17 = vld [vmem:[%s7179_s1 + $0x1410] sm:$0xff]  ;;  %v702_v11 = vld [vmem:[%s7179_s1 + $0x14e8] sm:$0xff] }
 0x137   :  { %4383 = vmatpush3.bf16.msra.mxu1 %v4382_v16  ;;  %v3036_v36 = vpop.f32.mrb[4].mxu0  ;;  %v4400_v16 = vpack.c.bf16 %v692_v7, %v691_v8  ;;  %v715_v6 = vld [vmem:[%s7179_s1 + $0x1550] sm:$0xff]  ;;  %v716_v7 = vld [vmem:[%s7179_s1 + $0x1558] sm:$0xff] }
 0x138   :  { %4385 = vmatprep.subr.bf16.mxu1 %v4384_v21  ;;  %v3037_v43 = vpop.f32.mrb[5].mxu0  ;;  %v708_v21 = vld [vmem:[%s7179_s1 + $0x1518] sm:$0xff] }
 0x139   :  { %v3071_v44 = vpop.f32.mrb[4].mxu1  ;;  %v3038_v52 = vadd.f32 %v3037_v43, %v3036_v36  ;;  %4355 = vmatpush3.bf16.msra.mxu0 %v4354_v31  ;;  %v1006_v31 = vcombine.high %v6738_v12, %v6738_v12  ;;  %v4436_v36 = vpack.c.bf16 %v726_v29, %v725_v28  ;;  %v703_v28 = vld [vmem:[%s7179_s1 + $0x14f0] sm:$0xff]  ;;  %v704_v29 = vld [vmem:[%s7179_s1 + $0x14f8] sm:$0xff] }
 0x13a   :  { %v3072_v48 = vpop.f32.mrb[5].mxu1  ;;  %4357 = vmatprep.subr.bf16.mxu0 %v4356_v32  ;;  %v4434_v32 = vpack.c.bf16 %v708_v21, %v707_v19  ;;  %v685_v19 = vld [vmem:[%s7179_s1 + $0x1460] sm:$0xff] }
 0x13b   :  { %v3073_v39 = vadd.f32 %v3072_v48, %v3071_v44  ;;  %4387 = vmatpush3.bf16.msra.mxu1 %v4386_v30  ;;  %v1419_v45 = vadd.f32 %v3038_v52, %v6498_v10  ;;  %v722_v10 = vld [vmem:[%s7179_s1 + $0x1588] sm:$0xff]  ;;  %v4402_v30 = vpack.c.bf16 %v676_v18, %v675_v17  ;;  %v680_v52 = vld [vmem:[%s7179_s1 + $0x1438] sm:$0xff]  ;;  %v711_v48 = vld [vmem:[%s7179_s1 + $0x1530] sm:$0xff]  ;;  %v4450_v17 = vpack.c.bf16 %v716_v7, %v715_v6 }
 0x13c   :  { %4389 = vmatprep.subr.bf16.mxu1 %v4388_v37  ;;  %v4428_v5 = vpack.c.bf16 %v722_v10, %v721_v61  ;;  %v695_v37 = vld [vmem:[%s7179_s1 + $0x14b0] sm:$0xff]  ;;  %v4410_v56 = vpack.c.bf16 %v680_v52, %v679_v47  ;;  %v4442_v57 = vpack.c.bf16 %v712_v50, %v711_v48  ;;  %v714_v61 = vld [vmem:[%s7179_s1 + $0x1548] sm:$0xff]  ;;  %v4420_v18 = vpack.c.bf16 %v702_v11, %v701_v26  ;;  %v717_v21 = vld [vmem:[%s7179_s1 + $0x1560] sm:$0xff] }
 0x13d   :  { %v6708_v62 = vadd.f32 %v3073_v39, %v1419_v45  ;;  %4359 = vmatpush3.bf16.msra.mxu0 %v4358_v49  ;;  %v4408_v46 = vpack.c.bf16 %v696_v38, %v695_v37  ;;  %v4440_v49 = vpack.c.bf16 %v728_v41, %v727_v40  ;;  %v697_v39 = vld [vmem:[%s7179_s1 + $0x14c0] sm:$0xff]  ;;  %v699_v10 = vld [vmem:[%s7179_s1 + $0x14d0] sm:$0xff]  ;;  %v4446_v2 = vpack.c.bf16 %v714_v61, %v713_v59  ;;  %v688_v41 = vld [vmem:[%s7179_s1 + $0x1478] sm:$0xff] }
 0x13e   :  { %4361 = vmatprep.subr.bf16.mxu0 %v4360_v54  ;;  %v729_v54 = vld [vmem:[%s7179_s1 + $0x15c0] sm:$0xff]  ;;  %v4416_v3 = vpack.c.bf16 %v700_v33, %v699_v10  ;;  %v4424_v38 = vpack.c.bf16 %v704_v29, %v703_v28  ;;  %v687_v40 = vld [vmem:[%s7179_s1 + $0x1470] sm:$0xff]  ;;  %v720_v47 = vld [vmem:[%s7179_s1 + $0x1578] sm:$0xff] }
 0x13f   :  { %4391 = vmatpush3.bf16.msra.mxu1 %v4390_v53  ;;  %v698_v53 = vld [vmem:[%s7179_s1 + $0x14c8] sm:$0xff]  ;;  %v4444_v60 = vpack.c.bf16 %v730_v55, %v729_v54  ;;  %v753_v52 = vld [vmem:[%s7179_s1 + $0x1680] sm:$0xff]  ;;  %v755_v59 = vld [vmem:[%s7179_s1 + $0x1690] sm:$0xff] }
 0x140   :  { %4393 = vmatprep.subr.bf16.mxu1 %v4392_v58  ;;  %v4412_v45 = vpack.c.bf16 %v698_v53, %v697_v39  ;;  %v681_v58 = vld [vmem:[%s7179_s1 + $0x1440] sm:$0xff]  ;;  %v754_v48 = vld [vmem:[%s7179_s1 + $0x1688] sm:$0xff]  ;;  %v4426_v53 = vpack.c.bf16 %v688_v41, %v687_v40  ;;  %v787_v10 = vld [vmem:[%s7179_s1 + $0x1790] sm:$0xff] }
 0x141   :  { %4363 = vmatpush3.bf16.msra.mxu0 %v4362_v63  ;;  %v731_v63 = vld [vmem:[%s7179_s1 + $0x15d0] sm:$0xff]  ;;  %v4460_v55 = vpack.c.bf16 %v754_v48, %v753_v52  ;;  %v788_v33 = vld [vmem:[%s7179_s1 + $0x1798] sm:$0xff]  ;;  %v758_v7 = vld [vmem:[%s7179_s1 + $0x16a8] sm:$0xff] }
 0x142   :  { %4397 = vmatprep.subr.bf16.mxu0 %v4396_v1  ;;  %v4414_v1 = vpack.c.bf16 %v682_v51, %v681_v58  ;;  %v770_v51 = vld [vmem:[%s7179_s1 + $0x1708] sm:$0xff]  ;;  %v772_v6 = vld [vmem:[%s7179_s1 + $0x1718] sm:$0xff]  ;;  %v789_v11 = vld [vmem:[%s7179_s1 + $0x17a0] sm:$0xff] }
 0x143   :  { %4395 = vmatpush3.bf16.msra.mxu1 %v4394_v0  ;;  %v732_v0 = vld [vmem:[%s7179_s1 + $0x15d8] sm:$0xff]  ;;  %v778_v48 = vld [vmem:[%s7179_s1 + $0x1748] sm:$0xff] }
 0x144   :  { %4429 = vmatprep.subr.bf16.mxu1 %v4428_v5  ;;  %2397 = vmatmul.mubr.f32.vlgmr.msra.gmra.mrb[18].mxu0 %v6519_v23  ;;  %v677_v23 = vld [vmem:[%s7179_s1 + $0x1420] sm:$0xff]  ;;  %v684_v5 = vld [vmem:[%s7179_s1 + $0x1458] sm:$0xff]  ;;  %v4448_v8 = vpack.c.bf16 %v732_v0, %v731_v63 }
 0x145   :  { %4399 = vmatpush3.bf16.msra.mxu0 %v4398_v14  ;;  %2536 = vmatprep.mubr.f32.mxu0 %v1005_v25  ;;  %v4406_v43 = vpack.c.bf16 %v678_v34, %v677_v23  ;;  %v733_v14 = vld [vmem:[%s7179_s1 + $0x15e0] sm:$0xff]  ;;  %v718_v25 = vld [vmem:[%s7179_s1 + $0x1568] sm:$0xff]  ;;  %v792_v28 = vld [vmem:[%s7179_s1 + $0x17b8] sm:$0xff] }
 0x146   :  { %2467 = vmatmul.mubr.f32.vlgmr.msra.gmra.mrb[18].mxu1 %v6528_v27  ;;  %4401 = vmatprep.subr.bf16.mxu0 %v4400_v16  ;;  %v710_v27 = vld [vmem:[%s7179_s1 + $0x1528] sm:$0xff]  ;;  %v4418_v16 = vpack.c.bf16 %v684_v5, %v683_v4  ;;  %v4454_v37 = vpack.c.bf16 %v718_v25, %v717_v21  ;;  %v740_v4 = vld [vmem:[%s7179_s1 + $0x1618] sm:$0xff]  ;;  %v771_v5 = vld [vmem:[%s7179_s1 + $0x1710] sm:$0xff] }
 0x147   :  { %4431 = vmatpush3.bf16.msra.mxu1 %v4430_v15  ;;  %2606 = vmatprep.mubr.f32.mxu1 %v1006_v31  ;;  %v4438_v44 = vpack.c.bf16 %v710_v27, %v709_v35  ;;  %v734_v15 = vld [vmem:[%s7179_s1 + $0x15e8] sm:$0xff]  ;;  %v791_v25 = vld [vmem:[%s7179_s1 + $0x17b0] sm:$0xff] }
 0x148   :  { %4433 = vmatprep.subr.bf16.mxu1 %v4432_v20  ;;  %v686_v20 = vld [vmem:[%s7179_s1 + $0x1468] sm:$0xff]  ;;  %v4452_v24 = vpack.c.bf16 %v734_v15, %v733_v14 }
 0x149   :  { %4403 = vmatpush3.bf16.msra.mxu0 %v4402_v30  ;;  %v4422_v35 = vpack.c.bf16 %v686_v20, %v685_v19  ;;  %v790_v14 = vld [vmem:[%s7179_s1 + $0x17a8] sm:$0xff]  ;;  %v773_v20 = vld [vmem:[%s7179_s1 + $0x1720] sm:$0xff] }
 0x14a   :  { %4405 = vmatprep.subr.bf16.mxu0 %v4404_v42  ;;  %v736_v42 = vld [vmem:[%s7179_s1 + $0x15f8] sm:$0xff]  ;;  %v742_v19 = vld [vmem:[%s7179_s1 + $0x1628] sm:$0xff]  ;;  %v4500_v21 = vpack.c.bf16 %v790_v14, %v789_v11 }
 0x14b   :  { %4435 = vmatpush3.bf16.msra.mxu1 %v4434_v32  ;;  %v735_v32 = vld [vmem:[%s7179_s1 + $0x15f0] sm:$0xff]  ;;  %v768_v11 = vld [vmem:[%s7179_s1 + $0x16f8] sm:$0xff] }
 0x14c   :  { %4437 = vmatprep.subr.bf16.mxu1 %v4436_v36  ;;  %v32_v36 = vld [vmem:[%s7178_s0 + $0x58] sm:$0xff]  ;;  %s2854_s0 = sshll.u32 %s4593_s8, 4  ;;  %s2855_s0 = int_to_ptr.vmem [resolvable:$true] %s2854_s0 }
 0x14d   :  { %4407 = vmatpush3.bf16.msra.mxu0 %v4406_v43  ;;  %v719_v43 = vld [vmem:[%s7179_s1 + $0x1570] sm:$0xff]  ;;  %v1007_v50 = vcombine.high %v32_v36, %v32_v36  ;;  %v6939_v61 = vrot.slane %v32_v36, %v4774_v13  ;;  %v761_v36 = vld [vmem:[%s7179_s1 + $0x16c0] sm:$0xff]  ;;  %s4565_s9 = scalar_lea.vmem %s2855_s0, 32  ;;  %p4570_p1 = scmp.lt.s32.totalorder %s2855_s0, %s2855_s0 }
 0x14e   :  { %4409 = vmatprep.subr.bf16.mxu0 %v4408_v46  ;;  %v4456_v46 = vpack.c.bf16 %v736_v42, %v735_v32  ;;  %v4458_v54 = vpack.c.bf16 %v720_v47, %v719_v43  ;;  %v743_v32 = vld [vmem:[%s7179_s1 + $0x1630] sm:$0xff]  ;;  %v744_v42 = vld [vmem:[%s7179_s1 + $0x1638] sm:$0xff]  ;;  %v777_v47 = vld [vmem:[%s7179_s1 + $0x1740] sm:$0xff]  ;;  %p4566_p0 = scmp.ne.s32.totalorder %s2855_s0, %s4565_s9  ;;  %p4571_p2 = scmp.lt.s32.totalorder %s4565_s9, %s4565_s9 }
 0x14f   :  { %4439 = vmatpush3.bf16.msra.mxu1 %v4438_v44  ;;  %v6948_v63 = vrot.slane %v1007_v50, %v4774_v13  ;;  %v4496_v13 = vpack.c.bf16 %v788_v33, %v787_v10  ;;  %v1022_v26 = vcombine.high %v6939_v61, %v6939_v61  ;;  %v4474_v40 = vpack.c.bf16 %v744_v42, %v743_v32  ;;  %v795_v50 = vld [vmem:[%s7179_s1 + $0x17d0] sm:$0xff]  ;;  %v766_v10 = vld [vmem:[%s7179_s1 + $0x16e8] sm:$0xff]  ;;  %v797_v33 = vld [vmem:[%s7179_s1 + $0x17e0] sm:$0xff] }
 0x150   :  { %4441 = vmatprep.subr.bf16.mxu1 %v4440_v49  ;;  %v785_v49 = vld [vmem:[%s7179_s1 + $0x1780] sm:$0xff]  ;;  %p4572_p3 = por %p4571_p2, %p4570_p1 }
 0x151   :  { %4411 = vmatpush3.bf16.msra.mxu0 %v4410_v56  ;;  %v737_v56 = vld [vmem:[%s7179_s1 + $0x1600] sm:$0xff]  ;;  %v1023_v15 = vcombine.high %v6948_v63, %v6948_v63 }
 0x152   :  { %4413 = vmatprep.subr.bf16.mxu0 %v4412_v45  ;;  %v769_v45 = vld [vmem:[%s7179_s1 + $0x1700] sm:$0xff]  ;;  %p4573_p4 = pnand %p4572_p3, %p4566_p0 }
 0x153   :  { %4443 = vmatpush3.bf16.msra.mxu1 %v4442_v57  ;;  %v738_v57 = vld [vmem:[%s7179_s1 + $0x1608] sm:$0xff] }
 0x154   :  { %4445 = vmatprep.subr.bf16.mxu1 %v4444_v60  ;;  %v756_v60 = vld [vmem:[%s7179_s1 + $0x1698] sm:$0xff]  ;;  %v4462_v0 = vpack.c.bf16 %v738_v57, %v737_v56  ;;  %v747_v57 = vld [vmem:[%s7179_s1 + $0x1650] sm:$0xff] }
 0x155   :  { %4415 = vmatpush3.bf16.msra.mxu0 %v4414_v1  ;;  %v4494_v1 = vpack.c.bf16 %v770_v51, %v769_v45  ;;  %v748_v45 = vld [vmem:[%s7179_s1 + $0x1658] sm:$0xff] }
 0x156   :  { %4417 = vmatprep.subr.bf16.mxu0 %v4416_v3  ;;  %v739_v3 = vld [vmem:[%s7179_s1 + $0x1610] sm:$0xff] }
 0x157   :  { %4447 = vmatpush3.bf16.msra.mxu1 %v4446_v2  ;;  %v3106_v22 = vpop.f32.mrb[6].mxu0  ;;  %v4464_v2 = vpack.c.bf16 %v756_v60, %v755_v59  ;;  %v780_v59 = vld [vmem:[%s7179_s1 + $0x1758] sm:$0xff]  ;;  %v765_v60 = vld [vmem:[%s7179_s1 + $0x16e0] sm:$0xff] }
 0x158   :  { %4449 = vmatprep.subr.bf16.mxu1 %v4448_v8  ;;  %v3107_v31 = vpop.f32.mrb[7].mxu0  ;;  %v757_v8 = vld [vmem:[%s7179_s1 + $0x16a0] sm:$0xff] }
 0x159   :  { %v3141_v30 = vpop.f32.mrb[6].mxu1  ;;  %v3108_v23 = vadd.f32 %v3107_v31, %v3106_v22  ;;  %4419 = vmatpush3.bf16.msra.mxu0 %v4418_v16  ;;  %v4466_v16 = vpack.c.bf16 %v740_v4, %v739_v3  ;;  %v759_v22 = vld [vmem:[%s7179_s1 + $0x16b0] sm:$0xff]  ;;  %v4484_v3 = vpack.c.bf16 %v766_v10, %v765_v60  ;;  %v749_v4 = vld [vmem:[%s7179_s1 + $0x1660] sm:$0xff]  ;;  %v2762_v60 = vld [vmem:[%s7181_s3 + $0x48] sm:$0xff] }
 0x15a   :  { %v3142_v34 = vpop.f32.mrb[7].mxu1  ;;  %4421 = vmatprep.subr.bf16.mxu0 %v4420_v18  ;;  %v4468_v18 = vpack.c.bf16 %v758_v7, %v757_v8  ;;  %v782_v7 = vld [vmem:[%s7179_s1 + $0x1768] sm:$0xff] }
 0x15b   :  { %v3143_v27 = vadd.f32 %v3142_v34, %v3141_v30  ;;  %4451 = vmatpush3.bf16.msra.mxu1 %v4450_v17  ;;  %v1559_v44 = vadd.f32 %v3108_v23, %v6708_v62  ;;  %v786_v62 = vld [vmem:[%s7179_s1 + $0x1788] sm:$0xff]  ;;  %v4498_v17 = vpack.c.bf16 %v772_v6, %v771_v5  ;;  %v775_v23 = vld [vmem:[%s7179_s1 + $0x1730] sm:$0xff]  ;;  %v4504_v34 = vpack.c.bf16 %v792_v28, %v791_v25 }
 0x15c   :  { %4453 = vmatprep.subr.bf16.mxu1 %v4452_v24  ;;  %v4492_v58 = vpack.c.bf16 %v786_v62, %v785_v49  ;;  %v760_v24 = vld [vmem:[%s7179_s1 + $0x16b8] sm:$0xff]  ;;  %v763_v49 = vld [vmem:[%s7179_s1 + $0x16d0] sm:$0xff]  ;;  %v750_v5 = vld [vmem:[%s7179_s1 + $0x1668] sm:$0xff] }
 0x15d   :  { %v6918_v39 = vadd.f32 %v3143_v27, %v1559_v44  ;;  %4423 = vmatpush3.bf16.msra.mxu0 %v4422_v35  ;;  %v4472_v30 = vpack.c.bf16 %v760_v24, %v759_v22  ;;  %v776_v35 = vld [vmem:[%s7179_s1 + $0x1738] sm:$0xff]  ;;  %v762_v27 = vld [vmem:[%s7179_s1 + $0x16c8] sm:$0xff]  ;;  %v745_v44 = vld [vmem:[%s7179_s1 + $0x1640] sm:$0xff] }
 0x15e   :  { %4425 = vmatprep.subr.bf16.mxu0 %v4424_v38  ;;  %v794_v38 = vld [vmem:[%s7179_s1 + $0x17c8] sm:$0xff]  ;;  %v4506_v41 = vpack.c.bf16 %v776_v35, %v775_v23  ;;  %v4476_v43 = vpack.c.bf16 %v762_v27, %v761_v36  ;;  %v764_v62 = vld [vmem:[%s7179_s1 + $0x16d8] sm:$0xff]  ;;  %v751_v22 = vld [vmem:[%s7179_s1 + $0x1670] sm:$0xff] }
 0x15f   :  { %4455 = vmatpush3.bf16.msra.mxu1 %v4454_v37  ;;  %v793_v37 = vld [vmem:[%s7179_s1 + $0x17c0] sm:$0xff]  ;;  %v4480_v56 = vpack.c.bf16 %v764_v62, %v763_v49  ;;  %v752_v24 = vld [vmem:[%s7179_s1 + $0x1678] sm:$0xff]  ;;  %v2755_v49 = vld [vmem:[%s7181_s3 + $0x10] sm:$0xff]  ;;  %v4590_v62 = vmov 0.0|0.0  }
 0x160   :  { %4457 = vmatprep.subr.bf16.mxu1 %v4456_v46  ;;  %v746_v46 = vld [vmem:[%s7179_s1 + $0x1648] sm:$0xff]  ;;  %v4508_v52 = vpack.c.bf16 %v794_v38, %v793_v37  ;;  %v4490_v32 = vpack.c.bf16 %v752_v24, %v751_v22 }
 0x161   :  { %4427 = vmatpush3.bf16.msra.mxu0 %v4426_v53  ;;  %v796_v53 = vld [vmem:[%s7179_s1 + $0x17d8] sm:$0xff] }
 0x162   :  { %4461 = vmatprep.subr.bf16.mxu0 %v4460_v55  ;;  %v4510_v55 = vpack.c.bf16 %v778_v48, %v777_v47  ;;  %v4512_v51 = vpack.c.bf16 %v796_v53, %v795_v50  ;;  %v2756_v53 = vld [vmem:[%s7181_s3 + $0x18] sm:$0xff] }
 0x163   :  { %4459 = vmatpush3.bf16.msra.mxu1 %v4458_v54  ;;  %v4478_v54 = vpack.c.bf16 %v746_v46, %v745_v44 }
 0x164   :  { %4493 = vmatprep.subr.bf16.mxu1 %v4492_v58  ;;  %2537 = vmatmul.mubr.f32.vlgmr.msra.gmra.mrb[20].mxu0 %v6729_v9  ;;  %v741_v9 = vld [vmem:[%s7179_s1 + $0x1620] sm:$0xff]  ;;  %v779_v58 = vld [vmem:[%s7179_s1 + $0x1750] sm:$0xff] }
 0x165   :  { %4463 = vmatpush3.bf16.msra.mxu0 %v4462_v0  ;;  %2676 = vmatprep.mubr.f32.mxu0 %v1022_v26  ;;  %v4470_v29 = vpack.c.bf16 %v742_v19, %v741_v9  ;;  %v798_v0 = vld [vmem:[%s7179_s1 + $0x17e8] sm:$0xff]  ;;  %v767_v26 = vld [vmem:[%s7179_s1 + $0x16f0] sm:$0xff]  ;;  %v4486_v19 = vpack.c.bf16 %v750_v5, %v749_v4 }
 0x166   :  { %2607 = vmatmul.mubr.f32.vlgmr.msra.gmra.mrb[20].mxu1 %v6738_v12  ;;  %4465 = vmatprep.subr.bf16.mxu0 %v4464_v2  ;;  %v774_v12 = vld [vmem:[%s7179_s1 + $0x1728] sm:$0xff]  ;;  %v4514_v2 = vpack.c.bf16 %v780_v59, %v779_v58  ;;  %v4516_v8 = vpack.c.bf16 %v798_v0, %v797_v33  ;;  %v2760_v58 = vld [vmem:[%s7181_s3 + $0x38] sm:$0xff]  ;;  %v2761_v59 = vld [vmem:[%s7181_s3 + $0x40] sm:$0xff] }
 0x167   :  { %4495 = vmatpush3.bf16.msra.mxu1 %v4494_v1  ;;  %2746 = vmatprep.mubr.f32.mxu1 %v1023_v15  ;;  %v4502_v31 = vpack.c.bf16 %v774_v12, %v773_v20  ;;  %v4482_v1 = vpack.c.bf16 %v748_v45, %v747_v57  ;;  %v4488_v12 = vpack.c.bf16 %v768_v11, %v767_v26  ;;  %v2759_v45 = vld [vmem:[%s7181_s3 + $0x30] sm:$0xff]  ;;  %v2764_v0 = vld [vmem:[%s7181_s3 + $0x58] sm:$0xff]  ;;  %v2766_v4 = vld [vmem:[%s7181_s3 + $0x68] sm:$0xff] }
 0x168   :  { %4497 = vmatprep.subr.bf16.mxu1 %v4496_v13  ;;  %v781_v13 = vld [vmem:[%s7179_s1 + $0x1760] sm:$0xff]  ;;  %v4537_v10 = vpack.c.bf16 %v2762_v60, %v2761_v59  ;;  %v2763_v33 = vld [vmem:[%s7181_s3 + $0x50] sm:$0xff] }
 0x169   :  { %4467 = vmatpush3.bf16.msra.mxu0 %v4466_v16  ;;  %v799_v16 = vld [vmem:[%s7179_s1 + $0x17f0] sm:$0xff] }
 0x16a   :  { %4469 = vmatprep.subr.bf16.mxu0 %v4468_v18 }
 0x16b   :  { %4499 = vmatpush3.bf16.msra.mxu1 %v4498_v17  ;;  %v800_v17 = vld [vmem:[%s7179_s1 + $0x17f8] sm:$0xff] }
 0x16c   :  { %4501 = vmatprep.subr.bf16.mxu1 %v4500_v21  ;;  %v4518_v21 = vpack.c.bf16 %v782_v7, %v781_v13  ;;  %v4520_v28 = vpack.c.bf16 %v800_v17, %v799_v16 }
 0x16d   :  { %4471 = vmatpush3.bf16.msra.mxu0 %v4470_v29  ;;  %v783_v29 = vld [vmem:[%s7179_s1 + $0x1770] sm:$0xff] }
 0x16e   :  { %4473 = vmatprep.subr.bf16.mxu0 %v4472_v30 }
 0x16f   :  { %4503 = vmatpush3.bf16.msra.mxu1 %v4502_v31  ;;  %v784_v31 = vld [vmem:[%s7179_s1 + $0x1778] sm:$0xff] }
 0x170   :  { %4505 = vmatprep.subr.bf16.mxu1 %v4504_v34  ;;  %v4522_v42 = vpack.c.bf16 %v784_v31, %v783_v29 }
 0x171   :  { %4475 = vmatpush3.bf16.msra.mxu0 %v4474_v40 }
 0x172   :  { %4477 = vmatprep.subr.bf16.mxu0 %v4476_v43 }
 0x173   :  { %4507 = vmatpush3.bf16.msra.mxu1 %v4506_v41 }
 0x174   :  { %4509 = vmatprep.subr.bf16.mxu1 %v4508_v52 }
 0x175   :  { %4479 = vmatpush3.bf16.msra.mxu0 %v4478_v54  ;;  %v4528_v54 = vpack.c.bf16 %v2756_v53, %v2755_v49 }
 0x176   :  { %4481 = vmatprep.subr.bf16.mxu0 %v4480_v56  ;;  %v2758_v56 = vld [vmem:[%s7181_s3 + $0x28] sm:$0xff] }
 0x177   :  { %4511 = vmatpush3.bf16.msra.mxu1 %v4510_v55  ;;  %v3176_v6 = vpop.f32.mrb[8].mxu0  ;;  %v2757_v55 = vld [vmem:[%s7181_s3 + $0x20] sm:$0xff] }
 0x178   :  { %4513 = vmatprep.subr.bf16.mxu1 %v4512_v51  ;;  %v3177_v14 = vpop.f32.mrb[9].mxu0  ;;  %v4531_v57 = vpack.c.bf16 %v2758_v56, %v2757_v55  ;;  %v4534_v51 = vpack.c.bf16 %v2760_v58, %v2759_v45 }
 0x179   :  { %v3211_v15 = vpop.f32.mrb[8].mxu1  ;;  %v3178_v18 = vadd.f32 %v3177_v14, %v3176_v6  ;;  %4483 = vmatpush3.bf16.msra.mxu0 %v4482_v1  ;;  %v4540_v1 = vpack.c.bf16 %v2764_v0, %v2763_v33  ;;  %v2767_v14 = vld [vmem:[%s7181_s3 + $0x70] sm:$0xff] }
 0x17a   :  { %v3212_v9 = vpop.f32.mrb[9].mxu1  ;;  %4485 = vmatprep.subr.bf16.mxu0 %v4484_v3  ;;  %v2765_v3 = vld [vmem:[%s7181_s3 + $0x60] sm:$0xff] }
 0x17b   :  { %v3213_v20 = vadd.f32 %v3212_v9, %v3211_v15  ;;  %4515 = vmatpush3.bf16.msra.mxu1 %v4514_v2  ;;  %v1699_v25 = vadd.f32 %v3178_v18, %v6918_v39  ;;  %v4543_v6 = vpack.c.bf16 %v2766_v4, %v2765_v3  ;;  %v2768_v15 = vld [vmem:[%s7181_s3 + $0x78] sm:$0xff]  ;;  %v4592_v18 = vmov 0.0  }
 0x17c   :  { %4517 = vmatprep.subr.bf16.mxu1 %v4516_v8  ;;  %v4546_v16 = vpack.c.bf16 %v2768_v15, %v2767_v14 }
 0x17d   :  { %v1769_v30 = vadd.f32 %v3213_v20, %v1699_v25  ;;  %4487 = vmatpush3.bf16.msra.mxu0 %v4486_v19 }
 0x17e   :  { %4489 = vmatprep.subr.bf16.mxu0 %v4488_v12 }
 0x17f   :  { %4519 = vmatpush3.bf16.msra.mxu1 %v4518_v21 }
 0x180   :  { %4521 = vmatprep.subr.bf16.mxu1 %v4520_v28 }
 0x181   :  { %4491 = vmatpush3.bf16.msra.mxu0 %v4490_v32 }
 0x182   :  { %4524 = vmatprep.subr.bf16.mxu0 %v4590_v62 }
 0x183   :  { %4523 = vmatpush3.bf16.msra.mxu1 %v4522_v42 }
 0x184   :  { %2677 = vmatmul.mubr.f32.vlgmr.msra.gmra.mrb[22].mxu0 %v6939_v61  ;;  %v2753_v61 = vld [vmem:[%s7181_s3] sm:$0xff] }
 0x185   :  { %3753 = vmatprep.mubr.msk.f32.mxu0 %vm4591_vm0, %v4592_v18 }
 0x186   :  { %2747 = vmatmul.mubr.f32.vlgmr.msra.gmra.mrb[22].mxu1 %v6948_v63  ;;  %v2754_v63 = vld [vmem:[%s7181_s3 + $0x8] sm:$0xff] }
 0x187   :  { %v4525_v50 = vpack.c.bf16 %v2754_v63, %v2753_v61 }
 0x189   :  { %4526 = vmatpush3.bf16.msra.mxu0 %v4525_v50 }
 0x18a   :  { %4527 = vmatprep.subr.bf16.mxu0 %v4590_v62 }
 0x18d   :  { %4529 = vmatpush3.bf16.msra.mxu0 %v4528_v54 }
 0x18e   :  { %4530 = vmatprep.subr.bf16.mxu0 %v4590_v62 }
 0x191   :  { %4532 = vmatpush3.bf16.msra.mxu0 %v4531_v57 }
 0x192   :  { %4533 = vmatprep.subr.bf16.mxu0 %v4590_v62 }
 0x195   :  { %4535 = vmatpush3.bf16.msra.mxu0 %v4534_v51 }
 0x196   :  { %4536 = vmatprep.subr.bf16.mxu0 %v4590_v62 }
 0x197   :  { %v3246_v39 = vpop.f32.mrb[10].mxu0 }
 0x198   :  { %v3247_v23 = vpop.f32.mrb[11].mxu0 }
 0x199   :  { %v3281_v34 = vpop.f32.mrb[10].mxu1  ;;  %v3248_v35 = vadd.f32 %v3247_v23, %v3246_v39  ;;  %4538 = vmatpush3.bf16.msra.mxu0 %v4537_v10 }
 0x19a   :  { %v3282_v36 = vpop.f32.mrb[11].mxu1  ;;  %4539 = vmatprep.subr.bf16.mxu0 %v4590_v62 }
 0x19b   :  { %v3283_v27 = vadd.f32 %v3282_v36, %v3281_v34  ;;  %v1839_v37 = vadd.f32 %v3248_v35, %v1769_v30 }
 0x19d   :  { %v1909_v38 = vadd.f32 %v3283_v27, %v1839_v37  ;;  %4541 = vmatpush3.bf16.msra.mxu0 %v4540_v1 }
 0x19e   :  { %4542 = vmatprep.subr.bf16.mxu0 %v4590_v62 }
 0x1a1   :  { %4544 = vmatpush3.bf16.msra.mxu0 %v4543_v6 }
 0x1a2   :  { %4545 = vmatprep.subr.bf16.mxu0 %v4590_v62  ;;  %v2863_v62 = vld [vmem:[%s7182_s4] ss:$0 sm:$0xff] }
 0x1a5   :  { %4547 = vmatpush3.bf16.msra.mxu0 %v4546_v16 }
 0x1b7   :  { %v3316_v40 = vpop.f32.mrb[12].mxu0 }
 0x1b8   :  { %v3317_v41 = vpop.f32.mrb[13].mxu0 }
 0x1b9   :  { %v3351_v43 = vpop.f32.mrb[12].mxu1  ;;  %v3318_v44 = vadd.f32 %v3317_v41, %v3316_v40 }
 0x1ba   :  { %v3352_v46 = vpop.f32.mrb[13].mxu1 }
 0x1bb   :  { %v3353_v47 = vadd.f32 %v3352_v46, %v3351_v43  ;;  %v1979_v52 = vadd.f32 %v3318_v44, %v1909_v38 }
 0x1bd   :  { %v2049_v48 = vadd.f32 %v3353_v47, %v1979_v52 }
 0x1d7   :  { %v3386_v2 = vpop.f32.mrb[14].mxu0 }
 0x1d8   :  { %v3387_v5 = vpop.f32.mrb[15].mxu0 }
 0x1d9   :  { %v3421_v13 = vpop.f32.mrb[14].mxu1  ;;  %v3388_v8 = vadd.f32 %v3387_v5, %v3386_v2 }
 0x1da   :  { %v3422_v7 = vpop.f32.mrb[15].mxu1 }
 0x1db   :  { %v3423_v26 = vadd.f32 %v3422_v7, %v3421_v13  ;;  %v2119_v11 = vadd.f32 %v3388_v8, %v2049_v48 }
 0x1dd   :  { %v2189_v17 = vadd.f32 %v3423_v26, %v2119_v11 }
 0x1f7   :  { %v3456_v9 = vpop.f32.mrb[16].mxu0 }
 0x1f8   :  { %v3457_v19 = vpop.f32.mrb[17].mxu0 }
 0x1f9   :  { %v3491_v20 = vpop.f32.mrb[16].mxu1  ;;  %v3458_v21 = vadd.f32 %v3457_v19, %v3456_v9 }
 0x1fa   :  { %v3492_v12 = vpop.f32.mrb[17].mxu1 }
 0x1fb   :  { %v3493_v22 = vadd.f32 %v3492_v12, %v3491_v20  ;;  %v2259_v24 = vadd.f32 %v3458_v21, %v2189_v17 }
 0x1fd   :  { %v2329_v25 = vadd.f32 %v3493_v22, %v2259_v24 }
 0x217   :  { %v3526_v28 = vpop.f32.mrb[18].mxu0 }
 0x218   :  { %v3527_v29 = vpop.f32.mrb[19].mxu0 }
 0x219   :  { %v3561_v31 = vpop.f32.mrb[18].mxu1  ;;  %v3528_v30 = vadd.f32 %v3527_v29, %v3526_v28 }
 0x21a   :  { %v3562_v32 = vpop.f32.mrb[19].mxu1 }
 0x21b   :  { %v3563_v42 = vadd.f32 %v3562_v32, %v3561_v31  ;;  %v2399_v39 = vadd.f32 %v3528_v30, %v2329_v25 }
 0x21d   :  { %v2469_v23 = vadd.f32 %v3563_v42, %v2399_v39 }
 0x237   :  { %v3596_v34 = vpop.f32.mrb[20].mxu0 }
 0x238   :  { %v3597_v35 = vpop.f32.mrb[21].mxu0 }
 0x239   :  { %v3631_v36 = vpop.f32.mrb[20].mxu1  ;;  %v3598_v27 = vadd.f32 %v3597_v35, %v3596_v34 }
 0x23a   :  { %v3632_v37 = vpop.f32.mrb[21].mxu1 }
 0x23b   :  { %v3633_v38 = vadd.f32 %v3632_v37, %v3631_v36  ;;  %v2539_v40 = vadd.f32 %v3598_v27, %v2469_v23 }
 0x23d   :  { %v2609_v41 = vadd.f32 %v3633_v38, %v2539_v40 }
 0x257   :  { %v3666_v43 = vpop.f32.mrb[22].mxu0 }
 0x258   :  { %v3667_v44 = vpop.f32.mrb[23].mxu0 }
 0x259   :  { %v3701_v46 = vpop.f32.mrb[22].mxu1  ;;  %v3668_v47 = vadd.f32 %v3667_v44, %v3666_v43 }
 0x25a   :  { %v3702_v52 = vpop.f32.mrb[23].mxu1 }
 0x25b   :  { %v3703_v48 = vadd.f32 %v3702_v52, %v3701_v46  ;;  %v2679_v61 = vadd.f32 %v3668_v47, %v2609_v41 }
 0x25d   :  { %v2749_v63 = vadd.f32 %v3703_v48, %v2679_v61 }
 0x25f   :  { %v2752_v49 = vmax.f32 %v2749_v63, 0.0 }
 0x261   :  { %3754 = vmatmul.mubr.f32.vlgmr.msra.gmra.mrb[24].mxu0 %v2752_v49 }
 0x334   :  { %v2842_v50 = vpop.f32.mrb[24].mxu0 }
 0x335   :  { %v2843_v53 = vadd.f32 %v2863_v62, %v2842_v50  ;;  %v3755_v54 = vpop.f32.mrb[25].mxu0 }
 0x337   :  { %v2846_v55 = vmul.f32 %v2843_v53, %v2843_v53 }
 0x339   :  { %2847 = vst [vmem:[#allocation2] sm:$0x3] %v2846_v55 }
 0x33a   :  { %4576 = shalt.err (!%p4573_p4)
}
 0x33b   :  { %s4577_s12 = scalar_lea.hbm %s7183_s5, 32 }
 0x33c   :  { %p4578_p5 = scmp.ne.s32.totalorder %s7183_s5, %s4577_s12  ;;  %p4581_p6 = scmp.lt.u32.totalorder %s4577_s12, %s7183_s5 }
 0x33e   :  { %p4583_p7 = pnand %p4581_p6, %p4578_p5 }
 0x340   :  { %4586 = shalt.err (!%p4583_p7)
}
 0x341   :  { %2857 = dma.vmem_to_hbm [thread:$0]  %s2855_s0, 32, %s7183_s5, [#allocation3]  }
 0x342   :  { %4587 = dma.done.wait [#allocation3], 32  }
 0x343   :  { %4588 = vsyncadd [#allocation3], 4294967264 }
 0x344   :  { %2861 = vsyncpa [#allocation3], 1 }

// kernel: simple_dcnn_forward.2
= control target key start
LH: loop header
LB: loop body
LE: loop exit
PB: predicated region body
PF: predicated region fallthrough
CT: control target
= control target key end

     0   :  { %s6540_s18 = smov 0   ;;  %s8575_s0 = inlined_call_operand.vmem [shape: f32[2,264,1], index: 0, kind: input, shape index: {}]   ;;  %s8576_s1 = inlined_call_operand.vmem [shape: f32[9,32], index: 1, kind: input, shape index: {}]   ;;  %s8577_s2 = inlined_call_operand.vmem [shape: f32[1,32], index: 2, kind: input, shape index: {}]   ;;  %s8578_s3 = inlined_call_operand.vmem [shape: f32[288,128], index: 3, kind: input, shape index: {}]   ;;  %s8579_s4 = inlined_call_operand.vmem [shape: f32[1,128], index: 4, kind: input, shape index: {}]   ;;  %s8580_s5 = inlined_call_operand.vmem [shape: f32[2,6,8,128], index: 5, kind: output, shape index: {}]  }
   0x1 LB: > { %s5326_s19 = sadd.s32 4294967295, %s6506_s18   ;;  %p5330_p0 = scmp.ge.s32.totalorder %s6506_s18, 1  ;;  %s6506_s18 = sphi %s6540_s18, %s15_s18  }
   0x2   : > { %p187_p1 = scmp.lt.s32.totalorder %s6506_s18, 3 }
   0x4   : > { %p188_p2 = pnand %p5330_p0, %p187_p1 }
   0x6   : > { %191 = sbr.rel (%p188_p2) target bundleno = 1038 (0x40e), region = 40 }
   0xd   : > { %p215_p3 = scmp.lt.s32.totalorder %s5326_s19, 1  ;;  %v6508_v0 = vmov 0   ;;  %vm2349_vm0 = vcmask 261120  }
   0xe   : > { %6491 = vset.pattern.permute.xlu1 %v6508_v0  ;;  %6490 = vset.pattern.permute.xlu0 %v6508_v0 }
   0xf   : > { %s8717_s19 = smov (!%p215_p3, %s5326_s19), 1 }
  0x10   : > { %s6478_s20 = smul.u32 264, %s8717_s19 }
  0x12   : > { %s6554_s23 = scalar_lea.vmem %s8575_s0, %s6478_s20 }
  0x13   : > { %v6557_v1 = vld [vmem:[%s6554_s23 + $0x10] sm:$0xff]  ;;  %v225_v2 = vld [vmem:[%s6554_s23] sm:$0xff]  ;;  %v6562_v3 = vld [vmem:[%s6554_s23 + $0x18] sm:$0xff] }
  0x14   : > { %266 = vperm.xlu1 %6491, %v6557_v1   ;;  %256 = vperm.xlu0 %6490, %v225_v2   ;;  %v226_v4 = vld [vmem:[%s6554_s23 + $0x8] sm:$0xff]  ;;  %v6570_v6 = vld [vmem:[%s6554_s23 + $0x20] sm:$0xff]  ;;  %v6575_v7 = vld [vmem:[%s6554_s23 + $0x38] sm:$0xff] }
  0x15   : > { %v6567_v5 = vld [vmem:[%s6554_s23 + $0x28] sm:$0xff]  ;;  %v6578_v8 = vld [vmem:[%s6554_s23 + $0x30] sm:$0xff]  ;;  %v6586_v10 = vld [vmem:[%s6554_s23 + $0x40] sm:$0xff] }
  0x16   : > { %v6583_v9 = vld [vmem:[%s6554_s23 + $0x48] sm:$0xff]  ;;  %v6591_v11 = vld [vmem:[%s6554_s23 + $0x58] sm:$0xff]  ;;  %v6594_v12 = vld [vmem:[%s6554_s23 + $0x50] sm:$0xff] }
  0x17   : > { %v6599_v13 = vld [vmem:[%s6554_s23 + $0x68] sm:$0xff]  ;;  %v6602_v14 = vld [vmem:[%s6554_s23 + $0x60] sm:$0xff]  ;;  %v6607_v15 = vld [vmem:[%s6554_s23 + $0x78] sm:$0xff] }
  0x18   : > { %271 = vperm.xlu1 %6491, %v6562_v3   ;;  %261 = vperm.xlu0 %6490, %v226_v4   ;;  %v6610_v16 = vld [vmem:[%s6554_s23 + $0x70] sm:$0xff]  ;;  %v6615_v17 = vld [vmem:[%s6554_s23 + $0x88] sm:$0xff]  ;;  %v6618_v18 = vld [vmem:[%s6554_s23 + $0x80] sm:$0xff] }
  0x19   : > { %v6623_v19 = vld [vmem:[%s6554_s23 + $0x98] sm:$0xff]  ;;  %v6626_v20 = vld [vmem:[%s6554_s23 + $0x90] sm:$0xff]  ;;  %v6631_v21 = vld [vmem:[%s6554_s23 + $0xa8] sm:$0xff] }
  0x1a   : > { %v6634_v22 = vld [vmem:[%s6554_s23 + $0xa0] sm:$0xff]  ;;  %v6639_v23 = vld [vmem:[%s6554_s23 + $0xb8] sm:$0xff]  ;;  %v6642_v24 = vld [vmem:[%s6554_s23 + $0xb0] sm:$0xff] }
  0x1b   : > { %v6647_v25 = vld [vmem:[%s6554_s23 + $0xc8] sm:$0xff]  ;;  %v6650_v26 = vld [vmem:[%s6554_s23 + $0xc0] sm:$0xff]  ;;  %v6655_v27 = vld [vmem:[%s6554_s23 + $0xd8] sm:$0xff] }
  0x1c   : > { %281 = vperm.xlu1 %6491, %v6567_v5   ;;  %276 = vperm.xlu0 %6490, %v6570_v6   ;;  %v6658_v28 = vld [vmem:[%s6554_s23 + $0xd0] sm:$0xff]  ;;  %v454_v30 = vld [vmem:[%s6554_s23 + $0x1] sm:$0xff]  ;;  %v6665_v31 = vld [vmem:[%s6554_s23 + $0x19] sm:$0xff] }
  0x1d   : > { %v455_v29 = vld [vmem:[%s6554_s23 + $0x9] sm:$0xff]  ;;  %v6668_v32 = vld [vmem:[%s6554_s23 + $0x11] sm:$0xff]  ;;  %v6676_v34 = vld [vmem:[%s6554_s23 + $0x21] sm:$0xff] }
  0x1e   : > { %v6673_v33 = vld [vmem:[%s6554_s23 + $0x29] sm:$0xff]  ;;  %v6681_v35 = vld [vmem:[%s6554_s23 + $0x39] sm:$0xff]  ;;  %v6684_v36 = vld [vmem:[%s6554_s23 + $0x31] sm:$0xff] }
  0x1f   : > { %v6689_v37 = vld [vmem:[%s6554_s23 + $0x49] sm:$0xff]  ;;  %v6692_v38 = vld [vmem:[%s6554_s23 + $0x41] sm:$0xff]  ;;  %v6697_v39 = vld [vmem:[%s6554_s23 + $0x59] sm:$0xff] }
  0x20   : > { %291 = vperm.xlu1 %6491, %v6575_v7   ;;  %286 = vperm.xlu0 %6490, %v6578_v8   ;;  %8608 = vst [vmem:[#allocation4_spill] sm:$0xff] %v6697_v39  ;;  %v6700_v40 = vld [vmem:[%s6554_s23 + $0x51] sm:$0xff]  ;;  %v6705_v41 = vld [vmem:[%s6554_s23 + $0x69] sm:$0xff]  ;;  %v6708_v42 = vld [vmem:[%s6554_s23 + $0x61] sm:$0xff] }
  0x21   : > { %8609 = vst [vmem:[#allocation5_spill] sm:$0xff] %v6700_v40  ;;  %8610 = vst [vmem:[#allocation6_spill] sm:$0xff] %v6705_v41  ;;  %v469_v43 = vld [vmem:[%s6554_s23 + $0x79] sm:$0xff]  ;;  %v468_v44 = vld [vmem:[%s6554_s23 + $0x71] sm:$0xff] }
  0x22   : > { %8611 = vst [vmem:[#allocation7_spill] sm:$0xff] %v6708_v42  ;;  %v471_v45 = vld [vmem:[%s6554_s23 + $0x89] sm:$0xff]  ;;  %v470_v46 = vld [vmem:[%s6554_s23 + $0x81] sm:$0xff]  ;;  %v473_v47 = vld [vmem:[%s6554_s23 + $0x99] sm:$0xff] }
  0x23   : > { %v472_v48 = vld [vmem:[%s6554_s23 + $0x91] sm:$0xff]  ;;  %v475_v49 = vld [vmem:[%s6554_s23 + $0xa9] sm:$0xff]  ;;  %v474_v50 = vld [vmem:[%s6554_s23 + $0xa1] sm:$0xff] }
  0x24   : > { %301 = vperm.xlu1 %6491, %v6583_v9   ;;  %296 = vperm.xlu0 %6490, %v6586_v10   ;;  %v477_v51 = vld [vmem:[%s6554_s23 + $0xb9] sm:$0xff]  ;;  %v476_v52 = vld [vmem:[%s6554_s23 + $0xb1] sm:$0xff]  ;;  %v479_v53 = vld [vmem:[%s6554_s23 + $0xc9] sm:$0xff] }
  0x25   : > { %v478_v54 = vld [vmem:[%s6554_s23 + $0xc1] sm:$0xff]  ;;  %v481_v55 = vld [vmem:[%s6554_s23 + $0xd9] sm:$0xff]  ;;  %v480_v56 = vld [vmem:[%s6554_s23 + $0xd1] sm:$0xff] }
  0x26   : > { %v684_v57 = vld [vmem:[%s6554_s23 + $0xa] sm:$0xff]  ;;  %v683_v58 = vld [vmem:[%s6554_s23 + $0x2] sm:$0xff]  ;;  %v6729_v59 = vld [vmem:[%s6554_s23 + $0x1a] sm:$0xff] }
  0x27   : > { %v6732_v60 = vld [vmem:[%s6554_s23 + $0x12] sm:$0xff]  ;;  %v6737_v61 = vld [vmem:[%s6554_s23 + $0x2a] sm:$0xff]  ;;  %v6740_v62 = vld [vmem:[%s6554_s23 + $0x22] sm:$0xff] }
  0x28   : > { %311 = vperm.xlu1 %6491, %v6591_v11   ;;  %306 = vperm.xlu0 %6490, %v6594_v12   ;;  %v6745_v63 = vld [vmem:[%s6554_s23 + $0x3a] sm:$0xff]  ;;  %v6748_v0 = vld [vmem:[%s6554_s23 + $0x32] sm:$0xff]  ;;  %v6753_v2 = vld [vmem:[%s6554_s23 + $0x4a] sm:$0xff] }
  0x29   : > { %8612 = vst [vmem:[#allocation8_spill] sm:$0xff] %v6753_v2  ;;  %v6756_v4 = vld [vmem:[%s6554_s23 + $0x42] sm:$0xff] }
  0x2c   : > { %321 = vperm.xlu1 %6491, %v6599_v13   ;;  %316 = vperm.xlu0 %6490, %v6602_v14  }
  0x30   : > { %331 = vperm.xlu1 %6491, %v6607_v15   ;;  %326 = vperm.xlu0 %6490, %v6610_v16  }
  0x34   : > { %341 = vperm.xlu1 %6491, %v6615_v17   ;;  %336 = vperm.xlu0 %6490, %v6618_v18  }
  0x38   : > { %351 = vperm.xlu1 %6491, %v6623_v19   ;;  %346 = vperm.xlu0 %6490, %v6626_v20  }
  0x3c   : > { %361 = vperm.xlu1 %6491, %v6631_v21   ;;  %356 = vperm.xlu0 %6490, %v6634_v22  }
  0x40   : > { %371 = vperm.xlu1 %6491, %v6639_v23   ;;  %366 = vperm.xlu0 %6490, %v6642_v24  }
  0x44   : > { %381 = vperm.xlu1 %6491, %v6647_v25   ;;  %376 = vperm.xlu0 %6490, %v6650_v26  }
  0x48   : > { %391 = vperm.xlu1 %6491, %v6655_v27   ;;  %386 = vperm.xlu0 %6490, %v6658_v28  }
  0x4c   : > { %490 = vperm.xlu1 %6491, %v455_v29   ;;  %485 = vperm.xlu0 %6490, %v454_v30  }
  0x50   : > { %500 = vperm.xlu1 %6491, %v6665_v31   ;;  %495 = vperm.xlu0 %6490, %v6668_v32  }
  0x54   : > { %510 = vperm.xlu1 %6491, %v6673_v33   ;;  %505 = vperm.xlu0 %6490, %v6676_v34  }
  0x58   : > { %520 = vperm.xlu1 %6491, %v6681_v35   ;;  %515 = vperm.xlu0 %6490, %v6684_v36  }
  0x5c   : > { %530 = vperm.xlu1 %6491, %v6689_v37   ;;  %525 = vperm.xlu0 %6490, %v6692_v38  }
  0x60   : > { %540 = vperm.xlu1 %6491, %v6697_v39   ;;  %535 = vperm.xlu0 %6490, %v6700_v40  }
  0x64   : > { %550 = vperm.xlu1 %6491, %v6705_v41   ;;  %545 = vperm.xlu0 %6490, %v6708_v42   ;;  %v710_v41 = vld [vmem:[%s6554_s23 + $0xda] sm:$0xff] }
  0x68   : > { %560 = vperm.xlu1 %6491, %v469_v43   ;;  %555 = vperm.xlu0 %6490, %v468_v44   ;;  %v6765_v43 = vld [vmem:[%s6554_s23 + $0x5a] sm:$0xff]  ;;  %v6768_v44 = vld [vmem:[%s6554_s23 + $0x52] sm:$0xff] }
  0x69   : > { %8615 = vst [vmem:[#allocation11_spill] sm:$0xff] %v6765_v43  ;;  %8616 = vst [vmem:[#allocation12_spill] sm:$0xff] %v6768_v44 }
  0x6c   : > { %570 = vperm.xlu1 %6491, %v471_v45   ;;  %565 = vperm.xlu0 %6490, %v470_v46  }
  0x70   : > { %580 = vperm.xlu1 %6491, %v473_v47   ;;  %575 = vperm.xlu0 %6490, %v472_v48   ;;  %v6777_v47 = vld [vmem:[%s6554_s23 + $0x6a] sm:$0xff]  ;;  %v6780_v48 = vld [vmem:[%s6554_s23 + $0x62] sm:$0xff] }
  0x71   : > { %8619 = vst [vmem:[#allocation15_spill] sm:$0xff] %v6777_v47  ;;  %8620 = vst [vmem:[#allocation16_spill] sm:$0xff] %v6780_v48 }
  0x74   : > { %590 = vperm.xlu1 %6491, %v475_v49   ;;  %585 = vperm.xlu0 %6490, %v474_v50  }
  0x78   : > { %600 = vperm.xlu1 %6491, %v477_v51   ;;  %595 = vperm.xlu0 %6490, %v476_v52   ;;  %v6789_v51 = vld [vmem:[%s6554_s23 + $0x7a] sm:$0xff]  ;;  %v6792_v52 = vld [vmem:[%s6554_s23 + $0x72] sm:$0xff] }
  0x79   : > { %8623 = vst [vmem:[#allocation19_spill] sm:$0xff] %v6789_v51  ;;  %8624 = vst [vmem:[#allocation20_spill] sm:$0xff] %v6792_v52 }
  0x7c   : > { %610 = vperm.xlu1 %6491, %v479_v53   ;;  %605 = vperm.xlu0 %6490, %v478_v54  }
  0x80   : > { %620 = vperm.xlu1 %6491, %v481_v55   ;;  %615 = vperm.xlu0 %6490, %v480_v56   ;;  %v700_v55 = vld [vmem:[%s6554_s23 + $0x8a] sm:$0xff]  ;;  %v6802_v56 = vld [vmem:[%s6554_s23 + $0x82] sm:$0xff] }
  0x81   : > { %8627 = vst [vmem:[#allocation23_spill] sm:$0xff] %v6802_v56 }
  0x84   : > { %719 = vperm.xlu1 %6491, %v684_v57   ;;  %714 = vperm.xlu0 %6490, %v683_v58  }
  0x88   : > { %729 = vperm.xlu1 %6491, %v6729_v59   ;;  %724 = vperm.xlu0 %6490, %v6732_v60  }
  0x8c   : > { %739 = vperm.xlu1 %6491, %v6737_v61   ;;  %734 = vperm.xlu0 %6490, %v6740_v62  }
  0x90   : > { %749 = vperm.xlu1 %6491, %v6745_v63   ;;  %744 = vperm.xlu0 %6490, %v6748_v0  }
  0x93   : > { %v6758_v29 = vpop.permute.xlu1 %266  ;;  %v6760_v30 = vpop.permute.xlu0 %256 }
  0x94   : > { %8613 = vst [vmem:[#allocation9_spill] sm:$0xff] %v6758_v29  ;;  %8614 = vst [vmem:[#allocation10_spill] sm:$0xff] %v6760_v30  ;;  %759 = vperm.xlu1 %6491, %v6753_v2   ;;  %754 = vperm.xlu0 %6490, %v6756_v4   ;;  %v703_v30 = vld [vmem:[%s6554_s23 + $0xa2] sm:$0xff]  ;;  %v705_v29 = vld [vmem:[%s6554_s23 + $0xb2] sm:$0xff] }
  0x97   : > { %v6770_v45 = vpop.permute.xlu1 %271  ;;  %v6772_v46 = vpop.permute.xlu0 %261 }
  0x98   : > { %8617 = vst [vmem:[#allocation13_spill] sm:$0xff] %v6770_v45  ;;  %8618 = vst [vmem:[#allocation14_spill] sm:$0xff] %v6772_v46  ;;  %769 = vperm.xlu1 %6491, %v6765_v43   ;;  %764 = vperm.xlu0 %6490, %v6768_v44   ;;  %v704_v45 = vld [vmem:[%s6554_s23 + $0xaa] sm:$0xff] }
  0x9b   : > { %v6782_v49 = vpop.permute.xlu1 %281  ;;  %v6784_v50 = vpop.permute.xlu0 %276 }
  0x9c   : > { %8621 = vst [vmem:[#allocation17_spill] sm:$0xff] %v6782_v49  ;;  %8622 = vst [vmem:[#allocation18_spill] sm:$0xff] %v6784_v50  ;;  %779 = vperm.xlu1 %6491, %v6777_v47   ;;  %774 = vperm.xlu0 %6490, %v6780_v48   ;;  %v701_v49 = vld [vmem:[%s6554_s23 + $0x92] sm:$0xff] }
  0x9d   : > { %v709_v48 = vld [vmem:[%s6554_s23 + $0xd2] sm:$0xff] }
  0x9f   : > { %v6794_v53 = vpop.permute.xlu1 %291  ;;  %v6796_v54 = vpop.permute.xlu0 %286 }
  0xa0   : > { %8625 = vst [vmem:[#allocation21_spill] sm:$0xff] %v6794_v53  ;;  %8626 = vst [vmem:[#allocation22_spill] sm:$0xff] %v6796_v54  ;;  %789 = vperm.xlu1 %6491, %v6789_v51   ;;  %784 = vperm.xlu0 %6490, %v6792_v52   ;;  %v702_v53 = vld [vmem:[%s6554_s23 + $0x9a] sm:$0xff] }
  0xa3   : > { %v6804_v57 = vpop.permute.xlu1 %301  ;;  %v6806_v58 = vpop.permute.xlu0 %296 }
  0xa4   : > { %8628 = vst [vmem:[#allocation24_spill] sm:$0xff] %v6806_v58  ;;  %799 = vperm.xlu1 %6491, %v700_v55   ;;  %794 = vperm.xlu0 %6490, %v6802_v56   ;;  %v706_v55 = vld [vmem:[%s6554_s23 + $0xba] sm:$0xff] }
  0xa7   : > { %v6811_v54 = vpop.permute.xlu1 %311  ;;  %v6813_v50 = vpop.permute.xlu0 %306 }
  0xa8   : > { %809 = vperm.xlu1 %6491, %v702_v53   ;;  %804 = vperm.xlu0 %6490, %v701_v49   ;;  %v708_v53 = vld [vmem:[%s6554_s23 + $0xca] sm:$0xff]  ;;  %v707_v49 = vld [vmem:[%s6554_s23 + $0xc2] sm:$0xff] }
  0xab   : > { %v6817_v46 = vpop.permute.xlu1 %321  ;;  %v6819_v58 = vpop.permute.xlu0 %316 }
  0xac   : > { %819 = vperm.xlu1 %6491, %v704_v45   ;;  %814 = vperm.xlu0 %6490, %v703_v30  }
  0xaf   : > { %v6823_v56 = vpop.permute.xlu1 %331  ;;  %v6825_v51 = vpop.permute.xlu0 %326 }
  0xb0   : > { %829 = vperm.xlu1 %6491, %v706_v55   ;;  %824 = vperm.xlu0 %6490, %v705_v29  }
  0xb3   : > { %v6829_v52 = vpop.permute.xlu1 %341  ;;  %v6831_v47 = vpop.permute.xlu0 %336 }
  0xb4   : > { %839 = vperm.xlu1 %6491, %v708_v53   ;;  %834 = vperm.xlu0 %6490, %v707_v49  }
  0xb7   : > { %v6835_v45 = vpop.permute.xlu1 %351  ;;  %v6837_v30 = vpop.permute.xlu0 %346 }
  0xb8   : > { %849 = vperm.xlu1 %6491, %v710_v41   ;;  %844 = vperm.xlu0 %6490, %v709_v48  }
  0xbb   : > { %v6839_v43 = vpop.permute.xlu1 %361  ;;  %v6841_v55 = vpop.permute.xlu0 %356 }
  0xbc   : > { %948 = vperm.xlu1 %6491, %v6562_v3   ;;  %943 = vperm.xlu0 %6490, %v6557_v1  }
  0xbf   : > { %v6845_v29 = vpop.permute.xlu1 %371  ;;  %v6847_v53 = vpop.permute.xlu0 %366 }
  0xc0   : > { %958 = vperm.xlu1 %6491, %v6567_v5   ;;  %953 = vperm.xlu0 %6490, %v6570_v6  }
  0xc3   : > { %v6851_v49 = vpop.permute.xlu1 %381  ;;  %v6853_v41 = vpop.permute.xlu0 %376 }
  0xc4   : > { %968 = vperm.xlu1 %6491, %v6575_v7   ;;  %963 = vperm.xlu0 %6490, %v6578_v8  }
  0xc7   : > { %v6857_v48 = vpop.permute.xlu1 %391  ;;  %v6859_v3 = vpop.permute.xlu0 %386 }
  0xc8   : > { %978 = vperm.xlu1 %6491, %v6583_v9   ;;  %973 = vperm.xlu0 %6490, %v6586_v10  }
  0xcb   : > { %v6863_v1 = vpop.permute.xlu1 %490  ;;  %v6865_v42 = vpop.permute.xlu0 %485 }
  0xcc   : > { %8629 = vst [vmem:[#allocation25_spill] sm:$0xff] %v6865_v42  ;;  %988 = vperm.xlu1 %6491, %v6591_v11   ;;  %983 = vperm.xlu0 %6490, %v6594_v12  }
  0xcf   : > { %v6869_v39 = vpop.permute.xlu1 %500  ;;  %v6871_v44 = vpop.permute.xlu0 %495 }
  0xd0   : > { %8630 = vst [vmem:[#allocation26_spill] sm:$0xff] %v6871_v44  ;;  %998 = vperm.xlu1 %6491, %v6599_v13   ;;  %993 = vperm.xlu0 %6490, %v6602_v14   ;;  %v6890_v13 = vld [vmem:[%s8576_s1] ss:$0 sm:$0xff]  ;;  %v6895_v14 = vld [vmem:[%s8576_s1 + $0x1] ss:$0 sm:$0xff] }
  0xd1   : > { %v408_v44 = vmul.f32 %v6890_v13, %v6813_v50  ;;  %v410_v50 = vmul.f32 %v6890_v13, %v6819_v58  ;;  %v412_v58 = vmul.f32 %v6890_v13, %v6825_v51  ;;  %v414_v51 = vmul.f32 %v6890_v13, %v6831_v47 }
  0xd2   : > { %v416_v47 = vmul.f32 %v6890_v13, %v6837_v30 }
  0xd3   : > { %v6875_v2 = vpop.permute.xlu1 %510  ;;  %v6877_v40 = vpop.permute.xlu0 %505 }
  0xd4   : > { %8631 = vst [vmem:[#allocation27_spill] sm:$0xff] %v6875_v2  ;;  %8632 = vst [vmem:[#allocation28_spill] sm:$0xff] %v6877_v40  ;;  %1008 = vperm.xlu1 %6491, %v6607_v15   ;;  %1003 = vperm.xlu0 %6490, %v6610_v16  }
  0xd7   : > { %v6881_v42 = vpop.permute.xlu1 %520  ;;  %v6883_v11 = vpop.permute.xlu0 %515 }
  0xd8   : > { %8633 = vst [vmem:[#allocation29_spill] sm:$0xff] %v6881_v42  ;;  %8634 = vst [vmem:[#allocation30_spill] sm:$0xff] %v6883_v11  ;;  %1018 = vperm.xlu1 %6491, %v6615_v17   ;;  %1013 = vperm.xlu0 %6490, %v6618_v18   ;;  %v407_v42 = vmul.f32 %v6890_v13, %v6804_v57  ;;  %v409_v11 = vmul.f32 %v6890_v13, %v6811_v54 }
  0xdb   : > { %v531_v15 = vpop.permute.xlu1 %530  ;;  %v6897_v16 = vpop.permute.xlu0 %525 }
  0xdc   : > { %8635 = vst [vmem:[#allocation31_spill] sm:$0xff] %v6897_v16  ;;  %v636_v17 = vmul.f32 %v6895_v14, %v531_v15  ;;  %1028 = vperm.xlu1 %6491, %v6623_v19   ;;  %1023 = vperm.xlu0 %6490, %v6626_v20  }
  0xde   : > { %v6904_v18 = vadd.f32 %v636_v17, %v407_v42  ;;  %v411_v42 = vmul.f32 %v6890_v13, %v6817_v46 }
  0xdf   : > { %v541_v2 = vpop.permute.xlu1 %540  ;;  %v536_v40 = vpop.permute.xlu0 %535 }
  0xe0   : > { %v638_v16 = vmul.f32 %v6895_v14, %v541_v2  ;;  %v637_v57 = vmul.f32 %v6895_v14, %v536_v40  ;;  %1038 = vperm.xlu1 %6491, %v6631_v21   ;;  %1033 = vperm.xlu0 %6490, %v6634_v22  }
  0xe2   : > { %v6914_v19 = vadd.f32 %v638_v16, %v409_v11  ;;  %v6916_v20 = vadd.f32 %v637_v57, %v408_v44  ;;  %v413_v44 = vmul.f32 %v6890_v13, %v6823_v56  ;;  %v415_v56 = vmul.f32 %v6890_v13, %v6829_v52 }
  0xe3   : > { %v551_v54 = vpop.permute.xlu1 %550  ;;  %v546_v15 = vpop.permute.xlu0 %545  ;;  %v417_v52 = vmul.f32 %v6890_v13, %v6835_v45 }
  0xe4   : > { %v640_v2 = vmul.f32 %v6895_v14, %v551_v54  ;;  %v639_v40 = vmul.f32 %v6895_v14, %v546_v15  ;;  %1048 = vperm.xlu1 %6491, %v6639_v23   ;;  %1043 = vperm.xlu0 %6490, %v6642_v24  }
  0xe6   : > { %v6926_v21 = vadd.f32 %v640_v2, %v411_v42  ;;  %v6928_v22 = vadd.f32 %v639_v40, %v410_v50 }
  0xe7   : > { %v561_v46 = vpop.permute.xlu1 %560  ;;  %v556_v11 = vpop.permute.xlu0 %555 }
  0xe8   : > { %v642_v16 = vmul.f32 %v6895_v14, %v561_v46  ;;  %v641_v23 = vmul.f32 %v6895_v14, %v556_v11  ;;  %1058 = vperm.xlu1 %6491, %v6647_v25   ;;  %1053 = vperm.xlu0 %6490, %v6650_v26   ;;  %v939_v25 = vld [vmem:[%s6554_s23 + $0xe8] sm:$0xff]  ;;  %v938_v26 = vld [vmem:[%s6554_s23 + $0xe0] sm:$0xff] }
  0xea   : > { %v6938_v24 = vadd.f32 %v642_v16, %v413_v44  ;;  %v6940_v17 = vadd.f32 %v641_v23, %v412_v58  ;;  %v419_v58 = vmul.f32 %v6890_v13, %v6839_v43  ;;  %v418_v23 = vmul.f32 %v6890_v13, %v6841_v55 }
  0xeb   : > { %v571_v57 = vpop.permute.xlu1 %570  ;;  %v566_v42 = vpop.permute.xlu0 %565  ;;  %v421_v43 = vmul.f32 %v6890_v13, %v6845_v29  ;;  %v420_v55 = vmul.f32 %v6890_v13, %v6847_v53  ;;  %v423_v29 = vmul.f32 %v6890_v13, %v6851_v49  ;;  %v422_v53 = vmul.f32 %v6890_v13, %v6853_v41 }
  0xec   : > { %v644_v54 = vmul.f32 %v6895_v14, %v571_v57  ;;  %v643_v15 = vmul.f32 %v6895_v14, %v566_v42  ;;  %1068 = vperm.xlu1 %6491, %v6655_v27   ;;  %1063 = vperm.xlu0 %6490, %v6658_v28   ;;  %v425_v49 = vmul.f32 %v6890_v13, %v6857_v48 }
  0xed   : > { %v424_v41 = vmul.f32 %v6890_v13, %v6859_v3 }
  0xee   : > { %v6952_v50 = vadd.f32 %v644_v54, %v415_v56  ;;  %v6954_v2 = vadd.f32 %v643_v15, %v414_v51 }
  0xef   : > { %v581_v40 = vpop.permute.xlu1 %580  ;;  %v576_v44 = vpop.permute.xlu0 %575 }
  0xf0   : > { %v646_v46 = vmul.f32 %v6895_v14, %v581_v40  ;;  %v645_v27 = vmul.f32 %v6895_v14, %v576_v44  ;;  %1078 = vperm.xlu1 %6491, %v939_v25   ;;  %1073 = vperm.xlu0 %6490, %v938_v26  }
  0xf2   : > { %v6962_v28 = vadd.f32 %v646_v46, %v417_v52  ;;  %v6964_v11 = vadd.f32 %v645_v27, %v416_v47 }
  0xf3   : > { %v591_v16 = vpop.permute.xlu1 %590  ;;  %v586_v45 = vpop.permute.xlu0 %585 }
  0xf4   : > { %v648_v30 = vmul.f32 %v6895_v14, %v591_v16  ;;  %v647_v56 = vmul.f32 %v6895_v14, %v586_v45  ;;  %1177 = vperm.xlu1 %6491, %v6665_v31   ;;  %1172 = vperm.xlu0 %6490, %v6668_v32  }
  0xf6   : > { %v6974_v57 = vadd.f32 %v648_v30, %v419_v58  ;;  %v6976_v42 = vadd.f32 %v647_v56, %v418_v23 }
  0xf7   : > { %v601_v51 = vpop.permute.xlu1 %600  ;;  %v596_v54 = vpop.permute.xlu0 %595 }
  0xf8   : > { %v650_v15 = vmul.f32 %v6895_v14, %v601_v51  ;;  %v649_v25 = vmul.f32 %v6895_v14, %v596_v54  ;;  %1187 = vperm.xlu1 %6491, %v6673_v33   ;;  %1182 = vperm.xlu0 %6490, %v6676_v34  }
  0xfa   : > { %v6986_v31 = vadd.f32 %v650_v15, %v421_v43  ;;  %v6988_v32 = vadd.f32 %v649_v25, %v420_v55 }
  0xfb   : > { %v611_v26 = vpop.permute.xlu1 %610  ;;  %v606_v52 = vpop.permute.xlu0 %605 }
  0xfc   : > { %v652_v40 = vmul.f32 %v6895_v14, %v611_v26  ;;  %v651_v44 = vmul.f32 %v6895_v14, %v606_v52  ;;  %1197 = vperm.xlu1 %6491, %v6681_v35   ;;  %1192 = vperm.xlu0 %6490, %v6684_v36  }
  0xfe   : > { %v6998_v47 = vadd.f32 %v652_v40, %v423_v29  ;;  %v7000_v46 = vadd.f32 %v651_v44, %v422_v53 }
  0xff   : > { %v621_v27 = vpop.permute.xlu1 %620  ;;  %v616_v58 = vpop.permute.xlu0 %615 }
 0x100   : > { %v654_v16 = vmul.f32 %v6895_v14, %v621_v27  ;;  %v653_v45 = vmul.f32 %v6895_v14, %v616_v58  ;;  %1401 = vperm.xlu1 %6491, %v6732_v60   ;;  %1202 = vperm.xlu0 %6490, %v6692_v38  }
 0x102   : > { %v7010_v23 = vadd.f32 %v654_v16, %v425_v49  ;;  %v7012_v30 = vadd.f32 %v653_v45, %v424_v41 }
 0x103   : > { %v7014_v56 = vpop.permute.xlu1 %719  ;;  %v7016_v48 = vpop.permute.xlu0 %714 }
 0x104   : > { %1411 = vperm.xlu1 %6491, %v6740_v62   ;;  %1406 = vperm.xlu0 %6490, %v6729_v59   ;;  %v7041_v59 = vld [vmem:[%s8576_s1 + $0x2] ss:$0 sm:$0xff] }
 0x107   : > { %v7020_v3 = vpop.permute.xlu1 %729  ;;  %v7022_v43 = vpop.permute.xlu0 %724 }
 0x108   : > { %1421 = vperm.xlu1 %6491, %v6748_v0   ;;  %1416 = vperm.xlu0 %6490, %v6737_v61  }
 0x10b   : > { %v7026_v60 = vpop.permute.xlu1 %739  ;;  %v7028_v51 = vpop.permute.xlu0 %734 }
 0x10c   : > { %1635 = vperm.xlu1 %6491, %v6567_v5   ;;  %1630 = vperm.xlu0 %6490, %v6570_v6  }
 0x10f   : > { %v7032_v54 = vpop.permute.xlu1 %749  ;;  %v7034_v55 = vpop.permute.xlu0 %744 }
 0x110   : > { %1645 = vperm.xlu1 %6491, %v6575_v7   ;;  %1640 = vperm.xlu0 %6490, %v6578_v8  }
 0x113   : > { %v760_v15 = vpop.permute.xlu1 %759  ;;  %v7043_v25 = vpop.permute.xlu0 %754 }
 0x114   : > { %8636 = vst [vmem:[#allocation32_spill] sm:$0xff] %v7043_v25  ;;  %v865_v5 = vmul.f32 %v7041_v59, %v760_v15  ;;  %1426 = vperm.xlu1 %6491, %v6745_v63   ;;  %1650 = vperm.xlu0 %6490, %v6586_v10  }
 0x116   : > { %v7049_v6 = vadd.f32 %v865_v5, %v6904_v18 }
 0x117   : > { %v770_v7 = vpop.permute.xlu1 %769  ;;  %v765_v29 = vpop.permute.xlu0 %764 }
 0x118   : > { %v867_v8 = vmul.f32 %v7041_v59, %v770_v7  ;;  %v866_v26 = vmul.f32 %v7041_v59, %v765_v29  ;;  %1864 = vperm.xlu1 %6491, %v6673_v33   ;;  %1859 = vperm.xlu0 %6490, %v6676_v34  }
 0x11a   : > { %v7056_v52 = vadd.f32 %v867_v8, %v6914_v19  ;;  %v7059_v53 = vadd.f32 %v866_v26, %v6916_v20 }
 0x11b   : > { %v780_v10 = vpop.permute.xlu1 %779  ;;  %v775_v40 = vpop.permute.xlu0 %774 }
 0x11c   : > { %v869_v18 = vmul.f32 %v7041_v59, %v780_v10  ;;  %v868_v44 = vmul.f32 %v7041_v59, %v775_v40  ;;  %1874 = vperm.xlu1 %6491, %v6681_v35   ;;  %1869 = vperm.xlu0 %6490, %v6684_v36   ;;  %v8637_v10 = vld [vmem:[#allocation5_spill] sm:$0xff] }
 0x11e   : > { %v7066_v33 = vadd.f32 %v869_v18, %v6926_v21  ;;  %v7069_v34 = vadd.f32 %v868_v44, %v6928_v22 }
 0x11f   : > { %v790_v19 = vpop.permute.xlu1 %789  ;;  %v785_v49 = vpop.permute.xlu0 %784 }
 0x120   : > { %v871_v20 = vmul.f32 %v7041_v59, %v790_v19  ;;  %v870_v27 = vmul.f32 %v7041_v59, %v785_v49  ;;  %1879 = vperm.xlu1 %6491, %v6692_v38   ;;  %1431 = vperm.xlu0 %6490, %v6756_v4  }
 0x122   : > { %v7076_v35 = vadd.f32 %v871_v20, %v6938_v24  ;;  %v7079_v36 = vadd.f32 %v870_v27, %v6940_v17  ;;  %v2433_v20 = vld [vmem:[%s8578_s3 + $0x30] sm:$0xff]  ;;  %v2434_v27 = vld [vmem:[%s8578_s3 + $0x38] sm:$0xff] }
 0x123   : > { %v800_v21 = vpop.permute.xlu1 %799  ;;  %v795_v58 = vpop.permute.xlu0 %794 }
 0x124   : > { %v873_v22 = vmul.f32 %v7041_v59, %v800_v21  ;;  %v872_v41 = vmul.f32 %v7041_v59, %v795_v58  ;;  %1655 = vperm.xlu1 %6491, %v6583_v9   ;;  %1207 = vperm.xlu0 %6490, %v6689_v37  }
 0x126   : > { %v7086_v38 = vadd.f32 %v873_v22, %v6952_v50  ;;  %v7089_v16 = vadd.f32 %v872_v41, %v6954_v2  ;;  %v6214_v22 = vpack.c.bf16 %v2434_v27, %v2433_v20  ;;  %v8639_v41 = vld [vmem:[#allocation12_spill] sm:$0xff] }
 0x127   : > { %v810_v24 = vpop.permute.xlu1 %809  ;;  %v805_v45 = vpop.permute.xlu0 %804  ;;  %v8647_v20 = vld [vmem:[#allocation16_spill] sm:$0xff] }
 0x128   : > { %v875_v17 = vmul.f32 %v7041_v59, %v810_v24  ;;  %v874_v15 = vmul.f32 %v7041_v59, %v805_v45  ;;  %2093 = vperm.xlu1 %6491, %v6737_v61   ;;  %2088 = vperm.xlu0 %6490, %v6740_v62   ;;  %v3591_v45 = vld [vmem:[%s8578_s3 + $0x80] sm:$0xff] }
 0x12a   : > { %v7096_v9 = vadd.f32 %v875_v17, %v6962_v28  ;;  %v7099_v5 = vadd.f32 %v874_v15, %v6964_v11  ;;  %v3592_v17 = vld [vmem:[%s8578_s3 + $0x88] sm:$0xff] }
 0x12b   : > { %v820_v50 = vpop.permute.xlu1 %819  ;;  %v815_v7 = vpop.permute.xlu0 %814 }
 0x12c   : > { %v877_v2 = vmul.f32 %v7041_v59, %v820_v50  ;;  %v876_v29 = vmul.f32 %v7041_v59, %v815_v7  ;;  %2103 = vperm.xlu1 %6491, %v6745_v63   ;;  %2098 = vperm.xlu0 %6490, %v6748_v0   ;;  %v7163_v50 = vpack.c.bf16 %v3592_v17, %v3591_v45  ;;  %v3593_v7 = vld [vmem:[%s8578_s3 + $0x90] sm:$0xff] }
 0x12e   : > { %v7106_v61 = vadd.f32 %v877_v2, %v6974_v57  ;;  %v7109_v62 = vadd.f32 %v876_v29, %v6976_v42  ;;  %v2431_v57 = vld [vmem:[%s8578_s3 + $0x20] sm:$0xff]  ;;  %v2432_v42 = vld [vmem:[%s8578_s3 + $0x28] sm:$0xff]  ;;  %8640 = vst [vmem:[#allocation5_spill] sm:$0xff] %v7163_v50  ;;  %6243 = vmatprep.subr.bf16.mxu0 %v7163_v50  ;;  %v3594_v2 = vld [vmem:[%s8578_s3 + $0x98] sm:$0xff] }
 0x12f   : > { %v830_v28 = vpop.permute.xlu1 %829  ;;  %v825_v8 = vpop.permute.xlu0 %824  ;;  %v6210_v44 = vpack.c.bf16 %v2432_v42, %v2431_v57  ;;  %6245 = vmatpush3.bf16.msra.mxu0 %v7163_v50  ;;  %v8643_v57 = vld [vmem:[#allocation7_spill] sm:$0xff] }
 0x130   : > { %v879_v11 = vmul.f32 %v7041_v59, %v830_v28  ;;  %v878_v26 = vmul.f32 %v7041_v59, %v825_v8  ;;  %1660 = vperm.xlu1 %6491, %v6594_v12   ;;  %1212 = vperm.xlu0 %6490, %v8637_v10   ;;  %v7180_v8 = vpack.c.bf16 %v3594_v2, %v3593_v7  ;;  %v1609_v2 = vld [vmem:[%s6554_s23 + $0x70] sm:$0xff]  ;;  %v1159_v50 = vld [vmem:[%s6554_s23 + $0xa1] sm:$0xff] }
 0x131   : > { %6211 = vmatprep.subr.bf16.mxu1 %v6210_v44 }
 0x132   : > { %v7116_v63 = vadd.f32 %v879_v11, %v6986_v31  ;;  %v7119_v0 = vadd.f32 %v878_v26, %v6988_v32  ;;  %v8638_v31 = vld [vmem:[#allocation8_spill] sm:$0xff]  ;;  %6213 = vmatpush3.bf16.msra.mxu1 %v6210_v44  ;;  %v1607_v11 = vld [vmem:[%s6554_s23 + $0x60] sm:$0xff]  ;;  %6247 = vmatprep.subr.bf16.mxu0 %v7180_v8 }
 0x133   : > { %v840_v40 = vpop.permute.xlu1 %839  ;;  %v835_v18 = vpop.permute.xlu0 %834  ;;  %6215 = vmatprep.subr.bf16.mxu1 %v6214_v22  ;;  %8642 = vst [vmem:[#allocation8_spill] sm:$0xff] %v7180_v8  ;;  %6249 = vmatpush3.bf16.msra.mxu0 %v7180_v8  ;;  %v7200_v44 = vld [vmem:[%s8576_s1 + $0x3] ss:$0 sm:$0xff] }
 0x134   : > { %v881_v12 = vmul.f32 %v7041_v59, %v840_v40  ;;  %v880_v19 = vmul.f32 %v7041_v59, %v835_v18  ;;  %1436 = vperm.xlu1 %6491, %v8638_v31   ;;  %2108 = vperm.xlu0 %6490, %v6756_v4   ;;  %v8645_v18 = vld [vmem:[#allocation11_spill] sm:$0xff] }
 0x136   : > { %v7132_v32 = vadd.f32 %v881_v12, %v6998_v47  ;;  %v7135_v49 = vadd.f32 %v880_v19, %v7000_v46  ;;  %6217 = vmatpush3.bf16.msra.mxu1 %v6214_v22 }
 0x137   : > { %v850_v21 = vpop.permute.xlu1 %849  ;;  %v845_v58 = vpop.permute.xlu0 %844 }
 0x138   : > { %v883_v4 = vmul.f32 %v7041_v59, %v850_v21  ;;  %v882_v47 = vmul.f32 %v7041_v59, %v845_v58  ;;  %1441 = vperm.xlu1 %6491, %v8639_v41   ;;  %1884 = vperm.xlu0 %6490, %v6689_v37  }
 0x13a   : > { %v7148_v46 = vadd.f32 %v883_v4, %v7010_v23  ;;  %v7151_v24 = vadd.f32 %v882_v47, %v7012_v30  ;;  %v8641_v23 = vld [vmem:[#allocation4_spill] sm:$0xff]  ;;  %v1606_v30 = vld [vmem:[%s6554_s23 + $0x58] sm:$0xff] }
 0x13b   : > { %v7159_v15 = vpop.permute.xlu1 %948  ;;  %v7161_v37 = vpop.permute.xlu0 %943  ;;  %v8649_v47 = vld [vmem:[#allocation6_spill] sm:$0xff] }
 0x13c   : > { %1217 = vperm.xlu1 %6491, %v8641_v23   ;;  %1889 = vperm.xlu0 %6490, %v8637_v10   ;;  %v1085_v25 = vmul.f32 %v7200_v44, %v7161_v37 }
 0x13f   : > { %v7176_v29 = vpop.permute.xlu1 %958  ;;  %v7178_v28 = vpop.permute.xlu0 %953 }
 0x140   : > { %2113 = vperm.xlu1 %6491, %v8638_v31   ;;  %1665 = vperm.xlu0 %6490, %v1606_v30  }
 0x143   : > { %v7186_v26 = vpop.permute.xlu1 %968  ;;  %v7188_v10 = vpop.permute.xlu0 %963 }
 0x144   : > { %1670 = vperm.xlu1 %6491, %v1607_v11   ;;  %1222 = vperm.xlu0 %6490, %v8643_v57   ;;  %v1153_v11 = vld [vmem:[%s6554_s23 + $0x71] sm:$0xff] }
 0x147   : > { %v7191_v42 = vpop.permute.xlu1 %978  ;;  %v7193_v40 = vpop.permute.xlu0 %973 }
 0x148   : > { %8644 = vst [vmem:[#allocation12_spill] sm:$0xff] %v7191_v42  ;;  %1446 = vperm.xlu1 %6491, %v8645_v18   ;;  %2118 = vperm.xlu0 %6490, %v8639_v41   ;;  %v1608_v41 = vld [vmem:[%s6554_s23 + $0x68] sm:$0xff]  ;;  %v7415_v42 = vld [vmem:[%s8576_s1 + $0x5] ss:$0 sm:$0xff] }
 0x14b   : > { %v989_v12 = vpop.permute.xlu1 %988  ;;  %v7202_v19 = vpop.permute.xlu0 %983 }
 0x14c   : > { %8646 = vst [vmem:[#allocation4_spill] sm:$0xff] %v7202_v19  ;;  %v1094_v31 = vmul.f32 %v7200_v44, %v989_v12  ;;  %1451 = vperm.xlu1 %6491, %v8647_v20   ;;  %1894 = vperm.xlu0 %6490, %v8641_v23  }
 0x14e   : > { %v7208_v27 = vadd.f32 %v1094_v31, %v7049_v6 }
 0x14f   : > { %v999_v21 = vpop.permute.xlu1 %998  ;;  %v994_v58 = vpop.permute.xlu0 %993 }
 0x150   : > { %8648 = vst [vmem:[#allocation7_spill] sm:$0xff] %v7208_v27  ;;  %v1096_v22 = vmul.f32 %v7200_v44, %v999_v21  ;;  %v1095_v4 = vmul.f32 %v7200_v44, %v994_v58  ;;  %1227 = vperm.xlu1 %6491, %v8649_v47   ;;  %1899 = vperm.xlu0 %6490, %v8643_v57   ;;  %v8656_v47 = vld [vmem:[#allocation15_spill] sm:$0xff] }
 0x152   : > { %v7216_v45 = vadd.f32 %v1096_v22, %v7056_v52  ;;  %v7219_v17 = vadd.f32 %v1095_v4, %v7059_v53 }
 0x153   : > { %v1009_v6 = vpop.permute.xlu1 %1008  ;;  %v1004_v23 = vpop.permute.xlu0 %1003 }
 0x154   : > { %8650 = vst [vmem:[#allocation11_spill] sm:$0xff] %v7216_v45  ;;  %8651 = vst [vmem:[#allocation16_spill] sm:$0xff] %v7219_v17  ;;  %v1098_v30 = vmul.f32 %v7200_v44, %v1009_v6  ;;  %v1097_v7 = vmul.f32 %v7200_v44, %v1004_v23  ;;  %2123 = vperm.xlu1 %6491, %v8645_v18   ;;  %1675 = vperm.xlu0 %6490, %v1608_v41   ;;  %v1837_v41 = vld [vmem:[%s6554_s23 + $0x69] sm:$0xff] }
 0x156   : > { %v7227_v57 = vadd.f32 %v1098_v30, %v7066_v33  ;;  %v7230_v52 = vadd.f32 %v1097_v7, %v7069_v34 }
 0x157   : > { %v1019_v53 = vpop.permute.xlu1 %1018  ;;  %v1014_v12 = vpop.permute.xlu0 %1013 }
 0x158   : > { %8652 = vst [vmem:[#allocation6_spill] sm:$0xff] %v7227_v57  ;;  %8653 = vst [vmem:[#allocation33_spill] sm:$0xff] %v7230_v52  ;;  %v1100_v31 = vmul.f32 %v7200_v44, %v1019_v53  ;;  %v1099_v21 = vmul.f32 %v7200_v44, %v1014_v12  ;;  %1680 = vperm.xlu1 %6491, %v1609_v2   ;;  %1232 = vperm.xlu0 %6490, %v1153_v11   ;;  %v8659_v2 = vld [vmem:[#allocation20_spill] sm:$0xff]  ;;  %v1154_v53 = vld [vmem:[%s6554_s23 + $0x79] sm:$0xff] }
 0x15a   : > { %v7235_v18 = vadd.f32 %v1100_v31, %v7076_v35  ;;  %v7238_v58 = vadd.f32 %v1099_v21, %v7079_v36 }
 0x15b   : > { %v1029_v33 = vpop.permute.xlu1 %1028  ;;  %v1024_v22 = vpop.permute.xlu0 %1023 }
 0x15c   : > { %8654 = vst [vmem:[#allocation34_spill] sm:$0xff] %v7235_v18  ;;  %8655 = vst [vmem:[#allocation35_spill] sm:$0xff] %v7238_v58  ;;  %v1102_v34 = vmul.f32 %v7200_v44, %v1029_v33  ;;  %v1101_v4 = vmul.f32 %v7200_v44, %v1024_v22  ;;  %1456 = vperm.xlu1 %6491, %v8656_v47   ;;  %2128 = vperm.xlu0 %6490, %v8647_v20   ;;  %v1610_v33 = vld [vmem:[%s6554_s23 + $0x78] sm:$0xff] }
 0x15d   : > { %v8674_v18 = vld [vmem:[#allocation14_spill] sm:$0xff] }
 0x15e   : > { %v7246_v6 = vadd.f32 %v1102_v34, %v7086_v38  ;;  %v7249_v35 = vadd.f32 %v1101_v4, %v7089_v16  ;;  %v8675_v58 = vld [vmem:[#allocation26_spill] sm:$0xff] }
 0x15f   : > { %v1039_v36 = vpop.permute.xlu1 %1038  ;;  %v1034_v23 = vpop.permute.xlu0 %1033  ;;  %v629_v57 = vmul.f32 %v6895_v14, %v8675_v58  ;;  %v8678_v58 = vld [vmem:[#allocation18_spill] sm:$0xff] }
 0x160   : > { %8657 = vst [vmem:[#allocation15_spill] sm:$0xff] %v7246_v6  ;;  %8658 = vst [vmem:[#allocation36_spill] sm:$0xff] %v7249_v35  ;;  %v1104_v30 = vmul.f32 %v7200_v44, %v1039_v36  ;;  %v1103_v7 = vmul.f32 %v7200_v44, %v1034_v23  ;;  %1461 = vperm.xlu1 %6491, %v8659_v2   ;;  %1904 = vperm.xlu0 %6490, %v1837_v41   ;;  %v1611_v36 = vld [vmem:[%s6554_s23 + $0x80] sm:$0xff]  ;;  %v8673_v6 = vld [vmem:[#allocation9_spill] sm:$0xff] }
 0x161   : > { %v1155_v23 = vld [vmem:[%s6554_s23 + $0x81] sm:$0xff]  ;;  %v400_v35 = vmul.f32 %v6890_v13, %v8673_v6  ;;  %v856_v6 = vmul.f32 %v7041_v59, %v7016_v48  ;;  %v402_v45 = vmul.f32 %v6890_v13, %v8678_v58 }
 0x162   : > { %v7256_v20 = vadd.f32 %v1104_v30, %v7096_v9  ;;  %v7259_v38 = vadd.f32 %v1103_v7, %v7099_v5 }
 0x163   : > { %v1049_v16 = vpop.permute.xlu1 %1048  ;;  %v1044_v12 = vpop.permute.xlu0 %1043  ;;  %v657_v58 = vadd.f32 %v629_v57, %v400_v35 }
 0x164   : > { %8660 = vst [vmem:[#allocation20_spill] sm:$0xff] %v7256_v20  ;;  %8661 = vst [vmem:[#allocation37_spill] sm:$0xff] %v7259_v38  ;;  %v1106_v31 = vmul.f32 %v7200_v44, %v1049_v16  ;;  %v1105_v21 = vmul.f32 %v7200_v44, %v1044_v12  ;;  %1237 = vperm.xlu1 %6491, %v1154_v53   ;;  %1909 = vperm.xlu0 %6490, %v1153_v11  }
 0x165   : > { %v630_v38 = vmul.f32 %v6895_v14, %v6869_v39  ;;  %v8676_v39 = vld [vmem:[#allocation10_spill] sm:$0xff] }
 0x166   : > { %v7265_v22 = vadd.f32 %v1106_v31, %v7106_v61  ;;  %v7268_v9 = vadd.f32 %v1105_v21, %v7109_v62 }
 0x167   : > { %v1059_v34 = vpop.permute.xlu1 %1058  ;;  %v1054_v5 = vpop.permute.xlu0 %1053 }
 0x168   : > { %8662 = vst [vmem:[#allocation38_spill] sm:$0xff] %v7265_v22  ;;  %8663 = vst [vmem:[#allocation39_spill] sm:$0xff] %v7268_v9  ;;  %v1108_v4 = vmul.f32 %v7200_v44, %v1059_v34  ;;  %v1107_v41 = vmul.f32 %v7200_v44, %v1054_v5  ;;  %2133 = vperm.xlu1 %6491, %v8656_v47   ;;  %1685 = vperm.xlu0 %6490, %v1610_v33   ;;  %v8668_v33 = vld [vmem:[#allocation19_spill] sm:$0xff]  ;;  %v8672_v9 = vld [vmem:[#allocation25_spill] sm:$0xff] }
 0x169   : > { %v627_v20 = vmul.f32 %v6895_v14, %v8672_v9  ;;  %v398_v9 = vmul.f32 %v6890_v13, %v8676_v39  ;;  %v858_v39 = vmul.f32 %v7041_v59, %v7022_v43 }
 0x16a   : > { %v7276_v11 = vadd.f32 %v1108_v4, %v7116_v63  ;;  %v7279_v61 = vadd.f32 %v1107_v41, %v7119_v0  ;;  %v8671_v4 = vld [vmem:[#allocation23_spill] sm:$0xff]  ;;  %v1612_v41 = vld [vmem:[%s6554_s23 + $0x88] sm:$0xff] }
 0x16b   : > { %v1069_v30 = vpop.permute.xlu1 %1068  ;;  %v1064_v62 = vpop.permute.xlu0 %1063  ;;  %v886_v35 = vadd.f32 %v858_v39, %v657_v58  ;;  %v1616_v39 = vld [vmem:[%s6554_s23 + $0xa8] sm:$0xff] }
 0x16c   : > { %8664 = vst [vmem:[#allocation40_spill] sm:$0xff] %v7276_v11  ;;  %8665 = vst [vmem:[#allocation41_spill] sm:$0xff] %v7279_v61  ;;  %v1110_v7 = vmul.f32 %v7200_v44, %v1069_v30  ;;  %v1109_v16 = vmul.f32 %v7200_v44, %v1064_v62  ;;  %1690 = vperm.xlu1 %6491, %v1611_v36   ;;  %1242 = vperm.xlu0 %6490, %v1155_v23  }
 0x16d   : > { %v628_v11 = vmul.f32 %v6895_v14, %v6863_v1  ;;  %v399_v1 = vmul.f32 %v6890_v13, %v8674_v18  ;;  %v859_v18 = vmul.f32 %v7041_v59, %v7020_v3  ;;  %v655_v3 = vadd.f32 %v627_v20, %v398_v9 }
 0x16e   : > { %v7284_v47 = vadd.f32 %v1110_v7, %v7132_v32  ;;  %v7287_v12 = vadd.f32 %v1109_v16, %v7135_v49  ;;  %v1841_v7 = vld [vmem:[%s6554_s23 + $0x89] sm:$0xff] }
 0x16f   : > { %v1079_v63 = vpop.permute.xlu1 %1078  ;;  %v1074_v31 = vpop.permute.xlu0 %1073  ;;  %v656_v17 = vadd.f32 %v628_v11, %v399_v1  ;;  %v8679_v11 = vld [vmem:[#allocation28_spill] sm:$0xff]  ;;  %v884_v20 = vadd.f32 %v856_v6, %v655_v3 }
 0x170   : > { %8666 = vst [vmem:[#allocation42_spill] sm:$0xff] %v7284_v47  ;;  %8667 = vst [vmem:[#allocation43_spill] sm:$0xff] %v7287_v12  ;;  %v1112_v0 = vmul.f32 %v7200_v44, %v1079_v63  ;;  %v1111_v21 = vmul.f32 %v7200_v44, %v1074_v31  ;;  %1466 = vperm.xlu1 %6491, %v8668_v33   ;;  %2138 = vperm.xlu0 %6490, %v8659_v2   ;;  %v7348_v47 = vld [vmem:[%s6554_s23 + $0x9a] sm:$0xff] }
 0x171   : > { %v3900_v12 = vld [vmem:[%s8578_s3 + $0xa0] sm:$0xff]  ;;  %v631_v1 = vmul.f32 %v6895_v14, %v8679_v11  ;;  %v1113_v9 = vadd.f32 %v1085_v25, %v884_v20 }
 0x172   : > { %v7294_v34 = vadd.f32 %v1112_v0, %v7148_v46  ;;  %v7297_v32 = vadd.f32 %v1111_v21, %v7151_v24  ;;  %v1613_v46 = vld [vmem:[%s6554_s23 + $0x90] sm:$0xff]  ;;  %v2068_v24 = vld [vmem:[%s6554_s23 + $0x7a] sm:$0xff] }
 0x173   : > { %v7299_v49 = vpop.permute.xlu1 %1177  ;;  %v7301_v5 = vpop.permute.xlu0 %1172  ;;  %v2070_v21 = vld [vmem:[%s6554_s23 + $0x8a] sm:$0xff] }
 0x174   : > { %8669 = vst [vmem:[#allocation19_spill] sm:$0xff] %v7294_v34  ;;  %8670 = vst [vmem:[#allocation44_spill] sm:$0xff] %v7297_v32  ;;  %1471 = vperm.xlu1 %6491, %v8671_v4   ;;  %1914 = vperm.xlu0 %6490, %v1154_v53   ;;  %v2069_v53 = vld [vmem:[%s6554_s23 + $0x82] sm:$0xff]  ;;  %v1614_v34 = vld [vmem:[%s6554_s23 + $0x98] sm:$0xff] }
 0x177   : > { %v7305_v36 = vpop.permute.xlu1 %1187  ;;  %v7307_v2 = vpop.permute.xlu0 %1182 }
 0x178   : > { %1695 = vperm.xlu1 %6491, %v1612_v41   ;;  %1919 = vperm.xlu0 %6490, %v1155_v23   ;;  %v1842_v23 = vld [vmem:[%s6554_s23 + $0x91] sm:$0xff] }
 0x179   : > { %v2071_v41 = vld [vmem:[%s6554_s23 + $0x92] sm:$0xff] }
 0x17b   : > { %v7311_v30 = vpop.permute.xlu1 %1197  ;;  %v7313_v62 = vpop.permute.xlu0 %1192 }
 0x17c   : > { %1700 = vperm.xlu1 %6491, %v1613_v46   ;;  %2143 = vperm.xlu0 %6490, %v2068_v24  }
 0x17f   : > { %v7317_v16 = vpop.permute.xlu1 %1401  ;;  %v7319_v63 = vpop.permute.xlu0 %1202 }
 0x180   : > { %1924 = vperm.xlu1 %6491, %v1841_v7   ;;  %2148 = vperm.xlu0 %6490, %v2069_v53   ;;  %v1543_v6 = vmul.f32 %v7415_v42, %v7317_v16 }
 0x183   : > { %v7322_v31 = vpop.permute.xlu1 %1411  ;;  %v7324_v0 = vpop.permute.xlu0 %1406 }
 0x184   : > { %1247 = vperm.xlu1 %6491, %v1841_v7   ;;  %1929 = vperm.xlu0 %6490, %v1842_v23   ;;  %v1158_v7 = vld [vmem:[%s6554_s23 + $0x99] sm:$0xff]  ;;  %v1545_v3 = vmul.f32 %v7415_v42, %v7322_v31 }
 0x187   : > { %v7327_v33 = vpop.permute.xlu1 %1421  ;;  %v7329_v4 = vpop.permute.xlu0 %1416 }
 0x188   : > { %1252 = vperm.xlu1 %6491, %v1842_v23   ;;  %2153 = vperm.xlu0 %6490, %v2070_v21  }
 0x18b   : > { %v7332_v46 = vpop.permute.xlu1 %1635  ;;  %v7334_v24 = vpop.permute.xlu0 %1630 }
 0x18c   : > { %1476 = vperm.xlu1 %6491, %v2070_v21   ;;  %2158 = vperm.xlu0 %6490, %v2071_v41   ;;  %v1615_v21 = vld [vmem:[%s6554_s23 + $0xa0] sm:$0xff] }
 0x18f   : > { %v7337_v53 = vpop.permute.xlu1 %1645  ;;  %v7339_v8 = vpop.permute.xlu0 %1640 }
 0x190   : > { %1257 = vperm.xlu1 %6491, %v1158_v7   ;;  %1481 = vperm.xlu0 %6490, %v2071_v41   ;;  %v3901_v41 = vld [vmem:[%s8578_s3 + $0xa8] sm:$0xff] }
 0x193   : > { %v7343_v23 = vpop.permute.xlu1 %1426  ;;  %v7345_v32 = vpop.permute.xlu0 %1650 }
 0x194   : > { %1262 = vperm.xlu1 %6491, %v1159_v50   ;;  %1705 = vperm.xlu0 %6490, %v1614_v34   ;;  %v7363_v34 = vpack.c.bf16 %v3901_v41, %v3900_v12  ;;  %v857_v12 = vmul.f32 %v7041_v59, %v7014_v56  ;;  %v7379_v41 = vld [vmem:[%s6554_s23 + $0xa2] sm:$0xff] }
 0x195   : > { %v7393_v56 = vld [vmem:[%s8576_s1 + $0x4] ss:$0 sm:$0xff] }
 0x196   : > { %6251 = vmatprep.subr.bf16.mxu0 %v7363_v34  ;;  %v885_v43 = vadd.f32 %v857_v12, %v656_v17  ;;  %v1314_v57 = vmul.f32 %v7393_v56, %v7301_v5  ;;  %v7427_v17 = vld [vmem:[%s8576_s1 + $0x6] ss:$0 sm:$0xff]  ;;  %v1316_v5 = vmul.f32 %v7393_v56, %v7307_v2  ;;  %v1317_v25 = vmul.f32 %v7393_v56, %v7305_v36 }
 0x197   : > { %v7359_v61 = vpop.permute.xlu1 %1864  ;;  %v7361_v22 = vpop.permute.xlu0 %1859  ;;  %v1773_v2 = vmul.f32 %v7427_v17, %v7332_v46  ;;  %v1772_v58 = vmul.f32 %v7427_v17, %v7334_v24 }
 0x198   : > { %1486 = vperm.xlu1 %6491, %v7348_v47   ;;  %1710 = vperm.xlu0 %6490, %v1615_v21   ;;  %v8677_v21 = vld [vmem:[#allocation13_spill] sm:$0xff] }
 0x199   : > { %v401_v52 = vmul.f32 %v6890_v13, %v8677_v21  ;;  %v1086_v21 = vmul.f32 %v7200_v44, %v7159_v15  ;;  %v1315_v15 = vmul.f32 %v7393_v56, %v7299_v49 }
 0x19b   : > { %v7401_v48 = vpop.permute.xlu1 %1874  ;;  %v7403_v27 = vpop.permute.xlu0 %1869  ;;  %v658_v19 = vadd.f32 %v630_v38, %v401_v52  ;;  %v7418_v52 = vld [vmem:[%s6554_s23 + $0xa9] sm:$0xff]  ;;  %v1087_v38 = vmul.f32 %v7200_v44, %v7178_v28  ;;  %v1114_v49 = vadd.f32 %v1086_v21, %v885_v43  ;;  %v1342_v21 = vadd.f32 %v1314_v57, %v1113_v9 }
 0x19c   : > { %1491 = vperm.xlu1 %6491, %v7379_v41   ;;  %1934 = vperm.xlu0 %6490, %v1158_v7   ;;  %v1088_v7 = vmul.f32 %v7200_v44, %v7176_v29  ;;  %v860_v29 = vmul.f32 %v7041_v59, %v7028_v51  ;;  %v1546_v51 = vmul.f32 %v7415_v42, %v7329_v4  ;;  %v1617_v57 = vld [vmem:[%s6554_s23 + $0xb0] sm:$0xff] }
 0x19d   : > { %v887_v37 = vadd.f32 %v859_v18, %v658_v19  ;;  %v1544_v19 = vmul.f32 %v7415_v42, %v7324_v0  ;;  %v7444_v18 = vld [vmem:[%s8576_s1 + $0x7] ss:$0 sm:$0xff]  ;;  %v1343_v0 = vadd.f32 %v1315_v15, %v1114_v49  ;;  %v1115_v16 = vadd.f32 %v1087_v38, %v886_v35  ;;  %v7476_v38 = vld [vmem:[%s8576_s1 + $0x8] ss:$0 sm:$0xff]  ;;  %v7480_v35 = vld [vmem:[%s6554_s23 + $0xb1] sm:$0xff] }
 0x19e   : > { %v2002_v36 = vmul.f32 %v7444_v18, %v7359_v61  ;;  %v1571_v20 = vadd.f32 %v1543_v6, %v1342_v21  ;;  %v2001_v31 = vmul.f32 %v7444_v18, %v7361_v22  ;;  %v1775_v4 = vmul.f32 %v7427_v17, %v7337_v53 }
 0x19f   : > { %v7433_v12 = vpop.permute.xlu1 %1879  ;;  %v7435_v28 = vpop.permute.xlu0 %1431  ;;  %v1572_v11 = vadd.f32 %v1544_v19, %v1343_v0  ;;  %v1344_v15 = vadd.f32 %v1316_v5, %v1115_v16  ;;  %v1774_v61 = vmul.f32 %v7427_v17, %v7339_v8  ;;  %v659_v22 = vadd.f32 %v631_v1, %v402_v45 }
 0x1a0   : > { %1267 = vperm.xlu1 %6491, %v7418_v52   ;;  %1939 = vperm.xlu0 %6490, %v1159_v50   ;;  %v1116_v50 = vadd.f32 %v1088_v7, %v887_v37  ;;  %v1800_v7 = vadd.f32 %v1772_v58, %v1571_v20  ;;  %v2004_v8 = vmul.f32 %v7444_v18, %v7401_v48  ;;  %v1389_v48 = vld [vmem:[%s6554_s23 + $0xaa] sm:$0xff] }
 0x1a1   : > { %v1801_v37 = vadd.f32 %v1773_v2, %v1572_v11  ;;  %v1573_v49 = vadd.f32 %v1545_v3, %v1344_v15  ;;  %v2003_v9 = vmul.f32 %v7444_v18, %v7403_v27  ;;  %v1318_v1 = vmul.f32 %v7393_v56, %v7313_v62  ;;  %v7496_v27 = vld [vmem:[%s8577_s2] ss:$0 sm:$0xff] }
 0x1a2   : > { %v1345_v24 = vadd.f32 %v1317_v25, %v1116_v50  ;;  %v2029_v0 = vadd.f32 %v2001_v31, %v1800_v7  ;;  %v1547_v58 = vmul.f32 %v7415_v42, %v7327_v33  ;;  %v7509_v33 = vld [vmem:[%s6554_s23 + $0xb2] sm:$0xff] }
 0x1a3   : > { %v7462_v46 = vpop.permute.xlu1 %1655  ;;  %v7464_v43 = vpop.permute.xlu0 %1207  ;;  %v2030_v53 = vadd.f32 %v2002_v36, %v1801_v37 }
 0x1a4   : > { %2163 = vperm.xlu1 %6491, %v7348_v47   ;;  %1715 = vperm.xlu0 %6490, %v1616_v39   ;;  %v1089_v47 = vmul.f32 %v7200_v44, %v7188_v10  ;;  %v1574_v19 = vadd.f32 %v1546_v51, %v1345_v24  ;;  %v888_v10 = vadd.f32 %v860_v29, %v659_v22  ;;  %v8680_v22 = vld [vmem:[#allocation27_spill] sm:$0xff] }
 0x1a5   : > { %v1802_v39 = vadd.f32 %v1774_v61, %v1573_v49  ;;  %v1776_v24 = vmul.f32 %v7427_v17, %v7345_v32  ;;  %v2005_v32 = vmul.f32 %v7444_v18, %v7433_v12  ;;  %v861_v12 = vmul.f32 %v7041_v59, %v7026_v60 }
 0x1a6   : > { %v1803_v2 = vadd.f32 %v1775_v4, %v1574_v19  ;;  %v1117_v3 = vadd.f32 %v1089_v47, %v888_v10  ;;  %v632_v47 = vmul.f32 %v6895_v14, %v8680_v22 }
 0x1a7   : > { %v2094_v5 = vpop.permute.xlu1 %2093  ;;  %v2089_v6 = vpop.permute.xlu0 %2088  ;;  %v2031_v29 = vadd.f32 %v2003_v9, %v1802_v39  ;;  %v7528_v9 = vld [vmem:[%s6554_s23 + $0xb9] sm:$0xff] }
 0x1a8   : > { %v2231_v25 = vmul.f32 %v7476_v38, %v2094_v5  ;;  %v2230_v45 = vmul.f32 %v7476_v38, %v2089_v6  ;;  %1720 = vperm.xlu1 %6491, %v1617_v57   ;;  %1272 = vperm.xlu0 %6490, %v7480_v35   ;;  %v2032_v50 = vadd.f32 %v2004_v8, %v1803_v2  ;;  %v8681_v8 = vld [vmem:[#allocation17_spill] sm:$0xff] }
 0x1a9   : > { %v1346_v31 = vadd.f32 %v1318_v1, %v1117_v3  ;;  %v403_v14 = vmul.f32 %v6890_v13, %v8681_v8  ;;  %v1090_v1 = vmul.f32 %v7200_v44, %v7186_v26  ;;  %v7547_v26 = vld [vmem:[%s8576_s1 + $0x1] ss:$0 sm:$0xff] }
 0x1aa   : > { %v2259_v16 = vadd.f32 %v2231_v25, %v2030_v53  ;;  %v2258_v21 = vadd.f32 %v2230_v45, %v2029_v0 }
 0x1ab   : > { %v2104_v11 = vpop.permute.xlu1 %2103  ;;  %v2099_v51 = vpop.permute.xlu0 %2098  ;;  %v1575_v19 = vadd.f32 %v1547_v58, %v1346_v31  ;;  %v660_v10 = vadd.f32 %v632_v47, %v403_v14  ;;  %v1091_v47 = vmul.f32 %v7200_v44, %v7193_v40 }
 0x1ac   : > { %v2294_v62 = vadd.f32 %v7496_v27, %v2259_v16  ;;  %v2293_v36 = vadd.f32 %v7496_v27, %v2258_v21  ;;  %v2233_v15 = vmul.f32 %v7476_v38, %v2104_v11  ;;  %v2232_v20 = vmul.f32 %v7476_v38, %v2099_v51  ;;  %1496 = vperm.xlu1 %6491, %v1389_v48   ;;  %v1618_v16 = vld [vmem:[%s6554_s23 + $0xb8] sm:$0xff]  ;;  %v7560_v51 = vld [vmem:[%s8576_s1] ss:$0 sm:$0xff] }
 0x1ad   : > { %2168 = vperm.xlu0 %6490, %v7379_v41   ;;  %v1804_v5 = vadd.f32 %v1776_v24, %v1575_v19  ;;  %v889_v60 = vadd.f32 %v861_v12, %v660_v10  ;;  %v8682_v21 = vld [vmem:[#allocation30_spill] sm:$0xff]  ;;  %v1163_v24 = vld [vmem:[%s6554_s23 + $0xc1] sm:$0xff]  ;;  %v1549_v12 = vmul.f32 %v7415_v42, %v7435_v28 }
 0x1ae   : > { %v2322_v37 = vmax.f32 %v2294_v62, 0.0  ;;  %v2321_v4 = vmax.f32 %v2293_v36, 0.0  ;;  %v2261_v61 = vadd.f32 %v2233_v15, %v2032_v50  ;;  %v2260_v57 = vadd.f32 %v2232_v20, %v2031_v29  ;;  %v8683_v62 = vld [vmem:[#allocation22_spill] sm:$0xff]  ;;  %v1619_v15 = vld [vmem:[%s6554_s23 + $0xc0] sm:$0xff] }
 0x1af   : > { %v7513_v49 = vpop.permute.xlu1 %1660  ;;  %v7515_v7 = vpop.permute.xlu0 %1212  ;;  %v2033_v2 = vadd.f32 %v2005_v32, %v1804_v5  ;;  %v633_v3 = vmul.f32 %v7547_v26, %v8682_v21  ;;  %v1118_v29 = vadd.f32 %v1090_v1, %v889_v60  ;;  %v404_v36 = vmul.f32 %v7560_v51, %v8683_v62 }
 0x1b0   : > { %2351 = vst.msk [vmem:[#allocation2 + $0x8] sm:$0xff] %vm2349_vm0, %v2322_v37  ;;  %2350 = vst.msk [vmem:[#allocation2] sm:$0xff] %vm2349_vm0, %v2321_v4  ;;  %v2296_v41 = vadd.f32 %v7496_v27, %v2261_v61  ;;  %v2295_v53 = vadd.f32 %v7496_v27, %v2260_v57  ;;  %1501 = vperm.xlu1 %6491, %v7509_v33   ;;  %v862_v20 = vmul.f32 %v7041_v59, %v7034_v55 }
 0x1b1   : > { %1944 = vperm.xlu0 %6490, %v7418_v52   ;;  %v1319_v52 = vmul.f32 %v7393_v56, %v7311_v30  ;;  %v1548_v30 = vmul.f32 %v7415_v42, %v7343_v23  ;;  %v1777_v23 = vmul.f32 %v7427_v17, %v7462_v46  ;;  %v661_v37 = vadd.f32 %v633_v3, %v404_v36  ;;  %v1391_v46 = vld [vmem:[%s6554_s23 + $0xba] sm:$0xff] }
 0x1b2   : > { %v2324_v6 = vmax.f32 %v2296_v41, 0.0  ;;  %v2323_v0 = vmax.f32 %v2295_v53, 0.0  ;;  %v1320_v41 = vmul.f32 %v7393_v56, %v7319_v63  ;;  %v3903_v63 = vld [vmem:[%s8578_s3 + $0xb8] sm:$0xff]  ;;  %v1778_v28 = vmul.f32 %v7427_v17, %v7513_v49  ;;  %v7610_v49 = vld [vmem:[%s6554_s23 + $0xc9] sm:$0xff] }
 0x1b3   : > { %v7532_v25 = vpop.permute.xlu1 %1436  ;;  %v2109_v45 = vpop.permute.xlu0 %2108  ;;  %v1347_v31 = vadd.f32 %v1319_v52, %v1118_v29  ;;  %v890_v32 = vadd.f32 %v862_v20, %v661_v37  ;;  %v863_v29 = vmul.f32 %v7041_v59, %v7032_v54  ;;  %v1620_v37 = vld [vmem:[%s6554_s23 + $0xc8] sm:$0xff] }
 0x1b4   : > { %2353 = vst.msk [vmem:[#allocation2 + $0x18] sm:$0xff] %vm2349_vm0, %v2324_v6  ;;  %2352 = vst.msk [vmem:[#allocation2 + $0x10] sm:$0xff] %vm2349_vm0, %v2323_v0  ;;  %v2234_v13 = vmul.f32 %v7476_v38, %v2109_v45  ;;  %1277 = vperm.xlu1 %6491, %v7528_v9   ;;  %v3902_v0 = vld [vmem:[%s8578_s3 + $0xb0] sm:$0xff]  ;;  %v7593_v45 = vld [vmem:[%s6554_s23 + $0xc2] sm:$0xff] }
 0x1b5   : > { %1949 = vperm.xlu0 %6490, %v7480_v35   ;;  %v1576_v19 = vadd.f32 %v1548_v30, %v1347_v31  ;;  %v1119_v14 = vadd.f32 %v1091_v47, %v890_v32  ;;  %v8688_v32 = vld [vmem:[#allocation24_spill] sm:$0xff] }
 0x1b6   : > { %v2262_v39 = vadd.f32 %v2234_v13, %v2033_v2  ;;  %v8684_v2 = vld [vmem:[#allocation29_spill] sm:$0xff] }
 0x1b7   : > { %v7551_v58 = vpop.permute.xlu1 %1441  ;;  %v1885_v50 = vpop.permute.xlu0 %1884  ;;  %v2407_v35 = vld [vmem:[#allocation2 + $0x1] sm:$0xff]  ;;  %v1805_v53 = vadd.f32 %v1777_v23, %v1576_v19  ;;  %v1348_v10 = vadd.f32 %v1320_v41, %v1119_v14  ;;  %v634_v13 = vmul.f32 %v7547_v26, %v8684_v2  ;;  %v1621_v41 = vld [vmem:[%s6554_s23 + $0xd0] sm:$0xff] }
 0x1b8   : > { %v2297_v11 = vadd.f32 %v7496_v27, %v2262_v39  ;;  %2173 = vperm.xlu1 %6491, %v1389_v48   ;;  %5822 = vmatprep.mubr.msk.f32.mxu1 %vm2349_vm0, %v2407_v35  ;;  %v2006_v55 = vmul.f32 %v7444_v18, %v1885_v50  ;;  %v8685_v50 = vld [vmem:[#allocation21_spill] sm:$0xff] }
 0x1b9   : > { %1725 = vperm.xlu0 %6490, %v1618_v16   ;;  %v6254_v16 = vpack.c.bf16 %v3903_v63, %v3902_v0  ;;  %v1577_v21 = vadd.f32 %v1549_v12, %v1348_v10  ;;  %v405_v35 = vmul.f32 %v7560_v51, %v8685_v50  ;;  %v2404_v50 = vld [vmem:[%s8578_s3 + $0x8] sm:$0xff] }
 0x1ba   : > { %v2325_v48 = vmax.f32 %v2297_v11, 0.0  ;;  %v2034_v5 = vadd.f32 %v2006_v55, %v1805_v53  ;;  %v1550_v55 = vmul.f32 %v7415_v42, %v7532_v25  ;;  %v8689_v53 = vld [vmem:[#allocation32_spill] sm:$0xff] }
 0x1bb   : > { %v7570_v4 = vpop.permute.xlu1 %1217  ;;  %v1890_v61 = vpop.permute.xlu0 %1889  ;;  %v2408_v57 = vld [vmem:[#allocation2 + $0x9] sm:$0xff]  ;;  %v3567_v22 = vld [vmem:[#allocation2 + $0x11] sm:$0xff]  ;;  %v1806_v30 = vadd.f32 %v1778_v28, %v1577_v21 }
 0x1bc   : > { %2354 = vst.msk [vmem:[#allocation2 + $0x20] sm:$0xff] %vm2349_vm0, %v2325_v48  ;;  %1730 = vperm.xlu1 %6491, %v1619_v15   ;;  %5823 = vmatmul.mubr.msk.f32.vlgmr.msra.gmra.mrb[0].mxu1 %vm2349_vm0, %v2408_v57  ;;  %v8686_v15 = vld [vmem:[#allocation12_spill] sm:$0xff] }
 0x1bd   : > { %1282 = vperm.xlu0 %6490, %v1163_v24   ;;  %5998 = vmatprep.mubr.msk.f32.mxu0 %vm2349_vm0, %v3567_v22  ;;  %v1092_v20 = vmul.f32 %v7200_v44, %v8686_v15 }
 0x1be   : > { %5825 = vmatprep.mubr.msk.f32.mxu1 %vm2349_vm0, %v3567_v22 }
 0x1bf   : > { %v2114_v40 = vpop.permute.xlu1 %2113  ;;  %v1666_v8 = vpop.permute.xlu0 %1665 }
 0x1c0   : > { %v2235_v6 = vmul.f32 %v7476_v38, %v2114_v40  ;;  %1506 = vperm.xlu1 %6491, %v1391_v46   ;;  %v864_v40 = vmul.f32 %v7041_v59, %v8689_v53  ;;  %v1393_v59 = vld [vmem:[%s6554_s23 + $0xca] sm:$0xff] }
 0x1c1   : > { %2178 = vperm.xlu0 %6490, %v7509_v33   ;;  %v2007_v33 = vmul.f32 %v7444_v18, %v1890_v61  ;;  %v8687_v61 = vld [vmem:[#allocation31_spill] sm:$0xff] }
 0x1c2   : > { %v2263_v1 = vadd.f32 %v2235_v6, %v2034_v5  ;;  %v635_v57 = vmul.f32 %v7547_v26, %v8687_v61  ;;  %v1779_v26 = vmul.f32 %v7427_v17, %v1666_v8  ;;  %v1165_v5 = vld [vmem:[%s6554_s23 + $0xd1] sm:$0xff]  ;;  %v1623_v61 = vld [vmem:[%s6554_s23 + $0xe0] sm:$0xff] }
 0x1c3   : > { %v7599_v60 = vpop.permute.xlu1 %1670  ;;  %v7601_v52 = vpop.permute.xlu0 %1222  ;;  %v2410_v39 = vld [vmem:[#allocation2 + $0x19] sm:$0xff]  ;;  %v2035_v31 = vadd.f32 %v2007_v33, %v1806_v30 }
 0x1c4   : > { %v2298_v3 = vadd.f32 %v7496_v27, %v2263_v1  ;;  %1511 = vperm.xlu1 %6491, %v7593_v45   ;;  %5826 = vmatmul.mubr.msk.f32.gmra.mrb[2].mxu1 %vm2349_vm0, %v2410_v39  ;;  %v1322_v1 = vmul.f32 %v7393_v56, %v7515_v7  ;;  %v1394_v7 = vld [vmem:[%s6554_s23 + $0xd2] sm:$0xff] }
 0x1c5   : > { %1954 = vperm.xlu0 %6490, %v7528_v9   ;;  %5999 = vmatmul.mubr.msk.f32.vlgmr.msra.gmra.mrb[0].mxu0 %vm2349_vm0, %v2410_v39  ;;  %v662_v9 = vadd.f32 %v634_v13, %v405_v35 }
 0x1c6   : > { %v2326_v11 = vmax.f32 %v2298_v3, 0.0  ;;  %6253 = vmatpush3.bf16.msra.mxu0 %v7363_v34  ;;  %v1321_v34 = vmul.f32 %v7393_v56, %v7464_v43  ;;  %v406_v43 = vmul.f32 %v7560_v51, %v8688_v32  ;;  %v2403_v3 = vld [vmem:[%s8578_s3] sm:$0xff] }
 0x1c7   : > { %v7617_v62 = vpop.permute.xlu1 %1446  ;;  %v2119_v36 = vpop.permute.xlu0 %2118  ;;  %6255 = vmatprep.subr.bf16.mxu0 %v6254_v16  ;;  %v891_v54 = vadd.f32 %v863_v29, %v662_v9  ;;  %v6218_v35 = vpack.c.bf16 %v2404_v50, %v2403_v3  ;;  %v1851_v32 = vld [vmem:[%s6554_s23 + $0xd9] sm:$0xff] }
 0x1c8   : > { %2355 = vst.msk [vmem:[#allocation2 + $0x28] sm:$0xff] %vm2349_vm0, %v2326_v11  ;;  %v2236_v23 = vmul.f32 %v7476_v38, %v2119_v36  ;;  %1287 = vperm.xlu1 %6491, %v7610_v49   ;;  %v663_v6 = vadd.f32 %v635_v57, %v406_v43  ;;  %v8691_v43 = vld [vmem:[#allocation7_spill] sm:$0xff] }
 0x1c9   : > { %1959 = vperm.xlu0 %6490, %v1163_v24   ;;  %v1120_v19 = vadd.f32 %v1092_v20, %v891_v54  ;;  %6219 = vmatprep.subr.bf16.mxu1 %v6218_v35 }
 0x1ca   : > { %v2264_v48 = vadd.f32 %v2236_v23, %v2035_v31  ;;  %6257 = vmatpush3.bf16.msra.mxu0 %v6254_v16  ;;  %v892_v8 = vadd.f32 %v864_v40, %v663_v6  ;;  %v1551_v16 = vmul.f32 %v7415_v42, %v7551_v58  ;;  %v1780_v58 = vmul.f32 %v7427_v17, %v7599_v60 }
 0x1cb   : > { %v7629_v22 = vpop.permute.xlu1 %1451  ;;  %v1895_v47 = vpop.permute.xlu0 %1894  ;;  %v1349_v14 = vadd.f32 %v1321_v34, %v1120_v19  ;;  %6221 = vmatpush3.bf16.msra.mxu1 %v6218_v35  ;;  %v1324_v6 = vmul.f32 %v7393_v56, %v7601_v52 }
 0x1cc   : > { %v2299_v24 = vadd.f32 %v7496_v27, %v2264_v48  ;;  %2183 = vperm.xlu1 %6491, %v1391_v46   ;;  %v8690_v46 = vld [vmem:[#allocation4_spill] sm:$0xff]  ;;  %v2008_v28 = vmul.f32 %v7444_v18, %v1895_v47 }
 0x1cd   : > { %1735 = vperm.xlu0 %6490, %v1620_v37   ;;  %v1093_v10 = vmul.f32 %v7200_v44, %v8690_v46  ;;  %v1578_v51 = vadd.f32 %v1550_v55, %v1349_v14  ;;  %v1552_v55 = vmul.f32 %v7415_v42, %v7617_v62 }
 0x1ce   : > { %v2327_v12 = vmax.f32 %v2299_v24, 0.0 }
 0x1cf   : > { %v7641_v0 = vpop.permute.xlu1 %1227  ;;  %v1900_v25 = vpop.permute.xlu0 %1899  ;;  %v2411_v63 = vld [vmem:[#allocation2 + $0x21] sm:$0xff]  ;;  %v1807_v2 = vadd.f32 %v1779_v26, %v1578_v51  ;;  %v1121_v39 = vadd.f32 %v1093_v10, %v892_v8  ;;  %v1553_v51 = vmul.f32 %v7415_v42, %v7629_v22 }
 0x1d0   : > { %2356 = vst.msk [vmem:[#allocation2 + $0x30] sm:$0xff] %vm2349_vm0, %v2327_v12  ;;  %1740 = vperm.xlu1 %6491, %v1621_v41   ;;  %5828 = vmatprep.mubr.msk.f32.mxu1 %vm2349_vm0, %v2411_v63  ;;  %v2009_v20 = vmul.f32 %v7444_v18, %v1900_v25  ;;  %v8692_v8 = vld [vmem:[#allocation16_spill] sm:$0xff] }
 0x1d1   : > { %1292 = vperm.xlu0 %6490, %v1165_v5   ;;  %6001 = vmatprep.mubr.msk.f32.mxu0 %vm2349_vm0, %v2411_v63  ;;  %v2036_v21 = vadd.f32 %v2008_v28, %v1807_v2  ;;  %v1350_v29 = vadd.f32 %v1322_v1, %v1121_v39  ;;  %v1852_v63 = vld [vmem:[%s6554_s23 + $0xe1] sm:$0xff]  ;;  %v1352_v1 = vadd.f32 %v1324_v6, %v8692_v8  ;;  %v1854_v6 = vld [vmem:[%s6554_s23 + $0xf1] sm:$0xff] }
 0x1d3   : > { %v2124_v13 = vpop.permute.xlu1 %2123  ;;  %v1676_v44 = vpop.permute.xlu0 %1675  ;;  %v1579_v15 = vadd.f32 %v1551_v16, %v1350_v29 }
 0x1d4   : > { %v2237_v33 = vmul.f32 %v7476_v38, %v2124_v13  ;;  %1516 = vperm.xlu1 %6491, %v1393_v59   ;;  %v1781_v53 = vmul.f32 %v7427_v17, %v1676_v44  ;;  %v2081_v44 = vld [vmem:[%s6554_s23 + $0xe2] sm:$0xff] }
 0x1d5   : > { %2188 = vperm.xlu0 %6490, %v7593_v45   ;;  %v1622_v45 = vld [vmem:[%s6554_s23 + $0xd8] sm:$0xff]  ;;  %v1808_v60 = vadd.f32 %v1780_v58, %v1579_v15  ;;  %v1624_v15 = vld [vmem:[%s6554_s23 + $0xe8] sm:$0xff] }
 0x1d6   : > { %v2265_v30 = vadd.f32 %v2237_v33, %v2036_v21  ;;  %v1581_v21 = vadd.f32 %v1553_v51, %v1352_v1  ;;  %v2083_v1 = vld [vmem:[%s6554_s23 + $0xf2] sm:$0xff] }
 0x1d7   : > { %v1681_v11 = vpop.permute.xlu1 %1680  ;;  %v7665_v36 = vpop.permute.xlu0 %1232  ;;  %v2412_v9 = vld [vmem:[#allocation2 + $0x29] sm:$0xff]  ;;  %v2037_v48 = vadd.f32 %v2009_v20, %v1808_v60 }
 0x1d8   : > { %v2300_v31 = vadd.f32 %v7496_v27, %v2265_v30  ;;  %1521 = vperm.xlu1 %6491, %v1394_v7   ;;  %5829 = vmatmul.mubr.msk.f32.gmra.mrb[4].mxu1 %vm2349_vm0, %v2412_v9  ;;  %v1782_v2 = vmul.f32 %v7427_v17, %v1681_v11  ;;  %v2405_v30 = vld [vmem:[%s8578_s3 + $0x10] sm:$0xff]  ;;  %v2406_v11 = vld [vmem:[%s8578_s3 + $0x18] sm:$0xff] }
 0x1d9   : > { %1964 = vperm.xlu0 %6490, %v7610_v49   ;;  %6002 = vmatmul.mubr.msk.f32.gmra.mrb[2].mxu0 %vm2349_vm0, %v2412_v9  ;;  %v1323_v49 = vmul.f32 %v7393_v56, %v7570_v4  ;;  %v4209_v9 = vld [vmem:[%s8578_s3 + $0xc0] sm:$0xff]  ;;  %v6222_v20 = vpack.c.bf16 %v2406_v11, %v2405_v30 }
 0x1da   : > { %v2328_v23 = vmax.f32 %v2300_v31, 0.0  ;;  %v1810_v3 = vadd.f32 %v1782_v2, %v1581_v21  ;;  %v4210_v31 = vld [vmem:[%s8578_s3 + $0xc8] sm:$0xff] }
 0x1db   : > { %v7673_v54 = vpop.permute.xlu1 %1456  ;;  %v2129_v34 = vpop.permute.xlu0 %2128  ;;  %v1351_v41 = vadd.f32 %v1323_v49, %v8691_v43  ;;  %6223 = vmatprep.subr.bf16.mxu1 %v6222_v20  ;;  %v1853_v49 = vld [vmem:[%s6554_s23 + $0xe9] sm:$0xff] }
 0x1dc   : > { %2357 = vst.msk [vmem:[#allocation2 + $0x38] sm:$0xff] %vm2349_vm0, %v2328_v23  ;;  %v2238_v37 = vmul.f32 %v7476_v38, %v2129_v34  ;;  %1745 = vperm.xlu1 %6491, %v1622_v45   ;;  %v1325_v45 = vmul.f32 %v7393_v56, %v7641_v0  ;;  %v7727_v23 = vpack.c.bf16 %v4210_v31, %v4209_v9  ;;  %v8693_v0 = vld [vmem:[#allocation11_spill] sm:$0xff]  ;;  %v2974_v31 = vld [vmem:[%s8578_s3 + $0x48] sm:$0xff] }
 0x1dd   : > { %1969 = vperm.xlu0 %6490, %v1165_v5   ;;  %v1580_v12 = vadd.f32 %v1552_v55, %v1351_v41  ;;  %v2080_v5 = vld [vmem:[%s6554_s23 + $0xda] sm:$0xff]  ;;  %6225 = vmatpush3.bf16.msra.mxu1 %v6222_v20 }
 0x1de   : > { %v2266_v57 = vadd.f32 %v2238_v37, %v2037_v48  ;;  %v1554_v37 = vmul.f32 %v7415_v42, %v7673_v54  ;;  %6259 = vmatprep.subr.bf16.mxu0 %v7727_v23 }
 0x1df   : > { %v7680_v47 = vpop.permute.xlu1 %1461  ;;  %v1905_v19 = vpop.permute.xlu0 %1904  ;;  %v1809_v25 = vadd.f32 %v1781_v53, %v1580_v12 }
 0x1e0   : > { %v2301_v24 = vadd.f32 %v7496_v27, %v2266_v57  ;;  %1750 = vperm.xlu1 %6491, %v1623_v61   ;;  %v2010_v62 = vmul.f32 %v7444_v18, %v1905_v19  ;;  %v1353_v57 = vadd.f32 %v1325_v45, %v8693_v0  ;;  %v1326_v19 = vmul.f32 %v7393_v56, %v7665_v36  ;;  %v2082_v36 = vld [vmem:[%s6554_s23 + $0xea] sm:$0xff]  ;;  %v2084_v45 = vld [vmem:[%s6554_s23 + $0xfa] sm:$0xff] }
 0x1e1   : > { %2193 = vperm.xlu0 %6490, %v1393_v59   ;;  %v1855_v0 = vld [vmem:[%s6554_s23 + $0xf9] sm:$0xff] }
 0x1e2   : > { %v2329_v40 = vmax.f32 %v2301_v24, 0.0  ;;  %v2038_v28 = vadd.f32 %v2010_v62, %v1809_v25  ;;  %v1582_v53 = vadd.f32 %v1554_v37, %v1353_v57 }
 0x1e3   : > { %v7688_v4 = vpop.permute.xlu1 %1237  ;;  %v1910_v14 = vpop.permute.xlu0 %1909  ;;  %v2413_v26 = vld [vmem:[#allocation2 + $0x31] sm:$0xff] }
 0x1e4   : > { %2358 = vst.msk [vmem:[#allocation2 + $0x40] sm:$0xff] %vm2349_vm0, %v2329_v40  ;;  %1974 = vperm.xlu1 %6491, %v1851_v32   ;;  %5831 = vmatprep.mubr.msk.f32.mxu1 %vm2349_vm0, %v2413_v26  ;;  %v2011_v33 = vmul.f32 %v7444_v18, %v1910_v14  ;;  %v1555_v40 = vmul.f32 %v7415_v42, %v7680_v47 }
 0x1e5   : > { %2198 = vperm.xlu0 %6490, %v1394_v7   ;;  %6004 = vmatprep.mubr.msk.f32.mxu0 %vm2349_vm0, %v2413_v26  ;;  %v8694_v26 = vld [vmem:[#allocation33_spill] sm:$0xff] }
 0x1e6   : > { %v2039_v29 = vadd.f32 %v2011_v33, %v1810_v3  ;;  %v1354_v12 = vadd.f32 %v1326_v19, %v8694_v26  ;;  %v1626_v3 = vld [vmem:[%s6554_s23 + $0xf8] sm:$0xff] }
 0x1e7   : > { %v2134_v46 = vpop.permute.xlu1 %2133  ;;  %v1686_v10 = vpop.permute.xlu0 %1685 }
 0x1e8   : > { %v2239_v59 = vmul.f32 %v7476_v38, %v2134_v46  ;;  %2203 = vperm.xlu1 %6491, %v2080_v5   ;;  %v1783_v55 = vmul.f32 %v7427_v17, %v1686_v10 }
 0x1e9   : > { %1979 = vperm.xlu0 %6490, %v1852_v63  }
 0x1ea   : > { %v2267_v13 = vadd.f32 %v2239_v59, %v2038_v28  ;;  %v1811_v62 = vadd.f32 %v1783_v55, %v1582_v53  ;;  %v1327_v28 = vmul.f32 %v7393_v56, %v7688_v4 }
 0x1eb   : > { %v1691_v39 = vpop.permute.xlu1 %1690  ;;  %v7704_v52 = vpop.permute.xlu0 %1242  ;;  %v2414_v16 = vld [vmem:[#allocation2 + $0x39] sm:$0xff] }
 0x1ec   : > { %v2302_v22 = vadd.f32 %v7496_v27, %v2267_v13  ;;  %1297 = vperm.xlu1 %6491, %v1851_v32   ;;  %5832 = vmatmul.mubr.msk.f32.gmra.mrb[6].mxu1 %vm2349_vm0, %v2414_v16  ;;  %v1625_v32 = vld [vmem:[%s6554_s23 + $0xf0] sm:$0xff]  ;;  %s6479_s23 = smul.u32 48, %s8717_s19 }
 0x1ed   : > { %2208 = vperm.xlu0 %6490, %v2081_v44   ;;  %6005 = vmatmul.mubr.msk.f32.gmra.mrb[4].mxu0 %vm2349_vm0, %v2414_v16 }
 0x1ee   : > { %v2330_v50 = vmax.f32 %v2302_v22, 0.0  ;;  %v8695_v22 = vld [vmem:[#allocation6_spill] sm:$0xff]  ;;  %s8538_s22 = scalar_lea.vmem %s8580_s5, %s6479_s23 }
 0x1ef   : > { %v1467_v7 = vpop.permute.xlu1 %1466  ;;  %v2139_v35 = vpop.permute.xlu0 %2138  ;;  %v1355_v4 = vadd.f32 %v1327_v28, %v8695_v22  ;;  %v6509_v28 = vmov 0.0   ;;  %v7831_v22 = vld [vmem:[#allocation2 + $0x12] sm:$0xff] }
 0x1f0   : > { %2359 = vst.msk [vmem:[#allocation2 + $0x48] sm:$0xff] %vm2349_vm0, %v2330_v50  ;;  %v2240_v58 = vmul.f32 %v7476_v38, %v2139_v35  ;;  %1526 = vperm.xlu1 %6491, %v2080_v5   ;;  %v1784_v5 = vmul.f32 %v7427_v17, %v1691_v39  ;;  %v1556_v2 = vmul.f32 %v7415_v42, %v1467_v7  ;;  %2378 = vst.msk [vmem:[#allocation2 + $0xe0] sm:$0xff] %vm2349_vm0, %v6509_v28  ;;  %v7910_v28 = vld [vmem:[%s8576_s1 + $0x5] ss:$0 sm:$0xff] }
 0x1f1   : > { %1302 = vperm.xlu0 %6490, %v1852_v63   ;;  %v1583_v63 = vadd.f32 %v1555_v40, %v1354_v12  ;;  %v1328_v50 = vmul.f32 %v7393_v56, %v7704_v52  ;;  %v2973_v52 = vld [vmem:[%s8578_s3 + $0x40] sm:$0xff] }
 0x1f2   : > { %v2268_v60 = vadd.f32 %v2240_v58, %v2039_v29  ;;  %v1584_v11 = vadd.f32 %v1556_v2, %v1355_v4  ;;  %v8697_v4 = vld [vmem:[#allocation34_spill] sm:$0xff] }
 0x1f3   : > { %v7729_v34 = vpop.permute.xlu1 %1471  ;;  %v1915_v48 = vpop.permute.xlu0 %1914  ;;  %v1812_v59 = vadd.f32 %v1784_v5, %v1583_v63 }
 0x1f4   : > { %v2303_v61 = vadd.f32 %v7496_v27, %v2268_v60  ;;  %1755 = vperm.xlu1 %6491, %v1624_v15   ;;  %v2012_v14 = vmul.f32 %v7444_v18, %v1915_v48  ;;  %v1557_v9 = vmul.f32 %v7415_v42, %v7729_v34  ;;  %v7778_v60 = vpack.c.bf16 %v2974_v31, %v2973_v52  ;;  %v8696_v34 = vld [vmem:[#allocation35_spill] sm:$0xff] }
 0x1f5   : > { %1531 = vperm.xlu0 %6490, %v2081_v44   ;;  %v1356_v48 = vadd.f32 %v1328_v50, %v8696_v34 }
 0x1f6   : > { %v2331_v24 = vmax.f32 %v2303_v61, 0.0  ;;  %v2040_v46 = vadd.f32 %v2012_v14, %v1811_v62  ;;  %6227 = vmatprep.subr.bf16.mxu1 %v7778_v60 }
 0x1f7   : > { %v1696_v54 = vpop.permute.xlu1 %1695  ;;  %v1920_v43 = vpop.permute.xlu0 %1919  ;;  %v2415_v41 = vld [vmem:[#allocation2 + $0x41] sm:$0xff]  ;;  %v1585_v55 = vadd.f32 %v1557_v9, %v1356_v48 }
 0x1f8   : > { %2360 = vst.msk [vmem:[#allocation2 + $0x50] sm:$0xff] %vm2349_vm0, %v2331_v24  ;;  %1984 = vperm.xlu1 %6491, %v1853_v49   ;;  %5834 = vmatprep.mubr.msk.f32.mxu1 %vm2349_vm0, %v2415_v41  ;;  %v2013_v10 = vmul.f32 %v7444_v18, %v1920_v43  ;;  %v1785_v7 = vmul.f32 %v7427_v17, %v1696_v54 }
 0x1f9   : > { %1760 = vperm.xlu0 %6490, %v1625_v32   ;;  %6007 = vmatprep.mubr.msk.f32.mxu0 %vm2349_vm0, %v2415_v41 }
 0x1fa   : > { %v2041_v16 = vadd.f32 %v2013_v10, %v1812_v59  ;;  %v1813_v37 = vadd.f32 %v1785_v7, %v1584_v11  ;;  %v4519_v11 = vld [vmem:[%s8578_s3 + $0xe8] sm:$0xff] }
 0x1fb   : > { %v1701_v25 = vpop.permute.xlu1 %1700  ;;  %v2144_v47 = vpop.permute.xlu0 %2143 }
 0x1fc   : > { %v2241_v51 = vmul.f32 %v7476_v38, %v2144_v47  ;;  %2213 = vperm.xlu1 %6491, %v2082_v36   ;;  %v1786_v61 = vmul.f32 %v7427_v17, %v1701_v25 }
 0x1fd   : > { %1989 = vperm.xlu0 %6490, %v1854_v6  }
 0x1fe   : > { %v2269_v8 = vadd.f32 %v2241_v51, %v2040_v46  ;;  %v1814_v43 = vadd.f32 %v1786_v61, %v1585_v55 }
 0x1ff   : > { %v1925_v13 = vpop.permute.xlu1 %1924  ;;  %v2149_v44 = vpop.permute.xlu0 %2148  ;;  %v2416_v39 = vld [vmem:[#allocation2 + $0x49] sm:$0xff] }
 0x200   : > { %v2304_v21 = vadd.f32 %v7496_v27, %v2269_v8  ;;  %v2242_v33 = vmul.f32 %v7476_v38, %v2149_v44  ;;  %1307 = vperm.xlu1 %6491, %v1853_v49   ;;  %5835 = vmatmul.mubr.msk.f32.gmra.mrb[8].mxu1 %vm2349_vm0, %v2416_v39  ;;  %v2014_v15 = vmul.f32 %v7444_v18, %v1925_v13 }
 0x201   : > { %2218 = vperm.xlu0 %6490, %v2083_v1   ;;  %6008 = vmatmul.mubr.msk.f32.gmra.mrb[6].mxu0 %vm2349_vm0, %v2416_v39 }
 0x202   : > { %v2332_v35 = vmax.f32 %v2304_v21, 0.0  ;;  %v2270_v29 = vadd.f32 %v2242_v33, %v2041_v16  ;;  %v2042_v24 = vadd.f32 %v2014_v15, %v1813_v37  ;;  %v4211_v16 = vld [vmem:[%s8578_s3 + $0xd0] sm:$0xff]  ;;  %v4212_v21 = vld [vmem:[%s8578_s3 + $0xd8] sm:$0xff] }
 0x203   : > { %v1248_v58 = vpop.permute.xlu1 %1247  ;;  %v1930_v30 = vpop.permute.xlu0 %1929  ;;  %v6262_v7 = vpack.c.bf16 %v4212_v21, %v4211_v16  ;;  %v7859_v37 = vld [vmem:[#allocation2 + $0x2a] sm:$0xff]  ;;  %v8699_v16 = vld [vmem:[#allocation15_spill] sm:$0xff] }
 0x204   : > { %2361 = vst.msk [vmem:[#allocation2 + $0x58] sm:$0xff] %vm2349_vm0, %v2332_v35  ;;  %v2305_v20 = vadd.f32 %v7496_v27, %v2270_v29  ;;  %1765 = vperm.xlu1 %6491, %v1626_v3   ;;  %v2015_v32 = vmul.f32 %v7444_v18, %v1930_v30  ;;  %v1329_v2 = vmul.f32 %v7393_v56, %v1248_v58  ;;  %v7839_v58 = vld [vmem:[#allocation2 + $0x1a] sm:$0xff] }
 0x205   : > { %1536 = vperm.xlu0 %6490, %v2082_v36   ;;  %v4518_v30 = vld [vmem:[%s8578_s3 + $0xe0] sm:$0xff] }
 0x206   : > { %v2333_v49 = vmax.f32 %v2305_v20, 0.0  ;;  %v2043_v36 = vadd.f32 %v2015_v32, %v1814_v43  ;;  %v1357_v3 = vadd.f32 %v1329_v2, %v8697_v4  ;;  %v7850_v20 = vld [vmem:[#allocation2 + $0x22] sm:$0xff]  ;;  %v7855_v31 = vpack.c.bf16 %v4519_v11, %v4518_v30 }
 0x207   : > { %v7783_v57 = vpop.permute.xlu1 %1252  ;;  %v2154_v19 = vpop.permute.xlu0 %2153  ;;  %v7939_v11 = vld [vmem:[%s8576_s1 + $0x7] ss:$0 sm:$0xff] }
 0x208   : > { %2362 = vst.msk [vmem:[#allocation2 + $0x60] sm:$0xff] %vm2349_vm0, %v2333_v49  ;;  %v2243_v54 = vmul.f32 %v7476_v38, %v2154_v19  ;;  %2223 = vperm.xlu1 %6491, %v2084_v45   ;;  %v1330_v45 = vmul.f32 %v7393_v56, %v7783_v57  ;;  %v8698_v56 = vld [vmem:[#allocation36_spill] sm:$0xff] }
 0x209   : > { %1994 = vperm.xlu0 %6490, %v1855_v0   ;;  %v7864_v0 = vld [vmem:[#allocation2 + $0x32] sm:$0xff] }
 0x20a   : > { %v2271_v41 = vadd.f32 %v2243_v54, %v2042_v24  ;;  %v1358_v57 = vadd.f32 %v1330_v45, %v8698_v56  ;;  %v7874_v54 = vld [vmem:[#allocation2 + $0x3a] sm:$0xff]  ;;  %v8700_v56 = vld [vmem:[#allocation37_spill] sm:$0xff] }
 0x20b   : > { %v1477_v53 = vpop.permute.xlu1 %1476  ;;  %v2159_v40 = vpop.permute.xlu0 %2158  ;;  %v2417_v14 = vld [vmem:[#allocation2 + $0x51] sm:$0xff] }
 0x20c   : > { %v2306_v26 = vadd.f32 %v7496_v27, %v2271_v41  ;;  %v2244_v12 = vmul.f32 %v7476_v38, %v2159_v40  ;;  %5837 = vmatprep.mubr.msk.f32.mxu1 %vm2349_vm0, %v2417_v14  ;;  %6010 = vmatprep.mubr.msk.f32.mxu0 %vm2349_vm0, %v2417_v14  ;;  %v1558_v33 = vmul.f32 %v7415_v42, %v1477_v53 }
 0x20e   : > { %v2334_v62 = vmax.f32 %v2306_v26, 0.0  ;;  %v2272_v5 = vadd.f32 %v2244_v12, %v2043_v36  ;;  %v1586_v9 = vadd.f32 %v1558_v33, %v1357_v3  ;;  %v7886_v36 = vld [vmem:[#allocation2 + $0x4a] sm:$0xff]  ;;  %v7891_v12 = vld [vmem:[#allocation2 + $0x52] sm:$0xff]  ;;  %v7925_v33 = vld [vmem:[%s8576_s1 + $0x6] ss:$0 sm:$0xff] }
 0x20f   : > { %v7793_v6 = vpop.permute.xlu1 %1257  ;;  %v1482_v25 = vpop.permute.xlu0 %1481  ;;  %v7795_v47 = vld [vmem:[#allocation2 + $0x59] sm:$0xff] }
 0x210   : > { %2363 = vst.msk [vmem:[#allocation2 + $0x68] sm:$0xff] %vm2349_vm0, %v2334_v62  ;;  %v2307_v63 = vadd.f32 %v7496_v27, %v2272_v5  ;;  %5838 = vmatmul.mubr.msk.f32.gmra.mrb[10].mxu1 %vm2349_vm0, %v7795_v47  ;;  %6011 = vmatmul.mubr.msk.f32.gmra.mrb[8].mxu0 %vm2349_vm0, %v7795_v47  ;;  %v7899_v5 = vld [vmem:[%s8576_s1 + $0x4] ss:$0 sm:$0xff] }
 0x212   : > { %v2335_v46 = vmax.f32 %v2307_v63, 0.0 }
 0x213   : > { %v7803_v10 = vpop.permute.xlu1 %1262  ;;  %v1706_v51 = vpop.permute.xlu0 %1705 }
 0x214   : > { %2364 = vst.msk [vmem:[#allocation2 + $0x70] sm:$0xff] %vm2349_vm0, %v2335_v46  ;;  %v1787_v50 = vmul.f32 %v7427_v17, %v1706_v51  ;;  %v7905_v51 = vld [vmem:[#allocation2 + $0x5a] sm:$0xff]  ;;  %v1332_v45 = vmul.f32 %v7899_v5, %v7803_v10 }
 0x216   : > { %v1815_v52 = vadd.f32 %v1787_v50, %v1586_v9 }
 0x217   : > { %v7807_v59 = vpop.permute.xlu1 %1486  ;;  %v1711_v8 = vpop.permute.xlu0 %1710  ;;  %v7809_v1 = vld [vmem:[#allocation2 + $0x61] sm:$0xff] }
 0x218   : > { %5840 = vmatprep.mubr.msk.f32.mxu1 %vm2349_vm0, %v7809_v1  ;;  %6013 = vmatprep.mubr.msk.f32.mxu0 %vm2349_vm0, %v7809_v1  ;;  %v1788_v55 = vmul.f32 %v7427_v17, %v1711_v8  ;;  %v1560_v8 = vmul.f32 %v7910_v28, %v7807_v59 }
 0x21b   : > { %v7816_v13 = vpop.permute.xlu1 %1491  ;;  %v1935_v44 = vpop.permute.xlu0 %1934  ;;  %v7818_v39 = vld [vmem:[#allocation2 + $0x69] sm:$0xff] }
 0x21c   : > { %5841 = vmatmul.mubr.msk.f32.gmra.mrb[12].mxu1 %vm2349_vm0, %v7818_v39  ;;  %6014 = vmatmul.mubr.msk.f32.gmra.mrb[10].mxu0 %vm2349_vm0, %v7818_v39  ;;  %v2016_v15 = vmul.f32 %v7444_v18, %v1935_v44  ;;  %v7916_v44 = vld [vmem:[#allocation2 + $0x62] sm:$0xff] }
 0x21d   : > { %6042 = vmatprep.mubr.msk.f32.mxu0 %vm2349_vm0, %v7831_v22 }
 0x21e   : > { %v2044_v61 = vadd.f32 %v2016_v15, %v1815_v52 }
 0x21f   : > { %v7837_v35 = vpop.permute.xlu1 %1267  ;;  %v1940_v29 = vpop.permute.xlu0 %1939 }
 0x220   : > { %6043 = vmatmul.mubr.msk.f32.vlgmr.msra.gmra.mrb[0].mxu0 %vm2349_vm0, %v7839_v58  ;;  %v2017_v53 = vmul.f32 %v7444_v18, %v1940_v29 }
 0x221   : > { %6045 = vmatprep.mubr.msk.f32.mxu0 %vm2349_vm0, %v7850_v20  ;;  %6261 = vmatpush3.bf16.msra.mxu0 %v7727_v23  ;;  %v1559_v23 = vmul.f32 %v7415_v42, %v1482_v25  ;;  %v7879_v42 = vld [vmem:[#allocation2 + $0x42] sm:$0xff]  ;;  %v1331_v25 = vmul.f32 %v7899_v5, %v7793_v6 }
 0x222   : > { %6263 = vmatprep.subr.bf16.mxu0 %v6262_v7 }
 0x223   : > { %v2164_v34 = vpop.permute.xlu1 %2163  ;;  %v1716_v48 = vpop.permute.xlu0 %1715  ;;  %v1587_v41 = vadd.f32 %v1559_v23, %v1358_v57  ;;  %v1359_v21 = vadd.f32 %v1331_v25, %v8699_v16  ;;  %v1561_v23 = vmul.f32 %v7910_v28, %v7816_v13  ;;  %v1360_v57 = vadd.f32 %v1332_v45, %v8700_v56  ;;  %v7972_v25 = vld [vmem:[%s8576_s1 + $0x8] ss:$0 sm:$0xff] }
 0x224   : > { %v2245_v49 = vmul.f32 %v7476_v38, %v2164_v34  ;;  %6046 = vmatmul.mubr.msk.f32.gmra.mrb[2].mxu0 %vm2349_vm0, %v7859_v37  ;;  %v1789_v59 = vmul.f32 %v7925_v33, %v1716_v48 }
 0x225   : > { %6048 = vmatprep.mubr.msk.f32.mxu0 %vm2349_vm0, %v7864_v0  ;;  %6265 = vmatpush3.bf16.msra.mxu0 %v6262_v7  ;;  %v1816_v17 = vadd.f32 %v1788_v55, %v1587_v41  ;;  %v7932_v7 = vld [vmem:[#allocation2 + $0x6a] sm:$0xff]  ;;  %v1588_v30 = vadd.f32 %v1560_v8, %v1359_v21  ;;  %v1333_v8 = vmul.f32 %v7899_v5, %v7837_v35 }
 0x226   : > { %v2273_v19 = vadd.f32 %v2245_v49, %v2044_v61  ;;  %6267 = vmatprep.subr.bf16.mxu0 %v7855_v31 }
 0x227   : > { %v1721_v24 = vpop.permute.xlu1 %1720  ;;  %v7872_v32 = vpop.permute.xlu0 %1272  ;;  %v2045_v62 = vadd.f32 %v2017_v53, %v1816_v17  ;;  %v1817_v52 = vadd.f32 %v1789_v59, %v1588_v30  ;;  %v1589_v17 = vadd.f32 %v1561_v23, %v1360_v57 }
 0x228   : > { %v2308_v43 = vadd.f32 %v7496_v27, %v2273_v19  ;;  %6049 = vmatmul.mubr.msk.f32.gmra.mrb[4].mxu0 %vm2349_vm0, %v7874_v54  ;;  %v1790_v55 = vmul.f32 %v7925_v33, %v1721_v24 }
 0x229   : > { %6051 = vmatprep.mubr.msk.f32.mxu0 %vm2349_vm0, %v7879_v42 }
 0x22a   : > { %v2336_v40 = vmax.f32 %v2308_v43, 0.0  ;;  %v1818_v24 = vadd.f32 %v1790_v55, %v1589_v17 }
 0x22b   : > { %v7884_v14 = vpop.permute.xlu1 %1496 }
 0x22c   : > { %2365 = vst.msk [vmem:[#allocation2 + $0x78] sm:$0xff] %vm2349_vm0, %v2336_v40  ;;  %v2169_v26 = vpop.permute.xlu0 %2168  ;;  %6052 = vmatmul.mubr.msk.f32.gmra.mrb[6].mxu0 %vm2349_vm0, %v7886_v36  ;;  %v1562_v16 = vmul.f32 %v7910_v28, %v7884_v14  ;;  %v1334_v14 = vmul.f32 %v7899_v5, %v7872_v32 }
 0x22d   : > { %v2246_v18 = vmul.f32 %v7476_v38, %v2169_v26  ;;  %6054 = vmatprep.mubr.msk.f32.mxu0 %vm2349_vm0, %v7891_v12 }
 0x22f   : > { %v2274_v63 = vadd.f32 %v2246_v18, %v2045_v62  ;;  %v7903_v46 = vpop.permute.xlu1 %1501 }
 0x230   : > { %v1945_v2 = vpop.permute.xlu0 %1944  ;;  %6055 = vmatmul.mubr.msk.f32.gmra.mrb[8].mxu0 %vm2349_vm0, %v7905_v51  ;;  %v1563_v57 = vmul.f32 %v7910_v28, %v7903_v46 }
 0x231   : > { %v2309_v6 = vadd.f32 %v7496_v27, %v2274_v63  ;;  %6057 = vmatprep.mubr.msk.f32.mxu0 %vm2349_vm0, %v7916_v44  ;;  %v2018_v9 = vmul.f32 %v7939_v11, %v1945_v2 }
 0x233   : > { %v2337_v4 = vmax.f32 %v2309_v6, 0.0  ;;  %v7928_v3 = vpop.permute.xlu1 %1277  ;;  %v7930_v50 = vld [vmem:[#allocation2 + $0x71] sm:$0xff]  ;;  %v2046_v48 = vadd.f32 %v2018_v9, %v1817_v52 }
 0x234   : > { %v7934_v29 = vld [vmem:[#allocation2 + $0x72] sm:$0xff]  ;;  %v1950_v15 = vpop.permute.xlu0 %1949  ;;  %5843 = vmatprep.mubr.msk.f32.mxu1 %vm2349_vm0, %v7930_v50  ;;  %6058 = vmatmul.mubr.msk.f32.gmra.mrb[10].mxu0 %vm2349_vm0, %v7932_v7 }
 0x235   : > { %2366 = vst.msk [vmem:[#allocation2 + $0x80] sm:$0xff] %vm2349_vm0, %v2337_v4  ;;  %6060 = vmatprep.mubr.msk.f32.mxu0 %vm2349_vm0, %v7934_v29  ;;  %v8701_v4 = vld [vmem:[#allocation20_spill] sm:$0xff] }
 0x236   : > { %v1361_v30 = vadd.f32 %v1333_v8, %v8701_v4 }
 0x237   : > { %v2174_v34 = vpop.permute.xlu1 %2173 }
 0x238   : > { %v2247_v61 = vmul.f32 %v7476_v38, %v2174_v34  ;;  %v1726_v49 = vpop.permute.xlu0 %1725  ;;  %v2019_v38 = vmul.f32 %v7939_v11, %v1950_v15 }
 0x239   : > { %v1791_v9 = vmul.f32 %v7925_v33, %v1726_v49 }
 0x23a   : > { %v2275_v19 = vadd.f32 %v2247_v61, %v2046_v48  ;;  %v2047_v18 = vadd.f32 %v2019_v38, %v1818_v24  ;;  %v1590_v48 = vadd.f32 %v1562_v16, %v1361_v30  ;;  %v8002_v24 = vld [vmem:[%s8577_s2] ss:$0 sm:$0xff]  ;;  %v1335_v30 = vmul.f32 %v7899_v5, %v7928_v3 }
 0x23b   : > { %v1731_v43 = vpop.permute.xlu1 %1730 }
 0x23c   : > { %v2310_v41 = vadd.f32 %v7496_v27, %v2275_v19  ;;  %v7957_v53 = vpop.permute.xlu0 %1282  ;;  %v7959_v40 = vld [vmem:[#allocation2 + $0x79] sm:$0xff]  ;;  %v1792_v38 = vmul.f32 %v7925_v33, %v1731_v43 }
 0x23d   : > { %v7961_v10 = vld [vmem:[#allocation2 + $0x7a] sm:$0xff]  ;;  %5844 = vmatmul.mubr.msk.f32.gmra.mrb[14].mxu1 %vm2349_vm0, %v7959_v40 }
 0x23e   : > { %6061 = vmatmul.mubr.msk.f32.gmra.mrb[12].mxu0 %vm2349_vm0, %v7961_v10  ;;  %v2338_v13 = vmax.f32 %v2310_v41, 0.0  ;;  %v8702_v41 = vld [vmem:[#allocation39_spill] sm:$0xff] }
 0x23f   : > { %v1507_v26 = vpop.permute.xlu1 %1506  ;;  %v1362_v17 = vadd.f32 %v1334_v14, %v8702_v41 }
 0x240   : > { %2367 = vst.msk [vmem:[#allocation2 + $0x88] sm:$0xff] %vm2349_vm0, %v2338_v13  ;;  %v2179_v62 = vpop.permute.xlu0 %2178 }
 0x241   : > { %v2248_v63 = vmul.f32 %v7972_v25, %v2179_v62  ;;  %v1591_v8 = vadd.f32 %v1563_v57, %v1362_v17 }
 0x243   : > { %v2276_v2 = vadd.f32 %v2248_v63, %v2047_v18  ;;  %v1512_v6 = vpop.permute.xlu1 %1511 }
 0x244   : > { %v1955_v21 = vpop.permute.xlu0 %1954  ;;  %v1565_v17 = vmul.f32 %v7910_v28, %v1512_v6 }
 0x245   : > { %v2311_v59 = vadd.f32 %v7496_v27, %v2276_v2  ;;  %v2020_v35 = vmul.f32 %v7939_v11, %v1955_v21  ;;  %v1819_v27 = vadd.f32 %v1791_v9, %v1590_v48  ;;  %v1820_v2 = vadd.f32 %v1792_v38, %v1591_v8  ;;  %v8704_v38 = vld [vmem:[#allocation41_spill] sm:$0xff] }
 0x247   : > { %v2339_v15 = vmax.f32 %v2311_v59, 0.0  ;;  %v1288_v52 = vpop.permute.xlu1 %1287  ;;  %v7982_v45 = vld [vmem:[#allocation2 + $0x81] sm:$0xff]  ;;  %v2048_v23 = vadd.f32 %v2020_v35, %v1819_v27  ;;  %v1564_v35 = vmul.f32 %v7910_v28, %v1507_v26  ;;  %v8703_v27 = vld [vmem:[#allocation38_spill] sm:$0xff] }
 0x248   : > { %v7984_v34 = vld [vmem:[#allocation2 + $0x82] sm:$0xff]  ;;  %v1960_v61 = vpop.permute.xlu0 %1959  ;;  %5846 = vmatprep.mubr.msk.f32.mxu1 %vm2349_vm0, %v7982_v45  ;;  %v1363_v14 = vadd.f32 %v1335_v30, %v8703_v27 }
 0x249   : > { %6063 = vmatprep.mubr.msk.f32.mxu0 %vm2349_vm0, %v7984_v34  ;;  %2368 = vst.msk [vmem:[#allocation2 + $0x90] sm:$0xff] %vm2349_vm0, %v2339_v15  ;;  %v2021_v46 = vmul.f32 %v7939_v11, %v1960_v61 }
 0x24a   : > { %v1592_v26 = vadd.f32 %v1564_v35, %v1363_v14 }
 0x24b   : > { %v2184_v49 = vpop.permute.xlu1 %2183  ;;  %v2049_v59 = vadd.f32 %v2021_v46, %v1820_v2 }
 0x24c   : > { %v2249_v19 = vmul.f32 %v7972_v25, %v2184_v49  ;;  %v1736_v56 = vpop.permute.xlu0 %1735  ;;  %v1336_v49 = vmul.f32 %v7899_v5, %v7957_v53 }
 0x24e   : > { %v2277_v55 = vadd.f32 %v2249_v19, %v2048_v23  ;;  %v1793_v23 = vmul.f32 %v7925_v33, %v1736_v56  ;;  %v1337_v56 = vmul.f32 %v7899_v5, %v1288_v52 }
 0x24f   : > { %v1741_v13 = vpop.permute.xlu1 %1740 }
 0x250   : > { %v2312_v32 = vadd.f32 %v8002_v24, %v2277_v55  ;;  %v1293_v62 = vpop.permute.xlu0 %1292  ;;  %v8005_v18 = vld [vmem:[#allocation2 + $0x89] sm:$0xff]  ;;  %v1821_v8 = vadd.f32 %v1793_v23, %v1592_v26  ;;  %v1794_v46 = vmul.f32 %v7925_v33, %v1741_v13 }
 0x251   : > { %v8007_v63 = vld [vmem:[#allocation2 + $0x8a] sm:$0xff]  ;;  %5847 = vmatmul.mubr.msk.f32.gmra.mrb[16].mxu1 %vm2349_vm0, %v8005_v18 }
 0x252   : > { %6064 = vmatmul.mubr.msk.f32.gmra.mrb[14].mxu0 %vm2349_vm0, %v8007_v63  ;;  %v2340_v43 = vmax.f32 %v2312_v32, 0.0  ;;  %v1364_v32 = vadd.f32 %v1336_v49, %v8704_v38 }
 0x253   : > { %v1517_v16 = vpop.permute.xlu1 %1516 }
 0x254   : > { %2369 = vst.msk [vmem:[#allocation2 + $0x98] sm:$0xff] %vm2349_vm0, %v2340_v43  ;;  %v2189_v21 = vpop.permute.xlu0 %2188  ;;  %v1566_v2 = vmul.f32 %v7910_v28, %v1517_v16 }
 0x255   : > { %v2250_v4 = vmul.f32 %v7972_v25, %v2189_v21 }
 0x257   : > { %v2278_v9 = vadd.f32 %v2250_v4, %v2049_v59  ;;  %v1522_v15 = vpop.permute.xlu1 %1521  ;;  %v1593_v59 = vadd.f32 %v1565_v17, %v1364_v32 }
 0x258   : > { %v1965_v48 = vpop.permute.xlu0 %1964  ;;  %v1567_v49 = vmul.f32 %v7910_v28, %v1522_v15  ;;  %v8706_v15 = vld [vmem:[#allocation43_spill] sm:$0xff] }
 0x259   : > { %v2313_v61 = vadd.f32 %v8002_v24, %v2278_v9  ;;  %v2022_v53 = vmul.f32 %v7939_v11, %v1965_v48  ;;  %v8705_v9 = vld [vmem:[#allocation40_spill] sm:$0xff]  ;;  %v1822_v52 = vadd.f32 %v1794_v46, %v1593_v59 }
 0x25a   : > { %v1365_v35 = vadd.f32 %v1337_v56, %v8705_v9 }
 0x25b   : > { %v2341_v19 = vmax.f32 %v2313_v61, 0.0  ;;  %v1746_v57 = vpop.permute.xlu1 %1745  ;;  %v8024_v55 = vld [vmem:[#allocation2 + $0x91] sm:$0xff]  ;;  %v2050_v4 = vadd.f32 %v2022_v53, %v1821_v8  ;;  %v1338_v61 = vmul.f32 %v7899_v5, %v1293_v62 }
 0x25c   : > { %v8026_v41 = vld [vmem:[#allocation2 + $0x92] sm:$0xff]  ;;  %v1970_v3 = vpop.permute.xlu0 %1969  ;;  %5849 = vmatprep.mubr.msk.f32.mxu1 %vm2349_vm0, %v8024_v55  ;;  %v1795_v48 = vmul.f32 %v7925_v33, %v1746_v57  ;;  %v1594_v13 = vadd.f32 %v1566_v2, %v1365_v35 }
 0x25d   : > { %6066 = vmatprep.mubr.msk.f32.mxu0 %vm2349_vm0, %v8026_v41  ;;  %2370 = vst.msk [vmem:[#allocation2 + $0xa0] sm:$0xff] %vm2349_vm0, %v2341_v19  ;;  %v2023_v30 = vmul.f32 %v7939_v11, %v1970_v3  ;;  %v1366_v53 = vadd.f32 %v1338_v61, %v8706_v15 }
 0x25e   : > { %v1823_v62 = vadd.f32 %v1795_v48, %v1594_v13 }
 0x25f   : > { %v1751_v43 = vpop.permute.xlu1 %1750  ;;  %v2051_v26 = vadd.f32 %v2023_v30, %v1822_v52  ;;  %v1595_v59 = vadd.f32 %v1567_v49, %v1366_v53 }
 0x260   : > { %v2194_v21 = vpop.permute.xlu0 %2193  ;;  %v1796_v56 = vmul.f32 %v7925_v33, %v1751_v43 }
 0x261   : > { %v2251_v6 = vmul.f32 %v7972_v25, %v2194_v21 }
 0x262   : > { %v1824_v9 = vadd.f32 %v1796_v56, %v1595_v59 }
 0x263   : > { %v2279_v27 = vadd.f32 %v2251_v6, %v2050_v4  ;;  %v1975_v14 = vpop.permute.xlu1 %1974 }
 0x264   : > { %v2024_v16 = vmul.f32 %v7939_v11, %v1975_v14  ;;  %v2199_v23 = vpop.permute.xlu0 %2198  ;;  %v8046_v19 = vld [vmem:[#allocation2 + $0x99] sm:$0xff] }
 0x265   : > { %v8048_v3 = vld [vmem:[#allocation2 + $0x9a] sm:$0xff]  ;;  %v2314_v17 = vadd.f32 %v8002_v24, %v2279_v27  ;;  %v2252_v57 = vmul.f32 %v7972_v25, %v2199_v23  ;;  %5850 = vmatmul.mubr.msk.f32.gmra.mrb[18].mxu1 %vm2349_vm0, %v8046_v19 }
 0x266   : > { %6067 = vmatmul.mubr.msk.f32.gmra.mrb[16].mxu0 %vm2349_vm0, %v8048_v3  ;;  %v2052_v46 = vadd.f32 %v2024_v16, %v1823_v62 }
 0x267   : > { %v2342_v38 = vmax.f32 %v2314_v17, 0.0  ;;  %v2280_v32 = vadd.f32 %v2252_v57, %v2051_v26  ;;  %v2204_v8 = vpop.permute.xlu1 %2203 }
 0x268   : > { %v2253_v2 = vmul.f32 %v7972_v25, %v2204_v8  ;;  %v1980_v21 = vpop.permute.xlu0 %1979  ;;  %v8707_v8 = vld [vmem:[#allocation42_spill] sm:$0xff] }
 0x269   : > { %2371 = vst.msk [vmem:[#allocation2 + $0xa8] sm:$0xff] %vm2349_vm0, %v2342_v38  ;;  %v2315_v4 = vadd.f32 %v8002_v24, %v2280_v32  ;;  %v2025_v30 = vmul.f32 %v7939_v11, %v1980_v21 }
 0x26a   : > { %v2281_v6 = vadd.f32 %v2253_v2, %v2052_v46 }
 0x26b   : > { %v2343_v35 = vmax.f32 %v2315_v4, 0.0  ;;  %v1298_v48 = vpop.permute.xlu1 %1297  ;;  %v2053_v61 = vadd.f32 %v2025_v30, %v1824_v9 }
 0x26c   : > { %v2316_v43 = vadd.f32 %v8002_v24, %v2281_v6  ;;  %v2209_v52 = vpop.permute.xlu0 %2208  ;;  %v1339_v57 = vmul.f32 %v7899_v5, %v1298_v48 }
 0x26d   : > { %2372 = vst.msk [vmem:[#allocation2 + $0xb0] sm:$0xff] %vm2349_vm0, %v2343_v35  ;;  %v2254_v27 = vmul.f32 %v7972_v25, %v2209_v52  ;;  %v8708_v52 = vld [vmem:[#allocation44_spill] sm:$0xff] }
 0x26e   : > { %v2344_v14 = vmax.f32 %v2316_v43, 0.0  ;;  %v1367_v46 = vadd.f32 %v1339_v57, %v8707_v8  ;;  %v2379_v8 = vld [vmem:[#allocation2] sm:$0xff] }
 0x26f   : > { %v2282_v13 = vadd.f32 %v2254_v27, %v2053_v61  ;;  %v1527_v49 = vpop.permute.xlu1 %1526 }
 0x270   : > { %2373 = vst.msk [vmem:[#allocation2 + $0xb8] sm:$0xff] %vm2349_vm0, %v2344_v14  ;;  %v1303_v16 = vpop.permute.xlu0 %1302  ;;  %v8066_v23 = vld [vmem:[#allocation2 + $0xa1] sm:$0xff]  ;;  %v1568_v53 = vmul.f32 %v7910_v28, %v1527_v49 }
 0x271   : > { %v8068_v26 = vld [vmem:[#allocation2 + $0xa2] sm:$0xff]  ;;  %v2317_v17 = vadd.f32 %v8002_v24, %v2282_v13  ;;  %5852 = vmatprep.mubr.msk.f32.mxu1 %vm2349_vm0, %v8066_v23  ;;  %v1340_v21 = vmul.f32 %v7899_v5, %v1303_v16  ;;  %v2975_v13 = vld [vmem:[%s8578_s3 + $0x50] sm:$0xff] }
 0x272   : > { %6069 = vmatprep.mubr.msk.f32.mxu0 %vm2349_vm0, %v8068_v26  ;;  %v1596_v6 = vadd.f32 %v1568_v53, %v1367_v46 }
 0x273   : > { %v2345_v62 = vmax.f32 %v2317_v17, 0.0  ;;  %v1756_v15 = vpop.permute.xlu1 %1755  ;;  %v1368_v61 = vadd.f32 %v1340_v21, %v8708_v52 }
 0x274   : > { %v1532_v56 = vpop.permute.xlu0 %1531  ;;  %v8077_v38 = vld [vmem:[#allocation2 + $0xa9] sm:$0xff]  ;;  %v1797_v2 = vmul.f32 %v7925_v33, %v1756_v15  ;;  %v2976_v15 = vld [vmem:[%s8578_s3 + $0x58] sm:$0xff] }
 0x275   : > { %v8079_v32 = vld [vmem:[#allocation2 + $0xaa] sm:$0xff]  ;;  %2374 = vst.msk [vmem:[#allocation2 + $0xc0] sm:$0xff] %vm2349_vm0, %v2345_v62  ;;  %5853 = vmatmul.mubr.msk.f32.gmra.mrb[20].mxu1 %vm2349_vm0, %v8077_v38  ;;  %v1569_v48 = vmul.f32 %v7910_v28, %v1532_v56 }
 0x276   : > { %6070 = vmatmul.mubr.msk.f32.gmra.mrb[18].mxu0 %vm2349_vm0, %v8079_v32  ;;  %v1825_v43 = vadd.f32 %v1797_v2, %v1596_v6 }
 0x277   : > { %v1985_v59 = vpop.permute.xlu1 %1984  ;;  %v8089_v4 = vld [vmem:[#allocation2 + $0xb1] sm:$0xff]  ;;  %v1597_v53 = vadd.f32 %v1569_v48, %v1368_v61  ;;  %v3282_v48 = vld [vmem:[%s8578_s3 + $0x60] sm:$0xff] }
 0x278   : > { %v8091_v30 = vld [vmem:[#allocation2 + $0xb2] sm:$0xff]  ;;  %v2026_v9 = vmul.f32 %v7939_v11, %v1985_v59  ;;  %v1761_v35 = vpop.permute.xlu0 %1760  ;;  %5855 = vmatprep.mubr.msk.f32.mxu1 %vm2349_vm0, %v8089_v4  ;;  %v6230_v59 = vpack.c.bf16 %v2976_v15, %v2975_v13 }
 0x279   : > { %6072 = vmatprep.mubr.msk.f32.mxu0 %vm2349_vm0, %v8091_v30  ;;  %v1798_v27 = vmul.f32 %v7925_v33, %v1761_v35  ;;  %v2380_v35 = vld [vmem:[#allocation2 + $0x8] sm:$0xff]  ;;  %v8136_v15 = vld [vmem:[#allocation2 + $0x18] sm:$0xff] }
 0x27a   : > { %v2054_v49 = vadd.f32 %v2026_v9, %v1825_v43  ;;  %v3283_v43 = vld [vmem:[%s8578_s3 + $0x68] sm:$0xff] }
 0x27b   : > { %v2214_v14 = vpop.permute.xlu1 %2213  ;;  %v1826_v2 = vadd.f32 %v1798_v27, %v1597_v53  ;;  %v8128_v27 = vld [vmem:[#allocation2 + $0x10] sm:$0xff]  ;;  %v8709_v53 = vld [vmem:[#allocation19_spill] sm:$0xff] }
 0x27c   : > { %v2255_v16 = vmul.f32 %v7972_v25, %v2214_v14  ;;  %v1990_v17 = vpop.permute.xlu0 %1989  ;;  %v8105_v57 = vld [vmem:[#allocation2 + $0xb9] sm:$0xff] }
 0x27d   : > { %v8107_v62 = vld [vmem:[#allocation2 + $0xba] sm:$0xff]  ;;  %v2027_v56 = vmul.f32 %v7939_v11, %v1990_v17  ;;  %5856 = vmatmul.mubr.msk.f32.gmra.mrb[22].mxu1 %vm2349_vm0, %v8105_v57  ;;  %v8133_v17 = vpack.c.bf16 %v3283_v43, %v3282_v48  ;;  %v8149_v48 = vld [vmem:[#allocation2 + $0x28] sm:$0xff] }
 0x27e   : > { %6073 = vmatmul.mubr.msk.f32.gmra.mrb[20].mxu0 %vm2349_vm0, %v8107_v62  ;;  %v2283_v46 = vadd.f32 %v2255_v16, %v2054_v49  ;;  %5866 = vmatprep.mubr.msk.f32.mxu1 %vm2349_vm0, %v2379_v8 }
 0x27f   : > { %v1308_v21 = vpop.permute.xlu1 %1307  ;;  %v2055_v52 = vadd.f32 %v2027_v56, %v1826_v2 }
 0x280   : > { %v2318_v6 = vadd.f32 %v8002_v24, %v2283_v46  ;;  %v2219_v9 = vpop.permute.xlu0 %2218  ;;  %v1341_v61 = vmul.f32 %v7899_v5, %v1308_v21 }
 0x281   : > { %v2256_v14 = vmul.f32 %v7972_v25, %v2219_v9  ;;  %5867 = vmatmul.mubr.msk.f32.vlgmr.msra.gmra.mrb[0].mxu1 %vm2349_vm0, %v2380_v35 }
 0x282   : > { %v2346_v13 = vmax.f32 %v2318_v6, 0.0  ;;  %6229 = vmatpush3.bf16.msra.mxu1 %v7778_v60  ;;  %5869 = vmatprep.mubr.msk.f32.mxu1 %vm2349_vm0, %v8128_v27  ;;  %v1369_v56 = vadd.f32 %v1341_v61, %v8709_v53  ;;  %v8143_v60 = vld [vmem:[#allocation2 + $0x20] sm:$0xff]  ;;  %v8181_v53 = vld [vmem:[#allocation2 + $0x50] sm:$0xff] }
 0x283   : > { %v2284_v49 = vadd.f32 %v2256_v14, %v2055_v52  ;;  %v1766_v16 = vpop.permute.xlu1 %1765  ;;  %6231 = vmatprep.subr.bf16.mxu1 %v6230_v59  ;;  %v8155_v52 = vld [vmem:[#allocation2 + $0x30] sm:$0xff]  ;;  %v8162_v14 = vld [vmem:[#allocation2 + $0x38] sm:$0xff] }
 0x284   : > { %2375 = vst.msk [vmem:[#allocation2 + $0xc8] sm:$0xff] %vm2349_vm0, %v2346_v13  ;;  %v1537_v5 = vpop.permute.xlu0 %1536  ;;  %v1799_v21 = vmul.f32 %v7925_v33, %v1766_v16 }
 0x285   : > { %v2319_v8 = vadd.f32 %v8002_v24, %v2284_v49  ;;  %v1570_v46 = vmul.f32 %v7910_v28, %v1537_v5  ;;  %5870 = vmatmul.mubr.msk.f32.gmra.mrb[2].mxu1 %vm2349_vm0, %v8136_v15 }
 0x286   : > { %5872 = vmatprep.mubr.msk.f32.mxu1 %vm2349_vm0, %v8143_v60  ;;  %6233 = vmatpush3.bf16.msra.mxu1 %v6230_v59 }
 0x287   : > { %v2347_v2 = vmax.f32 %v2319_v8, 0.0  ;;  %v1598_v6 = vadd.f32 %v1570_v46, %v1369_v56  ;;  %6235 = vmatprep.subr.bf16.mxu1 %v8133_v17  ;;  %v2224_v9 = vpop.permute.xlu1 %2223  ;;  %v4520_v56 = vld [vmem:[%s8578_s3 + $0xf0] sm:$0xff]  ;;  %v8194_v8 = vld [vmem:[#allocation2 + $0x58] sm:$0xff] }
 0x288   : > { %v1995_v35 = vpop.permute.xlu0 %1994  ;;  %v2257_v33 = vmul.f32 %v7972_v25, %v2224_v9  ;;  %v8173_v25 = vld [vmem:[#allocation2 + $0x48] sm:$0xff] }
 0x289   : > { %2376 = vst.msk [vmem:[#allocation2 + $0xd0] sm:$0xff] %vm2349_vm0, %v2347_v2  ;;  %v1827_v28 = vadd.f32 %v1799_v21, %v1598_v6  ;;  %v2028_v43 = vmul.f32 %v7939_v11, %v1995_v35  ;;  %5873 = vmatmul.mubr.msk.f32.gmra.mrb[4].mxu1 %vm2349_vm0, %v8149_v48  ;;  %v8168_v11 = vld [vmem:[#allocation2 + $0x40] sm:$0xff]  ;;  %v4828_v6 = vld [vmem:[%s8578_s3 + $0x108] sm:$0xff] }
 0x28a   : > { %5875 = vmatprep.mubr.msk.f32.mxu1 %vm2349_vm0, %v8155_v52  ;;  %v8200_v2 = vld [vmem:[#allocation2 + $0x60] sm:$0xff]  ;;  %v8213_v9 = vld [vmem:[#allocation2 + $0x68] sm:$0xff] }
 0x28b   : > { %v2056_v59 = vadd.f32 %v2028_v43, %v1827_v28  ;;  %v8160_v61 = vld [vmem:[#allocation2 + $0xc2] sm:$0xff]  ;;  %v8221_v28 = vld [vmem:[#allocation2 + $0x70] sm:$0xff] }
 0x28c   : > { %8710 = vst [vmem:[#allocation23_spill] sm:$0xff] %v8160_v61  ;;  %6075 = vmatprep.mubr.msk.f32.mxu0 %vm2349_vm0, %v8160_v61  ;;  %v4827_v21 = vld [vmem:[%s8578_s3 + $0x100] sm:$0xff]  ;;  %v2950_v61 = vld [vmem:[#allocation2 + $0xa] sm:$0xff] }
 0x28d   : > { %v2285_v13 = vadd.f32 %v2257_v33, %v2056_v59  ;;  %5876 = vmatmul.mubr.msk.f32.gmra.mrb[6].mxu1 %vm2349_vm0, %v8162_v14  ;;  %v8215_v35 = vpack.c.bf16 %v4828_v6, %v4827_v21  ;;  %v8234_v43 = vld [vmem:[#allocation2 + $0x80] sm:$0xff]  ;;  %v8240_v33 = vld [vmem:[#allocation2 + $0x88] sm:$0xff]  ;;  %v8246_v59 = vld [vmem:[#allocation2 + $0x90] sm:$0xff] }
 0x28e   : > { %5878 = vmatprep.mubr.msk.f32.mxu1 %vm2349_vm0, %v8168_v11  ;;  %v3285_v21 = vld [vmem:[%s8578_s3 + $0x78] sm:$0xff]  ;;  %v2949_v6 = vld [vmem:[#allocation2 + $0x2] sm:$0xff] }
 0x28f   : > { %v2320_v49 = vadd.f32 %v8002_v24, %v2285_v13  ;;  %v4521_v24 = vld [vmem:[%s8578_s3 + $0xf8] sm:$0xff] }
 0x290   : > { %v8175_v16 = vld [vmem:[#allocation2 + $0xca] sm:$0xff]  ;;  %v6270_v46 = vpack.c.bf16 %v4521_v24, %v4520_v56  ;;  %v8252_v13 = vld [vmem:[#allocation2 + $0x98] sm:$0xff] }
 0x291   : > { %8711 = vst [vmem:[#allocation25_spill] sm:$0xff] %v8175_v16  ;;  %v2348_v5 = vmax.f32 %v2320_v49, 0.0  ;;  %5879 = vmatmul.mubr.msk.f32.gmra.mrb[8].mxu1 %vm2349_vm0, %v8173_v25  ;;  %6076 = vmatmul.mubr.msk.f32.gmra.mrb[22].mxu0 %vm2349_vm0, %v8175_v16  ;;  %v8258_v49 = vld [vmem:[#allocation2 + $0xa0] sm:$0xff]  ;;  %v8270_v56 = vld [vmem:[#allocation2 + $0xb0] sm:$0xff]  ;;  %v8276_v24 = vld [vmem:[#allocation2 + $0xb8] sm:$0xff] }
 0x292   : > { %5881 = vmatprep.mubr.msk.f32.mxu1 %vm2349_vm0, %v8181_v53  ;;  %6086 = vmatprep.mubr.msk.f32.mxu0 %vm2349_vm0, %v8143_v60 }
 0x293   : > { %2377 = vst.msk [vmem:[#allocation2 + $0xd8] sm:$0xff] %vm2349_vm0, %v2348_v5  ;;  %v8264_v5 = vld [vmem:[#allocation2 + $0xa8] sm:$0xff] }
 0x295   : > { %5882 = vmatmul.mubr.msk.f32.gmra.mrb[10].mxu1 %vm2349_vm0, %v8194_v8  ;;  %6087 = vmatmul.mubr.msk.f32.vlgmr.msra.gmra.mrb[0].mxu0 %vm2349_vm0, %v8149_v48 }
 0x296   : > { %5884 = vmatprep.mubr.msk.f32.mxu1 %vm2349_vm0, %v8200_v2  ;;  %6089 = vmatprep.mubr.msk.f32.mxu0 %vm2349_vm0, %v8155_v52 }
 0x297   : > { %6269 = vmatpush3.bf16.msra.mxu0 %v7855_v31  ;;  %v8227_v31 = vld [vmem:[#allocation2 + $0x78] sm:$0xff] }
 0x298   : > { %6271 = vmatprep.subr.bf16.mxu0 %v6270_v46 }
 0x299   : > { %5885 = vmatmul.mubr.msk.f32.gmra.mrb[12].mxu1 %vm2349_vm0, %v8213_v9  ;;  %6090 = vmatmul.mubr.msk.f32.gmra.mrb[2].mxu0 %vm2349_vm0, %v8162_v14 }
 0x29a   : > { %5887 = vmatprep.mubr.msk.f32.mxu1 %vm2349_vm0, %v8221_v28  ;;  %6092 = vmatprep.mubr.msk.f32.mxu0 %vm2349_vm0, %v8168_v11 }
 0x29b   : > { %6273 = vmatpush3.bf16.msra.mxu0 %v6270_v46  ;;  %v3284_v46 = vld [vmem:[%s8578_s3 + $0x70] sm:$0xff] }
 0x29c   : > { %6275 = vmatprep.subr.bf16.mxu0 %v8215_v35  ;;  %v6238_v16 = vpack.c.bf16 %v3285_v21, %v3284_v46  ;;  %v4497_v46 = vld [vmem:[#allocation2 + $0x39] sm:$0xff] }
 0x29d   : > { %5888 = vmatmul.mubr.msk.f32.gmra.mrb[14].mxu1 %vm2349_vm0, %v8227_v31  ;;  %6093 = vmatmul.mubr.msk.f32.gmra.mrb[4].mxu0 %vm2349_vm0, %v8173_v25 }
 0x29e   : > { %5890 = vmatprep.mubr.msk.f32.mxu1 %vm2349_vm0, %v8234_v43  ;;  %6095 = vmatprep.mubr.msk.f32.mxu0 %vm2349_vm0, %v8181_v53 }
 0x2a1   : > { %5891 = vmatmul.mubr.msk.f32.gmra.mrb[16].mxu1 %vm2349_vm0, %v8240_v33  ;;  %6096 = vmatmul.mubr.msk.f32.gmra.mrb[6].mxu0 %vm2349_vm0, %v8194_v8 }
 0x2a2   : > { %5893 = vmatprep.mubr.msk.f32.mxu1 %vm2349_vm0, %v8246_v59  ;;  %6098 = vmatprep.mubr.msk.f32.mxu0 %vm2349_vm0, %v8200_v2 }
 0x2a5   : > { %5894 = vmatmul.mubr.msk.f32.gmra.mrb[18].mxu1 %vm2349_vm0, %v8252_v13  ;;  %6099 = vmatmul.mubr.msk.f32.gmra.mrb[8].mxu0 %vm2349_vm0, %v8213_v9 }
 0x2a6   : > { %5896 = vmatprep.mubr.msk.f32.mxu1 %vm2349_vm0, %v8258_v49  ;;  %6101 = vmatprep.mubr.msk.f32.mxu0 %vm2349_vm0, %v8221_v28 }
 0x2a9   : > { %5897 = vmatmul.mubr.msk.f32.gmra.mrb[20].mxu1 %vm2349_vm0, %v8264_v5  ;;  %6102 = vmatmul.mubr.msk.f32.gmra.mrb[10].mxu0 %vm2349_vm0, %v8227_v31 }
 0x2aa   : > { %5899 = vmatprep.mubr.msk.f32.mxu1 %vm2349_vm0, %v8270_v56  ;;  %6104 = vmatprep.mubr.msk.f32.mxu0 %vm2349_vm0, %v8234_v43 }
 0x2ad   : > { %5900 = vmatmul.mubr.msk.f32.gmra.mrb[22].mxu1 %vm2349_vm0, %v8276_v24  ;;  %6105 = vmatmul.mubr.msk.f32.gmra.mrb[12].mxu0 %vm2349_vm0, %v8240_v33 }
 0x2ae   : > { %5910 = vmatprep.mubr.msk.f32.mxu1 %vm2349_vm0, %v2949_v6  ;;  %6107 = vmatprep.mubr.msk.f32.mxu0 %vm2349_vm0, %v8246_v59 }
 0x2b1   : > { %5911 = vmatmul.mubr.msk.f32.vlgmr.msra.gmra.mrb[0].mxu1 %vm2349_vm0, %v2950_v61  ;;  %6108 = vmatmul.mubr.msk.f32.gmra.mrb[14].mxu0 %vm2349_vm0, %v8252_v13  ;;  %v4830_v61 = vld [vmem:[%s8578_s3 + $0x118] sm:$0xff] }
 0x2b2   : > { %6237 = vmatpush3.bf16.msra.mxu1 %v8133_v17  ;;  %5913 = vmatprep.mubr.msk.f32.mxu1 %vm2349_vm0, %v7831_v22  ;;  %v8712_v17 = vld [vmem:[#allocation5_spill] sm:$0xff]  ;;  %v8312_v22 = vld [vmem:[#allocation2 + $0xc0] sm:$0xff] }
 0x2b3   : > { %6110 = vmatprep.mubr.msk.f32.mxu0 %vm2349_vm0, %v8258_v49  ;;  %6239 = vmatprep.subr.bf16.mxu1 %v6238_v16 }
 0x2b5   : > { %5914 = vmatmul.mubr.msk.f32.gmra.mrb[2].mxu1 %vm2349_vm0, %v7839_v58  ;;  %6111 = vmatmul.mubr.msk.f32.gmra.mrb[16].mxu0 %vm2349_vm0, %v8264_v5  ;;  %v8318_v58 = vld [vmem:[#allocation2 + $0xc8] sm:$0xff] }
 0x2b6   : > { %5916 = vmatprep.mubr.msk.f32.mxu1 %vm2349_vm0, %v7850_v20  ;;  %6113 = vmatprep.mubr.msk.f32.mxu0 %vm2349_vm0, %v8270_v56  ;;  %v4207_v20 = vld [vmem:[#allocation2 + $0xd0] sm:$0xff] }
 0x2b7   : > { %6241 = vmatpush3.bf16.msra.mxu1 %v6238_v16 }
 0x2b8   : > { %6282 = vmatprep.subr.bf16.mxu1 %v8712_v17 }
 0x2b9   : > { %5917 = vmatmul.mubr.msk.f32.gmra.mrb[4].mxu1 %vm2349_vm0, %v7859_v37  ;;  %6114 = vmatmul.mubr.msk.f32.gmra.mrb[18].mxu0 %vm2349_vm0, %v8276_v24  ;;  %v4208_v37 = vld [vmem:[#allocation2 + $0xd8] sm:$0xff] }
 0x2ba   : > { %5919 = vmatprep.mubr.msk.f32.mxu1 %vm2349_vm0, %v7864_v0  ;;  %6116 = vmatprep.mubr.msk.f32.mxu0 %vm2349_vm0, %v8312_v22  ;;  %v4494_v0 = vld [vmem:[#allocation2 + $0x21] sm:$0xff] }
 0x2bd   : > { %5920 = vmatmul.mubr.msk.f32.gmra.mrb[6].mxu1 %vm2349_vm0, %v7874_v54  ;;  %6117 = vmatmul.mubr.msk.f32.gmra.mrb[20].mxu0 %vm2349_vm0, %v8318_v58  ;;  %v4829_v54 = vld [vmem:[%s8578_s3 + $0x110] sm:$0xff] }
 0x2be   : > { %5922 = vmatprep.mubr.msk.f32.mxu1 %vm2349_vm0, %v7879_v42  ;;  %6119 = vmatprep.mubr.msk.f32.mxu0 %vm2349_vm0, %v4207_v20  ;;  %v4495_v42 = vld [vmem:[#allocation2 + $0x29] sm:$0xff]  ;;  %v6278_v16 = vpack.c.bf16 %v4830_v61, %v4829_v54  ;;  %v5256_v61 = vlaneseq }
 0x2c1   : > { %5923 = vmatmul.mubr.msk.f32.gmra.mrb[8].mxu1 %vm2349_vm0, %v7886_v36  ;;  %6120 = vmatmul.mubr.msk.f32.gmra.mrb[22].mxu0 %vm2349_vm0, %v4208_v37  ;;  %v4496_v36 = vld [vmem:[#allocation2 + $0x31] sm:$0xff] }
 0x2c2   : > { %5925 = vmatprep.mubr.msk.f32.mxu1 %vm2349_vm0, %v7891_v12  ;;  %6130 = vmatprep.mubr.msk.f32.mxu0 %vm2349_vm0, %v4494_v0  ;;  %v4498_v12 = vld [vmem:[#allocation2 + $0x41] sm:$0xff] }
 0x2c5   : > { %5926 = vmatmul.mubr.msk.f32.gmra.mrb[10].mxu1 %vm2349_vm0, %v7905_v51  ;;  %6131 = vmatmul.mubr.msk.f32.vlgmr.msra.gmra.mrb[0].mxu0 %vm2349_vm0, %v4495_v42  ;;  %v4499_v51 = vld [vmem:[#allocation2 + $0x49] sm:$0xff] }
 0x2c6   : > { %5928 = vmatprep.mubr.msk.f32.mxu1 %vm2349_vm0, %v7916_v44  ;;  %6133 = vmatprep.mubr.msk.f32.mxu0 %vm2349_vm0, %v4496_v36  ;;  %v4500_v44 = vld [vmem:[#allocation2 + $0x51] sm:$0xff] }
 0x2c7   : > { %6277 = vmatpush3.bf16.msra.mxu0 %v8215_v35 }
 0x2c8   : > { %6279 = vmatprep.subr.bf16.mxu0 %v6278_v16 }
 0x2c9   : > { %5929 = vmatmul.mubr.msk.f32.gmra.mrb[12].mxu1 %vm2349_vm0, %v7932_v7  ;;  %6134 = vmatmul.mubr.msk.f32.gmra.mrb[2].mxu0 %vm2349_vm0, %v4497_v46  ;;  %v4517_v7 = vld [vmem:[#allocation2 + $0xd9] sm:$0xff] }
 0x2ca   : > { %5931 = vmatprep.mubr.msk.f32.mxu1 %vm2349_vm0, %v7934_v29  ;;  %6136 = vmatprep.mubr.msk.f32.mxu0 %vm2349_vm0, %v4498_v12  ;;  %v4803_v29 = vld [vmem:[#allocation2 + $0x22] sm:$0xff] }
 0x2cb   : > { %6281 = vmatpush3.bf16.msra.mxu0 %v6278_v16 }
 0x2cd   : > { %5932 = vmatmul.mubr.msk.f32.gmra.mrb[14].mxu1 %vm2349_vm0, %v7961_v10  ;;  %6137 = vmatmul.mubr.msk.f32.gmra.mrb[4].mxu0 %vm2349_vm0, %v4499_v51 }
 0x2ce   : > { %5934 = vmatprep.mubr.msk.f32.mxu1 %vm2349_vm0, %v7984_v34  ;;  %6139 = vmatprep.mubr.msk.f32.mxu0 %vm2349_vm0, %v4500_v44 }
 0x2d1   : > { %5935 = vmatmul.mubr.msk.f32.gmra.mrb[16].mxu1 %vm2349_vm0, %v8007_v63  ;;  %6140 = vmatmul.mubr.msk.f32.gmra.mrb[6].mxu0 %vm2349_vm0, %v7795_v47  ;;  %v8713_v47 = vld [vmem:[#allocation8_spill] sm:$0xff] }
 0x2d2   : > { %5937 = vmatprep.mubr.msk.f32.mxu1 %vm2349_vm0, %v8026_v41  ;;  %6142 = vmatprep.mubr.msk.f32.mxu0 %vm2349_vm0, %v7809_v1  ;;  %v8413_v1 = vld [vmem:[#allocation2 + $0xc1] sm:$0xff] }
 0x2d5   : > { %5938 = vmatmul.mubr.msk.f32.gmra.mrb[18].mxu1 %vm2349_vm0, %v8048_v3  ;;  %6143 = vmatmul.mubr.msk.f32.gmra.mrb[8].mxu0 %vm2349_vm0, %v7818_v39  ;;  %v8419_v39 = vld [vmem:[#allocation2 + $0xc9] sm:$0xff] }
 0x2d6   : > { %5940 = vmatprep.mubr.msk.f32.mxu1 %vm2349_vm0, %v8068_v26  ;;  %6145 = vmatprep.mubr.msk.f32.mxu0 %vm2349_vm0, %v7930_v50  ;;  %v4516_v50 = vld [vmem:[#allocation2 + $0xd1] sm:$0xff] }
 0x2d9   : > { %5941 = vmatmul.mubr.msk.f32.gmra.mrb[20].mxu1 %vm2349_vm0, %v8079_v32  ;;  %6146 = vmatmul.mubr.msk.f32.gmra.mrb[10].mxu0 %vm2349_vm0, %v7959_v40  ;;  %v4804_v40 = vld [vmem:[#allocation2 + $0x2a] sm:$0xff] }
 0x2da   : > { %5943 = vmatprep.mubr.msk.f32.mxu1 %vm2349_vm0, %v8091_v30  ;;  %6148 = vmatprep.mubr.msk.f32.mxu0 %vm2349_vm0, %v7982_v45 }
 0x2dd   : > { %5944 = vmatmul.mubr.msk.f32.gmra.mrb[22].mxu1 %vm2349_vm0, %v8107_v62  ;;  %6149 = vmatmul.mubr.msk.f32.gmra.mrb[12].mxu0 %vm2349_vm0, %v8005_v18 }
 0x2de   : > { %5954 = vmatprep.mubr.msk.f32.mxu1 %vm2349_vm0, %v8128_v27  ;;  %6151 = vmatprep.mubr.msk.f32.mxu0 %vm2349_vm0, %v8024_v55  ;;  %v4805_v27 = vld [vmem:[#allocation2 + $0x32] sm:$0xff] }
 0x2e1   : > { %5955 = vmatmul.mubr.msk.f32.vlgmr.msra.gmra.mrb[0].mxu1 %vm2349_vm0, %v8136_v15  ;;  %6152 = vmatmul.mubr.msk.f32.gmra.mrb[14].mxu0 %vm2349_vm0, %v8046_v19  ;;  %v4806_v15 = vld [vmem:[#allocation2 + $0x3a] sm:$0xff] }
 0x2e2   : > { %6284 = vmatpush3.bf16.msra.mxu1 %v8712_v17  ;;  %5957 = vmatprep.mubr.msk.f32.mxu1 %vm2349_vm0, %v8143_v60  ;;  %v4807_v60 = vld [vmem:[#allocation2 + $0x42] sm:$0xff] }
 0x2e3   : > { %6154 = vmatprep.mubr.msk.f32.mxu0 %vm2349_vm0, %v8066_v23  ;;  %6283 = vmatprep.subr.bf16.mxu1 %v8713_v47 }
 0x2e5   : > { %5958 = vmatmul.mubr.msk.f32.gmra.mrb[2].mxu1 %vm2349_vm0, %v8149_v48  ;;  %6155 = vmatmul.mubr.msk.f32.gmra.mrb[16].mxu0 %vm2349_vm0, %v8077_v38  ;;  %v4808_v48 = vld [vmem:[#allocation2 + $0x4a] sm:$0xff] }
 0x2e6   : > { %5960 = vmatprep.mubr.msk.f32.mxu1 %vm2349_vm0, %v8155_v52  ;;  %6157 = vmatprep.mubr.msk.f32.mxu0 %vm2349_vm0, %v8089_v4  ;;  %v4809_v52 = vld [vmem:[#allocation2 + $0x52] sm:$0xff] }
 0x2e7   : > { %6285 = vmatpush3.bf16.msra.mxu1 %v8713_v47 }
 0x2e9   : > { %5961 = vmatmul.mubr.msk.f32.gmra.mrb[4].mxu1 %vm2349_vm0, %v8162_v14  ;;  %6158 = vmatmul.mubr.msk.f32.gmra.mrb[18].mxu0 %vm2349_vm0, %v8105_v57  ;;  %v4810_v14 = vld [vmem:[#allocation2 + $0x5a] sm:$0xff] }
 0x2ea   : > { %5963 = vmatprep.mubr.msk.f32.mxu1 %vm2349_vm0, %v8168_v11  ;;  %6160 = vmatprep.mubr.msk.f32.mxu0 %vm2349_vm0, %v8413_v1  ;;  %v4811_v11 = vld [vmem:[#allocation2 + $0x62] sm:$0xff] }
 0x2ed   : > { %5964 = vmatmul.mubr.msk.f32.gmra.mrb[6].mxu1 %vm2349_vm0, %v8173_v25  ;;  %6161 = vmatmul.mubr.msk.f32.gmra.mrb[20].mxu0 %vm2349_vm0, %v8419_v39  ;;  %v4812_v25 = vld [vmem:[#allocation2 + $0x6a] sm:$0xff] }
 0x2ee   : > { %5966 = vmatprep.mubr.msk.f32.mxu1 %vm2349_vm0, %v8181_v53  ;;  %6163 = vmatprep.mubr.msk.f32.mxu0 %vm2349_vm0, %v4516_v50  ;;  %v4813_v53 = vld [vmem:[#allocation2 + $0x72] sm:$0xff] }
 0x2f1   : > { %5967 = vmatmul.mubr.msk.f32.gmra.mrb[8].mxu1 %vm2349_vm0, %v8194_v8  ;;  %6164 = vmatmul.mubr.msk.f32.gmra.mrb[22].mxu0 %vm2349_vm0, %v4517_v7  ;;  %v3579_v8 = vld [vmem:[#allocation2 + $0x71] sm:$0xff] }
 0x2f2   : > { %5969 = vmatprep.mubr.msk.f32.mxu1 %vm2349_vm0, %v8200_v2  ;;  %6174 = vmatprep.mubr.msk.f32.mxu0 %vm2349_vm0, %v4803_v29  ;;  %v3580_v2 = vld [vmem:[#allocation2 + $0x79] sm:$0xff] }
 0x2f5   : > { %5970 = vmatmul.mubr.msk.f32.gmra.mrb[10].mxu1 %vm2349_vm0, %v8213_v9  ;;  %6175 = vmatmul.mubr.msk.f32.vlgmr.msra.gmra.mrb[0].mxu0 %vm2349_vm0, %v4804_v40 }
 0x2f6   : > { %5972 = vmatprep.mubr.msk.f32.mxu1 %vm2349_vm0, %v8221_v28  ;;  %6177 = vmatprep.mubr.msk.f32.mxu0 %vm2349_vm0, %v4805_v27 }
 0x2f9   : > { %5973 = vmatmul.mubr.msk.f32.gmra.mrb[12].mxu1 %vm2349_vm0, %v8227_v31  ;;  %6178 = vmatmul.mubr.msk.f32.gmra.mrb[2].mxu0 %vm2349_vm0, %v4806_v15 }
 0x2fa   : > { %5975 = vmatprep.mubr.msk.f32.mxu1 %vm2349_vm0, %v8234_v43  ;;  %6180 = vmatprep.mubr.msk.f32.mxu0 %vm2349_vm0, %v4807_v60 }
 0x2fd   : > { %5976 = vmatmul.mubr.msk.f32.gmra.mrb[14].mxu1 %vm2349_vm0, %v8240_v33  ;;  %6181 = vmatmul.mubr.msk.f32.gmra.mrb[4].mxu0 %vm2349_vm0, %v4808_v48 }
 0x2fe   : > { %5978 = vmatprep.mubr.msk.f32.mxu1 %vm2349_vm0, %v8246_v59  ;;  %6183 = vmatprep.mubr.msk.f32.mxu0 %vm2349_vm0, %v4809_v52 }
 0x301   : > { %5979 = vmatmul.mubr.msk.f32.gmra.mrb[16].mxu1 %vm2349_vm0, %v8252_v13  ;;  %6184 = vmatmul.mubr.msk.f32.gmra.mrb[6].mxu0 %vm2349_vm0, %v4810_v14 }
 0x302   : > { %5981 = vmatprep.mubr.msk.f32.mxu1 %vm2349_vm0, %v8258_v49  ;;  %6186 = vmatprep.mubr.msk.f32.mxu0 %vm2349_vm0, %v4811_v11 }
 0x305   : > { %5982 = vmatmul.mubr.msk.f32.gmra.mrb[18].mxu1 %vm2349_vm0, %v8264_v5  ;;  %6187 = vmatmul.mubr.msk.f32.gmra.mrb[8].mxu0 %vm2349_vm0, %v4812_v25 }
 0x306   : > { %5984 = vmatprep.mubr.msk.f32.mxu1 %vm2349_vm0, %v8270_v56  ;;  %6189 = vmatprep.mubr.msk.f32.mxu0 %vm2349_vm0, %v4813_v53 }
 0x309   : > { %5985 = vmatmul.mubr.msk.f32.gmra.mrb[20].mxu1 %vm2349_vm0, %v8276_v24  ;;  %6190 = vmatmul.mubr.msk.f32.gmra.mrb[10].mxu0 %vm2349_vm0, %v7961_v10  ;;  %v8714_v10 = vld [vmem:[#allocation23_spill] sm:$0xff] }
 0x30a   : > { %5987 = vmatprep.mubr.msk.f32.mxu1 %vm2349_vm0, %v8312_v22  ;;  %6192 = vmatprep.mubr.msk.f32.mxu0 %vm2349_vm0, %v7984_v34  ;;  %v4825_v34 = vld [vmem:[#allocation2 + $0xd2] sm:$0xff] }
 0x30d   : > { %5988 = vmatmul.mubr.msk.f32.gmra.mrb[22].mxu1 %vm2349_vm0, %v8318_v58  ;;  %6193 = vmatmul.mubr.msk.f32.gmra.mrb[12].mxu0 %vm2349_vm0, %v8007_v63 }
 0x30e   : > { %6016 = vmatprep.mubr.msk.f32.mxu1 %vm2349_vm0, %v3579_v8  ;;  %6195 = vmatprep.mubr.msk.f32.mxu0 %vm2349_vm0, %v8026_v41 }
 0x311   : > { %6017 = vmatmul.mubr.msk.f32.vlgmr.msra.gmra.mrb[12].mxu1 %vm2349_vm0, %v3580_v2  ;;  %6196 = vmatmul.mubr.msk.f32.gmra.mrb[14].mxu0 %vm2349_vm0, %v8048_v3 }
 0x312   : > { %6019 = vmatprep.mubr.msk.f32.mxu1 %vm2349_vm0, %v7982_v45  ;;  %6198 = vmatprep.mubr.msk.f32.mxu0 %vm2349_vm0, %v8068_v26  ;;  %v8715_v45 = vld [vmem:[#allocation25_spill] sm:$0xff] }
 0x315   : > { %6020 = vmatmul.mubr.msk.f32.gmra.mrb[14].mxu1 %vm2349_vm0, %v8005_v18  ;;  %6199 = vmatmul.mubr.msk.f32.gmra.mrb[16].mxu0 %vm2349_vm0, %v8079_v32  ;;  %v4826_v18 = vld [vmem:[#allocation2 + $0xda] sm:$0xff] }
 0x316   : > { %6022 = vmatprep.mubr.msk.f32.mxu1 %vm2349_vm0, %v8024_v55  ;;  %6201 = vmatprep.mubr.msk.f32.mxu0 %vm2349_vm0, %v8091_v30 }
 0x319   : > { %6023 = vmatmul.mubr.msk.f32.gmra.mrb[16].mxu1 %vm2349_vm0, %v8046_v19  ;;  %6202 = vmatmul.mubr.msk.f32.gmra.mrb[18].mxu0 %vm2349_vm0, %v8107_v62  ;;  %v8519_v62 = vld [vmem:[%s8579_s4] ss:$0 sm:$0xff] }
 0x31a   : > { %6025 = vmatprep.mubr.msk.f32.mxu1 %vm2349_vm0, %v8066_v23  ;;  %6204 = vmatprep.mubr.msk.f32.mxu0 %vm2349_vm0, %v8714_v10 }
 0x31d   : > { %6026 = vmatmul.mubr.msk.f32.gmra.mrb[18].mxu1 %vm2349_vm0, %v8077_v38  ;;  %6205 = vmatmul.mubr.msk.f32.gmra.mrb[20].mxu0 %vm2349_vm0, %v8715_v45 }
 0x31e   : > { %6028 = vmatprep.mubr.msk.f32.mxu1 %vm2349_vm0, %v8089_v4  ;;  %6207 = vmatprep.mubr.msk.f32.mxu0 %vm2349_vm0, %v4825_v34 }
 0x321   : > { %6029 = vmatmul.mubr.msk.f32.gmra.mrb[20].mxu1 %vm2349_vm0, %v8105_v57  ;;  %6208 = vmatmul.mubr.msk.f32.gmra.mrb[22].mxu0 %vm2349_vm0, %v4826_v18 }
 0x322   : > { %6031 = vmatprep.mubr.msk.f32.mxu1 %vm2349_vm0, %v8413_v1  ;;  %v8528_v1 = vshrl.u32 %v5256_v61, 7 }
 0x324   : > { %vm5258_vm1 = vcmp.lt.s32.totalorder %v8528_v1, 6 }
 0x325   : > { %6032 = vmatmul.mubr.msk.f32.gmra.mrb[22].mxu1 %vm2349_vm0, %v8419_v39 }
 0x3b4   : > { %v5956_v63 = vpop.f32.mrb[0].mxu1 }
 0x3b5   : > { %v3424_v55 = vpop.f32.mrb[1].mxu1 }
 0x3b8   : > { %v5959_v41 = vpop.f32.mrb[2].mxu1 }
 0x3b9   : > { %v3434_v19 = vpop.f32.mrb[3].mxu1 }
 0x3bc   : > { %v5962_v3 = vpop.f32.mrb[4].mxu1 }
 0x3bd   : > { %v3444_v23 = vpop.f32.mrb[5].mxu1 }
 0x3c0   : > { %v5965_v26 = vpop.f32.mrb[6].mxu1 }
 0x3c1   : > { %v3454_v38 = vpop.f32.mrb[7].mxu1 }
 0x3c4   : > { %v5968_v32 = vpop.f32.mrb[8].mxu1 }
 0x3c5   : > { %v3464_v4 = vpop.f32.mrb[9].mxu1 }
 0x3c8   : > { %v5971_v30 = vpop.f32.mrb[10].mxu1  ;;  %v6176_v57 = vpop.f32.mrb[0].mxu0 }
 0x3c9   : > { %v6286_v9 = vadd.f32 %v6176_v57, %v5956_v63  ;;  %v3474_v35 = vpop.f32.mrb[11].mxu1  ;;  %v4969_v28 = vpop.f32.mrb[1].mxu0 }
 0x3ca   : > { %v6287_v31 = vadd.f32 %v4969_v28, %v3424_v55 }
 0x3cb   : > { %v5120_v43 = vadd.f32 %v6286_v9, %v8519_v62 }
 0x3cc   : > { %v5119_v33 = vadd.f32 %v6287_v31, %v8519_v62  ;;  %v6179_v59 = vpop.f32.mrb[2].mxu0 }
 0x3cd   : > { %v5144_v13 = vmax.f32 %v5120_v43, 0.0  ;;  %v6288_v49 = vadd.f32 %v6179_v59, %v5959_v41  ;;  %v4979_v5 = vpop.f32.mrb[3].mxu0 }
 0x3ce   : > { %v5143_v56 = vmax.f32 %v5119_v33, 0.0  ;;  %v6289_v24 = vadd.f32 %v4979_v5, %v3434_v19 }
 0x3cf   : > { %5168 = vst [vmem:[#allocation3 + $0x8] sm:$0xff] %v5144_v13  ;;  %v5122_v21 = vadd.f32 %v6288_v49, %v8519_v62 }
 0x3d0   : > { %5167 = vst [vmem:[#allocation3] sm:$0xff] %v5143_v56  ;;  %v5121_v6 = vadd.f32 %v6289_v24, %v8519_v62  ;;  %v6182_v17 = vpop.f32.mrb[4].mxu0 }
 0x3d1   : > { %v5146_v22 = vmax.f32 %v5122_v21, 0.0  ;;  %v6290_v58 = vadd.f32 %v6182_v17, %v5962_v3  ;;  %v4989_v20 = vpop.f32.mrb[5].mxu0 }
 0x3d2   : > { %v5145_v37 = vmax.f32 %v5121_v6, 0.0  ;;  %v6291_v0 = vadd.f32 %v4989_v20, %v3444_v23 }
 0x3d3   : > { %5170 = vst [vmem:[#allocation3 + $0x18] sm:$0xff] %v5146_v22  ;;  %v5124_v54 = vadd.f32 %v6290_v58, %v8519_v62 }
 0x3d4   : > { %5169 = vst [vmem:[#allocation3 + $0x10] sm:$0xff] %v5145_v37  ;;  %v5123_v42 = vadd.f32 %v6291_v0, %v8519_v62  ;;  %v6185_v16 = vpop.f32.mrb[6].mxu0 }
 0x3d5   : > { %v5148_v36 = vmax.f32 %v5124_v54, 0.0  ;;  %v6292_v46 = vadd.f32 %v6185_v16, %v5965_v26  ;;  %v4999_v12 = vpop.f32.mrb[7].mxu0 }
 0x3d6   : > { %v5147_v51 = vmax.f32 %v5123_v42, 0.0  ;;  %v6293_v44 = vadd.f32 %v4999_v12, %v3454_v38 }
 0x3d7   : > { %5172 = vst [vmem:[#allocation3 + $0x28] sm:$0xff] %v5148_v36  ;;  %v5126_v47 = vadd.f32 %v6292_v46, %v8519_v62  ;;  %v5191_v7 = vld [vmem:[#allocation3] ss:$2 sm:$0xff]  ;;  %v5215_v29 = vld [vmem:[#allocation3 + $0x1] ss:$2 sm:$0xff] }
 0x3d8   : > { %5171 = vst [vmem:[#allocation3 + $0x20] sm:$0xff] %v5147_v51  ;;  %v5125_v39 = vadd.f32 %v6293_v44, %v8519_v62  ;;  %v6188_v50 = vpop.f32.mrb[8].mxu0  ;;  %v5238_v25 = vmax.f32 %v5191_v7, %v5215_v29 }
 0x3d9   : > { %v5150_v40 = vmax.f32 %v5126_v47, 0.0  ;;  %v6294_v27 = vadd.f32 %v6188_v50, %v5968_v32  ;;  %v5009_v15 = vpop.f32.mrb[9].mxu0 }
 0x3da   : > { %v5149_v60 = vmax.f32 %v5125_v39, 0.0  ;;  %v6295_v48 = vadd.f32 %v5009_v15, %v3464_v4 }
 0x3db   : > { %v5193_v52 = vld [vmem:[#allocation3 + $0x10] ss:$2 sm:$0xff]  ;;  %v5217_v14 = vld [vmem:[#allocation3 + $0x11] ss:$2 sm:$0xff]  ;;  %5174 = vst [vmem:[#allocation3 + $0x38] sm:$0xff] %v5150_v40  ;;  %v5128_v11 = vadd.f32 %v6294_v27, %v8519_v62 }
 0x3dc   : > { %v5239_v53 = vmax.f32 %v5193_v52, %v5217_v14  ;;  %5173 = vst [vmem:[#allocation3 + $0x30] sm:$0xff] %v5149_v60  ;;  %v5127_v8 = vadd.f32 %v6295_v48, %v8519_v62  ;;  %v6191_v2 = vpop.f32.mrb[10].mxu0 }
 0x3dd   : > { %v5152_v10 = vmax.f32 %v5128_v11, 0.0  ;;  %v6296_v45 = vadd.f32 %v6191_v2, %v5971_v30  ;;  %v5019_v34 = vpop.f32.mrb[11].mxu0 }
 0x3de   : > { %v5250_v18 = vmax.f32 %v5238_v25, %v5239_v53  ;;  %v5151_v63 = vmax.f32 %v5127_v8, 0.0  ;;  %v6297_v55 = vadd.f32 %v5019_v34, %v3474_v35 }
 0x3df   : > { %5176 = vst [vmem:[#allocation3 + $0x48] sm:$0xff] %v5152_v10  ;;  %v5130_v41 = vadd.f32 %v6296_v45, %v8519_v62  ;;  %v5195_v26 = vld [vmem:[#allocation3 + $0x20] ss:$2 sm:$0xff]  ;;  %v5219_v38 = vld [vmem:[#allocation3 + $0x21] ss:$2 sm:$0xff] }
 0x3e0   : > { %v5259_v19 = vsel %vm5258_vm1, %v5250_v18, 0.0  ;;  %5175 = vst [vmem:[#allocation3 + $0x40] sm:$0xff] %v5151_v63  ;;  %v5129_v3 = vadd.f32 %v6297_v55, %v8519_v62  ;;  %v6194_v23 = vpop.f32.mrb[12].mxu0  ;;  %v5240_v35 = vmax.f32 %v5195_v26, %v5219_v38 }
 0x3e1   : > { %5265 = vst [vmem:[%s8538_s22] sm:$0xff] %v5259_v19  ;;  %v5154_v32 = vmax.f32 %v5130_v41, 0.0  ;;  %v5029_v4 = vpop.f32.mrb[13].mxu0 }
 0x3e2   : > { %v5153_v30 = vmax.f32 %v5129_v3, 0.0 }
 0x3e3   : > { %v5197_v57 = vld [vmem:[#allocation3 + $0x30] ss:$2 sm:$0xff]  ;;  %v5221_v9 = vld [vmem:[#allocation3 + $0x31] ss:$2 sm:$0xff]  ;;  %5178 = vst [vmem:[#allocation3 + $0x58] sm:$0xff] %v5154_v32 }
 0x3e4   : > { %v5241_v28 = vmax.f32 %v5197_v57, %v5221_v9  ;;  %5177 = vst [vmem:[#allocation3 + $0x50] sm:$0xff] %v5153_v30  ;;  %v6018_v31 = vpop.f32.mrb[12].mxu1  ;;  %v6197_v43 = vpop.f32.mrb[14].mxu0 }
 0x3e5   : > { %v6298_v33 = vadd.f32 %v6194_v23, %v6018_v31  ;;  %v3793_v59 = vpop.f32.mrb[13].mxu1  ;;  %v5039_v13 = vpop.f32.mrb[15].mxu0 }
 0x3e6   : > { %v5251_v49 = vmax.f32 %v5240_v35, %v5241_v28  ;;  %v6299_v5 = vadd.f32 %v5029_v4, %v3793_v59 }
 0x3e7   : > { %v5132_v56 = vadd.f32 %v6298_v33, %v8519_v62  ;;  %v5199_v21 = vld [vmem:[#allocation3 + $0x40] ss:$2 sm:$0xff]  ;;  %v5223_v58 = vld [vmem:[#allocation3 + $0x41] ss:$2 sm:$0xff] }
 0x3e8   : > { %v5260_v24 = vsel %vm5258_vm1, %v5251_v49, 0.0  ;;  %v5131_v6 = vadd.f32 %v6299_v5, %v8519_v62  ;;  %v6021_v17 = vpop.f32.mrb[14].mxu1  ;;  %v6200_v22 = vpop.f32.mrb[16].mxu0  ;;  %v5242_v12 = vmax.f32 %v5199_v21, %v5223_v58 }
 0x3e9   : > { %5266 = vst [vmem:[%s8538_s22 + $0x8] sm:$0xff] %v5260_v24  ;;  %v5156_v20 = vmax.f32 %v5132_v56, 0.0  ;;  %v6300_v37 = vadd.f32 %v6197_v43, %v6021_v17  ;;  %v3803_v0 = vpop.f32.mrb[15].mxu1  ;;  %v5049_v54 = vpop.f32.mrb[17].mxu0 }
 0x3ea   : > { %v5155_v61 = vmax.f32 %v5131_v6, 0.0  ;;  %v6301_v42 = vadd.f32 %v5039_v13, %v3803_v0 }
 0x3eb   : > { %v5201_v16 = vld [vmem:[#allocation3 + $0x50] ss:$2 sm:$0xff]  ;;  %v5225_v36 = vld [vmem:[#allocation3 + $0x51] ss:$2 sm:$0xff]  ;;  %5180 = vst [vmem:[#allocation3 + $0x68] sm:$0xff] %v5156_v20  ;;  %v5134_v46 = vadd.f32 %v6300_v37, %v8519_v62 }
 0x3ec   : > { %v5243_v51 = vmax.f32 %v5201_v16, %v5225_v36  ;;  %5179 = vst [vmem:[#allocation3 + $0x60] sm:$0xff] %v5155_v61  ;;  %v5133_v44 = vadd.f32 %v6301_v42, %v8519_v62  ;;  %v6024_v47 = vpop.f32.mrb[16].mxu1  ;;  %v6203_v39 = vpop.f32.mrb[18].mxu0 }
 0x3ed   : > { %v5158_v50 = vmax.f32 %v5134_v46, 0.0  ;;  %v6302_v7 = vadd.f32 %v6200_v22, %v6024_v47  ;;  %v3813_v29 = vpop.f32.mrb[17].mxu1  ;;  %v5059_v40 = vpop.f32.mrb[19].mxu0 }
 0x3ee   : > { %v5252_v27 = vmax.f32 %v5242_v12, %v5243_v51  ;;  %v5157_v15 = vmax.f32 %v5133_v44, 0.0  ;;  %v6303_v60 = vadd.f32 %v5049_v54, %v3813_v29 }
 0x3ef   : > { %5182 = vst [vmem:[#allocation3 + $0x78] sm:$0xff] %v5158_v50  ;;  %v5136_v48 = vadd.f32 %v6302_v7, %v8519_v62 }
 0x3f0   : > { %v5261_v52 = vsel %vm5258_vm1, %v5252_v27, 0.0  ;;  %5181 = vst [vmem:[#allocation3 + $0x70] sm:$0xff] %v5157_v15  ;;  %v5135_v14 = vadd.f32 %v6303_v60, %v8519_v62  ;;  %v6027_v11 = vpop.f32.mrb[18].mxu1  ;;  %v6206_v25 = vpop.f32.mrb[20].mxu0 }
 0x3f1   : > { %5267 = vst [vmem:[%s8538_s22 + $0x10] sm:$0xff] %v5261_v52  ;;  %v5160_v53 = vmax.f32 %v5136_v48, 0.0  ;;  %v6304_v8 = vadd.f32 %v6203_v39, %v6027_v11  ;;  %v3823_v2 = vpop.f32.mrb[19].mxu1  ;;  %v5069_v10 = vpop.f32.mrb[21].mxu0 }
 0x3f2   : > { %v5159_v45 = vmax.f32 %v5135_v14, 0.0  ;;  %v6305_v34 = vadd.f32 %v5059_v40, %v3823_v2 }
 0x3f3   : > { %5184 = vst [vmem:[#allocation3 + $0x88] sm:$0xff] %v5160_v53  ;;  %v5138_v18 = vadd.f32 %v6304_v8, %v8519_v62  ;;  %v5203_v63 = vld [vmem:[#allocation3 + $0x60] ss:$2 sm:$0xff]  ;;  %v5227_v3 = vld [vmem:[#allocation3 + $0x61] ss:$2 sm:$0xff] }
 0x3f4   : > { %5183 = vst [vmem:[#allocation3 + $0x80] sm:$0xff] %v5159_v45  ;;  %v5137_v55 = vadd.f32 %v6305_v34, %v8519_v62  ;;  %v6030_v41 = vpop.f32.mrb[20].mxu1  ;;  %v6209_v19 = vpop.f32.mrb[22].mxu0  ;;  %v5244_v28 = vmax.f32 %v5203_v63, %v5227_v3 }
 0x3f5   : > { %v5162_v23 = vmax.f32 %v5138_v18, 0.0  ;;  %v6306_v26 = vadd.f32 %v6206_v25, %v6030_v41  ;;  %v3833_v38 = vpop.f32.mrb[21].mxu1  ;;  %v5079_v32 = vpop.f32.mrb[23].mxu0 }
 0x3f6   : > { %v5161_v4 = vmax.f32 %v5137_v55, 0.0  ;;  %v6307_v30 = vadd.f32 %v5069_v10, %v3833_v38 }
 0x3f7   : > { %v5205_v57 = vld [vmem:[#allocation3 + $0x70] ss:$2 sm:$0xff]  ;;  %v5229_v9 = vld [vmem:[#allocation3 + $0x71] ss:$2 sm:$0xff]  ;;  %5186 = vst [vmem:[#allocation3 + $0x98] sm:$0xff] %v5162_v23  ;;  %v5140_v35 = vadd.f32 %v6306_v26, %v8519_v62 }
 0x3f8   : > { %v5245_v31 = vmax.f32 %v5205_v57, %v5229_v9  ;;  %5185 = vst [vmem:[#allocation3 + $0x90] sm:$0xff] %v5161_v4  ;;  %v5139_v43 = vadd.f32 %v6307_v30, %v8519_v62  ;;  %v6033_v33 = vpop.f32.mrb[22].mxu1 }
 0x3f9   : > { %v5164_v59 = vmax.f32 %v5140_v35, 0.0  ;;  %v6308_v13 = vadd.f32 %v6209_v19, %v6033_v33  ;;  %v3843_v49 = vpop.f32.mrb[23].mxu1 }
 0x3fa   : > { %v5253_v5 = vmax.f32 %v5244_v28, %v5245_v31  ;;  %v5163_v56 = vmax.f32 %v5139_v43, 0.0  ;;  %v6309_v24 = vadd.f32 %v5079_v32, %v3843_v49 }
 0x3fb   : > { %5188 = vst [vmem:[#allocation3 + $0xa8] sm:$0xff] %v5164_v59  ;;  %v5142_v21 = vadd.f32 %v6308_v13, %v8519_v62  ;;  %v5207_v22 = vld [vmem:[#allocation3 + $0x80] ss:$2 sm:$0xff]  ;;  %v5231_v58 = vld [vmem:[#allocation3 + $0x81] ss:$2 sm:$0xff] }
 0x3fc   : > { %v5262_v6 = vsel %vm5258_vm1, %v5253_v5, 0.0  ;;  %5187 = vst [vmem:[#allocation3 + $0xa0] sm:$0xff] %v5163_v56  ;;  %v5141_v17 = vadd.f32 %v6309_v24, %v8519_v62  ;;  %v5246_v61 = vmax.f32 %v5207_v22, %v5231_v58 }
 0x3fd   : > { %5268 = vst [vmem:[%s8538_s22 + $0x18] sm:$0xff] %v5262_v6  ;;  %v5166_v20 = vmax.f32 %v5142_v21, 0.0 }
 0x3fe   : > { %v5165_v37 = vmax.f32 %v5141_v17, 0.0 }
 0x3ff   : > { %v5209_v0 = vld [vmem:[#allocation3 + $0x90] ss:$2 sm:$0xff]  ;;  %v5233_v54 = vld [vmem:[#allocation3 + $0x91] ss:$2 sm:$0xff]  ;;  %5190 = vst [vmem:[#allocation3 + $0xb8] sm:$0xff] %v5166_v20 }
 0x400   : > { %v5247_v42 = vmax.f32 %v5209_v0, %v5233_v54  ;;  %5189 = vst [vmem:[#allocation3 + $0xb0] sm:$0xff] %v5165_v37 }
 0x402   : > { %v5254_v16 = vmax.f32 %v5246_v61, %v5247_v42 }
 0x403   : > { %v5211_v46 = vld [vmem:[#allocation3 + $0xa0] ss:$2 sm:$0xff]  ;;  %v5235_v12 = vld [vmem:[#allocation3 + $0xa1] ss:$2 sm:$0xff] }
 0x404   : > { %v5263_v36 = vsel %vm5258_vm1, %v5254_v16, 0.0  ;;  %v5248_v44 = vmax.f32 %v5211_v46, %v5235_v12 }
 0x405   : > { %5269 = vst [vmem:[%s8538_s22 + $0x20] sm:$0xff] %v5263_v36 }
 0x407   : > { %v5213_v62 = vld [vmem:[#allocation3 + $0xb0] ss:$2 sm:$0xff]  ;;  %v5237_v51 = vld [vmem:[#allocation3 + $0xb1] ss:$2 sm:$0xff] }
 0x408   : > { %v5249_v47 = vmax.f32 %v5213_v62, %v5237_v51 }
 0x40a   : > { %v5255_v39 = vmax.f32 %v5248_v44, %v5249_v47 }
 0x40c   : > { %v5264_v50 = vsel %vm5258_vm1, %v5255_v39, 0.0 }
 0x40d   : > { %5270 = vst [vmem:[%s8538_s22 + $0x28] sm:$0xff] %v5264_v50 }
 0x40e PF: > { %s15_s18 = sadd.s32 1, %s6506_s18  }
 0x40f   : > { %p12_p4 = scmp.ge.s32.totalorder %s15_s18, 4  }
 0x411   :  { %14 = sbr.rel (!%p12_p4) target bundleno = 1 (0x1), region = 93 }

</bundles_post_ra>
